<compile_context>
chip_gen: v5e
topology: v5e:2x2
jax: 0.10.0
libtpu: 0.0.40
codegen_flags: <defaults>
</compile_context>

<pallas_src>
import jax
import jax.numpy as jnp
from jax.experimental import pallas as pl
from jax.experimental.pallas import tpu as pltpu

C_IN = 3
C1, C2, C3 = 32, 64, 128          # channel widths from the PyTorch module
K1 = 7 * 7 * C_IN                 # conv1 im2col depth (147)
CLS_PAD = 128                     # lane-dense padded class dimension


# --------------------------- wrapper-side helpers --------------------------- #
def _im2col_nhwc(x, kh, kw):
    """Plain-XLA im2col: (B,H,W,C) -> (B, Ho*Wo, kh*kw*C), tap order [kh, kw, c]."""
    B, H, W, C = x.shape
    Ho, Wo = H - kh + 1, W - kw + 1
    taps = [x[:, i:i + Ho, j:j + Wo, :] for i in range(kh) for j in range(kw)]
    return jnp.concatenate(taps, axis=-1).reshape(B, Ho * Wo, kh * kw * C)


# ------------------------------ in-kernel ops ------------------------------ #
def _max_pool_2x2(x_hwc):
    """2x2 stride-2 max pool on (H, W, C); floors odd dims like F.max_pool2d."""
    H, W, C = x_hwc.shape
    He, We = (H // 2) * 2, (W // 2) * 2
    x = x_hwc[:He, :We, :]
    x = x.reshape(He, We // 2, 2, C)
    x = jnp.maximum(x[:, :, 0, :], x[:, :, 1, :])          # pool over width
    x = x.reshape(He // 2, 2, We // 2, C)
    x = jnp.maximum(x[:, 0, :, :], x[:, 1, :, :])          # pool over height
    return x


def _make_kernel(BT, H1, W1):
    """Kernel for BT images per grid step; H1,W1 = spatial size after conv1 (static)."""
    H2, W2 = H1 - 2, W1 - 2            # after conv2
    H2p, W2p = H2 // 2, W2 // 2        # after maxpool
    H3, W3 = H2p - 2, W2p - 2          # after conv3
    H3p, W3p = H3 // 2, W3 // 2        # after maxpool

    def kernel(p1_ref, w1_ref, b1_ref, w2_ref, b2_ref, w3_ref, b3_ref,
               wfc_ref, bfc_ref, out_ref):
        # ---- conv1 (7x7, 3->32): one dense (BT*H1*W1, 147)x(147, 32) MXU matmul ----
        h1 = jnp.dot(p1_ref[0], w1_ref[...], preferred_element_type=jnp.float32)
        h1 = jnp.maximum(h1 + b1_ref[...], 0.0)
        h1 = h1.astype(jnp.bfloat16).reshape(BT, H1, W1, C1)

        # ---- conv2 (3x3, 32->64): bf16 value im2col -> one dense matmul ----
        taps2 = [h1[:, kh:kh + H2, kw:kw + W2, :].reshape(BT * H2 * W2, C1)
                 for kh in range(3) for kw in range(3)]
        p2 = jnp.concatenate(taps2, axis=-1)                 # (BT*H2*W2, 9*C1)
        h2 = jnp.dot(p2, w2_ref[...], preferred_element_type=jnp.float32)
        h2 = jnp.maximum(h2 + b2_ref[...], 0.0).reshape(BT, H2, W2, C2)
        h2 = jnp.stack([_max_pool_2x2(h2[b]) for b in range(BT)], axis=0)
        h2 = h2.astype(jnp.bfloat16)          # dropout1: identity (inference)

        # ---- conv3 (3x3, 64->128): bf16 value im2col -> one dense matmul ----
        taps3 = [h2[:, kh:kh + H3, kw:kw + W3, :].reshape(BT * H3 * W3, C2)
                 for kh in range(3) for kw in range(3)]
        p3 = jnp.concatenate(taps3, axis=-1)                 # (BT*H3*W3, 9*C2)
        h3 = jnp.dot(p3, w3_ref[...], preferred_element_type=jnp.float32)
        h3 = jnp.maximum(h3 + b3_ref[...], 0.0).reshape(BT, H3, W3, C3)
        h3 = jnp.stack([_max_pool_2x2(h3[b]) for b in range(BT)], axis=0)
        # dropout2: identity (inference)

        # ---- adaptive avg pool (1,1): plain sum (1/area folded into wfc) + fc ----
        feat = h3.reshape(BT, H3p * W3p, C3).sum(axis=1)     # (BT, 128) f32
        out = jnp.dot(feat.astype(jnp.bfloat16), wfc_ref[...],
                      preferred_element_type=jnp.float32) + bfc_ref[...]
        out_ref[0] = out.astype(out_ref.dtype)               # (BT, CLS_PAD)

    return kernel


# --------------------------------- wrapper --------------------------------- #
def base_model_forward(x_nchw, params, num_classes, bt=4):
    """x_nchw: (B, 3, H, W) float32 -> (B, num_classes) float32 (inference)."""
    w1, b1, w2, b2, w3, b3, wfc, bfc = params
    B, C, H, W = x_nchw.shape
    assert C == C_IN
    assert num_classes <= CLS_PAD, "num_classes must be <= 128"
    assert H >= 16 and W >= 16, "input must be at least 16x16 for this architecture"

    H1, W1 = H - 6, W - 6
    H2, W2 = H1 - 2, W1 - 2
    H2p, W2p = H2 // 2, W2 // 2
    H3, W3 = H2p - 2, W2p - 2
    H3p, W3p = H3 // 2, W3 // 2
    pool_area = H3p * W3p                       # > 0 by the assert above

    # BT images per grid step: fills MXU rows and amortizes per-step overhead.
    BT = max(1, min(bt, B))
    nsteps = -(-B // BT)
    Bpad = nsteps * BT

    x = jnp.transpose(x_nchw, (0, 2, 3, 1)).astype(jnp.bfloat16)     # NHWC bf16
    if Bpad != B:
        x = jnp.concatenate([x, jnp.zeros((Bpad - B, H, W, C), x.dtype)], axis=0)
    # conv1 im2col in the wrapper (bf16 -> half the HBM bytes of the 49x expansion);
    # reshaped so each grid step reads one dense (BT*H1*W1, 147) slab.
    p1 = _im2col_nhwc(x, 7, 7).reshape(nsteps, BT * H1 * W1, K1)

    # Fold avg-pool 1/area into fc weight; pad classes to 128 for lane-dense stores.
    wfc_eff = (wfc / float(pool_area)).astype(jnp.bfloat16)
    wfc_pad = jnp.zeros((C3, CLS_PAD), jnp.bfloat16).at[:, :num_classes].set(wfc_eff)
    bfc_pad = jnp.zeros((1, CLS_PAD), jnp.float32).at[:, :num_classes].set(
        bfc.astype(jnp.float32))

    # bf16 weights -> bf16 MXU operands and half the weight DMA bytes.
    w1b, w2b, w3b = (w.astype(jnp.bfloat16) for w in (w1, w2, w3))
    b1f, b2f, b3f = (b.astype(jnp.float32) for b in (b1, b2, b3))

    kernel = _make_kernel(BT, H1, W1)

    def resident(a):   # grid-invariant weight/bias: constant index_map, fetched once
        return pl.BlockSpec(a.shape, lambda b: (0, 0))

    out = pl.pallas_call(
        kernel,
        out_shape=jax.ShapeDtypeStruct((nsteps, BT, CLS_PAD), jnp.float32),
        grid=(nsteps,),
        in_specs=[
            pl.BlockSpec((1, BT * H1 * W1, K1), lambda b: (b, 0, 0)),  # conv1 patches
            resident(w1b), resident(b1f),
            resident(w2b), resident(b2f),
            resident(w3b), resident(b3f),
            resident(wfc_pad), resident(bfc_pad),
        ],
        out_specs=pl.BlockSpec((1, BT, CLS_PAD), lambda b: (b, 0, 0)),
        compiler_params=pltpu.CompilerParams(
            dimension_semantics=("parallel",),          # v7x: both TCs take steps
            vmem_limit_bytes=32 * 1024 * 1024),         # explicit v7x-safe budget
    )(p1, w1b, b1f, w2b, b2f, w3b, b3f, wfc_pad, bfc_pad)

    return out.reshape(Bpad, CLS_PAD)[:B, :num_classes]


def init_params(key, num_classes=3):
    ks = jax.random.split(key, 8)
    # conv weights stored pre-flattened in [kh, kw, cin] x cout layout (matches the
    # in-kernel im2col tap order). Pretrained PyTorch OIHW weights would need a
    # transpose to HWIO before this reshape.
    w1 = (jax.random.normal(ks[0], (7, 7, 3, C1), jnp.float32) * 0.08).reshape(K1, C1)
    b1 = jax.random.normal(ks[1], (1, C1), jnp.float32) * 0.01
    w2 = (jax.random.normal(ks[2], (3, 3, C1, C2), jnp.float32) * 0.06).reshape(9 * C1, C2)
    b2 = jax.random.normal(ks[3], (1, C2), jnp.float32) * 0.01
    w3 = (jax.random.normal(ks[4], (3, 3, C2, C3), jnp.float32) * 0.04).reshape(9 * C2, C3)
    b3 = jax.random.normal(ks[5], (1, C3), jnp.float32) * 0.01
    wfc = jax.random.normal(ks[6], (C3, num_classes), jnp.float32) * 0.05
    bfc = jax.random.normal(ks[7], (1, num_classes), jnp.float32) * 0.01
    return w1, b1, w2, b2, w3, b3, wfc, bfc


if __name__ == "__main__":
    key = jax.random.PRNGKey(0)
    kx, kp = jax.random.split(key)

    B, C, H, W = 6, 3, 16, 16          # small NCHW RGB images (PyTorch convention)
    num_classes = 3
    x = jax.random.normal(kx, (B, C, H, W), jnp.float32)
    params = init_params(kp, num_classes=num_classes)

    y = base_model_forward(x, params, num_classes=num_classes, bt=4)
    y = jax.block_until_ready(y)
    assert y.shape == (B, num_classes) and y.dtype == jnp.float32
    print("KERNEL_OK")
</pallas_src>

<mosaic_0001>
module attributes {stable_mosaic.version = 11 : i64} {
  func.func @kernel(%arg0: i32, %arg1: memref<1x400x147xbf16, #tpu.memory_space<vmem>>, %arg2: memref<147x32xbf16, #tpu.memory_space<vmem>>, %arg3: memref<1x32xf32, #tpu.memory_space<vmem>>, %arg4: memref<288x64xbf16, #tpu.memory_space<vmem>>, %arg5: memref<1x64xf32, #tpu.memory_space<vmem>>, %arg6: memref<576x128xbf16, #tpu.memory_space<vmem>>, %arg7: memref<1x128xf32, #tpu.memory_space<vmem>>, %arg8: memref<128x128xbf16, #tpu.memory_space<vmem>>, %arg9: memref<1x128xf32, #tpu.memory_space<vmem>>, %arg10: memref<1x4x128xf32, #tpu.memory_space<vmem>>) attributes {dimension_semantics = [#tpu.dimension_semantics<parallel>], iteration_bounds = array<i64: 2>, scalar_prefetch = 0 : i64, scratch_operands = 0 : i64, tpu.core_type = #tpu.core_type<tc>, window_params = [{transform_indices = @transform_0, window_bounds = array<i64: 1, 400, 147>}, {pipeline_mode = #tpu.pipeline_mode<synchronous>, transform_indices = @transform_1, window_bounds = array<i64: 147, 32>}, {pipeline_mode = #tpu.pipeline_mode<synchronous>, transform_indices = @transform_2, window_bounds = array<i64: 1, 32>}, {pipeline_mode = #tpu.pipeline_mode<synchronous>, transform_indices = @transform_3, window_bounds = array<i64: 288, 64>}, {pipeline_mode = #tpu.pipeline_mode<synchronous>, transform_indices = @transform_4, window_bounds = array<i64: 1, 64>}, {pipeline_mode = #tpu.pipeline_mode<synchronous>, transform_indices = @transform_5, window_bounds = array<i64: 576, 128>}, {pipeline_mode = #tpu.pipeline_mode<synchronous>, transform_indices = @transform_6, window_bounds = array<i64: 1, 128>}, {pipeline_mode = #tpu.pipeline_mode<synchronous>, transform_indices = @transform_7, window_bounds = array<i64: 128, 128>}, {pipeline_mode = #tpu.pipeline_mode<synchronous>, transform_indices = @transform_8, window_bounds = array<i64: 1, 128>}, {transform_indices = @transform_9, window_bounds = array<i64: 1, 4, 128>}]} {
    %c0 = arith.constant 0 : index
    %c0_0 = arith.constant 0 : index
    %c0_1 = arith.constant 0 : index
    %0 = vector.load %arg1[%c0, %c0_0, %c0_1] : memref<1x400x147xbf16, #tpu.memory_space<vmem>>, vector<1x400x147xbf16>
    %1 = vector.shape_cast %0 : vector<1x400x147xbf16> to vector<400x147xbf16>
    %c0_2 = arith.constant 0 : index
    %c0_3 = arith.constant 0 : index
    %2 = vector.load %arg2[%c0_2, %c0_3] : memref<147x32xbf16, #tpu.memory_space<vmem>>, vector<147x32xbf16>
    %cst = arith.constant dense<0.000000e+00> : vector<400x32xf32>
    %3 = tpu.matmul %1, %2, %cst {dimension_numbers = #tpu.dot_dimension_numbers<[1], [0], [0], [1], [0, 0, 1, 1], [], []>} : vector<400x147xbf16>, vector<147x32xbf16>, vector<400x32xf32> -> vector<400x32xf32>
    %c0_4 = arith.constant 0 : index
    %c0_5 = arith.constant 0 : index
    %4 = vector.load %arg3[%c0_4, %c0_5] : memref<1x32xf32, #tpu.memory_space<vmem>>, vector<1x32xf32>
    %5 = vector.broadcast %4 : vector<1x32xf32> to vector<400x32xf32>
    %6 = arith.addf %3, %5 : vector<400x32xf32>
    %cst_6 = arith.constant 0.000000e+00 : f32
    %7 = vector.broadcast %cst_6 : f32 to vector<400x32xf32>
    %8 = arith.maximumf %6, %7 : vector<400x32xf32>
    %9 = arith.truncf %8 : vector<400x32xf32> to vector<400x32xbf16>
    %10 = vector.shape_cast %9 : vector<400x32xbf16> to vector<4x10x10x32xbf16>
    %11 = vector.extract_strided_slice %10 {offsets = [0, 0, 0, 0], sizes = [4, 8, 8, 32], strides = [1, 1, 1, 1]} : vector<4x10x10x32xbf16> to vector<4x8x8x32xbf16>
    %12 = vector.shape_cast %11 : vector<4x8x8x32xbf16> to vector<256x32xbf16>
    %13 = vector.extract_strided_slice %10 {offsets = [0, 0, 1, 0], sizes = [4, 8, 8, 32], strides = [1, 1, 1, 1]} : vector<4x10x10x32xbf16> to vector<4x8x8x32xbf16>
    %14 = vector.shape_cast %13 : vector<4x8x8x32xbf16> to vector<256x32xbf16>
    %15 = vector.extract_strided_slice %10 {offsets = [0, 0, 2, 0], sizes = [4, 8, 8, 32], strides = [1, 1, 1, 1]} : vector<4x10x10x32xbf16> to vector<4x8x8x32xbf16>
    %16 = vector.shape_cast %15 : vector<4x8x8x32xbf16> to vector<256x32xbf16>
    %17 = vector.extract_strided_slice %10 {offsets = [0, 1, 0, 0], sizes = [4, 8, 8, 32], strides = [1, 1, 1, 1]} : vector<4x10x10x32xbf16> to vector<4x8x8x32xbf16>
    %18 = vector.shape_cast %17 : vector<4x8x8x32xbf16> to vector<256x32xbf16>
    %19 = vector.extract_strided_slice %10 {offsets = [0, 1, 1, 0], sizes = [4, 8, 8, 32], strides = [1, 1, 1, 1]} : vector<4x10x10x32xbf16> to vector<4x8x8x32xbf16>
    %20 = vector.shape_cast %19 : vector<4x8x8x32xbf16> to vector<256x32xbf16>
    %21 = vector.extract_strided_slice %10 {offsets = [0, 1, 2, 0], sizes = [4, 8, 8, 32], strides = [1, 1, 1, 1]} : vector<4x10x10x32xbf16> to vector<4x8x8x32xbf16>
    %22 = vector.shape_cast %21 : vector<4x8x8x32xbf16> to vector<256x32xbf16>
    %23 = vector.extract_strided_slice %10 {offsets = [0, 2, 0, 0], sizes = [4, 8, 8, 32], strides = [1, 1, 1, 1]} : vector<4x10x10x32xbf16> to vector<4x8x8x32xbf16>
    %24 = vector.shape_cast %23 : vector<4x8x8x32xbf16> to vector<256x32xbf16>
    %25 = vector.extract_strided_slice %10 {offsets = [0, 2, 1, 0], sizes = [4, 8, 8, 32], strides = [1, 1, 1, 1]} : vector<4x10x10x32xbf16> to vector<4x8x8x32xbf16>
    %26 = vector.shape_cast %25 : vector<4x8x8x32xbf16> to vector<256x32xbf16>
    %27 = vector.extract_strided_slice %10 {offsets = [0, 2, 2, 0], sizes = [4, 8, 8, 32], strides = [1, 1, 1, 1]} : vector<4x10x10x32xbf16> to vector<4x8x8x32xbf16>
    %28 = vector.shape_cast %27 : vector<4x8x8x32xbf16> to vector<256x32xbf16>
    %29 = tpu.concatenate %12, %14, %16, %18, %20, %22, %24, %26, %28 in 1 : vector<256x32xbf16>, vector<256x32xbf16>, vector<256x32xbf16>, vector<256x32xbf16>, vector<256x32xbf16>, vector<256x32xbf16>, vector<256x32xbf16>, vector<256x32xbf16>, vector<256x32xbf16> -> vector<256x288xbf16>
    %c0_7 = arith.constant 0 : index
    %c0_8 = arith.constant 0 : index
    %30 = vector.load %arg4[%c0_7, %c0_8] : memref<288x64xbf16, #tpu.memory_space<vmem>>, vector<288x64xbf16>
    %cst_9 = arith.constant dense<0.000000e+00> : vector<256x64xf32>
    %31 = tpu.matmul %29, %30, %cst_9 {dimension_numbers = #tpu.dot_dimension_numbers<[1], [0], [0], [1], [0, 0, 1, 1], [], []>} : vector<256x288xbf16>, vector<288x64xbf16>, vector<256x64xf32> -> vector<256x64xf32>
    %c0_10 = arith.constant 0 : index
    %c0_11 = arith.constant 0 : index
    %32 = vector.load %arg5[%c0_10, %c0_11] : memref<1x64xf32, #tpu.memory_space<vmem>>, vector<1x64xf32>
    %33 = vector.broadcast %32 : vector<1x64xf32> to vector<256x64xf32>
    %34 = arith.addf %31, %33 : vector<256x64xf32>
    %cst_12 = arith.constant 0.000000e+00 : f32
    %35 = vector.broadcast %cst_12 : f32 to vector<256x64xf32>
    %36 = arith.maximumf %34, %35 : vector<256x64xf32>
    %37 = vector.shape_cast %36 : vector<256x64xf32> to vector<4x8x8x64xf32>
    %38 = vector.extract_strided_slice %37 {offsets = [0, 0, 0, 0], sizes = [1, 8, 8, 64], strides = [1, 1, 1, 1]} : vector<4x8x8x64xf32> to vector<1x8x8x64xf32>
    %39 = vector.shape_cast %38 : vector<1x8x8x64xf32> to vector<8x8x64xf32>
    %40 = vector.shape_cast %39 : vector<8x8x64xf32> to vector<8x4x2x64xf32>
    %41 = vector.extract_strided_slice %40 {offsets = [0, 0, 0, 0], sizes = [8, 4, 1, 64], strides = [1, 1, 1, 1]} : vector<8x4x2x64xf32> to vector<8x4x1x64xf32>
    %42 = vector.shape_cast %41 : vector<8x4x1x64xf32> to vector<8x4x64xf32>
    %43 = vector.extract_strided_slice %40 {offsets = [0, 0, 1, 0], sizes = [8, 4, 1, 64], strides = [1, 1, 1, 1]} : vector<8x4x2x64xf32> to vector<8x4x1x64xf32>
    %44 = vector.shape_cast %43 : vector<8x4x1x64xf32> to vector<8x4x64xf32>
    %45 = arith.maximumf %42, %44 : vector<8x4x64xf32>
    %46 = vector.shape_cast %45 : vector<8x4x64xf32> to vector<4x2x4x64xf32>
    %47 = vector.extract_strided_slice %46 {offsets = [0, 0, 0, 0], sizes = [4, 1, 4, 64], strides = [1, 1, 1, 1]} : vector<4x2x4x64xf32> to vector<4x1x4x64xf32>
    %48 = vector.shape_cast %47 : vector<4x1x4x64xf32> to vector<4x4x64xf32>
    %49 = vector.extract_strided_slice %46 {offsets = [0, 1, 0, 0], sizes = [4, 1, 4, 64], strides = [1, 1, 1, 1]} : vector<4x2x4x64xf32> to vector<4x1x4x64xf32>
    %50 = vector.shape_cast %49 : vector<4x1x4x64xf32> to vector<4x4x64xf32>
    %51 = arith.maximumf %48, %50 : vector<4x4x64xf32>
    %52 = vector.extract_strided_slice %37 {offsets = [1, 0, 0, 0], sizes = [1, 8, 8, 64], strides = [1, 1, 1, 1]} : vector<4x8x8x64xf32> to vector<1x8x8x64xf32>
    %53 = vector.shape_cast %52 : vector<1x8x8x64xf32> to vector<8x8x64xf32>
    %54 = vector.shape_cast %53 : vector<8x8x64xf32> to vector<8x4x2x64xf32>
    %55 = vector.extract_strided_slice %54 {offsets = [0, 0, 0, 0], sizes = [8, 4, 1, 64], strides = [1, 1, 1, 1]} : vector<8x4x2x64xf32> to vector<8x4x1x64xf32>
    %56 = vector.shape_cast %55 : vector<8x4x1x64xf32> to vector<8x4x64xf32>
    %57 = vector.extract_strided_slice %54 {offsets = [0, 0, 1, 0], sizes = [8, 4, 1, 64], strides = [1, 1, 1, 1]} : vector<8x4x2x64xf32> to vector<8x4x1x64xf32>
    %58 = vector.shape_cast %57 : vector<8x4x1x64xf32> to vector<8x4x64xf32>
    %59 = arith.maximumf %56, %58 : vector<8x4x64xf32>
    %60 = vector.shape_cast %59 : vector<8x4x64xf32> to vector<4x2x4x64xf32>
    %61 = vector.extract_strided_slice %60 {offsets = [0, 0, 0, 0], sizes = [4, 1, 4, 64], strides = [1, 1, 1, 1]} : vector<4x2x4x64xf32> to vector<4x1x4x64xf32>
    %62 = vector.shape_cast %61 : vector<4x1x4x64xf32> to vector<4x4x64xf32>
    %63 = vector.extract_strided_slice %60 {offsets = [0, 1, 0, 0], sizes = [4, 1, 4, 64], strides = [1, 1, 1, 1]} : vector<4x2x4x64xf32> to vector<4x1x4x64xf32>
    %64 = vector.shape_cast %63 : vector<4x1x4x64xf32> to vector<4x4x64xf32>
    %65 = arith.maximumf %62, %64 : vector<4x4x64xf32>
    %66 = vector.extract_strided_slice %37 {offsets = [2, 0, 0, 0], sizes = [1, 8, 8, 64], strides = [1, 1, 1, 1]} : vector<4x8x8x64xf32> to vector<1x8x8x64xf32>
    %67 = vector.shape_cast %66 : vector<1x8x8x64xf32> to vector<8x8x64xf32>
    %68 = vector.shape_cast %67 : vector<8x8x64xf32> to vector<8x4x2x64xf32>
    %69 = vector.extract_strided_slice %68 {offsets = [0, 0, 0, 0], sizes = [8, 4, 1, 64], strides = [1, 1, 1, 1]} : vector<8x4x2x64xf32> to vector<8x4x1x64xf32>
    %70 = vector.shape_cast %69 : vector<8x4x1x64xf32> to vector<8x4x64xf32>
    %71 = vector.extract_strided_slice %68 {offsets = [0, 0, 1, 0], sizes = [8, 4, 1, 64], strides = [1, 1, 1, 1]} : vector<8x4x2x64xf32> to vector<8x4x1x64xf32>
    %72 = vector.shape_cast %71 : vector<8x4x1x64xf32> to vector<8x4x64xf32>
    %73 = arith.maximumf %70, %72 : vector<8x4x64xf32>
    %74 = vector.shape_cast %73 : vector<8x4x64xf32> to vector<4x2x4x64xf32>
    %75 = vector.extract_strided_slice %74 {offsets = [0, 0, 0, 0], sizes = [4, 1, 4, 64], strides = [1, 1, 1, 1]} : vector<4x2x4x64xf32> to vector<4x1x4x64xf32>
    %76 = vector.shape_cast %75 : vector<4x1x4x64xf32> to vector<4x4x64xf32>
    %77 = vector.extract_strided_slice %74 {offsets = [0, 1, 0, 0], sizes = [4, 1, 4, 64], strides = [1, 1, 1, 1]} : vector<4x2x4x64xf32> to vector<4x1x4x64xf32>
    %78 = vector.shape_cast %77 : vector<4x1x4x64xf32> to vector<4x4x64xf32>
    %79 = arith.maximumf %76, %78 : vector<4x4x64xf32>
    %80 = vector.extract_strided_slice %37 {offsets = [3, 0, 0, 0], sizes = [1, 8, 8, 64], strides = [1, 1, 1, 1]} : vector<4x8x8x64xf32> to vector<1x8x8x64xf32>
    %81 = vector.shape_cast %80 : vector<1x8x8x64xf32> to vector<8x8x64xf32>
    %82 = vector.shape_cast %81 : vector<8x8x64xf32> to vector<8x4x2x64xf32>
    %83 = vector.extract_strided_slice %82 {offsets = [0, 0, 0, 0], sizes = [8, 4, 1, 64], strides = [1, 1, 1, 1]} : vector<8x4x2x64xf32> to vector<8x4x1x64xf32>
    %84 = vector.shape_cast %83 : vector<8x4x1x64xf32> to vector<8x4x64xf32>
    %85 = vector.extract_strided_slice %82 {offsets = [0, 0, 1, 0], sizes = [8, 4, 1, 64], strides = [1, 1, 1, 1]} : vector<8x4x2x64xf32> to vector<8x4x1x64xf32>
    %86 = vector.shape_cast %85 : vector<8x4x1x64xf32> to vector<8x4x64xf32>
    %87 = arith.maximumf %84, %86 : vector<8x4x64xf32>
    %88 = vector.shape_cast %87 : vector<8x4x64xf32> to vector<4x2x4x64xf32>
    %89 = vector.extract_strided_slice %88 {offsets = [0, 0, 0, 0], sizes = [4, 1, 4, 64], strides = [1, 1, 1, 1]} : vector<4x2x4x64xf32> to vector<4x1x4x64xf32>
    %90 = vector.shape_cast %89 : vector<4x1x4x64xf32> to vector<4x4x64xf32>
    %91 = vector.extract_strided_slice %88 {offsets = [0, 1, 0, 0], sizes = [4, 1, 4, 64], strides = [1, 1, 1, 1]} : vector<4x2x4x64xf32> to vector<4x1x4x64xf32>
    %92 = vector.shape_cast %91 : vector<4x1x4x64xf32> to vector<4x4x64xf32>
    %93 = arith.maximumf %90, %92 : vector<4x4x64xf32>
    %94 = vector.shape_cast %51 : vector<4x4x64xf32> to vector<1x4x4x64xf32>
    %95 = vector.shape_cast %65 : vector<4x4x64xf32> to vector<1x4x4x64xf32>
    %96 = vector.shape_cast %79 : vector<4x4x64xf32> to vector<1x4x4x64xf32>
    %97 = vector.shape_cast %93 : vector<4x4x64xf32> to vector<1x4x4x64xf32>
    %98 = tpu.concatenate %94, %95, %96, %97 in 0 : vector<1x4x4x64xf32>, vector<1x4x4x64xf32>, vector<1x4x4x64xf32>, vector<1x4x4x64xf32> -> vector<4x4x4x64xf32>
    %99 = arith.truncf %98 : vector<4x4x4x64xf32> to vector<4x4x4x64xbf16>
    %100 = vector.extract_strided_slice %99 {offsets = [0, 0, 0, 0], sizes = [4, 2, 2, 64], strides = [1, 1, 1, 1]} : vector<4x4x4x64xbf16> to vector<4x2x2x64xbf16>
    %101 = vector.shape_cast %100 : vector<4x2x2x64xbf16> to vector<16x64xbf16>
    %102 = vector.extract_strided_slice %99 {offsets = [0, 0, 1, 0], sizes = [4, 2, 2, 64], strides = [1, 1, 1, 1]} : vector<4x4x4x64xbf16> to vector<4x2x2x64xbf16>
    %103 = vector.shape_cast %102 : vector<4x2x2x64xbf16> to vector<16x64xbf16>
    %104 = vector.extract_strided_slice %99 {offsets = [0, 0, 2, 0], sizes = [4, 2, 2, 64], strides = [1, 1, 1, 1]} : vector<4x4x4x64xbf16> to vector<4x2x2x64xbf16>
    %105 = vector.shape_cast %104 : vector<4x2x2x64xbf16> to vector<16x64xbf16>
    %106 = vector.extract_strided_slice %99 {offsets = [0, 1, 0, 0], sizes = [4, 2, 2, 64], strides = [1, 1, 1, 1]} : vector<4x4x4x64xbf16> to vector<4x2x2x64xbf16>
    %107 = vector.shape_cast %106 : vector<4x2x2x64xbf16> to vector<16x64xbf16>
    %108 = vector.extract_strided_slice %99 {offsets = [0, 1, 1, 0], sizes = [4, 2, 2, 64], strides = [1, 1, 1, 1]} : vector<4x4x4x64xbf16> to vector<4x2x2x64xbf16>
    %109 = vector.shape_cast %108 : vector<4x2x2x64xbf16> to vector<16x64xbf16>
    %110 = vector.extract_strided_slice %99 {offsets = [0, 1, 2, 0], sizes = [4, 2, 2, 64], strides = [1, 1, 1, 1]} : vector<4x4x4x64xbf16> to vector<4x2x2x64xbf16>
    %111 = vector.shape_cast %110 : vector<4x2x2x64xbf16> to vector<16x64xbf16>
    %112 = vector.extract_strided_slice %99 {offsets = [0, 2, 0, 0], sizes = [4, 2, 2, 64], strides = [1, 1, 1, 1]} : vector<4x4x4x64xbf16> to vector<4x2x2x64xbf16>
    %113 = vector.shape_cast %112 : vector<4x2x2x64xbf16> to vector<16x64xbf16>
    %114 = vector.extract_strided_slice %99 {offsets = [0, 2, 1, 0], sizes = [4, 2, 2, 64], strides = [1, 1, 1, 1]} : vector<4x4x4x64xbf16> to vector<4x2x2x64xbf16>
    %115 = vector.shape_cast %114 : vector<4x2x2x64xbf16> to vector<16x64xbf16>
    %116 = vector.extract_strided_slice %99 {offsets = [0, 2, 2, 0], sizes = [4, 2, 2, 64], strides = [1, 1, 1, 1]} : vector<4x4x4x64xbf16> to vector<4x2x2x64xbf16>
    %117 = vector.shape_cast %116 : vector<4x2x2x64xbf16> to vector<16x64xbf16>
    %118 = tpu.concatenate %101, %103, %105, %107, %109, %111, %113, %115, %117 in 1 : vector<16x64xbf16>, vector<16x64xbf16>, vector<16x64xbf16>, vector<16x64xbf16>, vector<16x64xbf16>, vector<16x64xbf16>, vector<16x64xbf16>, vector<16x64xbf16>, vector<16x64xbf16> -> vector<16x576xbf16>
    %c0_13 = arith.constant 0 : index
    %c0_14 = arith.constant 0 : index
    %119 = vector.load %arg6[%c0_13, %c0_14] : memref<576x128xbf16, #tpu.memory_space<vmem>>, vector<576x128xbf16>
    %cst_15 = arith.constant dense<0.000000e+00> : vector<16x128xf32>
    %120 = tpu.matmul %118, %119, %cst_15 {dimension_numbers = #tpu.dot_dimension_numbers<[1], [0], [0], [1], [0, 0, 1, 1], [], []>} : vector<16x576xbf16>, vector<576x128xbf16>, vector<16x128xf32> -> vector<16x128xf32>
    %c0_16 = arith.constant 0 : index
    %c0_17 = arith.constant 0 : index
    %121 = vector.load %arg7[%c0_16, %c0_17] : memref<1x128xf32, #tpu.memory_space<vmem>>, vector<1x128xf32>
    %122 = vector.broadcast %121 : vector<1x128xf32> to vector<16x128xf32>
    %123 = arith.addf %120, %122 : vector<16x128xf32>
    %cst_18 = arith.constant 0.000000e+00 : f32
    %124 = vector.broadcast %cst_18 : f32 to vector<16x128xf32>
    %125 = arith.maximumf %123, %124 : vector<16x128xf32>
    %126 = vector.shape_cast %125 : vector<16x128xf32> to vector<4x2x2x128xf32>
    %127 = vector.extract_strided_slice %126 {offsets = [0, 0, 0, 0], sizes = [1, 2, 2, 128], strides = [1, 1, 1, 1]} : vector<4x2x2x128xf32> to vector<1x2x2x128xf32>
    %128 = vector.shape_cast %127 : vector<1x2x2x128xf32> to vector<2x2x128xf32>
    %129 = vector.shape_cast %128 : vector<2x2x128xf32> to vector<2x1x2x128xf32>
    %130 = vector.extract_strided_slice %129 {offsets = [0, 0, 0, 0], sizes = [2, 1, 1, 128], strides = [1, 1, 1, 1]} : vector<2x1x2x128xf32> to vector<2x1x1x128xf32>
    %131 = vector.shape_cast %130 : vector<2x1x1x128xf32> to vector<2x1x128xf32>
    %132 = vector.extract_strided_slice %129 {offsets = [0, 0, 1, 0], sizes = [2, 1, 1, 128], strides = [1, 1, 1, 1]} : vector<2x1x2x128xf32> to vector<2x1x1x128xf32>
    %133 = vector.shape_cast %132 : vector<2x1x1x128xf32> to vector<2x1x128xf32>
    %134 = arith.maximumf %131, %133 : vector<2x1x128xf32>
    %135 = vector.shape_cast %134 : vector<2x1x128xf32> to vector<1x2x1x128xf32>
    %136 = vector.extract_strided_slice %135 {offsets = [0, 0, 0, 0], sizes = [1, 1, 1, 128], strides = [1, 1, 1, 1]} : vector<1x2x1x128xf32> to vector<1x1x1x128xf32>
    %137 = vector.shape_cast %136 : vector<1x1x1x128xf32> to vector<1x1x128xf32>
    %138 = vector.extract_strided_slice %135 {offsets = [0, 1, 0, 0], sizes = [1, 1, 1, 128], strides = [1, 1, 1, 1]} : vector<1x2x1x128xf32> to vector<1x1x1x128xf32>
    %139 = vector.shape_cast %138 : vector<1x1x1x128xf32> to vector<1x1x128xf32>
    %140 = arith.maximumf %137, %139 : vector<1x1x128xf32>
    %141 = vector.extract_strided_slice %126 {offsets = [1, 0, 0, 0], sizes = [1, 2, 2, 128], strides = [1, 1, 1, 1]} : vector<4x2x2x128xf32> to vector<1x2x2x128xf32>
    %142 = vector.shape_cast %141 : vector<1x2x2x128xf32> to vector<2x2x128xf32>
    %143 = vector.shape_cast %142 : vector<2x2x128xf32> to vector<2x1x2x128xf32>
    %144 = vector.extract_strided_slice %143 {offsets = [0, 0, 0, 0], sizes = [2, 1, 1, 128], strides = [1, 1, 1, 1]} : vector<2x1x2x128xf32> to vector<2x1x1x128xf32>
    %145 = vector.shape_cast %144 : vector<2x1x1x128xf32> to vector<2x1x128xf32>
    %146 = vector.extract_strided_slice %143 {offsets = [0, 0, 1, 0], sizes = [2, 1, 1, 128], strides = [1, 1, 1, 1]} : vector<2x1x2x128xf32> to vector<2x1x1x128xf32>
    %147 = vector.shape_cast %146 : vector<2x1x1x128xf32> to vector<2x1x128xf32>
    %148 = arith.maximumf %145, %147 : vector<2x1x128xf32>
    %149 = vector.shape_cast %148 : vector<2x1x128xf32> to vector<1x2x1x128xf32>
    %150 = vector.extract_strided_slice %149 {offsets = [0, 0, 0, 0], sizes = [1, 1, 1, 128], strides = [1, 1, 1, 1]} : vector<1x2x1x128xf32> to vector<1x1x1x128xf32>
    %151 = vector.shape_cast %150 : vector<1x1x1x128xf32> to vector<1x1x128xf32>
    %152 = vector.extract_strided_slice %149 {offsets = [0, 1, 0, 0], sizes = [1, 1, 1, 128], strides = [1, 1, 1, 1]} : vector<1x2x1x128xf32> to vector<1x1x1x128xf32>
    %153 = vector.shape_cast %152 : vector<1x1x1x128xf32> to vector<1x1x128xf32>
    %154 = arith.maximumf %151, %153 : vector<1x1x128xf32>
    %155 = vector.extract_strided_slice %126 {offsets = [2, 0, 0, 0], sizes = [1, 2, 2, 128], strides = [1, 1, 1, 1]} : vector<4x2x2x128xf32> to vector<1x2x2x128xf32>
    %156 = vector.shape_cast %155 : vector<1x2x2x128xf32> to vector<2x2x128xf32>
    %157 = vector.shape_cast %156 : vector<2x2x128xf32> to vector<2x1x2x128xf32>
    %158 = vector.extract_strided_slice %157 {offsets = [0, 0, 0, 0], sizes = [2, 1, 1, 128], strides = [1, 1, 1, 1]} : vector<2x1x2x128xf32> to vector<2x1x1x128xf32>
    %159 = vector.shape_cast %158 : vector<2x1x1x128xf32> to vector<2x1x128xf32>
    %160 = vector.extract_strided_slice %157 {offsets = [0, 0, 1, 0], sizes = [2, 1, 1, 128], strides = [1, 1, 1, 1]} : vector<2x1x2x128xf32> to vector<2x1x1x128xf32>
    %161 = vector.shape_cast %160 : vector<2x1x1x128xf32> to vector<2x1x128xf32>
    %162 = arith.maximumf %159, %161 : vector<2x1x128xf32>
    %163 = vector.shape_cast %162 : vector<2x1x128xf32> to vector<1x2x1x128xf32>
    %164 = vector.extract_strided_slice %163 {offsets = [0, 0, 0, 0], sizes = [1, 1, 1, 128], strides = [1, 1, 1, 1]} : vector<1x2x1x128xf32> to vector<1x1x1x128xf32>
    %165 = vector.shape_cast %164 : vector<1x1x1x128xf32> to vector<1x1x128xf32>
    %166 = vector.extract_strided_slice %163 {offsets = [0, 1, 0, 0], sizes = [1, 1, 1, 128], strides = [1, 1, 1, 1]} : vector<1x2x1x128xf32> to vector<1x1x1x128xf32>
    %167 = vector.shape_cast %166 : vector<1x1x1x128xf32> to vector<1x1x128xf32>
    %168 = arith.maximumf %165, %167 : vector<1x1x128xf32>
    %169 = vector.extract_strided_slice %126 {offsets = [3, 0, 0, 0], sizes = [1, 2, 2, 128], strides = [1, 1, 1, 1]} : vector<4x2x2x128xf32> to vector<1x2x2x128xf32>
    %170 = vector.shape_cast %169 : vector<1x2x2x128xf32> to vector<2x2x128xf32>
    %171 = vector.shape_cast %170 : vector<2x2x128xf32> to vector<2x1x2x128xf32>
    %172 = vector.extract_strided_slice %171 {offsets = [0, 0, 0, 0], sizes = [2, 1, 1, 128], strides = [1, 1, 1, 1]} : vector<2x1x2x128xf32> to vector<2x1x1x128xf32>
    %173 = vector.shape_cast %172 : vector<2x1x1x128xf32> to vector<2x1x128xf32>
    %174 = vector.extract_strided_slice %171 {offsets = [0, 0, 1, 0], sizes = [2, 1, 1, 128], strides = [1, 1, 1, 1]} : vector<2x1x2x128xf32> to vector<2x1x1x128xf32>
    %175 = vector.shape_cast %174 : vector<2x1x1x128xf32> to vector<2x1x128xf32>
    %176 = arith.maximumf %173, %175 : vector<2x1x128xf32>
    %177 = vector.shape_cast %176 : vector<2x1x128xf32> to vector<1x2x1x128xf32>
    %178 = vector.extract_strided_slice %177 {offsets = [0, 0, 0, 0], sizes = [1, 1, 1, 128], strides = [1, 1, 1, 1]} : vector<1x2x1x128xf32> to vector<1x1x1x128xf32>
    %179 = vector.shape_cast %178 : vector<1x1x1x128xf32> to vector<1x1x128xf32>
    %180 = vector.extract_strided_slice %177 {offsets = [0, 1, 0, 0], sizes = [1, 1, 1, 128], strides = [1, 1, 1, 1]} : vector<1x2x1x128xf32> to vector<1x1x1x128xf32>
    %181 = vector.shape_cast %180 : vector<1x1x1x128xf32> to vector<1x1x128xf32>
    %182 = arith.maximumf %179, %181 : vector<1x1x128xf32>
    %183 = vector.shape_cast %140 : vector<1x1x128xf32> to vector<1x1x1x128xf32>
    %184 = vector.shape_cast %154 : vector<1x1x128xf32> to vector<1x1x1x128xf32>
    %185 = vector.shape_cast %168 : vector<1x1x128xf32> to vector<1x1x1x128xf32>
    %186 = vector.shape_cast %182 : vector<1x1x128xf32> to vector<1x1x1x128xf32>
    %187 = tpu.concatenate %183, %184, %185, %186 in 0 : vector<1x1x1x128xf32>, vector<1x1x1x128xf32>, vector<1x1x1x128xf32>, vector<1x1x1x128xf32> -> vector<4x1x1x128xf32>
    %188 = vector.shape_cast %187 : vector<4x1x1x128xf32> to vector<4x1x128xf32>
    %cst_19 = arith.constant dense<0.000000e+00> : vector<4x128xf32>
    %189 = vector.multi_reduction <add>, %188, %cst_19 [1] : vector<4x1x128xf32> to vector<4x128xf32>
    %190 = arith.truncf %189 : vector<4x128xf32> to vector<4x128xbf16>
    %c0_20 = arith.constant 0 : index
    %c0_21 = arith.constant 0 : index
    %191 = vector.load %arg8[%c0_20, %c0_21] : memref<128x128xbf16, #tpu.memory_space<vmem>>, vector<128x128xbf16>
    %cst_22 = arith.constant dense<0.000000e+00> : vector<4x128xf32>
    %192 = tpu.matmul %190, %191, %cst_22 {dimension_numbers = #tpu.dot_dimension_numbers<[1], [0], [0], [1], [0, 0, 1, 1], [], []>} : vector<4x128xbf16>, vector<128x128xbf16>, vector<4x128xf32> -> vector<4x128xf32>
    %c0_23 = arith.constant 0 : index
    %c0_24 = arith.constant 0 : index
    %193 = vector.load %arg9[%c0_23, %c0_24] : memref<1x128xf32, #tpu.memory_space<vmem>>, vector<1x128xf32>
    %194 = vector.broadcast %193 : vector<1x128xf32> to vector<4x128xf32>
    %195 = arith.addf %192, %194 : vector<4x128xf32>
    %c0_25 = arith.constant 0 : index
    %c0_26 = arith.constant 0 : index
    %c0_27 = arith.constant 0 : index
    %196 = vector.load %arg10[%c0_25, %c0_26, %c0_27] : memref<1x4x128xf32, #tpu.memory_space<vmem>>, vector<1x4x128xf32>
    %197 = vector.shape_cast %196 : vector<1x4x128xf32> to vector<4x128xf32>
    %198 = vector.shape_cast %195 : vector<4x128xf32> to vector<1x4x128xf32>
    tpu.vector_store %arg10[%c0_25, %c0_26, %c0_27], %198 {strides = array<i32>} : memref<1x4x128xf32, #tpu.memory_space<vmem>>, vector<1x4x128xf32>,
    return
  }
  func.func @transform_0(%arg0: i32) -> (i32, i32, i32) {
    %c0_i32 = arith.constant 0 : i32
    %c0_i32_0 = arith.constant 0 : i32
    %c0_i32_1 = arith.constant 0 : i32
    return %arg0, %c0_i32, %c0_i32_0 : i32, i32, i32
  }
  func.func @transform_1(%arg0: i32) -> (i32, i32) {
    %c0_i32 = arith.constant 0 : i32
    %c0_i32_0 = arith.constant 0 : i32
    %c0_i32_1 = arith.constant 0 : i32
    return %c0_i32, %c0_i32_0 : i32, i32
  }
  func.func @transform_2(%arg0: i32) -> (i32, i32) {
    %c0_i32 = arith.constant 0 : i32
    %c0_i32_0 = arith.constant 0 : i32
    %c0_i32_1 = arith.constant 0 : i32
    return %c0_i32, %c0_i32_0 : i32, i32
  }
  func.func @transform_3(%arg0: i32) -> (i32, i32) {
    %c0_i32 = arith.constant 0 : i32
    %c0_i32_0 = arith.constant 0 : i32
    %c0_i32_1 = arith.constant 0 : i32
    return %c0_i32, %c0_i32_0 : i32, i32
  }
  func.func @transform_4(%arg0: i32) -> (i32, i32) {
    %c0_i32 = arith.constant 0 : i32
    %c0_i32_0 = arith.constant 0 : i32
    %c0_i32_1 = arith.constant 0 : i32
    return %c0_i32, %c0_i32_0 : i32, i32
  }
  func.func @transform_5(%arg0: i32) -> (i32, i32) {
    %c0_i32 = arith.constant 0 : i32
    %c0_i32_0 = arith.constant 0 : i32
    %c0_i32_1 = arith.constant 0 : i32
    return %c0_i32, %c0_i32_0 : i32, i32
  }
  func.func @transform_6(%arg0: i32) -> (i32, i32) {
    %c0_i32 = arith.constant 0 : i32
    %c0_i32_0 = arith.constant 0 : i32
    %c0_i32_1 = arith.constant 0 : i32
    return %c0_i32, %c0_i32_0 : i32, i32
  }
  func.func @transform_7(%arg0: i32) -> (i32, i32) {
    %c0_i32 = arith.constant 0 : i32
    %c0_i32_0 = arith.constant 0 : i32
    %c0_i32_1 = arith.constant 0 : i32
    return %c0_i32, %c0_i32_0 : i32, i32
  }
  func.func @transform_8(%arg0: i32) -> (i32, i32) {
    %c0_i32 = arith.constant 0 : i32
    %c0_i32_0 = arith.constant 0 : i32
    %c0_i32_1 = arith.constant 0 : i32
    return %c0_i32, %c0_i32_0 : i32, i32
  }
  func.func @transform_9(%arg0: i32) -> (i32, i32, i32) {
    %c0_i32 = arith.constant 0 : i32
    %c0_i32_0 = arith.constant 0 : i32
    %c0_i32_1 = arith.constant 0 : i32
    return %arg0, %c0_i32, %c0_i32_0 : i32, i32, i32
  }
}

</mosaic_0001>

<bundles_post_ra>
// kernel: tpu_custom_call.1
= control target key start
LH: loop header
LB: loop body
LE: loop exit
PB: predicated region body
PF: predicated region fallthrough
CT: control target
= control target key end

     0   :  { %s13829_s0 = inlined_call_operand.vmem [shape: bf16[2,400,147], index: 0, kind: input, shape index: {}]   ;;  %s13830_s1 = inlined_call_operand.vmem [shape: bf16[147,32], index: 1, kind: input, shape index: {}]   ;;  %s13831_s2 = inlined_call_operand.vmem [shape: f32[1,32], index: 2, kind: input, shape index: {}]   ;;  %s13832_s3 = inlined_call_operand.vmem [shape: bf16[288,64], index: 3, kind: input, shape index: {}]   ;;  %s13833_s4 = inlined_call_operand.vmem [shape: f32[1,64], index: 4, kind: input, shape index: {}]   ;;  %s13834_s5 = inlined_call_operand.vmem [shape: bf16[576,128], index: 5, kind: input, shape index: {}]   ;;  %s13835_s6 = inlined_call_operand.vmem [shape: f32[1,128], index: 6, kind: input, shape index: {}]   ;;  %s13836_s7 = inlined_call_operand.vmem [shape: bf16[128,128], index: 7, kind: input, shape index: {}]   ;;  %s13837_s8 = inlined_call_operand.vmem [shape: f32[1,128], index: 8, kind: input, shape index: {}]   ;;  %s13838_s9 = inlined_call_operand.hbm [shape: f32[2,4,128], index: 9, kind: output, shape index: {}]  }
   0x1   :  { %14579 = sst [smem:[#allocation322_spill]] %s13829_s0 }
   0x2   :  { %14 = vsyncpa [#allocation3], 0 }
   0x3   :  { %16 = vsyncpa [#allocation3 + $0x1], 0  ;;  %s8847_s30 = smov 0   ;;  %s8849_s10 = smov 0  }
   0x4   :  { %s8851_s11 = smov 0   ;;  %s8853_s12 = smov 0  }
   0x5 LB: > { %s8868_s13 = sadd.s32 4294967295, %s8791_s12   ;;  %s7646_s14 = sadd.s32 4294967294, %s8791_s12   ;;  %s8791_s12 = sphi %s8853_s12, %s16025_s12   ;;  %s8787_s11 = sphi %s8851_s11, %s16024_s11   ;;  %s8783_s10 = sphi %s8849_s10, %s16023_s10   ;;  %s8779_s30 = sphi %s8847_s30, %s16022_s30  }
   0x6   : > { %s8872_s15 = sadd.s32 1, %s8791_s12   ;;  %s223_s16 = sadd.s32 1, %s8787_s11 }
   0x7   : > { %s220_s17 = ssub.s32 %s8791_s12, %s8872_s15  ;;  %p233_p0 = scmp.ne.s32.totalorder %s8787_s11, %s8783_s10 }
   0x8   : > { %p221_p1 = scmp.eq.s32.totalorder %s220_s17, 0  ;;  %p234_p2 = scmp.eq.s32.totalorder %s8868_s13, 1 }
   0x9   : > { %p239_p3 = scmp.ne.s32.totalorder %s8783_s10, %s8779_s30  ;;  %p240_p4 = scmp.eq.s32.totalorder %s7646_s14, 1 }
   0xa   : > { %s8883_s18 = scalar_select %p221_p1, %s8787_s11, %s223_s16  }
   0xb   : > { %p8885_p5 = por %p234_p2, %p233_p0  ;;  %p8889_p6 = por %p240_p4, %p239_p3 }
   0xc   : > { %p7649_p7 = scmp.ge.s32.totalorder %s8791_s12, 1  ;;  %p290_p8 = scmp.lt.s32.totalorder %s8791_s12, 3 }
   0xe   : > { %p291_p9 = pnand %p7649_p7, %p290_p8 }
  0x10   : > { %294 = sbr.rel (%p291_p9) target bundleno = 3259 (0xcbb), region = 56 }
  0x15   : > { %v8599_v0 = vld [vmem:[%s13830_s1 + $0x38] sm:$0xff]  ;;  %vm763_vm0 = vcmask 1040384   ;;  %vm764_vm1 = vcmask 1041408   ;;  %v400_v1 = vld [vmem:[%s13830_s1 + $0x48] sm:$0x3]  ;;  %v8793_v2 = vmov 65535  }
  0x16   : > { %v765_v3 = vsel %vm763_vm0, 4294967295, %v8793_v2  ;;  %p326_p10 = scmp.lt.s32.totalorder %s8868_s13, 1  ;;  %770 = vmatpush.bf16.msra.mxu0 %v8599_v0  ;;  %v8598_v4 = vld [vmem:[%s13830_s1 + $0x30] sm:$0xff]  ;;  %v667_v5 = vunpack.c.l.b16 %v400_v1  ;;  %v8597_v8 = vld [vmem:[%s13830_s1 + $0x28] sm:$0xff]  ;;  %s14582_s0 = sld [smem:[#allocation322_spill]]  ;;  %v8600_v10 = vld [vmem:[%s13830_s1 + $0x40] sm:$0xff] }
  0x17   : > { %v766_v6 = vsel %vm764_vm1, %v765_v3, 0  ;;  %v8596_v13 = vld [vmem:[%s13830_s1 + $0x20] sm:$0xff]  ;;  %vm687_vm2 = vcmask 154624   ;;  %v8595_v15 = vld [vmem:[%s13830_s1 + $0x18] sm:$0xff]  ;;  %v8594_v16 = vld [vmem:[%s13830_s1 + $0x10] sm:$0xff]  ;;  %vm1241_vm3 = vcmask 1041409  }
  0x18   : > { %s327_s27 = scalar_select %p326_p10, %s8868_s13, 1  ;;  %v677_v7 = vpack.c.b16 %v667_v5, %v667_v5  ;;  %v8593_v17 = vld [vmem:[%s13830_s1 + $0x8] sm:$0xff]  ;;  %v8592_v20 = vld [vmem:[%s13830_s1] sm:$0xff]  ;;  %vm1245_vm4 = vcmask 1042434   ;;  %vm1249_vm5 = vcmask 1043459  }
  0x19   : > { %vm1841_vm6 = vsmask.f32 256  ;;  %vm1842_vm7 = vsmask.f32 1284  ;;  %vm1844_vm9 = vsmask.f32 2312 }
  0x1a   : > { %s8679_s28 = smul.u32 400, %s327_s27  ;;  %771 = vmatpush.bf16.msra.mxu0 %v8598_v4  ;;  %v768_v9 = vand.u32 %v766_v6, %v677_v7  ;;  %vm1843_vm8 = vmor %vm1841_vm6, %vm1842_vm7  ;;  %vm1846_vm11 = vsmask.f32 3340  ;;  %vm1848_vm13 = vsmask.f32 4368  ;;  %s8795_s29 = smov 64  }
  0x1b   : > { %vm1845_vm10 = vmor %vm1843_vm8, %vm1844_vm9  ;;  %vm1850_vm15 = vsmask.f32 5396  ;;  %vm1854_vm7 = vsmask.f32 7452  ;;  %s8796_s14 = smov 96   ;;  %vm4933_vm9 = vcmask 261120  }
  0x1c   : > { %s8913_s21 = scalar_lea.vmem %s14582_s0, %s8679_s28  ;;  %910 = vmatpush.bf16.msra.mxu1 %v768_v9  ;;  %v8983_v9 = vld [vmem:[%s13831_s2] ss:$0 sm:$0xff]  ;;  %vm1847_vm12 = vmor %vm1845_vm10, %vm1846_vm11  ;;  %vm4966_vm10 = vcmask 523264   ;;  %vm4999_vm11 = vcmask 785408   ;;  %s323_s25 = sand.u32 1, %s8783_s10  }
  0x1d   : > { %v8542_v11 = vld [vmem:[%s8913_s21 + $0x4] sm:$0xf]  ;;  %v7656_v12 = vld [vmem:[%s8913_s21 + $0x8] sm:$0xf0]  ;;  %v8544_v18 = vld [vmem:[%s8913_s21 + $0x14] sm:$0xf] }
  0x1e   : > { %772 = vmatpush.bf16.msra.mxu0 %v8597_v8  ;;  %v7659_v14 = vor.u32 %v8542_v11, %v7656_v12  ;;  %v7664_v19 = vld [vmem:[%s8913_s21 + $0x18] sm:$0xf0]  ;;  %v7654_v21 = vld [vmem:[%s8913_s21] sm:$0xf]  ;;  %v8543_v22 = vld [vmem:[%s8913_s21 + $0x4] sm:$0xf0] }
  0x1f   : > { %v7667_v23 = vor.u32 %v8544_v18, %v7664_v19  ;;  %v7655_v24 = vor.u32 %v8543_v22, %v7654_v21  ;;  %v8546_v25 = vld [vmem:[%s8913_s21 + $0x24] sm:$0xf]  ;;  %v7672_v26 = vld [vmem:[%s8913_s21 + $0x28] sm:$0xf0]  ;;  %v7662_v27 = vld [vmem:[%s8913_s21 + $0x10] sm:$0xf] }
  0x20   : > { %911 = vmatpush.bf16.msra.mxu1 %v8600_v10  ;;  %v8545_v28 = vld [vmem:[%s8913_s21 + $0x14] sm:$0xf0]  ;;  %v7675_v29 = vor.u32 %v8546_v25, %v7672_v26  ;;  %v8548_v31 = vld [vmem:[%s8913_s21 + $0x34] sm:$0xf]  ;;  %v7680_v32 = vld [vmem:[%s8913_s21 + $0x38] sm:$0xf0] }
  0x21   : > { %v7663_v30 = vor.u32 %v8545_v28, %v7662_v27  ;;  %v7670_v33 = vld [vmem:[%s8913_s21 + $0x20] sm:$0xf]  ;;  %v8547_v34 = vld [vmem:[%s8913_s21 + $0x24] sm:$0xf0]  ;;  %v7683_v35 = vor.u32 %v8548_v31, %v7680_v32  ;;  %v8550_v37 = vld [vmem:[%s8913_s21 + $0x44] sm:$0xf] }
  0x22   : > { %773 = vmatpush.bf16.msra.mxu0 %v8596_v13  ;;  %v7671_v36 = vor.u32 %v8547_v34, %v7670_v33  ;;  %v7688_v38 = vld [vmem:[%s8913_s21 + $0x48] sm:$0xf0]  ;;  %v7678_v39 = vld [vmem:[%s8913_s21 + $0x30] sm:$0xf]  ;;  %v8549_v40 = vld [vmem:[%s8913_s21 + $0x34] sm:$0xf0] }
  0x23   : > { %7888 = vmatmul.msk.bf16.vlgmr.msra.gmra.mxu1 %vm687_vm2, %v7659_v14  ;;  %v7691_v41 = vor.u32 %v8550_v37, %v7688_v38  ;;  %v7679_v42 = vor.u32 %v8549_v40, %v7678_v39  ;;  %v8552_v43 = vld [vmem:[%s8913_s21 + $0x54] sm:$0xf]  ;;  %v7696_v44 = vld [vmem:[%s8913_s21 + $0x58] sm:$0xf0]  ;;  %v7686_v45 = vld [vmem:[%s8913_s21 + $0x40] sm:$0xf] }
  0x24   : > { %v8551_v46 = vld [vmem:[%s8913_s21 + $0x44] sm:$0xf0]  ;;  %v7699_v47 = vor.u32 %v8552_v43, %v7696_v44  ;;  %v8554_v49 = vld [vmem:[%s8913_s21 + $0x64] sm:$0xf]  ;;  %v7704_v50 = vld [vmem:[%s8913_s21 + $0x68] sm:$0xf0] }
  0x25   : > { %v7687_v48 = vor.u32 %v8551_v46, %v7686_v45  ;;  %v7694_v51 = vld [vmem:[%s8913_s21 + $0x50] sm:$0xf]  ;;  %v8553_v52 = vld [vmem:[%s8913_s21 + $0x54] sm:$0xf0]  ;;  %v7707_v53 = vor.u32 %v8554_v49, %v7704_v50  ;;  %v8556_v55 = vld [vmem:[%s8913_s21 + $0x74] sm:$0xf] }
  0x26   : > { %774 = vmatpush.bf16.msra.mxu0 %v8595_v15  ;;  %v7695_v54 = vor.u32 %v8553_v52, %v7694_v51  ;;  %v7712_v56 = vld [vmem:[%s8913_s21 + $0x78] sm:$0xf0]  ;;  %v7702_v57 = vld [vmem:[%s8913_s21 + $0x60] sm:$0xf]  ;;  %v8555_v58 = vld [vmem:[%s8913_s21 + $0x64] sm:$0xf0] }
  0x27   : > { %v7715_v59 = vor.u32 %v8556_v55, %v7712_v56  ;;  %v7703_v60 = vor.u32 %v8555_v58, %v7702_v57  ;;  %v8558_v61 = vld [vmem:[%s8913_s21 + $0x84] sm:$0xf]  ;;  %v7720_v62 = vld [vmem:[%s8913_s21 + $0x88] sm:$0xf0]  ;;  %v7710_v63 = vld [vmem:[%s8913_s21 + $0x70] sm:$0xf] }
  0x28   : > { %v8557_v0 = vld [vmem:[%s8913_s21 + $0x74] sm:$0xf0]  ;;  %v7723_v1 = vor.u32 %v8558_v61, %v7720_v62  ;;  %v8560_v5 = vld [vmem:[%s8913_s21 + $0x94] sm:$0xf]  ;;  %v7728_v6 = vld [vmem:[%s8913_s21 + $0x98] sm:$0xf0] }
  0x29   : > { %v7711_v3 = vor.u32 %v8557_v0, %v7710_v63  ;;  %v7718_v7 = vld [vmem:[%s8913_s21 + $0x80] sm:$0xf]  ;;  %v8559_v8 = vld [vmem:[%s8913_s21 + $0x84] sm:$0xf0]  ;;  %v7731_v10 = vor.u32 %v8560_v5, %v7728_v6  ;;  %v8562_v22 = vld [vmem:[%s8913_s21 + $0xa4] sm:$0xf] }
  0x2a   : > { %775 = vmatpush.bf16.msra.mxu0 %v8594_v16  ;;  %v7719_v12 = vor.u32 %v8559_v8, %v7718_v7  ;;  %v7726_v28 = vld [vmem:[%s8913_s21 + $0x90] sm:$0xf]  ;;  %v8564_v55 = vld [vmem:[%s8913_s21 + $0xb4] sm:$0xf]  ;;  %v7744_v56 = vld [vmem:[%s8913_s21 + $0xb8] sm:$0xf0] }
  0x2b   : > { %v7747_v63 = vor.u32 %v8564_v55, %v7744_v56  ;;  %vm1849_vm14 = vmor %vm1847_vm12, %vm1848_vm13  ;;  %vm6577_vm12 = vcmask 1045509   ;;  %vm6580_vm13 = vcmask 1046534   ;;  %s8539_s26 = sshll.u32 %s8868_s13, 2  ;;  %s7572_s24 = scalar_lea.sflag [#allocation3], %s323_s25 }
  0x2c   : > { %vm1851_vm1 = vmor %vm1849_vm14, %vm1850_vm15  ;;  %vm6583_vm14 = vcmask 1047559   ;;  %s7582_s28 = scalar_lea.hbm %s13838_s9, %s8539_s26  ;;  %s8749_s27 = scalar_lea.hbm %s13838_s9, 8 }
  0x2d   : > { %s7586_s23 = sshll.u32 %s7582_s28, 4  ;;  %s7587_s23 = int_to_ptr.hbm [resolvable:$true] %s7586_s23 }
  0x2e   : > { %776 = vmatpush.bf16.msra.mxu0 %v8593_v17  ;;  %s8743_s13 = sshra.s32 %s7587_s23, 4  ;;  %s8744_s13 = int_to_ptr.hbm [resolvable:$true] %s8743_s13 }
  0x2f   : > { %s8745_s0 = scalar_lea.hbm %s8744_s13, 4  ;;  %p8750_p0 = scmp.lt.s32.totalorder %s8744_s13, %s13838_s9 }
  0x30   : > { %p8746_p11 = scmp.ne.s32.totalorder %s8744_s13, %s8745_s0  ;;  %p8751_p1 = scmp.lt.s32.totalorder %s8749_s27, %s8745_s0 }
  0x32   : > { %777 = vmatpush.bf16.msra.mxu0 %v8592_v20  ;;  %p8747_p12 = pnand %p8746_p11, %p8885_p5  ;;  %p8752_p2 = por %p8751_p1, %p8750_p0 }
  0x33   : > { %7889 = vmatmul.msk.bf16.gmra.mxu1 %vm687_vm2, %v7667_v23  ;;  %v7736_v23 = vld [vmem:[%s8913_s21 + $0xa8] sm:$0xf0] }
  0x34   : > { %v7739_v34 = vor.u32 %v8562_v22, %v7736_v23  ;;  %p8748_p13 = pneg %p8747_p12 }
  0x35   : > { %778 = vmatmul.bf16.vlgmr.msra.gmra.mxu0 %v7655_v24 }
  0x36   : > { %p8753_p3 = pnand %p8752_p2, %p8748_p13 }
  0x43   : > { %7890 = vmatmul.msk.bf16.gmra.mxu1 %vm687_vm2, %v7675_v29  ;;  %v8561_v29 = vld [vmem:[%s8913_s21 + $0x94] sm:$0xf0] }
  0x44   : > { %v7727_v37 = vor.u32 %v8561_v29, %v7726_v28 }
  0x45   : > { %783 = vmatmul.bf16.gmra.mxu0 %v7663_v30 }
  0x53   : > { %7891 = vmatmul.msk.bf16.gmra.mxu1 %vm687_vm2, %v7683_v35 }
  0x55   : > { %788 = vmatmul.bf16.gmra.mxu0 %v7671_v36 }
  0x63   : > { %7892 = vmatmul.msk.bf16.gmra.mxu1 %vm687_vm2, %v7691_v41 }
  0x65   : > { %793 = vmatmul.bf16.gmra.mxu0 %v7679_v42 }
  0x73   : > { %7893 = vmatmul.msk.bf16.gmra.mxu1 %vm687_vm2, %v7699_v47 }
  0x75   : > { %798 = vmatmul.bf16.gmra.mxu0 %v7687_v48 }
  0x83   : > { %7894 = vmatmul.msk.bf16.gmra.mxu1 %vm687_vm2, %v7707_v53 }
  0x85   : > { %803 = vmatmul.bf16.gmra.mxu0 %v7695_v54 }
  0x93   : > { %7895 = vmatmul.msk.bf16.gmra.mxu1 %vm687_vm2, %v7715_v59  ;;  %v7734_v59 = vld [vmem:[%s8913_s21 + $0xa0] sm:$0xf] }
  0x95   : > { %808 = vmatmul.bf16.gmra.mxu0 %v7703_v60  ;;  %v8563_v60 = vld [vmem:[%s8913_s21 + $0xa4] sm:$0xf0] }
  0xa0   : > { %v913_v2 = vpop.f32.mrf.mxu1 }
  0xa3   : > { %7896 = vmatmul.msk.bf16.gmra.mxu1 %vm687_vm2, %v7723_v1 }
  0xa5   : > { %813 = vmatmul.bf16.gmra.mxu0 %v7711_v3 }
  0xa8   : > { %v915_v4 = vpop.f32.mrf.mxu1 }
  0xb0   : > { %v918_v11 = vpop.f32.mrf.mxu1 }
  0xb2   : > { %v779_v13 = vpop.f32.mrf.mxu0 }
  0xb3   : > { %v780_v14 = vadd.f32 %v8983_v9, %v779_v13  ;;  %7897 = vmatmul.msk.bf16.gmra.mxu1 %vm687_vm2, %v7731_v10 }
  0xb5   : > { %v914_v15 = vadd.f32 %v913_v2, %v780_v14  ;;  %818 = vmatmul.bf16.gmra.mxu0 %v7719_v12  ;;  %v7735_v2 = vor.u32 %v8563_v60, %v7734_v59 }
  0xb7   : > { %v1038_v16 = vmax.f32 %v914_v15, 0.0 }
  0xb8   : > { %v920_v17 = vpop.f32.mrf.mxu1 }
  0xb9   : > { %v1088_v18 = vpack.c.bf16 %v1038_v16, %v1038_v16 }
  0xba   : > { %v781_v19 = vpop.f32.mrf.mxu0 }
  0xbb   : > { %v1188_v20 = vrot.slane %v1088_v18, 3  ;;  %v782_v21 = vadd.f32 %v8983_v9, %v781_v19 }
  0xbd   : > { %v8991_v24 = vsel %vm763_vm0, %v1088_v18, %v1188_v20  ;;  %v1242_v25 = vsel %vm1241_vm3, %v1088_v18, %v1188_v20  ;;  %v1246_v26 = vsel %vm1245_vm4, %v1088_v18, %v1188_v20  ;;  %v1250_v27 = vsel %vm1249_vm5, %v1088_v18, %v1188_v20 }
  0xbe   : > { %v8998_v30 = vrot.slane %v1242_v25, 1  ;;  %v9000_v31 = vrot.slane %v1246_v26, 2  ;;  %v9002_v32 = vrot.slane %v1250_v27, 3  ;;  %3126 = vst [vmem:[#allocation1] ss:$9 sm:$0xff] %v8991_v24  ;;  %v916_v33 = vadd.f32 %v915_v4, %v782_v21 }
  0xbf   : > { %v8566_v26 = vld [vmem:[%s8913_s21 + $0xc4] sm:$0xf]  ;;  %v7752_v27 = vld [vmem:[%s8913_s21 + $0xc8] sm:$0xf0] }
  0xc0   : > { %14583 = vst [vmem:[#allocation5_spill] sm:$0xff] %v8998_v30  ;;  %v923_v35 = vpop.f32.mrf.mxu1  ;;  %v1039_v36 = vmax.f32 %v916_v33, 0.0  ;;  %v7742_v33 = vld [vmem:[%s8913_s21 + $0xb0] sm:$0xf] }
  0xc1   : > { %14584 = vst [vmem:[#allocation6_spill] sm:$0xff] %v9000_v31 }
  0xc2   : > { %3128 = vst [vmem:[#allocation1 + $0x1] ss:$9 sm:$0xff] %v8998_v30  ;;  %v784_v38 = vpop.f32.mrf.mxu0  ;;  %v1089_v39 = vpack.c.bf16 %v1039_v36, %v1039_v36 }
  0xc3   : > { %3130 = vst [vmem:[#allocation1 + $0x2] ss:$9 sm:$0xff] %v9000_v31  ;;  %v785_v40 = vadd.f32 %v8983_v9, %v784_v38  ;;  %7898 = vmatmul.msk.bf16.gmra.mxu1 %vm687_vm2, %v7739_v34  ;;  %v8565_v34 = vld [vmem:[%s8913_s21 + $0xb4] sm:$0xf0] }
  0xc4   : > { %3132 = vst [vmem:[#allocation1 + $0x3] ss:$9 sm:$0xff] %v9002_v32  ;;  %v1189_v41 = vrot.slane %v1089_v39, 3 }
  0xc5   : > { %v919_v42 = vadd.f32 %v918_v11, %v785_v40  ;;  %823 = vmatmul.bf16.gmra.mxu0 %v7727_v37 }
  0xc6   : > { %v9011_v43 = vsel %vm763_vm0, %v1089_v39, %v1189_v41  ;;  %v1256_v44 = vsel %vm1241_vm3, %v1089_v39, %v1189_v41  ;;  %v1259_v45 = vsel %vm1245_vm4, %v1089_v39, %v1189_v41  ;;  %v1262_v46 = vsel %vm1249_vm5, %v1089_v39, %v1189_v41 }
  0xc7   : > { %14585 = vst [vmem:[#allocation7_spill] sm:$0xff] %v9011_v43  ;;  %v9016_v47 = vrot.slane %v1256_v44, 1  ;;  %v9018_v48 = vrot.slane %v1259_v45, 2  ;;  %v9020_v49 = vrot.slane %v1262_v46, 3  ;;  %v1040_v51 = vmax.f32 %v919_v42, 0.0 }
  0xc8   : > { %v925_v50 = vpop.f32.mrf.mxu1  ;;  %v7743_v45 = vor.u32 %v8565_v34, %v7742_v33 }
  0xc9   : > { %14586 = vst [vmem:[#allocation8_spill] sm:$0xff] %v9016_v47  ;;  %v1090_v53 = vpack.c.bf16 %v1040_v51, %v1040_v51 }
  0xca   : > { %3134 = vst [vmem:[#allocation1 + $0x4] ss:$9 sm:$0xff] %v9016_v47  ;;  %v786_v52 = vpop.f32.mrf.mxu0 }
  0xcb   : > { %3138 = vst [vmem:[#allocation1 + $0x6] ss:$9 sm:$0xff] %v9020_v49  ;;  %v787_v54 = vadd.f32 %v8983_v9, %v786_v52  ;;  %v1190_v57 = vrot.slane %v1090_v53, 3 }
  0xcc   : > { %3136 = vst [vmem:[#allocation1 + $0x5] ss:$9 sm:$0xff] %v9018_v48 }
  0xcd   : > { %v921_v58 = vadd.f32 %v920_v17, %v787_v54  ;;  %v9031_v61 = vsel %vm763_vm0, %v1090_v53, %v1190_v57  ;;  %v9034_v62 = vsel %vm1241_vm3, %v1090_v53, %v1190_v57  ;;  %v1271_v4 = vsel %vm1245_vm4, %v1090_v53, %v1190_v57 }
  0xce   : > { %3140 = vst [vmem:[#allocation1 + $0x7] ss:$9 sm:$0xff] %v9031_v61  ;;  %v1274_v5 = vsel %vm1249_vm5, %v1090_v53, %v1190_v57  ;;  %v9041_v11 = vrot.slane %v1271_v4, 2 }
  0xcf   : > { %v1041_v1 = vmax.f32 %v921_v58, 0.0  ;;  %v9043_v12 = vrot.slane %v1274_v5, 3  ;;  %v8568_v5 = vld [vmem:[%s8913_s21 + $0xd4] sm:$0xf] }
  0xd0   : > { %v928_v0 = vpop.f32.mrf.mxu1  ;;  %14587 = vst [vmem:[#allocation9_spill] sm:$0xff] %v9041_v11 }
  0xd1   : > { %v1091_v6 = vpack.c.bf16 %v1041_v1, %v1041_v1 }
  0xd2   : > { %v789_v3 = vpop.f32.mrf.mxu0 }
  0xd3   : > { %v790_v7 = vadd.f32 %v8983_v9, %v789_v3  ;;  %7899 = vmatmul.msk.bf16.gmra.mxu1 %vm687_vm2, %v7747_v63  ;;  %v1191_v8 = vrot.slane %v1091_v6, 3 }
  0xd5   : > { %v924_v10 = vadd.f32 %v923_v35, %v790_v7  ;;  %828 = vmatmul.bf16.gmra.mxu0 %v7735_v2  ;;  %v9045_v13 = vld [vmem:[#allocation1] sm:$0xff]  ;;  %v9048_v14 = vsel %vm763_vm0, %v1091_v6, %v1191_v8  ;;  %v1280_v15 = vsel %vm1241_vm3, %v1091_v6, %v1191_v8  ;;  %v9052_v16 = vsel %vm1245_vm4, %v1091_v6, %v1191_v8 }
  0xd6   : > { %14588 = vst [vmem:[#allocation10_spill] sm:$0xff] %v9045_v13  ;;  %v1286_v17 = vsel %vm1249_vm5, %v1091_v6, %v1191_v8  ;;  %v9056_v18 = vrot.slane %v1280_v15, 1  ;;  %v7755_v35 = vor.u32 %v8566_v26, %v7752_v27  ;;  %v7760_v6 = vld [vmem:[%s8913_s21 + $0xd8] sm:$0xf0]  ;;  %v8567_v15 = vld [vmem:[%s8913_s21 + $0xc4] sm:$0xf0] }
  0xd7   : > { %14589 = vst [vmem:[#allocation11_spill] sm:$0xff] %v9048_v14  ;;  %v9058_v19 = vrot.slane %v1286_v17, 3  ;;  %v1042_v21 = vmax.f32 %v924_v10, 0.0  ;;  %v7750_v10 = vld [vmem:[%s8913_s21 + $0xc0] sm:$0xf]  ;;  %v7763_v17 = vor.u32 %v8568_v5, %v7760_v6 }
  0xd8   : > { %3142 = vst [vmem:[#allocation1] ss:$9 sm:$0xff] %v9041_v11  ;;  %v930_v20 = vpop.f32.mrf.mxu1  ;;  %v7751_v33 = vor.u32 %v8567_v15, %v7750_v10  ;;  %v7758_v6 = vld [vmem:[%s8913_s21 + $0xd0] sm:$0xf] }
  0xd9   : > { %14590 = vst [vmem:[#allocation12_spill] sm:$0xff] %v9056_v18  ;;  %v1092_v23 = vpack.c.bf16 %v1042_v21, %v1042_v21 }
  0xda   : > { %14591 = vst [vmem:[#allocation13_spill] sm:$0xff] %v9058_v19  ;;  %v791_v22 = vpop.f32.mrf.mxu0 }
  0xdb   : > { %3143 = vst [vmem:[#allocation1 + $0x1] ss:$9 sm:$0xff] %v9043_v12  ;;  %v792_v25 = vadd.f32 %v8983_v9, %v791_v22  ;;  %v1192_v28 = vrot.slane %v1092_v23, 3 }
  0xdc   : > { %3144 = vst [vmem:[#allocation1 + $0x2] ss:$9 sm:$0xff] %v9048_v14 }
  0xdd   : > { %3145 = vst [vmem:[#allocation1 + $0x3] ss:$9 sm:$0xff] %v9056_v18  ;;  %v926_v29 = vadd.f32 %v925_v50, %v792_v25  ;;  %v9070_v36 = vsel %vm763_vm0, %v1092_v23, %v1192_v28  ;;  %v1292_v37 = vsel %vm1241_vm3, %v1092_v23, %v1192_v28  ;;  %v1295_v38 = vsel %vm1245_vm4, %v1092_v23, %v1192_v28 }
  0xde   : > { %3146 = vst [vmem:[#allocation1 + $0x4] ss:$9 sm:$0xff] %v9058_v19  ;;  %v9075_v39 = vsel %vm1249_vm5, %v1092_v23, %v1192_v28  ;;  %v9077_v40 = vrot.slane %v1292_v37, 1  ;;  %v9079_v41 = vrot.slane %v1295_v38, 2 }
  0xdf   : > { %3147 = vst [vmem:[#allocation1 + $0x5] ss:$9 sm:$0xff] %v9070_v36  ;;  %v1043_v44 = vmax.f32 %v926_v29, 0.0 }
  0xe0   : > { %14592 = vst [vmem:[#allocation14_spill] sm:$0xff] %v9079_v41  ;;  %v933_v42 = vpop.f32.mrf.mxu1 }
  0xe1   : > { %3148 = vst [vmem:[#allocation1 + $0x6] ss:$9 sm:$0xff] %v9077_v40  ;;  %v1093_v50 = vpack.c.bf16 %v1043_v44, %v1043_v44 }
  0xe2   : > { %v794_v46 = vpop.f32.mrf.mxu0  ;;  %3149 = vst [vmem:[#allocation1 + $0x7] ss:$9 sm:$0xff] %v9079_v41 }
  0xe3   : > { %v795_v51 = vadd.f32 %v8983_v9, %v794_v46  ;;  %7900 = vmatmul.msk.bf16.gmra.mxu1 %vm687_vm2, %v7755_v35  ;;  %v1193_v52 = vrot.slane %v1093_v50, 3 }
  0xe5   : > { %v929_v53 = vadd.f32 %v928_v0, %v795_v51  ;;  %833 = vmatmul.bf16.gmra.mxu0 %v7743_v45  ;;  %v1304_v54 = vsel %vm1241_vm3, %v1093_v50, %v1193_v52  ;;  %v1307_v55 = vsel %vm1245_vm4, %v1093_v50, %v1193_v52  ;;  %v1310_v56 = vsel %vm1249_vm5, %v1093_v50, %v1193_v52 }
  0xe6   : > { %v9089_v57 = vrot.slane %v1310_v56, 3  ;;  %v9091_v59 = vrot.slane %v1304_v54, 1  ;;  %v9094_v63 = vsel %vm763_vm0, %v1093_v50, %v1193_v52  ;;  %v9096_v0 = vrot.slane %v1307_v55, 2  ;;  %v8570_v56 = vld [vmem:[%s8913_s21 + $0xe4] sm:$0xf] }
  0xe7   : > { %v1044_v60 = vmax.f32 %v929_v53, 0.0  ;;  %14594 = vst [vmem:[#allocation16_spill] sm:$0xff] %v9094_v63 }
  0xe8   : > { %14593 = vst [vmem:[#allocation15_spill] sm:$0xff] %v9089_v57  ;;  %v935_v58 = vpop.f32.mrf.mxu1 }
  0xe9   : > { %v9098_v1 = vld [vmem:[#allocation1] sm:$0xff]  ;;  %v1094_v3 = vpack.c.bf16 %v1044_v60, %v1044_v60  ;;  %v7768_v60 = vld [vmem:[%s8913_s21 + $0xe8] sm:$0xf0] }
  0xea   : > { %14595 = vst [vmem:[#allocation17_spill] sm:$0xff] %v9098_v1  ;;  %v796_v2 = vpop.f32.mrf.mxu0 }
  0xeb   : > { %3151 = vst [vmem:[#allocation1] ss:$9 sm:$0xff] %v9094_v63  ;;  %v797_v4 = vadd.f32 %v8983_v9, %v796_v2  ;;  %v1194_v7 = vrot.slane %v1094_v3, 3 }
  0xec   : > { %3154 = vst [vmem:[#allocation1 + $0x3] ss:$9 sm:$0xff] %v9089_v57 }
  0xed   : > { %3152 = vst [vmem:[#allocation1 + $0x1] ss:$9 sm:$0xff] %v9091_v59  ;;  %v931_v8 = vadd.f32 %v930_v20, %v797_v4  ;;  %v9110_v21 = vsel %vm763_vm0, %v1094_v3, %v1194_v7  ;;  %v1316_v22 = vsel %vm1241_vm3, %v1094_v3, %v1194_v7  ;;  %v1319_v23 = vsel %vm1245_vm4, %v1094_v3, %v1194_v7 }
  0xee   : > { %3153 = vst [vmem:[#allocation1 + $0x2] ss:$9 sm:$0xff] %v9096_v0  ;;  %v1322_v25 = vsel %vm1249_vm5, %v1094_v3, %v1194_v7  ;;  %v9115_v26 = vrot.slane %v1316_v22, 1  ;;  %v9117_v27 = vrot.slane %v1319_v23, 2  ;;  %v8569_v7 = vld [vmem:[%s8913_s21 + $0xd4] sm:$0xf0] }
  0xef   : > { %14596 = vst [vmem:[#allocation18_spill] sm:$0xff] %v9110_v21  ;;  %v9119_v28 = vrot.slane %v1322_v25, 3  ;;  %v1045_v29 = vmax.f32 %v931_v8, 0.0  ;;  %v7771_v8 = vor.u32 %v8570_v56, %v7768_v60 }
  0xf0   : > { %14597 = vst [vmem:[#allocation19_spill] sm:$0xff] %v9115_v26  ;;  %v938_v20 = vpop.f32.mrf.mxu1 }
  0xf1   : > { %14598 = vst [vmem:[#allocation20_spill] sm:$0xff] %v9117_v27  ;;  %v1095_v35 = vpack.c.bf16 %v1045_v29, %v1045_v29 }
  0xf2   : > { %3155 = vst [vmem:[#allocation1 + $0x4] ss:$9 sm:$0xff] %v9115_v26  ;;  %v799_v34 = vpop.f32.mrf.mxu0 }
  0xf3   : > { %3157 = vst [vmem:[#allocation1 + $0x6] ss:$9 sm:$0xff] %v9119_v28  ;;  %v800_v37 = vadd.f32 %v8983_v9, %v799_v34  ;;  %7901 = vmatmul.msk.bf16.gmra.mxu1 %vm687_vm2, %v7763_v17  ;;  %v1195_v38 = vrot.slane %v1095_v35, 3  ;;  %v7759_v34 = vor.u32 %v8569_v7, %v7758_v6  ;;  %v7776_v6 = vld [vmem:[%s8913_s21 + $0xf8] sm:$0xf0] }
  0xf4   : > { %3156 = vst [vmem:[#allocation1 + $0x5] ss:$9 sm:$0xff] %v9117_v27 }
  0xf5   : > { %v934_v44 = vadd.f32 %v933_v42, %v800_v37  ;;  %838 = vmatmul.bf16.gmra.mxu0 %v7751_v33  ;;  %v9127_v45 = vsel %vm763_vm0, %v1095_v35, %v1195_v38  ;;  %v9130_v46 = vsel %vm1241_vm3, %v1095_v35, %v1195_v38  ;;  %v1331_v53 = vsel %vm1245_vm4, %v1095_v35, %v1195_v38 }
  0xf6   : > { %14599 = vst [vmem:[#allocation21_spill] sm:$0xff] %v9127_v45  ;;  %v1334_v54 = vsel %vm1249_vm5, %v1095_v35, %v1195_v38  ;;  %v9138_v4 = vrot.slane %v1331_v53, 2 }
  0xf7   : > { %3158 = vst [vmem:[#allocation1 + $0x7] ss:$9 sm:$0xff] %v9127_v45  ;;  %v1046_v51 = vmax.f32 %v934_v44, 0.0  ;;  %v9140_v5 = vrot.slane %v1334_v54, 3 }
  0xf8   : > { %v940_v50 = vpop.f32.mrf.mxu1  ;;  %14600 = vst [vmem:[#allocation22_spill] sm:$0xff] %v9138_v4 }
  0xf9   : > { %v1096_v55 = vpack.c.bf16 %v1046_v51, %v1046_v51 }
  0xfa   : > { %v801_v52 = vpop.f32.mrf.mxu0 }
  0xfb   : > { %v802_v42 = vadd.f32 %v8983_v9, %v801_v52  ;;  %v1196_v2 = vrot.slane %v1096_v55, 3 }
  0xfd   : > { %v936_v3 = vadd.f32 %v935_v58, %v802_v42  ;;  %v9147_v15 = vsel %vm763_vm0, %v1096_v55, %v1196_v2  ;;  %v1340_v17 = vsel %vm1241_vm3, %v1096_v55, %v1196_v2  ;;  %v9151_v22 = vsel %vm1245_vm4, %v1096_v55, %v1196_v2 }
  0xfe   : > { %v9144_v10 = vld [vmem:[#allocation1] sm:$0xff]  ;;  %14602 = vst [vmem:[#allocation24_spill] sm:$0xff] %v9147_v15  ;;  %v1346_v23 = vsel %vm1249_vm5, %v1096_v55, %v1196_v2  ;;  %v9155_v58 = vrot.slane %v1340_v17, 1  ;;  %v8571_v17 = vld [vmem:[%s8913_s21 + $0xe4] sm:$0xf0] }
  0xff   : > { %14601 = vst [vmem:[#allocation23_spill] sm:$0xff] %v9144_v10  ;;  %v9157_v25 = vrot.slane %v1346_v23, 3  ;;  %v1047_v33 = vmax.f32 %v936_v3, 0.0  ;;  %v8572_v3 = vld [vmem:[%s8913_s21 + $0xf4] sm:$0xf] }
 0x100   : > { %3160 = vst [vmem:[#allocation1] ss:$9 sm:$0xff] %v9138_v4  ;;  %v943_v29 = vpop.f32.mrf.mxu1  ;;  %v7779_v23 = vor.u32 %v8572_v3, %v7776_v6  ;;  %v7792_v10 = vld [vmem:[%s8913_s21 + $0x118] sm:$0xf0] }
 0x101   : > { %14603 = vst [vmem:[#allocation25_spill] sm:$0xff] %v9155_v58  ;;  %v1097_v37 = vpack.c.bf16 %v1047_v33, %v1047_v33 }
 0x102   : > { %14604 = vst [vmem:[#allocation26_spill] sm:$0xff] %v9157_v25  ;;  %v804_v35 = vpop.f32.mrf.mxu0 }
 0x103   : > { %3161 = vst [vmem:[#allocation1 + $0x1] ss:$9 sm:$0xff] %v9140_v5  ;;  %v805_v38 = vadd.f32 %v8983_v9, %v804_v35  ;;  %7902 = vmatmul.msk.bf16.gmra.mxu1 %vm687_vm2, %v7771_v8  ;;  %v1197_v44 = vrot.slane %v1097_v37, 3  ;;  %v7766_v8 = vld [vmem:[%s8913_s21 + $0xe0] sm:$0xf] }
 0x104   : > { %3162 = vst [vmem:[#allocation1 + $0x2] ss:$9 sm:$0xff] %v9147_v15  ;;  %v7767_v35 = vor.u32 %v8571_v17, %v7766_v8  ;;  %v8574_v17 = vld [vmem:[%s8913_s21 + $0x104] sm:$0xf] }
 0x105   : > { %3164 = vst [vmem:[#allocation1 + $0x4] ss:$9 sm:$0xff] %v9157_v25  ;;  %v9165_v51 = vadd.f32 %v938_v20, %v805_v38  ;;  %843 = vmatmul.bf16.gmra.mxu0 %v7759_v34  ;;  %v9168_v52 = vsel %vm763_vm0, %v1097_v37, %v1197_v44  ;;  %v1352_v53 = vsel %vm1241_vm3, %v1097_v37, %v1197_v44 }
 0x106   : > { %3163 = vst [vmem:[#allocation1 + $0x3] ss:$9 sm:$0xff] %v9155_v58  ;;  %v1355_v54 = vsel %vm1245_vm4, %v1097_v37, %v1197_v44  ;;  %v9173_v55 = vsel %vm1249_vm5, %v1097_v37, %v1197_v44  ;;  %v9175_v42 = vrot.slane %v1352_v53, 1 }
 0x107   : > { %14605 = vst [vmem:[#allocation27_spill] sm:$0xff] %v9165_v51  ;;  %v9177_v56 = vrot.slane %v1355_v54, 2 }
 0x108   : > { %14606 = vst [vmem:[#allocation28_spill] sm:$0xff] %v9175_v42  ;;  %v945_v20 = vpop.f32.mrf.mxu1 }
 0x109   : > { %14607 = vst [vmem:[#allocation29_spill] sm:$0xff] %v9177_v56 }
 0x10a   : > { %3165 = vst [vmem:[#allocation1 + $0x5] ss:$9 sm:$0xff] %v9168_v52  ;;  %v806_v60 = vpop.f32.mrf.mxu0 }
 0x10b   : > { %3166 = vst [vmem:[#allocation1 + $0x6] ss:$9 sm:$0xff] %v9175_v42  ;;  %v807_v2 = vadd.f32 %v8983_v9, %v806_v60 }
 0x10c   : > { %3167 = vst [vmem:[#allocation1 + $0x7] ss:$9 sm:$0xff] %v9177_v56 }
 0x10d   : > { %v941_v7 = vadd.f32 %v940_v50, %v807_v2 }
 0x10f   : > { %v1049_v34 = vmax.f32 %v941_v7, 0.0 }
 0x110   : > { %v948_v33 = vpop.f32.mrf.mxu1 }
 0x111   : > { %v9187_v38 = vpack.c.bf16 %v1049_v34, %v1049_v34 }
 0x112   : > { %v809_v37 = vpop.f32.mrf.mxu0 }
 0x113   : > { %14608 = vst [vmem:[#allocation30_spill] sm:$0xff] %v9187_v38  ;;  %v810_v44 = vadd.f32 %v8983_v9, %v809_v37  ;;  %7903 = vmatmul.msk.bf16.gmra.mxu1 %vm687_vm2, %v7779_v23  ;;  %v9192_v53 = vrot.slane %v9187_v38, 3  ;;  %v7784_v23 = vld [vmem:[%s8913_s21 + $0x108] sm:$0xf0]  ;;  %v7774_v37 = vld [vmem:[%s8913_s21 + $0xf0] sm:$0xf] }
 0x114   : > { %v7787_v1 = vor.u32 %v8574_v17, %v7784_v23 }
 0x115   : > { %14609 = vst [vmem:[#allocation31_spill] sm:$0xff] %v9192_v53  ;;  %v944_v50 = vadd.f32 %v943_v29, %v810_v44  ;;  %848 = vmatmul.bf16.gmra.mxu0 %v7767_v35  ;;  %v9197_v54 = vsel %vm1241_vm3, %v9187_v38, %v9192_v53  ;;  %v9202_v60 = vsel %vm1245_vm4, %v9187_v38, %v9192_v53  ;;  %v8573_v44 = vld [vmem:[%s8913_s21 + $0xf4] sm:$0xf0] }
 0x116   : > { %14610 = vst [vmem:[#allocation32_spill] sm:$0xff] %v9197_v54  ;;  %v9207_v2 = vsel %vm1249_vm5, %v9187_v38, %v9192_v53  ;;  %v7775_v17 = vor.u32 %v8573_v44, %v7774_v37  ;;  %v8575_v38 = vld [vmem:[%s8913_s21 + $0x104] sm:$0xf0] }
 0x117   : > { %14611 = vst [vmem:[#allocation33_spill] sm:$0xff] %v9202_v60  ;;  %v1050_v6 = vmax.f32 %v944_v50, 0.0 }
 0x118   : > { %14612 = vst [vmem:[#allocation34_spill] sm:$0xff] %v9207_v2  ;;  %v950_v3 = vpop.f32.mrf.mxu1 }
 0x119   : > { %v1100_v29 = vpack.c.bf16 %v1050_v6, %v1050_v6 }
 0x11a   : > { %v811_v7 = vpop.f32.mrf.mxu0 }
 0x11b   : > { %v812_v8 = vadd.f32 %v8983_v9, %v811_v7  ;;  %v1200_v34 = vrot.slane %v1100_v29, 3 }
 0x11d   : > { %v946_v35 = vadd.f32 %v945_v20, %v812_v8  ;;  %v9215_v13 = vsel %vm763_vm0, %v1100_v29, %v1200_v34  ;;  %v9218_v60 = vsel %vm1241_vm3, %v1100_v29, %v1200_v34  ;;  %v9221_v2 = vsel %vm1245_vm4, %v1100_v29, %v1200_v34  ;;  %v9227_v20 = vld [vmem:[#allocation1] sm:$0xff] }
 0x11e   : > { %14613 = vst [vmem:[#allocation35_spill] sm:$0xff] %v9215_v13  ;;  %v1394_v50 = vsel %vm1249_vm5, %v1100_v29, %v1200_v34  ;;  %v13842_v6 = vrot.slane %v9221_v2, 2 }
 0x11f   : > { %14614 = vst [vmem:[#allocation36_spill] sm:$0xff] %v9218_v60  ;;  %v9225_v7 = vrot.slane %v1394_v50, 3  ;;  %v1051_v8 = vmax.f32 %v946_v35, 0.0 }
 0x120   : > { %14615 = vst [vmem:[#allocation37_spill] sm:$0xff] %v9221_v2  ;;  %v953_v54 = vpop.f32.mrf.mxu1 }
 0x121   : > { %14616 = vst [vmem:[#allocation38_spill] sm:$0xff] %v9225_v7  ;;  %v1101_v60 = vpack.c.bf16 %v1051_v8, %v1051_v8 }
 0x122   : > { %14617 = vst [vmem:[#allocation39_spill] sm:$0xff] %v9227_v20  ;;  %v814_v23 = vpop.f32.mrf.mxu0  ;;  %v8576_v20 = vld [vmem:[%s8913_s21 + $0x114] sm:$0xf] }
 0x123   : > { %3169 = vst [vmem:[#allocation1] ss:$9 sm:$0xff] %v13842_v6  ;;  %v815_v13 = vadd.f32 %v8983_v9, %v814_v23  ;;  %7904 = vmatmul.msk.bf16.gmra.mxu1 %vm687_vm2, %v7787_v1  ;;  %v1201_v29 = vrot.slane %v1101_v60, 3 }
 0x124   : > { %3170 = vst [vmem:[#allocation1 + $0x1] ss:$9 sm:$0xff] %v9225_v7 }
 0x125   : > { %v949_v34 = vadd.f32 %v948_v33, %v815_v13  ;;  %853 = vmatmul.bf16.gmra.mxu0 %v7775_v17  ;;  %v9235_v50 = vsel %vm763_vm0, %v1101_v60, %v1201_v29  ;;  %v1400_v35 = vsel %vm1241_vm3, %v1101_v60, %v1201_v29  ;;  %v9239_v37 = vsel %vm1245_vm4, %v1101_v60, %v1201_v29 }
 0x126   : > { %14618 = vst [vmem:[#allocation40_spill] sm:$0xff] %v9235_v50  ;;  %v1406_v44 = vsel %vm1249_vm5, %v1101_v60, %v1201_v29  ;;  %v9242_v8 = vrot.slane %v1400_v35, 1  ;;  %v7782_v35 = vld [vmem:[%s8913_s21 + $0x100] sm:$0xf] }
 0x127   : > { %14619 = vst [vmem:[#allocation41_spill] sm:$0xff] %v9239_v37  ;;  %v9244_v1 = vrot.slane %v1406_v44, 3  ;;  %v1052_v33 = vmax.f32 %v949_v34, 0.0  ;;  %v7795_v44 = vor.u32 %v8576_v20, %v7792_v10 }
 0x128   : > { %14620 = vst [vmem:[#allocation42_spill] sm:$0xff] %v9242_v8  ;;  %v955_v13 = vpop.f32.mrf.mxu1 }
 0x129   : > { %14621 = vst [vmem:[#allocation43_spill] sm:$0xff] %v9244_v1  ;;  %v1102_v23 = vpack.c.bf16 %v1052_v33, %v1052_v33 }
 0x12a   : > { %3171 = vst [vmem:[#allocation1 + $0x2] ss:$9 sm:$0xff] %v9235_v50  ;;  %v816_v17 = vpop.f32.mrf.mxu0 }
 0x12b   : > { %3172 = vst [vmem:[#allocation1 + $0x3] ss:$9 sm:$0xff] %v9242_v8  ;;  %v817_v6 = vadd.f32 %v8983_v9, %v816_v17  ;;  %v1202_v60 = vrot.slane %v1102_v23, 3 }
 0x12c   : > { %3173 = vst [vmem:[#allocation1 + $0x4] ss:$9 sm:$0xff] %v9244_v1  ;;  %v7783_v1 = vor.u32 %v8575_v38, %v7782_v35 }
 0x12d   : > { %v951_v29 = vadd.f32 %v950_v3, %v817_v6  ;;  %v9255_v53 = vsel %vm763_vm0, %v1102_v23, %v1202_v60  ;;  %v1412_v34 = vsel %vm1241_vm3, %v1102_v23, %v1202_v60  ;;  %v1415_v51 = vsel %vm1245_vm4, %v1102_v23, %v1202_v60 }
 0x12e   : > { %14622 = vst [vmem:[#allocation44_spill] sm:$0xff] %v9255_v53  ;;  %v9260_v8 = vsel %vm1249_vm5, %v1102_v23, %v1202_v60  ;;  %v9262_v33 = vrot.slane %v1412_v34, 1  ;;  %v9264_v17 = vrot.slane %v1415_v51, 2 }
 0x12f   : > { %14623 = vst [vmem:[#allocation45_spill] sm:$0xff] %v9260_v8  ;;  %v1053_v6 = vmax.f32 %v951_v29, 0.0 }
 0x130   : > { %14624 = vst [vmem:[#allocation46_spill] sm:$0xff] %v9262_v33  ;;  %v958_v3 = vpop.f32.mrf.mxu1 }
 0x131   : > { %14625 = vst [vmem:[#allocation47_spill] sm:$0xff] %v9264_v17  ;;  %v1103_v20 = vpack.c.bf16 %v1053_v6, %v1053_v6 }
 0x132   : > { %3174 = vst [vmem:[#allocation1 + $0x5] ss:$9 sm:$0xff] %v9255_v53  ;;  %v819_v10 = vpop.f32.mrf.mxu0  ;;  %v7800_v53 = vld [vmem:[%s8913_s21 + $0x128] sm:$0xf0] }
 0x133   : > { %3175 = vst [vmem:[#allocation1 + $0x6] ss:$9 sm:$0xff] %v9262_v33  ;;  %v820_v50 = vadd.f32 %v8983_v9, %v819_v10  ;;  %7905 = vmatmul.msk.bf16.gmra.mxu1 %vm687_vm2, %v7795_v44  ;;  %v1203_v23 = vrot.slane %v1103_v20, 3  ;;  %v8578_v33 = vld [vmem:[%s8913_s21 + $0x124] sm:$0xf] }
 0x134   : > { %3176 = vst [vmem:[#allocation1 + $0x7] ss:$9 sm:$0xff] %v9264_v17 }
 0x135   : > { %v954_v60 = vadd.f32 %v953_v54, %v820_v50  ;;  %858 = vmatmul.bf16.gmra.mxu0 %v7783_v1  ;;  %v1424_v51 = vsel %vm1241_vm3, %v1103_v20, %v1203_v23  ;;  %v1427_v29 = vsel %vm1245_vm4, %v1103_v20, %v1203_v23  ;;  %v1430_v38 = vsel %vm1249_vm5, %v1103_v20, %v1203_v23 }
 0x136   : > { %v9274_v35 = vrot.slane %v1424_v51, 1  ;;  %v9276_v17 = vrot.slane %v1430_v38, 3  ;;  %v9281_v54 = vsel %vm763_vm0, %v1103_v20, %v1203_v23  ;;  %v9283_v50 = vrot.slane %v1427_v29, 2  ;;  %v7790_v20 = vld [vmem:[%s8913_s21 + $0x110] sm:$0xf] }
 0x137   : > { %v1054_v6 = vmax.f32 %v954_v60, 0.0  ;;  %14629 = vst [vmem:[#allocation51_spill] sm:$0xff] %v9281_v54  ;;  %v8577_v23 = vld [vmem:[%s8913_s21 + $0x114] sm:$0xf0]  ;;  %v7803_v29 = vor.u32 %v8578_v33, %v7800_v53 }
 0x138   : > { %14626 = vst [vmem:[#allocation48_spill] sm:$0xff] %v9274_v35  ;;  %v960_v34 = vpop.f32.mrf.mxu1 }
 0x139   : > { %14627 = vst [vmem:[#allocation49_spill] sm:$0xff] %v9276_v17  ;;  %v1104_v10 = vpack.c.bf16 %v1054_v6, %v1054_v6 }
 0x13a   : > { %14630 = vst [vmem:[#allocation52_spill] sm:$0xff] %v9283_v50  ;;  %v821_v1 = vpop.f32.mrf.mxu0 }
 0x13b   : > { %v9278_v44 = vld [vmem:[#allocation1] sm:$0xff]  ;;  %v822_v51 = vadd.f32 %v8983_v9, %v821_v1  ;;  %v1204_v60 = vrot.slane %v1104_v10, 3 }
 0x13c   : > { %14628 = vst [vmem:[#allocation50_spill] sm:$0xff] %v9278_v44 }
 0x13d   : > { %3178 = vst [vmem:[#allocation1] ss:$9 sm:$0xff] %v9281_v54  ;;  %v956_v38 = vadd.f32 %v955_v13, %v822_v51  ;;  %v9295_v44 = vsel %vm763_vm0, %v1104_v10, %v1204_v60  ;;  %v1436_v6 = vsel %vm1241_vm3, %v1104_v10, %v1204_v60  ;;  %v1439_v1 = vsel %vm1245_vm4, %v1104_v10, %v1204_v60 }
 0x13e   : > { %3179 = vst [vmem:[#allocation1 + $0x1] ss:$9 sm:$0xff] %v9274_v35  ;;  %v1442_v54 = vsel %vm1249_vm5, %v1104_v10, %v1204_v60  ;;  %v9300_v8 = vrot.slane %v1436_v6, 1  ;;  %v9302_v35 = vrot.slane %v1439_v1, 2 }
 0x13f   : > { %3181 = vst [vmem:[#allocation1 + $0x3] ss:$9 sm:$0xff] %v9276_v17  ;;  %v9304_v17 = vrot.slane %v1442_v54, 3  ;;  %v1055_v51 = vmax.f32 %v956_v38, 0.0 }
 0x140   : > { %3180 = vst [vmem:[#allocation1 + $0x2] ss:$9 sm:$0xff] %v9283_v50  ;;  %v963_v13 = vpop.f32.mrf.mxu1  ;;  %v7791_v50 = vor.u32 %v8577_v23, %v7790_v20 }
 0x141   : > { %14631 = vst [vmem:[#allocation53_spill] sm:$0xff] %v9295_v44  ;;  %v1105_v33 = vpack.c.bf16 %v1055_v51, %v1055_v51 }
 0x142   : > { %14632 = vst [vmem:[#allocation54_spill] sm:$0xff] %v9300_v8  ;;  %v824_v53 = vpop.f32.mrf.mxu0 }
 0x143   : > { %14633 = vst [vmem:[#allocation55_spill] sm:$0xff] %v9302_v35  ;;  %v825_v44 = vadd.f32 %v8983_v9, %v824_v53  ;;  %7906 = vmatmul.msk.bf16.gmra.mxu1 %vm687_vm2, %v7803_v29  ;;  %v1205_v10 = vrot.slane %v1105_v33, 3 }
 0x144   : > { %14634 = vst [vmem:[#allocation56_spill] sm:$0xff] %v9304_v17 }
 0x145   : > { %3182 = vst [vmem:[#allocation1 + $0x4] ss:$9 sm:$0xff] %v9300_v8  ;;  %v959_v54 = vadd.f32 %v958_v3, %v825_v44  ;;  %863 = vmatmul.bf16.gmra.mxu0 %v7791_v50  ;;  %v9312_v60 = vsel %vm763_vm0, %v1105_v33, %v1205_v10  ;;  %v9315_v38 = vsel %vm1241_vm3, %v1105_v33, %v1205_v10  ;;  %v8580_v44 = vld [vmem:[%s8913_s21 + $0x134] sm:$0xf]  ;;  %v7808_v50 = vld [vmem:[%s8913_s21 + $0x138] sm:$0xf0] }
 0x146   : > { %3183 = vst [vmem:[#allocation1 + $0x5] ss:$9 sm:$0xff] %v9302_v35  ;;  %v1451_v29 = vsel %vm1245_vm4, %v1105_v33, %v1205_v10  ;;  %v1454_v1 = vsel %vm1249_vm5, %v1105_v33, %v1205_v10  ;;  %v7811_v7 = vor.u32 %v8580_v44, %v7808_v50 }
 0x147   : > { %3184 = vst [vmem:[#allocation1 + $0x6] ss:$9 sm:$0xff] %v9304_v17  ;;  %v1056_v23 = vmax.f32 %v959_v54, 0.0  ;;  %v9323_v35 = vrot.slane %v1451_v29, 2  ;;  %v9325_v8 = vrot.slane %v1454_v1, 3 }
 0x148   : > { %14635 = vst [vmem:[#allocation57_spill] sm:$0xff] %v9312_v60  ;;  %v965_v20 = vpop.f32.mrf.mxu1 }
 0x149   : > { %14636 = vst [vmem:[#allocation58_spill] sm:$0xff] %v9315_v38  ;;  %v1106_v51 = vpack.c.bf16 %v1056_v23, %v1056_v23  ;;  %v7798_v38 = vld [vmem:[%s8913_s21 + $0x120] sm:$0xf] }
 0x14a   : > { %3185 = vst [vmem:[#allocation1 + $0x7] ss:$9 sm:$0xff] %v9312_v60  ;;  %v826_v6 = vpop.f32.mrf.mxu0  ;;  %v8579_v60 = vld [vmem:[%s8913_s21 + $0x124] sm:$0xf0] }
 0x14b   : > { %v827_v3 = vadd.f32 %v8983_v9, %v826_v6  ;;  %v1206_v53 = vrot.slane %v1106_v51, 3  ;;  %14637 = vst [vmem:[#allocation59_spill] sm:$0xff] %v9323_v35 }
 0x14c   : > { %14638 = vst [vmem:[#allocation60_spill] sm:$0xff] %v9325_v8 }
 0x14d   : > { %v961_v17 = vadd.f32 %v960_v34, %v827_v3  ;;  %v9332_v2 = vsel %vm763_vm0, %v1106_v51, %v1206_v53  ;;  %v1460_v33 = vsel %vm1241_vm3, %v1106_v51, %v1206_v53  ;;  %v9336_v10 = vsel %vm1245_vm4, %v1106_v51, %v1206_v53 }
 0x14e   : > { %14640 = vst [vmem:[#allocation62_spill] sm:$0xff] %v9332_v2  ;;  %v1466_v23 = vsel %vm1249_vm5, %v1106_v51, %v1206_v53  ;;  %v9340_v34 = vrot.slane %v1460_v33, 1  ;;  %v7799_v3 = vor.u32 %v8579_v60, %v7798_v38 }
 0x14f   : > { %14641 = vst [vmem:[#allocation63_spill] sm:$0xff] %v9336_v10  ;;  %v9342_v6 = vrot.slane %v1466_v23, 3  ;;  %v1057_v1 = vmax.f32 %v961_v17, 0.0 }
 0x150   : > { %14642 = vst [vmem:[#allocation64_spill] sm:$0xff] %v9340_v34  ;;  %v968_v29 = vpop.f32.mrf.mxu1 }
 0x151   : > { %v9329_v54 = vld [vmem:[#allocation1] sm:$0xff]  ;;  %14643 = vst [vmem:[#allocation65_spill] sm:$0xff] %v9342_v6  ;;  %v1107_v50 = vpack.c.bf16 %v1057_v1, %v1057_v1 }
 0x152   : > { %14639 = vst [vmem:[#allocation61_spill] sm:$0xff] %v9329_v54  ;;  %v829_v44 = vpop.f32.mrf.mxu0 }
 0x153   : > { %3187 = vst [vmem:[#allocation1] ss:$9 sm:$0xff] %v9323_v35  ;;  %v830_v54 = vadd.f32 %v8983_v9, %v829_v44  ;;  %7907 = vmatmul.msk.bf16.gmra.mxu1 %vm687_vm2, %v7811_v7  ;;  %v1207_v51 = vrot.slane %v1107_v50, 3 }
 0x154   : > { %3188 = vst [vmem:[#allocation1 + $0x1] ss:$9 sm:$0xff] %v9325_v8 }
 0x155   : > { %3189 = vst [vmem:[#allocation1 + $0x2] ss:$9 sm:$0xff] %v9332_v2  ;;  %v964_v53 = vadd.f32 %v963_v13, %v830_v54  ;;  %868 = vmatmul.bf16.gmra.mxu0 %v7799_v3  ;;  %v9351_v17 = vsel %vm763_vm0, %v1107_v50, %v1207_v51  ;;  %v1472_v60 = vsel %vm1241_vm3, %v1107_v50, %v1207_v51 }
 0x156   : > { %3190 = vst [vmem:[#allocation1 + $0x3] ss:$9 sm:$0xff] %v9340_v34  ;;  %v1475_v38 = vsel %vm1245_vm4, %v1107_v50, %v1207_v51  ;;  %v9356_v33 = vsel %vm1249_vm5, %v1107_v50, %v1207_v51  ;;  %v9358_v7 = vrot.slane %v1472_v60, 1  ;;  %v7816_v50 = vld [vmem:[%s8913_s21 + $0x148] sm:$0xf0] }
 0x157   : > { %3191 = vst [vmem:[#allocation1 + $0x4] ss:$9 sm:$0xff] %v9342_v6  ;;  %v9360_v23 = vrot.slane %v1475_v38, 2  ;;  %v1058_v54 = vmax.f32 %v964_v53, 0.0  ;;  %v8582_v6 = vld [vmem:[%s8913_s21 + $0x144] sm:$0xf] }
 0x158   : > { %14644 = vst [vmem:[#allocation66_spill] sm:$0xff] %v9351_v17  ;;  %v970_v13 = vpop.f32.mrf.mxu1  ;;  %v7806_v60 = vld [vmem:[%s8913_s21 + $0x130] sm:$0xf]  ;;  %v8581_v34 = vld [vmem:[%s8913_s21 + $0x134] sm:$0xf0]  ;;  %v7819_v2 = vor.u32 %v8582_v6, %v7816_v50 }
 0x159   : > { %14645 = vst [vmem:[#allocation67_spill] sm:$0xff] %v9356_v33  ;;  %v1108_v3 = vpack.c.bf16 %v1058_v54, %v1058_v54 }
 0x15a   : > { %14646 = vst [vmem:[#allocation68_spill] sm:$0xff] %v9358_v7  ;;  %v831_v1 = vpop.f32.mrf.mxu0 }
 0x15b   : > { %14647 = vst [vmem:[#allocation69_spill] sm:$0xff] %v9360_v23  ;;  %v832_v44 = vadd.f32 %v8983_v9, %v831_v1  ;;  %v1208_v51 = vrot.slane %v1108_v3, 3  ;;  %v7807_v1 = vor.u32 %v8581_v34, %v7806_v60 }
 0x15c   : > { %3192 = vst [vmem:[#allocation1 + $0x5] ss:$9 sm:$0xff] %v9351_v17 }
 0x15d   : > { %3193 = vst [vmem:[#allocation1 + $0x6] ss:$9 sm:$0xff] %v9358_v7  ;;  %v966_v33 = vadd.f32 %v965_v20, %v832_v44  ;;  %v1484_v38 = vsel %vm1241_vm3, %v1108_v3, %v1208_v51  ;;  %v1487_v17 = vsel %vm1245_vm4, %v1108_v3, %v1208_v51  ;;  %v1490_v53 = vsel %vm1249_vm5, %v1108_v3, %v1208_v51 }
 0x15e   : > { %3194 = vst [vmem:[#allocation1 + $0x7] ss:$9 sm:$0xff] %v9360_v23  ;;  %v9373_v7 = vrot.slane %v1484_v38, 1  ;;  %v9375_v23 = vrot.slane %v1487_v17, 2  ;;  %v9380_v20 = vsel %vm763_vm0, %v1108_v3, %v1208_v51  ;;  %v9382_v44 = vrot.slane %v1490_v53, 3 }
 0x15f   : > { %v1059_v54 = vmax.f32 %v966_v33, 0.0  ;;  %14651 = vst [vmem:[#allocation73_spill] sm:$0xff] %v9380_v20 }
 0x160   : > { %14648 = vst [vmem:[#allocation70_spill] sm:$0xff] %v9373_v7  ;;  %v973_v8 = vpop.f32.mrf.mxu1 }
 0x161   : > { %14649 = vst [vmem:[#allocation71_spill] sm:$0xff] %v9375_v23  ;;  %v1109_v37 = vpack.c.bf16 %v1059_v54, %v1059_v54 }
 0x162   : > { %14652 = vst [vmem:[#allocation74_spill] sm:$0xff] %v9382_v44  ;;  %v834_v10 = vpop.f32.mrf.mxu0 }
 0x163   : > { %v835_v6 = vadd.f32 %v8983_v9, %v834_v10  ;;  %7908 = vmatmul.msk.bf16.gmra.mxu1 %vm687_vm2, %v7819_v2  ;;  %v1209_v34 = vrot.slane %v1109_v37, 3 }
 0x165   : > { %v9377_v35 = vld [vmem:[#allocation1] sm:$0xff]  ;;  %v969_v17 = vadd.f32 %v968_v29, %v835_v6  ;;  %873 = vmatmul.bf16.gmra.mxu0 %v7807_v1  ;;  %v9391_v33 = vsel %vm763_vm0, %v1109_v37, %v1209_v34  ;;  %v1496_v3 = vsel %vm1241_vm3, %v1109_v37, %v1209_v34  ;;  %v1499_v10 = vsel %vm1245_vm4, %v1109_v37, %v1209_v34  ;;  %v8584_v6 = vld [vmem:[%s8913_s21 + $0x154] sm:$0xf] }
 0x166   : > { %14650 = vst [vmem:[#allocation72_spill] sm:$0xff] %v9377_v35  ;;  %v1502_v2 = vsel %vm1249_vm5, %v1109_v37, %v1209_v34  ;;  %v9396_v50 = vrot.slane %v1496_v3, 1  ;;  %v9398_v51 = vrot.slane %v1499_v10, 2  ;;  %v7824_v37 = vld [vmem:[%s8913_s21 + $0x158] sm:$0xf0] }
 0x167   : > { %3196 = vst [vmem:[#allocation1] ss:$9 sm:$0xff] %v9380_v20  ;;  %v9400_v29 = vrot.slane %v1502_v2, 3  ;;  %v1060_v38 = vmax.f32 %v969_v17, 0.0  ;;  %v7814_v10 = vld [vmem:[%s8913_s21 + $0x140] sm:$0xf]  ;;  %v7827_v2 = vor.u32 %v8584_v6, %v7824_v37 }
 0x168   : > { %3197 = vst [vmem:[#allocation1 + $0x1] ss:$9 sm:$0xff] %v9373_v7  ;;  %v975_v60 = vpop.f32.mrf.mxu1  ;;  %v8583_v35 = vld [vmem:[%s8913_s21 + $0x144] sm:$0xf0] }
 0x169   : > { %3198 = vst [vmem:[#allocation1 + $0x2] ss:$9 sm:$0xff] %v9375_v23  ;;  %v1110_v54 = vpack.c.bf16 %v1060_v38, %v1060_v38 }
 0x16a   : > { %3199 = vst [vmem:[#allocation1 + $0x3] ss:$9 sm:$0xff] %v9382_v44  ;;  %v836_v53 = vpop.f32.mrf.mxu0 }
 0x16b   : > { %14653 = vst [vmem:[#allocation75_spill] sm:$0xff] %v9391_v33  ;;  %v837_v1 = vadd.f32 %v8983_v9, %v836_v53  ;;  %v1210_v34 = vrot.slane %v1110_v54, 3 }
 0x16c   : > { %14654 = vst [vmem:[#allocation76_spill] sm:$0xff] %v9396_v50 }
 0x16d   : > { %14655 = vst [vmem:[#allocation77_spill] sm:$0xff] %v9398_v51  ;;  %v971_v3 = vadd.f32 %v970_v13, %v837_v1  ;;  %v9411_v33 = vsel %vm763_vm0, %v1110_v54, %v1210_v34  ;;  %v9414_v17 = vsel %vm1241_vm3, %v1110_v54, %v1210_v34  ;;  %v9420_v38 = vsel %vm1249_vm5, %v1110_v54, %v1210_v34 }
 0x16e   : > { %14656 = vst [vmem:[#allocation78_spill] sm:$0xff] %v9400_v29  ;;  %v7815_v13 = vor.u32 %v8583_v35, %v7814_v10 }
 0x16f   : > { %3200 = vst [vmem:[#allocation1 + $0x4] ss:$9 sm:$0xff] %v9396_v50 }
 0x170   : > { %3201 = vst [vmem:[#allocation1 + $0x5] ss:$9 sm:$0xff] %v9398_v51  ;;  %v9417_v51 = vsel %vm1245_vm4, %v1110_v54, %v1210_v34  ;;  %v978_v53 = vpop.f32.mrf.mxu1 }
 0x171   : > { %3202 = vst [vmem:[#allocation1 + $0x6] ss:$9 sm:$0xff] %v9400_v29  ;;  %v1061_v29 = vmax.f32 %v971_v3, 0.0 }
 0x172   : > { %14657 = vst [vmem:[#allocation79_spill] sm:$0xff] %v9411_v33  ;;  %v839_v1 = vpop.f32.mrf.mxu0 }
 0x173   : > { %14658 = vst [vmem:[#allocation80_spill] sm:$0xff] %v9414_v17  ;;  %v9423_v6 = vpack.c.bf16 %v1061_v29, %v1061_v29  ;;  %v840_v37 = vadd.f32 %v8983_v9, %v839_v1  ;;  %7909 = vmatmul.msk.bf16.gmra.mxu1 %vm687_vm2, %v7827_v2 }
 0x174   : > { %14659 = vst [vmem:[#allocation81_spill] sm:$0xff] %v9417_v51 }
 0x175   : > { %14660 = vst [vmem:[#allocation82_spill] sm:$0xff] %v9420_v38  ;;  %v9428_v51 = vrot.slane %v9423_v6, 3  ;;  %v974_v54 = vadd.f32 %v973_v8, %v840_v37  ;;  %878 = vmatmul.bf16.gmra.mxu0 %v7815_v13  ;;  %v8586_v38 = vld [vmem:[%s8913_s21 + $0x164] sm:$0xf]  ;;  %v7832_v8 = vld [vmem:[%s8913_s21 + $0x168] sm:$0xf0] }
 0x176   : > { %3203 = vst [vmem:[#allocation1 + $0x7] ss:$9 sm:$0xff] %v9411_v33  ;;  %v7822_v33 = vld [vmem:[%s8913_s21 + $0x150] sm:$0xf] }
 0x177   : > { %14661 = vst [vmem:[#allocation83_spill] sm:$0xff] %v9423_v6  ;;  %v9433_v34 = vsel %vm1245_vm4, %v9423_v6, %v9428_v51  ;;  %v9438_v35 = vsel %vm1249_vm5, %v9423_v6, %v9428_v51  ;;  %v1062_v3 = vmax.f32 %v974_v54, 0.0 }
 0x178   : > { %14662 = vst [vmem:[#allocation84_spill] sm:$0xff] %v9428_v51  ;;  %v980_v29 = vpop.f32.mrf.mxu1 }
 0x179   : > { %14663 = vst [vmem:[#allocation85_spill] sm:$0xff] %v9433_v34  ;;  %v9440_v2 = vpack.c.bf16 %v1062_v3, %v1062_v3  ;;  %v8585_v34 = vld [vmem:[%s8913_s21 + $0x154] sm:$0xf0] }
 0x17a   : > { %14664 = vst [vmem:[#allocation86_spill] sm:$0xff] %v9438_v35  ;;  %v841_v10 = vpop.f32.mrf.mxu0  ;;  %v7835_v35 = vor.u32 %v8586_v38, %v7832_v8  ;;  %v7823_v3 = vor.u32 %v8585_v34, %v7822_v33 }
 0x17b   : > { %14665 = vst [vmem:[#allocation87_spill] sm:$0xff] %v9440_v2  ;;  %v842_v1 = vadd.f32 %v8983_v9, %v841_v10  ;;  %v9446_v13 = vrot.slane %v9440_v2, 3 }
 0x17d   : > { %14666 = vst [vmem:[#allocation88_spill] sm:$0xff] %v9446_v13  ;;  %v976_v37 = vadd.f32 %v975_v60, %v842_v1  ;;  %v9453_v6 = vsel %vm1249_vm5, %v9440_v2, %v9446_v13  ;;  %v9457_v60 = vld [vmem:[#allocation1] sm:$0xff] }
 0x17e   : > { %14667 = vst [vmem:[#allocation89_spill] sm:$0xff] %v9453_v6 }
 0x17f   : > { %v1063_v51 = vmax.f32 %v976_v37, 0.0  ;;  %14668 = vst [vmem:[#allocation90_spill] sm:$0xff] %v9457_v60 }
 0x180   : > { %v983_v54 = vpop.f32.mrf.mxu1 }
 0x181   : > { %v1113_v17 = vpack.c.bf16 %v1063_v51, %v1063_v51 }
 0x182   : > { %v844_v50 = vpop.f32.mrf.mxu0 }
 0x183   : > { %v845_v10 = vadd.f32 %v8983_v9, %v844_v50  ;;  %7910 = vmatmul.msk.bf16.gmra.mxu1 %vm687_vm2, %v7835_v35  ;;  %v1213_v44 = vrot.slane %v1113_v17, 3 }
 0x185   : > { %v979_v20 = vadd.f32 %v978_v53, %v845_v10  ;;  %883 = vmatmul.bf16.gmra.mxu0 %v7823_v3  ;;  %v9460_v1 = vsel %vm763_vm0, %v1113_v17, %v1213_v44  ;;  %v1544_v38 = vsel %vm1241_vm3, %v1113_v17, %v1213_v44  ;;  %v1547_v33 = vsel %vm1245_vm4, %v1113_v17, %v1213_v44  ;;  %v8588_v3 = vld [vmem:[%s8913_s21 + $0x174] sm:$0xf]  ;;  %v7840_v10 = vld [vmem:[%s8913_s21 + $0x178] sm:$0xf0] }
 0x186   : > { %14669 = vst [vmem:[#allocation91_spill] sm:$0xff] %v9460_v1  ;;  %v1550_v51 = vsel %vm1249_vm5, %v1113_v17, %v1213_v44  ;;  %v9465_v34 = vrot.slane %v1544_v38, 1  ;;  %v9467_v9 = vrot.slane %v1547_v33, 2  ;;  %v9477_v44 = vld [vmem:[%s13831_s2] ss:$0 sm:$0xff]  ;;  %v7843_v6 = vor.u32 %v8588_v3, %v7840_v10 }
 0x187   : > { %v9469_v50 = vrot.slane %v1550_v51, 3  ;;  %3205 = vst [vmem:[#allocation1] ss:$9 sm:$0xff] %v9460_v1  ;;  %v1064_v35 = vmax.f32 %v979_v20, 0.0  ;;  %v7830_v20 = vld [vmem:[%s8913_s21 + $0x160] sm:$0xf] }
 0x188   : > { %14670 = vst [vmem:[#allocation92_spill] sm:$0xff] %v9465_v34  ;;  %v985_v53 = vpop.f32.mrf.mxu1  ;;  %v8587_v51 = vld [vmem:[%s8913_s21 + $0x164] sm:$0xf0] }
 0x189   : > { %14671 = vst [vmem:[#allocation93_spill] sm:$0xff] %v9467_v9  ;;  %v1114_v37 = vpack.c.bf16 %v1064_v35, %v1064_v35 }
 0x18a   : > { %14672 = vst [vmem:[#allocation94_spill] sm:$0xff] %v9469_v50  ;;  %v846_v8 = vpop.f32.mrf.mxu0 }
 0x18b   : > { %3206 = vst [vmem:[#allocation1 + $0x1] ss:$9 sm:$0xff] %v9465_v34  ;;  %v847_v17 = vadd.f32 %v9477_v44, %v846_v8  ;;  %v1214_v38 = vrot.slane %v1114_v37, 3 }
 0x18c   : > { %3207 = vst [vmem:[#allocation1 + $0x2] ss:$9 sm:$0xff] %v9467_v9 }
 0x18d   : > { %3208 = vst [vmem:[#allocation1 + $0x3] ss:$9 sm:$0xff] %v9469_v50  ;;  %v981_v33 = vadd.f32 %v980_v29, %v847_v17  ;;  %v9486_v2 = vsel %vm763_vm0, %v1114_v37, %v1214_v38  ;;  %v1556_v35 = vsel %vm1241_vm3, %v1114_v37, %v1214_v38  ;;  %v1559_v13 = vsel %vm1245_vm4, %v1114_v37, %v1214_v38 }
 0x18e   : > { %14673 = vst [vmem:[#allocation95_spill] sm:$0xff] %v9486_v2  ;;  %v1562_v60 = vsel %vm1249_vm5, %v1114_v37, %v1214_v38  ;;  %v9491_v1 = vrot.slane %v1556_v35, 1  ;;  %v9493_v8 = vrot.slane %v1559_v13, 2  ;;  %v7831_v17 = vor.u32 %v8587_v51, %v7830_v20 }
 0x18f   : > { %v9495_v9 = vrot.slane %v1562_v60, 3  ;;  %v1065_v29 = vmax.f32 %v981_v33, 0.0 }
 0x190   : > { %14674 = vst [vmem:[#allocation96_spill] sm:$0xff] %v9491_v1  ;;  %v988_v50 = vpop.f32.mrf.mxu1 }
 0x191   : > { %14675 = vst [vmem:[#allocation97_spill] sm:$0xff] %v9493_v8  ;;  %v1115_v10 = vpack.c.bf16 %v1065_v29, %v1065_v29 }
 0x192   : > { %14676 = vst [vmem:[#allocation98_spill] sm:$0xff] %v9495_v9  ;;  %v849_v3 = vpop.f32.mrf.mxu0 }
 0x193   : > { %3209 = vst [vmem:[#allocation1 + $0x4] ss:$9 sm:$0xff] %v9491_v1  ;;  %v850_v2 = vadd.f32 %v9477_v44, %v849_v3  ;;  %7911 = vmatmul.msk.bf16.gmra.mxu1 %vm687_vm2, %v7843_v6  ;;  %v1215_v13 = vrot.slane %v1115_v10, 3 }
 0x194   : > { %3210 = vst [vmem:[#allocation1 + $0x5] ss:$9 sm:$0xff] %v9493_v8 }
 0x195   : > { %3211 = vst [vmem:[#allocation1 + $0x6] ss:$9 sm:$0xff] %v9495_v9  ;;  %v984_v60 = vadd.f32 %v983_v54, %v850_v2  ;;  %888 = vmatmul.bf16.gmra.mxu0 %v7831_v17  ;;  %v9503_v37 = vsel %vm763_vm0, %v1115_v10, %v1215_v13  ;;  %v9506_v38 = vsel %vm1241_vm3, %v1115_v10, %v1215_v13  ;;  %v8590_v54 = vld [vmem:[%s8913_s21 + $0x184] sm:$0xf]  ;;  %v7848_v17 = vld [vmem:[%s8913_s21 + $0x188] sm:$0xf0] }
 0x196   : > { %14677 = vst [vmem:[#allocation99_spill] sm:$0xff] %v9503_v37  ;;  %v1571_v6 = vsel %vm1245_vm4, %v1115_v10, %v1215_v13  ;;  %v1574_v35 = vsel %vm1249_vm5, %v1115_v10, %v1215_v13  ;;  %v7851_v34 = vor.u32 %v8590_v54, %v7848_v17 }
 0x197   : > { %14678 = vst [vmem:[#allocation100_spill] sm:$0xff] %v9506_v38  ;;  %v1066_v20 = vmax.f32 %v984_v60, 0.0  ;;  %v9514_v8 = vrot.slane %v1571_v6, 2  ;;  %v9516_v1 = vrot.slane %v1574_v35, 3  ;;  %v7838_v38 = vld [vmem:[%s8913_s21 + $0x170] sm:$0xf] }
 0x198   : > { %3212 = vst [vmem:[#allocation1 + $0x7] ss:$9 sm:$0xff] %v9503_v37  ;;  %v990_v33 = vpop.f32.mrf.mxu1  ;;  %v8589_v37 = vld [vmem:[%s8913_s21 + $0x174] sm:$0xf0] }
 0x199   : > { %v1116_v29 = vpack.c.bf16 %v1066_v20, %v1066_v20  ;;  %14679 = vst [vmem:[#allocation101_spill] sm:$0xff] %v9514_v8 }
 0x19a   : > { %v851_v51 = vpop.f32.mrf.mxu0  ;;  %14680 = vst [vmem:[#allocation102_spill] sm:$0xff] %v9516_v1 }
 0x19b   : > { %v852_v2 = vadd.f32 %v9477_v44, %v851_v51  ;;  %v1216_v3 = vrot.slane %v1116_v29, 3 }
 0x19d   : > { %v986_v9 = vadd.f32 %v985_v53, %v852_v2  ;;  %v9523_v23 = vsel %vm763_vm0, %v1116_v29, %v1216_v3  ;;  %v1580_v10 = vsel %vm1241_vm3, %v1116_v29, %v1216_v3  ;;  %v9527_v13 = vsel %vm1245_vm4, %v1116_v29, %v1216_v3 }
 0x19e   : > { %14682 = vst [vmem:[#allocation104_spill] sm:$0xff] %v9523_v23  ;;  %v1586_v20 = vsel %vm1249_vm5, %v1116_v29, %v1216_v3  ;;  %v9531_v53 = vrot.slane %v1580_v10, 1  ;;  %v7839_v2 = vor.u32 %v8589_v37, %v7838_v38 }
 0x19f   : > { %v9520_v60 = vld [vmem:[#allocation1] sm:$0xff]  ;;  %v9533_v51 = vrot.slane %v1586_v20, 3  ;;  %v1067_v35 = vmax.f32 %v986_v9, 0.0 }
 0x1a0   : > { %14681 = vst [vmem:[#allocation103_spill] sm:$0xff] %v9520_v60  ;;  %v993_v6 = vpop.f32.mrf.mxu1 }
 0x1a1   : > { %3214 = vst [vmem:[#allocation1] ss:$9 sm:$0xff] %v9514_v8  ;;  %v1117_v17 = vpack.c.bf16 %v1067_v35, %v1067_v35 }
 0x1a2   : > { %14683 = vst [vmem:[#allocation105_spill] sm:$0xff] %v9531_v53  ;;  %v854_v54 = vpop.f32.mrf.mxu0 }
 0x1a3   : > { %14684 = vst [vmem:[#allocation106_spill] sm:$0xff] %v9533_v51  ;;  %v855_v60 = vadd.f32 %v9477_v44, %v854_v54  ;;  %7912 = vmatmul.msk.bf16.gmra.mxu1 %vm687_vm2, %v7851_v34  ;;  %v1217_v29 = vrot.slane %v1117_v17, 3  ;;  %vm1852_vm2 = vsmask.f32 6424 }
 0x1a4   : > { %3215 = vst [vmem:[#allocation1 + $0x1] ss:$9 sm:$0xff] %v9516_v1  ;;  %vm1853_vm6 = vmor %vm1851_vm1, %vm1852_vm2 }
 0x1a5   : > { %3216 = vst [vmem:[#allocation1 + $0x2] ss:$9 sm:$0xff] %v9523_v23  ;;  %v989_v3 = vadd.f32 %v988_v50, %v855_v60  ;;  %893 = vmatmul.bf16.gmra.mxu0 %v7839_v2  ;;  %v9542_v10 = vsel %vm763_vm0, %v1117_v17, %v1217_v29  ;;  %v1592_v9 = vsel %vm1241_vm3, %v1117_v17, %v1217_v29  ;;  %vm9852_vm8 = vmor %vm1853_vm6, %vm1854_vm7 }
 0x1a6   : > { %3217 = vst [vmem:[#allocation1 + $0x3] ss:$9 sm:$0xff] %v9531_v53  ;;  %v1595_v37 = vsel %vm1245_vm4, %v1117_v17, %v1217_v29  ;;  %v9547_v38 = vsel %vm1249_vm5, %v1117_v17, %v1217_v29  ;;  %v9549_v20 = vrot.slane %v1592_v9, 1  ;;  %v7846_v17 = vld [vmem:[%s8913_s21 + $0x180] sm:$0xf] }
 0x1a7   : > { %3218 = vst [vmem:[#allocation1 + $0x4] ss:$9 sm:$0xff] %v9533_v51  ;;  %v9551_v34 = vrot.slane %v1595_v37, 2  ;;  %v1068_v60 = vmax.f32 %v989_v3, 0.0  ;;  %v8591_v29 = vld [vmem:[%s8913_s21 + $0x184] sm:$0xf0] }
 0x1a8   : > { %14685 = vst [vmem:[#allocation107_spill] sm:$0xff] %v9542_v10  ;;  %v995_v50 = vpop.f32.mrf.mxu1  ;;  %s8794_s21 = smov 32  }
 0x1a9   : > { %14686 = vst [vmem:[#allocation108_spill] sm:$0xff] %v9547_v38  ;;  %v1118_v2 = vpack.c.bf16 %v1068_v60, %v1068_v60 }
 0x1aa   : > { %14687 = vst [vmem:[#allocation109_spill] sm:$0xff] %v9549_v20  ;;  %v856_v35 = vpop.f32.mrf.mxu0 }
 0x1ab   : > { %14688 = vst [vmem:[#allocation110_spill] sm:$0xff] %v9551_v34  ;;  %v857_v54 = vadd.f32 %v9477_v44, %v856_v35  ;;  %v1218_v51 = vrot.slane %v1118_v2, 3 }
 0x1ac   : > { %3219 = vst [vmem:[#allocation1 + $0x5] ss:$9 sm:$0xff] %v9542_v10 }
 0x1ad   : > { %3220 = vst [vmem:[#allocation1 + $0x6] ss:$9 sm:$0xff] %v9549_v20  ;;  %v991_v53 = vadd.f32 %v990_v33, %v857_v54  ;;  %v1604_v9 = vsel %vm1241_vm3, %v1118_v2, %v1218_v51  ;;  %v1607_v37 = vsel %vm1245_vm4, %v1118_v2, %v1218_v51  ;;  %v1610_v10 = vsel %vm1249_vm5, %v1118_v2, %v1218_v51 }
 0x1ae   : > { %3221 = vst [vmem:[#allocation1 + $0x7] ss:$9 sm:$0xff] %v9551_v34  ;;  %v9562_v38 = vrot.slane %v1604_v9, 1  ;;  %v9564_v20 = vrot.slane %v1607_v37, 2  ;;  %v7847_v34 = vor.u32 %v8591_v29, %v7846_v17  ;;  %v9569_v35 = vsel %vm763_vm0, %v1118_v2, %v1218_v51 }
 0x1af   : > { %v1069_v23 = vmax.f32 %v991_v53, 0.0  ;;  %14692 = vst [vmem:[#allocation114_spill] sm:$0xff] %v9569_v35  ;;  %v9571_v33 = vrot.slane %v1610_v10, 3 }
 0x1b0   : > { %14689 = vst [vmem:[#allocation111_spill] sm:$0xff] %v9562_v38  ;;  %v998_v3 = vpop.f32.mrf.mxu1 }
 0x1b1   : > { %14690 = vst [vmem:[#allocation112_spill] sm:$0xff] %v9564_v20  ;;  %v1119_v1 = vpack.c.bf16 %v1069_v23, %v1069_v23 }
 0x1b2   : > { %14693 = vst [vmem:[#allocation115_spill] sm:$0xff] %v9571_v33  ;;  %v859_v54 = vpop.f32.mrf.mxu0 }
 0x1b3   : > { %v860_v8 = vadd.f32 %v9477_v44, %v859_v54  ;;  %v1219_v9 = vrot.slane %v1119_v1, 3 }
 0x1b5   : > { %v9566_v60 = vld [vmem:[#allocation1] sm:$0xff]  ;;  %v994_v53 = vadd.f32 %v993_v6, %v860_v8  ;;  %898 = vmatmul.bf16.gmra.mxu0 %v7847_v34  ;;  %v9579_v51 = vsel %vm763_vm0, %v1119_v1, %v1219_v9  ;;  %v1616_v10 = vsel %vm1241_vm3, %v1119_v1, %v1219_v9  ;;  %v1619_v2 = vsel %vm1245_vm4, %v1119_v1, %v1219_v9 }
 0x1b6   : > { %14691 = vst [vmem:[#allocation113_spill] sm:$0xff] %v9566_v60  ;;  %v1622_v23 = vsel %vm1249_vm5, %v1119_v1, %v1219_v9  ;;  %v9584_v17 = vrot.slane %v1616_v10, 1  ;;  %v9586_v29 = vrot.slane %v1619_v2, 2 }
 0x1b7   : > { %3223 = vst [vmem:[#allocation1] ss:$9 sm:$0xff] %v9569_v35  ;;  %v9588_v37 = vrot.slane %v1622_v23, 3  ;;  %v1070_v8 = vmax.f32 %v994_v53, 0.0 }
 0x1b8   : > { %3224 = vst [vmem:[#allocation1 + $0x1] ss:$9 sm:$0xff] %v9562_v38  ;;  %v1000_v54 = vpop.f32.mrf.mxu1 }
 0x1b9   : > { %3225 = vst [vmem:[#allocation1 + $0x2] ss:$9 sm:$0xff] %v9564_v20  ;;  %v1120_v34 = vpack.c.bf16 %v1070_v8, %v1070_v8 }
 0x1ba   : > { %3226 = vst [vmem:[#allocation1 + $0x3] ss:$9 sm:$0xff] %v9571_v33  ;;  %v861_v6 = vpop.f32.mrf.mxu0 }
 0x1bb   : > { %14694 = vst [vmem:[#allocation116_spill] sm:$0xff] %v9579_v51  ;;  %v862_v60 = vadd.f32 %v9477_v44, %v861_v6  ;;  %v1220_v51 = vrot.slane %v1120_v34, 3 }
 0x1bc   : > { %14695 = vst [vmem:[#allocation117_spill] sm:$0xff] %v9584_v17 }
 0x1bd   : > { %14696 = vst [vmem:[#allocation118_spill] sm:$0xff] %v9586_v29  ;;  %v996_v1 = vadd.f32 %v995_v50, %v862_v60  ;;  %v9595_v9 = vsel %vm763_vm0, %v1120_v34, %v1220_v51  ;;  %v9598_v10 = vsel %vm1241_vm3, %v1120_v34, %v1220_v51  ;;  %v1634_v8 = vsel %vm1249_vm5, %v1120_v34, %v1220_v51 }
 0x1be   : > { %14697 = vst [vmem:[#allocation119_spill] sm:$0xff] %v9588_v37  ;;  %v9606_v33 = vrot.slane %v1634_v8, 3 }
 0x1bf   : > { %3227 = vst [vmem:[#allocation1 + $0x4] ss:$9 sm:$0xff] %v9584_v17  ;;  %v1071_v2 = vmax.f32 %v996_v1, 0.0 }
 0x1c0   : > { %3228 = vst [vmem:[#allocation1 + $0x5] ss:$9 sm:$0xff] %v9586_v29  ;;  %v1003_v53 = vpop.f32.mrf.mxu1  ;;  %v1631_v29 = vsel %vm1245_vm4, %v1120_v34, %v1220_v51 }
 0x1c1   : > { %3229 = vst [vmem:[#allocation1 + $0x6] ss:$9 sm:$0xff] %v9588_v37  ;;  %v1121_v6 = vpack.c.bf16 %v1071_v2, %v1071_v2  ;;  %v9604_v60 = vrot.slane %v1631_v29, 2 }
 0x1c2   : > { %14698 = vst [vmem:[#allocation120_spill] sm:$0xff] %v9595_v9  ;;  %v864_v23 = vpop.f32.mrf.mxu0 }
 0x1c3   : > { %14699 = vst [vmem:[#allocation121_spill] sm:$0xff] %v9598_v10  ;;  %v865_v37 = vadd.f32 %v9477_v44, %v864_v23  ;;  %v1221_v17 = vrot.slane %v1121_v6, 3 }
 0x1c4   : > { %3230 = vst [vmem:[#allocation1 + $0x7] ss:$9 sm:$0xff] %v9595_v9 }
 0x1c5   : > { %v999_v50 = vadd.f32 %v998_v3, %v865_v37  ;;  %14700 = vst [vmem:[#allocation122_spill] sm:$0xff] %v9604_v60  ;;  %v9611_v9 = vsel %vm763_vm0, %v1121_v6, %v1221_v17  ;;  %v1640_v1 = vsel %vm1241_vm3, %v1121_v6, %v1221_v17  ;;  %v9615_v10 = vsel %vm1245_vm4, %v1121_v6, %v1221_v17 }
 0x1c6   : > { %14701 = vst [vmem:[#allocation123_spill] sm:$0xff] %v9606_v33  ;;  %v1646_v51 = vsel %vm1249_vm5, %v1121_v6, %v1221_v17  ;;  %v9619_v34 = vrot.slane %v1640_v1, 1 }
 0x1c7   : > { %14703 = vst [vmem:[#allocation125_spill] sm:$0xff] %v9611_v9  ;;  %v9621_v3 = vrot.slane %v1646_v51, 3  ;;  %v1072_v37 = vmax.f32 %v999_v50, 0.0 }
 0x1c8   : > { %14704 = vst [vmem:[#allocation126_spill] sm:$0xff] %v9619_v34  ;;  %v1005_v29 = vpop.f32.mrf.mxu1 }
 0x1c9   : > { %14705 = vst [vmem:[#allocation127_spill] sm:$0xff] %v9621_v3  ;;  %v1122_v23 = vpack.c.bf16 %v1072_v37, %v1072_v37 }
 0x1ca   : > { %v866_v2 = vpop.f32.mrf.mxu0 }
 0x1cb   : > { %v9608_v35 = vld [vmem:[#allocation1] sm:$0xff]  ;;  %v867_v8 = vadd.f32 %v9477_v44, %v866_v2  ;;  %v1222_v17 = vrot.slane %v1122_v23, 3 }
 0x1cc   : > { %14702 = vst [vmem:[#allocation124_spill] sm:$0xff] %v9608_v35 }
 0x1cd   : > { %3232 = vst [vmem:[#allocation1] ss:$9 sm:$0xff] %v9604_v60  ;;  %v9628_v6 = vadd.f32 %v1000_v54, %v867_v8  ;;  %v9631_v1 = vsel %vm763_vm0, %v1122_v23, %v1222_v17  ;;  %v1652_v51 = vsel %vm1241_vm3, %v1122_v23, %v1222_v17  ;;  %v1655_v50 = vsel %vm1245_vm4, %v1122_v23, %v1222_v17 }
 0x1ce   : > { %3233 = vst [vmem:[#allocation1 + $0x1] ss:$9 sm:$0xff] %v9606_v33  ;;  %v9636_v35 = vsel %vm1249_vm5, %v1122_v23, %v1222_v17  ;;  %v9640_v37 = vrot.slane %v1655_v50, 2 }
 0x1cf   : > { %3234 = vst [vmem:[#allocation1 + $0x2] ss:$9 sm:$0xff] %v9611_v9  ;;  %v9638_v9 = vrot.slane %v1652_v51, 1 }
 0x1d0   : > { %3235 = vst [vmem:[#allocation1 + $0x3] ss:$9 sm:$0xff] %v9619_v34  ;;  %v1008_v2 = vpop.f32.mrf.mxu1 }
 0x1d1   : > { %3236 = vst [vmem:[#allocation1 + $0x4] ss:$9 sm:$0xff] %v9621_v3 }
 0x1d2   : > { %14706 = vst [vmem:[#allocation128_spill] sm:$0xff] %v9628_v6  ;;  %v869_v54 = vpop.f32.mrf.mxu0 }
 0x1d3   : > { %14707 = vst [vmem:[#allocation129_spill] sm:$0xff] %v9631_v1  ;;  %v870_v8 = vadd.f32 %v9477_v44, %v869_v54 }
 0x1d4   : > { %14708 = vst [vmem:[#allocation130_spill] sm:$0xff] %v9636_v35 }
 0x1d5   : > { %14709 = vst [vmem:[#allocation131_spill] sm:$0xff] %v9638_v9  ;;  %v1004_v6 = vadd.f32 %v1003_v53, %v870_v8 }
 0x1d6   : > { %14710 = vst [vmem:[#allocation132_spill] sm:$0xff] %v9640_v37 }
 0x1d7   : > { %3237 = vst [vmem:[#allocation1 + $0x5] ss:$9 sm:$0xff] %v9631_v1  ;;  %v1074_v3 = vmax.f32 %v1004_v6, 0.0 }
 0x1d8   : > { %3238 = vst [vmem:[#allocation1 + $0x6] ss:$9 sm:$0xff] %v9638_v9  ;;  %v1010_v17 = vpop.f32.mrf.mxu1 }
 0x1d9   : > { %3239 = vst [vmem:[#allocation1 + $0x7] ss:$9 sm:$0xff] %v9640_v37  ;;  %v9646_v33 = vpack.c.bf16 %v1074_v3, %v1074_v3 }
 0x1da   : > { %v871_v34 = vpop.f32.mrf.mxu0 }
 0x1db   : > { %14711 = vst [vmem:[#allocation133_spill] sm:$0xff] %v9646_v33  ;;  %v872_v23 = vadd.f32 %v9477_v44, %v871_v34  ;;  %v9650_v51 = vrot.slane %v9646_v33, 3 }
 0x1dd   : > { %14712 = vst [vmem:[#allocation134_spill] sm:$0xff] %v9650_v51  ;;  %v1006_v50 = vadd.f32 %v1005_v29, %v872_v23  ;;  %v9655_v9 = vsel %vm1241_vm3, %v9646_v33, %v9650_v51  ;;  %v9660_v53 = vsel %vm1245_vm4, %v9646_v33, %v9650_v51  ;;  %v9665_v3 = vsel %vm1249_vm5, %v9646_v33, %v9650_v51 }
 0x1de   : > { %14713 = vst [vmem:[#allocation135_spill] sm:$0xff] %v9655_v9 }
 0x1df   : > { %14714 = vst [vmem:[#allocation136_spill] sm:$0xff] %v9660_v53  ;;  %v1075_v34 = vmax.f32 %v1006_v50, 0.0 }
 0x1e0   : > { %14715 = vst [vmem:[#allocation137_spill] sm:$0xff] %v9665_v3  ;;  %v1013_v37 = vpop.f32.mrf.mxu1 }
 0x1e1   : > { %v1125_v54 = vpack.c.bf16 %v1075_v34, %v1075_v34  ;;  %v9681_v34 = vld [vmem:[#allocation1] sm:$0xff] }
 0x1e2   : > { %v874_v6 = vpop.f32.mrf.mxu0  ;;  %14720 = vst [vmem:[#allocation142_spill] sm:$0xff] %v9681_v34 }
 0x1e3   : > { %v875_v29 = vadd.f32 %v9477_v44, %v874_v6  ;;  %v1225_v8 = vrot.slane %v1125_v54, 3 }
 0x1e5   : > { %v1009_v23 = vadd.f32 %v1008_v2, %v875_v29  ;;  %v9669_v9 = vsel %vm763_vm0, %v1125_v54, %v1225_v8  ;;  %v9672_v1 = vsel %vm1241_vm3, %v1125_v54, %v1225_v8  ;;  %v9675_v53 = vsel %vm1245_vm4, %v1125_v54, %v1225_v8 }
 0x1e6   : > { %14716 = vst [vmem:[#allocation138_spill] sm:$0xff] %v9669_v9  ;;  %v1694_v33 = vsel %vm1249_vm5, %v1125_v54, %v1225_v8  ;;  %v13983_v50 = vrot.slane %v9675_v53, 2 }
 0x1e7   : > { %14717 = vst [vmem:[#allocation139_spill] sm:$0xff] %v9672_v1  ;;  %v9679_v3 = vrot.slane %v1694_v33, 3  ;;  %v1076_v6 = vmax.f32 %v1009_v23, 0.0 }
 0x1e8   : > { %14718 = vst [vmem:[#allocation140_spill] sm:$0xff] %v9675_v53 }
 0x1e9   : > { %14719 = vst [vmem:[#allocation141_spill] sm:$0xff] %v9679_v3  ;;  %v1126_v29 = vpack.c.bf16 %v1076_v6, %v1076_v6  ;;  %v1015_v6 = vpop.f32.mrf.mxu1 }
 0x1ea   : > { %3241 = vst [vmem:[#allocation1] ss:$9 sm:$0xff] %v13983_v50  ;;  %v876_v2 = vpop.f32.mrf.mxu0 }
 0x1eb   : > { %3242 = vst [vmem:[#allocation1 + $0x1] ss:$9 sm:$0xff] %v9679_v3  ;;  %v877_v1 = vadd.f32 %v9477_v44, %v876_v2  ;;  %v1226_v9 = vrot.slane %v1126_v29, 3 }
 0x1ed   : > { %v1011_v51 = vadd.f32 %v1010_v17, %v877_v1  ;;  %v9688_v54 = vsel %vm763_vm0, %v1126_v29, %v1226_v9  ;;  %v1700_v33 = vsel %vm1241_vm3, %v1126_v29, %v1226_v9  ;;  %v9692_v8 = vsel %vm1245_vm4, %v1126_v29, %v1226_v9 }
 0x1ee   : > { %14721 = vst [vmem:[#allocation143_spill] sm:$0xff] %v9688_v54  ;;  %v1706_v23 = vsel %vm1249_vm5, %v1126_v29, %v1226_v9  ;;  %v9695_v34 = vrot.slane %v1700_v33, 1 }
 0x1ef   : > { %14722 = vst [vmem:[#allocation144_spill] sm:$0xff] %v9692_v8  ;;  %v9697_v50 = vrot.slane %v1706_v23, 3  ;;  %v1077_v2 = vmax.f32 %v1011_v51, 0.0 }
 0x1f0   : > { %14723 = vst [vmem:[#allocation145_spill] sm:$0xff] %v9695_v34 }
 0x1f1   : > { %14724 = vst [vmem:[#allocation146_spill] sm:$0xff] %v9697_v50  ;;  %v1127_v17 = vpack.c.bf16 %v1077_v2, %v1077_v2 }
 0x1f2   : > { %3243 = vst [vmem:[#allocation1 + $0x2] ss:$9 sm:$0xff] %v9688_v54  ;;  %v879_v1 = vpop.f32.mrf.mxu0 }
 0x1f3   : > { %3244 = vst [vmem:[#allocation1 + $0x3] ss:$9 sm:$0xff] %v9695_v34  ;;  %v880_v3 = vadd.f32 %v9477_v44, %v879_v1  ;;  %v1227_v53 = vrot.slane %v1127_v17, 3 }
 0x1f4   : > { %3245 = vst [vmem:[#allocation1 + $0x4] ss:$9 sm:$0xff] %v9697_v50 }
 0x1f5   : > { %v1014_v8 = vadd.f32 %v1013_v37, %v880_v3  ;;  %v9704_v9 = vsel %vm763_vm0, %v1127_v17, %v1227_v53  ;;  %v1712_v29 = vsel %vm1241_vm3, %v1127_v17, %v1227_v53  ;;  %v1715_v33 = vsel %vm1245_vm4, %v1127_v17, %v1227_v53  ;;  %v1018_v3 = vpop.f32.mrf.mxu1 }
 0x1f6   : > { %14725 = vst [vmem:[#allocation147_spill] sm:$0xff] %v9704_v9  ;;  %v9709_v23 = vsel %vm1249_vm5, %v1127_v17, %v1227_v53  ;;  %v9711_v51 = vrot.slane %v1712_v29, 1  ;;  %v9713_v34 = vrot.slane %v1715_v33, 2 }
 0x1f7   : > { %14726 = vst [vmem:[#allocation148_spill] sm:$0xff] %v9709_v23  ;;  %v1078_v2 = vmax.f32 %v1014_v8, 0.0 }
 0x1f8   : > { %14727 = vst [vmem:[#allocation149_spill] sm:$0xff] %v9711_v51 }
 0x1f9   : > { %14728 = vst [vmem:[#allocation150_spill] sm:$0xff] %v9713_v34  ;;  %v1128_v1 = vpack.c.bf16 %v1078_v2, %v1078_v2 }
 0x1fa   : > { %3246 = vst [vmem:[#allocation1 + $0x5] ss:$9 sm:$0xff] %v9704_v9  ;;  %v881_v37 = vpop.f32.mrf.mxu0 }
 0x1fb   : > { %3247 = vst [vmem:[#allocation1 + $0x6] ss:$9 sm:$0xff] %v9711_v51  ;;  %v882_v50 = vadd.f32 %v9477_v44, %v881_v37  ;;  %v1228_v54 = vrot.slane %v1128_v1, 3 }
 0x1fc   : > { %3248 = vst [vmem:[#allocation1 + $0x7] ss:$9 sm:$0xff] %v9713_v34 }
 0x1fd   : > { %v1016_v35 = vadd.f32 %v1015_v6, %v882_v50  ;;  %v1724_v53 = vsel %vm1241_vm3, %v1128_v1, %v1228_v54  ;;  %v1727_v17 = vsel %vm1245_vm4, %v1128_v1, %v1228_v54  ;;  %v1730_v29 = vsel %vm1249_vm5, %v1128_v1, %v1228_v54 }
 0x1fe   : > { %v9722_v33 = vrot.slane %v1724_v53, 1  ;;  %v9724_v8 = vrot.slane %v1727_v17, 2  ;;  %v9729_v34 = vsel %vm763_vm0, %v1128_v1, %v1228_v54  ;;  %v9731_v2 = vrot.slane %v1730_v29, 3  ;;  %v1020_v53 = vpop.f32.mrf.mxu1 }
 0x1ff   : > { %v1079_v51 = vmax.f32 %v1016_v35, 0.0  ;;  %14732 = vst [vmem:[#allocation154_spill] sm:$0xff] %v9729_v34 }
 0x200   : > { %14729 = vst [vmem:[#allocation151_spill] sm:$0xff] %v9722_v33 }
 0x201   : > { %14730 = vst [vmem:[#allocation152_spill] sm:$0xff] %v9724_v8  ;;  %v1129_v50 = vpack.c.bf16 %v1079_v51, %v1079_v51 }
 0x202   : > { %14733 = vst [vmem:[#allocation155_spill] sm:$0xff] %v9731_v2  ;;  %v884_v37 = vpop.f32.mrf.mxu0 }
 0x203   : > { %v9726_v9 = vld [vmem:[#allocation1] sm:$0xff]  ;;  %v885_v6 = vadd.f32 %v9477_v44, %v884_v37  ;;  %v1229_v17 = vrot.slane %v1129_v50, 3 }
 0x204   : > { %14731 = vst [vmem:[#allocation153_spill] sm:$0xff] %v9726_v9 }
 0x205   : > { %3250 = vst [vmem:[#allocation1] ss:$9 sm:$0xff] %v9729_v34  ;;  %v1019_v35 = vadd.f32 %v1018_v3, %v885_v6  ;;  %v9739_v54 = vsel %vm763_vm0, %v1129_v50, %v1229_v17  ;;  %v1736_v1 = vsel %vm1241_vm3, %v1129_v50, %v1229_v17  ;;  %v1739_v29 = vsel %vm1245_vm4, %v1129_v50, %v1229_v17 }
 0x206   : > { %3251 = vst [vmem:[#allocation1 + $0x1] ss:$9 sm:$0xff] %v9722_v33  ;;  %v1742_v51 = vsel %vm1249_vm5, %v1129_v50, %v1229_v17  ;;  %v9744_v9 = vrot.slane %v1736_v1, 1  ;;  %v9746_v37 = vrot.slane %v1739_v29, 2  ;;  %v1023_v50 = vpop.f32.mrf.mxu1 }
 0x207   : > { %3252 = vst [vmem:[#allocation1 + $0x2] ss:$9 sm:$0xff] %v9724_v8  ;;  %v9748_v34 = vrot.slane %v1742_v51, 3  ;;  %v1080_v8 = vmax.f32 %v1019_v35, 0.0 }
 0x208   : > { %3253 = vst [vmem:[#allocation1 + $0x3] ss:$9 sm:$0xff] %v9731_v2 }
 0x209   : > { %14734 = vst [vmem:[#allocation156_spill] sm:$0xff] %v9739_v54  ;;  %v1130_v6 = vpack.c.bf16 %v1080_v8, %v1080_v8 }
 0x20a   : > { %14735 = vst [vmem:[#allocation157_spill] sm:$0xff] %v9744_v9  ;;  %v886_v3 = vpop.f32.mrf.mxu0 }
 0x20b   : > { %14736 = vst [vmem:[#allocation158_spill] sm:$0xff] %v9746_v37  ;;  %v887_v54 = vadd.f32 %v9477_v44, %v886_v3  ;;  %v1230_v2 = vrot.slane %v1130_v6, 3 }
 0x20c   : > { %14737 = vst [vmem:[#allocation159_spill] sm:$0xff] %v9748_v34 }
 0x20d   : > { %3254 = vst [vmem:[#allocation1 + $0x4] ss:$9 sm:$0xff] %v9744_v9  ;;  %v1021_v33 = vadd.f32 %v1020_v53, %v887_v54  ;;  %v9755_v17 = vsel %vm763_vm0, %v1130_v6, %v1230_v2  ;;  %v9758_v1 = vsel %vm1241_vm3, %v1130_v6, %v1230_v2  ;;  %v1751_v51 = vsel %vm1245_vm4, %v1130_v6, %v1230_v2 }
 0x20e   : > { %3255 = vst [vmem:[#allocation1 + $0x5] ss:$9 sm:$0xff] %v9746_v37  ;;  %v1754_v8 = vsel %vm1249_vm5, %v1130_v6, %v1230_v2  ;;  %v9764_v54 = vrot.slane %v1751_v51, 2 }
 0x20f   : > { %3256 = vst [vmem:[#allocation1 + $0x6] ss:$9 sm:$0xff] %v9748_v34  ;;  %v1081_v35 = vmax.f32 %v1021_v33, 0.0  ;;  %v9766_v9 = vrot.slane %v1754_v8, 3 }
 0x210   : > { %14738 = vst [vmem:[#allocation160_spill] sm:$0xff] %v9755_v17 }
 0x211   : > { %14739 = vst [vmem:[#allocation161_spill] sm:$0xff] %v9758_v1  ;;  %v1131_v3 = vpack.c.bf16 %v1081_v35, %v1081_v35 }
 0x212   : > { %3257 = vst [vmem:[#allocation1 + $0x7] ss:$9 sm:$0xff] %v9755_v17  ;;  %v889_v29 = vpop.f32.mrf.mxu0 }
 0x213   : > { %v890_v34 = vadd.f32 %v9477_v44, %v889_v29  ;;  %v1231_v37 = vrot.slane %v1131_v3, 3  ;;  %14740 = vst [vmem:[#allocation162_spill] sm:$0xff] %v9764_v54 }
 0x214   : > { %14741 = vst [vmem:[#allocation163_spill] sm:$0xff] %v9766_v9 }
 0x215   : > { %v1024_v53 = vadd.f32 %v1023_v50, %v890_v34  ;;  %v9771_v1 = vsel %vm763_vm0, %v1131_v3, %v1231_v37  ;;  %v1760_v33 = vsel %vm1241_vm3, %v1131_v3, %v1231_v37  ;;  %v9775_v17 = vsel %vm1245_vm4, %v1131_v3, %v1231_v37  ;;  %v1025_v50 = vpop.f32.mrf.mxu1 }
 0x216   : > { %14743 = vst [vmem:[#allocation165_spill] sm:$0xff] %v9771_v1  ;;  %v1766_v2 = vsel %vm1249_vm5, %v1131_v3, %v1231_v37  ;;  %v9779_v6 = vrot.slane %v1760_v33, 1 }
 0x217   : > { %v9781_v34 = vrot.slane %v1766_v2, 3  ;;  %v1082_v35 = vmax.f32 %v1024_v53, 0.0 }
 0x218   : > { %14744 = vst [vmem:[#allocation166_spill] sm:$0xff] %v9779_v6 }
 0x219   : > { %v9768_v23 = vld [vmem:[#allocation1] sm:$0xff]  ;;  %14745 = vst [vmem:[#allocation167_spill] sm:$0xff] %v9781_v34  ;;  %v1132_v51 = vpack.c.bf16 %v1082_v35, %v1082_v35 }
 0x21a   : > { %14742 = vst [vmem:[#allocation164_spill] sm:$0xff] %v9768_v23  ;;  %v891_v29 = vpop.f32.mrf.mxu0 }
 0x21b   : > { %3259 = vst [vmem:[#allocation1] ss:$9 sm:$0xff] %v9764_v54  ;;  %v892_v8 = vadd.f32 %v9477_v44, %v891_v29  ;;  %v1232_v37 = vrot.slane %v1132_v51, 3 }
 0x21c   : > { %3260 = vst [vmem:[#allocation1 + $0x1] ss:$9 sm:$0xff] %v9766_v9 }
 0x21d   : > { %3261 = vst [vmem:[#allocation1 + $0x2] ss:$9 sm:$0xff] %v9771_v1  ;;  %v1026_v3 = vadd.f32 %v1025_v50, %v892_v8  ;;  %v9789_v33 = vsel %vm763_vm0, %v1132_v51, %v1232_v37  ;;  %v1772_v2 = vsel %vm1241_vm3, %v1132_v51, %v1232_v37  ;;  %v1775_v23 = vsel %vm1245_vm4, %v1132_v51, %v1232_v37  ;;  %v1028_v50 = vpop.f32.mrf.mxu1 }
 0x21e   : > { %3262 = vst [vmem:[#allocation1 + $0x3] ss:$9 sm:$0xff] %v9779_v6  ;;  %v9794_v53 = vsel %vm1249_vm5, %v1132_v51, %v1232_v37  ;;  %v9796_v1 = vrot.slane %v1772_v2, 1  ;;  %v9798_v6 = vrot.slane %v1775_v23, 2 }
 0x21f   : > { %3263 = vst [vmem:[#allocation1 + $0x4] ss:$9 sm:$0xff] %v9781_v34  ;;  %v1083_v35 = vmax.f32 %v1026_v3, 0.0 }
 0x220   : > { %14746 = vst [vmem:[#allocation168_spill] sm:$0xff] %v9789_v33 }
 0x221   : > { %14747 = vst [vmem:[#allocation169_spill] sm:$0xff] %v9796_v1  ;;  %v1133_v8 = vpack.c.bf16 %v1083_v35, %v1083_v35 }
 0x222   : > { %14748 = vst [vmem:[#allocation170_spill] sm:$0xff] %v9798_v6  ;;  %v894_v29 = vpop.f32.mrf.mxu0 }
 0x223   : > { %3264 = vst [vmem:[#allocation1 + $0x5] ss:$9 sm:$0xff] %v9789_v33  ;;  %v895_v34 = vadd.f32 %v9477_v44, %v894_v29  ;;  %v1233_v9 = vrot.slane %v1133_v8, 3 }
 0x224   : > { %3265 = vst [vmem:[#allocation1 + $0x6] ss:$9 sm:$0xff] %v9796_v1 }
 0x225   : > { %3266 = vst [vmem:[#allocation1 + $0x7] ss:$9 sm:$0xff] %v9798_v6  ;;  %v1029_v54 = vadd.f32 %v1028_v50, %v895_v34  ;;  %v1784_v51 = vsel %vm1241_vm3, %v1133_v8, %v1233_v9  ;;  %v1787_v23 = vsel %vm1245_vm4, %v1133_v8, %v1233_v9  ;;  %v1790_v37 = vsel %vm1249_vm5, %v1133_v8, %v1233_v9 }
 0x226   : > { %v9807_v3 = vrot.slane %v1784_v51, 1  ;;  %v9809_v2 = vrot.slane %v1787_v23, 2  ;;  %v9814_v29 = vsel %vm763_vm0, %v1133_v8, %v1233_v9  ;;  %v9816_v34 = vrot.slane %v1790_v37, 3  ;;  %v1030_v51 = vpop.f32.mrf.mxu1 }
 0x227   : > { %v1084_v1 = vmax.f32 %v1029_v54, 0.0  ;;  %14752 = vst [vmem:[#allocation174_spill] sm:$0xff] %v9814_v29 }
 0x228   : > { %14749 = vst [vmem:[#allocation171_spill] sm:$0xff] %v9807_v3 }
 0x229   : > { %14750 = vst [vmem:[#allocation172_spill] sm:$0xff] %v9809_v2  ;;  %v1134_v6 = vpack.c.bf16 %v1084_v1, %v1084_v1 }
 0x22a   : > { %14753 = vst [vmem:[#allocation175_spill] sm:$0xff] %v9816_v34  ;;  %v896_v50 = vpop.f32.mrf.mxu0 }
 0x22b   : > { %v897_v33 = vadd.f32 %v9477_v44, %v896_v50  ;;  %v1234_v54 = vrot.slane %v1134_v6, 3 }
 0x22c   : > { %v9811_v35 = vld [vmem:[#allocation1] sm:$0xff] }
 0x22d   : > { %14751 = vst [vmem:[#allocation173_spill] sm:$0xff] %v9811_v35  ;;  %v1031_v23 = vadd.f32 %v1030_v51, %v897_v33  ;;  %v9824_v9 = vsel %vm763_vm0, %v1134_v6, %v1234_v54  ;;  %v1796_v8 = vsel %vm1241_vm3, %v1134_v6, %v1234_v54  ;;  %v1799_v1 = vsel %vm1245_vm4, %v1134_v6, %v1234_v54 }
 0x22e   : > { %3268 = vst [vmem:[#allocation1] ss:$9 sm:$0xff] %v9814_v29  ;;  %v1802_v44 = vsel %vm1249_vm5, %v1134_v6, %v1234_v54  ;;  %v9829_v37 = vrot.slane %v1796_v8, 1  ;;  %v9831_v50 = vrot.slane %v1799_v1, 2  ;;  %v1861_v1 = vshll.u32 %v8998_v30, 16 }
 0x22f   : > { %3269 = vst [vmem:[#allocation1 + $0x1] ss:$9 sm:$0xff] %v9807_v3  ;;  %v9833_v35 = vrot.slane %v1802_v44, 3  ;;  %v1085_v33 = vmax.f32 %v1031_v23, 0.0  ;;  %v14762_v44 = vmov 0 }
 0x230   : > { %3270 = vst [vmem:[#allocation1 + $0x2] ss:$9 sm:$0xff] %v9809_v2  ;;  %v14763_v44 = vsel %vm9852_vm8, 4294967295, %v14762_v44 }
 0x231   : > { %3271 = vst [vmem:[#allocation1 + $0x3] ss:$9 sm:$0xff] %v9816_v34  ;;  %v1135_v51 = vpack.c.bf16 %v1085_v33, %v1085_v33  ;;  %v1864_v33 = vshrl.u32 %v8998_v30, 16  ;;  %v1893_v30 = vshll.u32 %v9018_v48, 16  ;;  %v1896_v34 = vshrl.u32 %v9018_v48, 16 }
 0x232   : > { %14754 = vst [vmem:[#allocation176_spill] sm:$0xff] %v9824_v9 }
 0x233   : > { %14755 = vst [vmem:[#allocation177_spill] sm:$0xff] %v9829_v37  ;;  %v1235_v9 = vrot.slane %v1135_v51, 3 }
 0x234   : > { %14756 = vst [vmem:[#allocation178_spill] sm:$0xff] %v9831_v50 }
 0x235   : > { %14757 = vst [vmem:[#allocation179_spill] sm:$0xff] %v9833_v35  ;;  %v9839_v6 = vsel %vm763_vm0, %v1135_v51, %v1235_v9  ;;  %v9842_v54 = vsel %vm1241_vm3, %v1135_v51, %v1235_v9  ;;  %v9845_v23 = vsel %vm1245_vm4, %v1135_v51, %v1235_v9  ;;  %v9848_v8 = vsel %vm1249_vm5, %v1135_v51, %v1235_v9 }
 0x236   : > { %3272 = vst [vmem:[#allocation1 + $0x4] ss:$9 sm:$0xff] %v9829_v37  ;;  %v1877_v9 = vshll.u32 %v9002_v32, 16  ;;  %v1884_v51 = vshll.u32 %v9011_v43, 16  ;;  %v1888_v37 = vshrl.u32 %v9016_v47, 16  ;;  %v1901_v43 = vshll.u32 %v9020_v49, 16 }
 0x237   : > { %3273 = vst [vmem:[#allocation1 + $0x5] ss:$9 sm:$0xff] %v9831_v50  ;;  %v1856_v50 = vshrl.u32 %v8991_v24, 16 }
 0x238   : > { %3274 = vst [vmem:[#allocation1 + $0x6] ss:$9 sm:$0xff] %v9833_v35  ;;  %v1869_v35 = vshll.u32 %v9000_v31, 16 }
 0x239   : > { %14758 = vst [vmem:[#allocation180_spill] sm:$0xff] %v9839_v6 }
 0x23a   : > { %14759 = vst [vmem:[#allocation181_spill] sm:$0xff] %v9842_v54  ;;  %v1871_v24 = vsel %vm9852_vm8, %v1864_v33, %v1869_v35  ;;  %v9884_v35 = vsel %vm9852_vm8, %v1888_v37, %v1893_v30  ;;  %v1904_v33 = vshrl.u32 %v9020_v49, 16  ;;  %v1925_v37 = vshll.u32 %v9043_v12, 16 }
 0x23b   : > { %14760 = vst [vmem:[#allocation182_spill] sm:$0xff] %v9845_v23  ;;  %v1872_v23 = vshrl.u32 %v9000_v31, 16  ;;  %v1880_v31 = vshrl.u32 %v9002_v32, 16 }
 0x23c   : > { %14761 = vst [vmem:[#allocation183_spill] sm:$0xff] %v9848_v8  ;;  %v9863_v8 = vrot.slane %v9034_v62, 1 }
 0x23d   : > { %3275 = vst [vmem:[#allocation1 + $0x7] ss:$9 sm:$0xff] %v9839_v6  ;;  %v1863_v6 = vsel %vm9852_vm8, %v1856_v50, %v1861_v1  ;;  %v1879_v62 = vsel %vm9852_vm8, %v1872_v23, %v1877_v9  ;;  %v1908_v50 = vshll.u32 %v9031_v61, 16  ;;  %v1886_v1 = vsel %vm9852_vm8, %v1880_v31, %v1884_v51 }
 0x23e   : > { %14764 = vst [vmem:[#allocation184_spill] sm:$0xff] %v14763_v44  ;;  %v1911_v23 = vshrl.u32 %v9031_v61, 16  ;;  %v1932_v9 = vshll.u32 %v9048_v14, 16  ;;  %v1940_v51 = vshll.u32 %v9056_v18, 16 }
 0x23f   : > { %14765 = vst [vmem:[#allocation185_spill] sm:$0xff] %v9863_v8  ;;  %v9895_v31 = vsel %vm9852_vm8, %v1904_v33, %v1908_v50  ;;  %v9915_v50 = vrot.slane %v9075_v39, 3  ;;  %v1956_v33 = vshll.u32 %v9070_v36, 16 }
 0x240   : > { %14767 = vst [vmem:[#allocation187_spill] sm:$0xff] %v9884_v35 }
 0x241   : > { %14769 = vst [vmem:[#allocation189_spill] sm:$0xff] %v9895_v31 }
 0x242   : > { %14772 = vst [vmem:[#allocation192_spill] sm:$0xff] %v9915_v50 }
 0x244   : > { %v9869_v54 = vld [vmem:[#allocation1] sm:$0xff] }
 0x245   : > { %14766 = vst [vmem:[#allocation186_spill] sm:$0xff] %v9869_v54  ;;  %v1916_v54 = vshll.u32 %v9863_v8, 16 }
 0x246   : > { %3278 = vst [vmem:[#allocation1] ss:$9 sm:$0xff] %v1863_v6  ;;  %v9889_v6 = vsel %vm9852_vm8, %v1896_v34, %v1901_v43  ;;  %v9905_v43 = vrot.slane %v9052_v16, 2  ;;  %v1920_v34 = vshrl.u32 %v9041_v11, 16 }
 0x247   : > { %3281 = vst [vmem:[#allocation1 + $0x1] ss:$9 sm:$0xff] %v1871_v24  ;;  %v9900_v30 = vsel %vm9852_vm8, %v1911_v23, %v1916_v54  ;;  %v1928_v24 = vshrl.u32 %v9043_v12, 16  ;;  %v1943_v54 = vshrl.u32 %v9056_v18, 16 }
 0x248   : > { %3284 = vst [vmem:[#allocation1 + $0x2] ss:$9 sm:$0xff] %v1879_v62  ;;  %v1948_v62 = vshll.u32 %v9905_v43, 16  ;;  %v9919_v16 = vsel %vm9852_vm8, %v1920_v34, %v1925_v37  ;;  %v1952_v34 = vshrl.u32 %v9058_v19, 16  ;;  %v1967_v37 = vshrl.u32 %v9077_v40, 16  ;;  %v14813_v19 = vld [vmem:[#allocation46_spill] sm:$0xff] }
 0x249   : > { %3287 = vst [vmem:[#allocation1 + $0x3] ss:$9 sm:$0xff] %v1886_v1  ;;  %v1935_v1 = vshrl.u32 %v9048_v14, 16  ;;  %v2155_v11 = vshll.u32 %v14813_v19, 16 }
 0x24a   : > { %14768 = vst [vmem:[#allocation188_spill] sm:$0xff] %v9889_v6 }
 0x24b   : > { %3290 = vst [vmem:[#allocation1 + $0x4] ss:$9 sm:$0xff] %v9884_v35  ;;  %v9933_v39 = vsel %vm9852_vm8, %v1935_v1, %v1940_v51  ;;  %v9949_v51 = vsel %vm9852_vm8, %v1952_v34, %v1956_v33  ;;  %v1988_v33 = vshll.u32 %v9091_v59, 16  ;;  %v1996_v34 = vshll.u32 %v9096_v0, 16 }
 0x24c   : > { %3293 = vst [vmem:[#allocation1 + $0x5] ss:$9 sm:$0xff] %v9889_v6  ;;  %v1972_v6 = vshll.u32 %v9079_v41, 16 }
 0x24d   : > { %14770 = vst [vmem:[#allocation190_spill] sm:$0xff] %v9900_v30 }
 0x24e   : > { %3296 = vst [vmem:[#allocation1 + $0x6] ss:$9 sm:$0xff] %v9895_v31  ;;  %v1964_v31 = vshll.u32 %v9077_v40, 16 }
 0x24f   : > { %3299 = vst [vmem:[#allocation1 + $0x7] ss:$9 sm:$0xff] %v9900_v30  ;;  %v9927_v30 = vsel %vm9852_vm8, %v1928_v24, %v1932_v9  ;;  %v9941_v9 = vsel %vm9852_vm8, %v1943_v54, %v1948_v62  ;;  %v1959_v24 = vshrl.u32 %v9070_v36, 16  ;;  %v9959_v54 = vsel %vm9852_vm8, %v1967_v37, %v1972_v6 }
 0x250   : > { %14771 = vst [vmem:[#allocation191_spill] sm:$0xff] %v9905_v43  ;;  %v1999_v6 = vshrl.u32 %v9096_v0, 16  ;;  %v2004_v37 = vshll.u32 %v9089_v57, 16 }
 0x251   : > { %14773 = vst [vmem:[#allocation193_spill] sm:$0xff] %v9919_v16  ;;  %v9954_v1 = vsel %vm9852_vm8, %v1959_v24, %v1964_v31  ;;  %v1991_v31 = vshrl.u32 %v9091_v59, 16  ;;  %v1983_v24 = vshrl.u32 %v9094_v63, 16 }
 0x252   : > { %14775 = vst [vmem:[#allocation195_spill] sm:$0xff] %v9927_v30 }
 0x253   : > { %14776 = vst [vmem:[#allocation196_spill] sm:$0xff] %v9933_v39 }
 0x254   : > { %14777 = vst [vmem:[#allocation197_spill] sm:$0xff] %v9941_v9 }
 0x255   : > { %14778 = vst [vmem:[#allocation198_spill] sm:$0xff] %v9949_v51 }
 0x256   : > { %v9923_v23 = vld [vmem:[#allocation1] sm:$0xff]  ;;  %14779 = vst [vmem:[#allocation199_spill] sm:$0xff] %v9954_v1 }
 0x257   : > { %14774 = vst [vmem:[#allocation194_spill] sm:$0xff] %v9923_v23  ;;  %v1975_v23 = vshrl.u32 %v9079_v41, 16 }
 0x258   : > { %3303 = vst [vmem:[#allocation1] ss:$9 sm:$0xff] %v9919_v16  ;;  %v1980_v16 = vshll.u32 %v9915_v50, 16 }
 0x259   : > { %3305 = vst [vmem:[#allocation1 + $0x1] ss:$9 sm:$0xff] %v9927_v30  ;;  %v2023_v30 = vshrl.u32 %v9117_v27, 16 }
 0x25a   : > { %3307 = vst [vmem:[#allocation1 + $0x2] ss:$9 sm:$0xff] %v9933_v39  ;;  %v9964_v62 = vsel %vm9852_vm8, %v1975_v23, %v1980_v16  ;;  %v9976_v16 = vrot.slane %v9130_v46, 1  ;;  %v9980_v23 = vsel %vm9852_vm8, %v1983_v24, %v1988_v33  ;;  %v2007_v39 = vshrl.u32 %v9089_v57, 16 }
 0x25b   : > { %3309 = vst [vmem:[#allocation1 + $0x3] ss:$9 sm:$0xff] %v9941_v9  ;;  %v9988_v9 = vsel %vm9852_vm8, %v1991_v31, %v1996_v34  ;;  %v2028_v46 = vshll.u32 %v9119_v28, 16  ;;  %v9996_v33 = vsel %vm9852_vm8, %v1999_v6, %v2004_v37  ;;  %v2035_v24 = vshll.u32 %v9127_v45, 16 }
 0x25c   : > { %3311 = vst [vmem:[#allocation1 + $0x4] ss:$9 sm:$0xff] %v9949_v51  ;;  %v2043_v34 = vshll.u32 %v9976_v16, 16  ;;  %v2038_v37 = vshrl.u32 %v9127_v45, 16 }
 0x25d   : > { %14780 = vst [vmem:[#allocation200_spill] sm:$0xff] %v9959_v54  ;;  %v10014_v6 = vsel %vm9852_vm8, %v2023_v30, %v2028_v46  ;;  %v10030_v30 = vrot.slane %v9151_v22, 2  ;;  %v2067_v46 = vshll.u32 %v9155_v58, 16 }
 0x25e   : > { %3313 = vst [vmem:[#allocation1 + $0x5] ss:$9 sm:$0xff] %v9954_v1  ;;  %v2011_v1 = vshll.u32 %v9110_v21, 16 }
 0x25f   : > { %14781 = vst [vmem:[#allocation201_spill] sm:$0xff] %v9964_v62 }
 0x260   : > { %3315 = vst [vmem:[#allocation1 + $0x6] ss:$9 sm:$0xff] %v9959_v54  ;;  %v2020_v54 = vshll.u32 %v9117_v27, 16  ;;  %v10002_v31 = vsel %vm9852_vm8, %v2007_v39, %v2011_v1  ;;  %v10025_v1 = vsel %vm9852_vm8, %v2038_v37, %v2043_v34  ;;  %v2070_v34 = vshrl.u32 %v9155_v58, 16 }
 0x261   : > { %3317 = vst [vmem:[#allocation1 + $0x7] ss:$9 sm:$0xff] %v9964_v62  ;;  %v2015_v62 = vshrl.u32 %v9115_v26, 16  ;;  %v2075_v37 = vshll.u32 %v10030_v30, 16 }
 0x262   : > { %14782 = vst [vmem:[#allocation202_spill] sm:$0xff] %v9976_v16 }
 0x263   : > { %14783 = vst [vmem:[#allocation203_spill] sm:$0xff] %v9980_v23 }
 0x264   : > { %14785 = vst [vmem:[#allocation205_spill] sm:$0xff] %v9988_v9 }
 0x265   : > { %14786 = vst [vmem:[#allocation206_spill] sm:$0xff] %v9996_v33 }
 0x266   : > { %14787 = vst [vmem:[#allocation207_spill] sm:$0xff] %v10002_v31 }
 0x267   : > { %14789 = vst [vmem:[#allocation209_spill] sm:$0xff] %v10014_v6 }
 0x268   : > { %v9984_v51 = vld [vmem:[#allocation1] sm:$0xff]  ;;  %14791 = vst [vmem:[#allocation211_spill] sm:$0xff] %v10025_v1 }
 0x269   : > { %14784 = vst [vmem:[#allocation204_spill] sm:$0xff] %v9984_v51  ;;  %v10008_v51 = vsel %vm9852_vm8, %v2015_v62, %v2020_v54  ;;  %v2047_v54 = vshrl.u32 %v9138_v4, 16  ;;  %v2052_v62 = vshll.u32 %v9140_v5, 16 }
 0x26a   : > { %3321 = vst [vmem:[#allocation1] ss:$9 sm:$0xff] %v9980_v23  ;;  %v2031_v23 = vshrl.u32 %v9119_v28, 16 }
 0x26b   : > { %3323 = vst [vmem:[#allocation1 + $0x1] ss:$9 sm:$0xff] %v9988_v9  ;;  %v10044_v22 = vsel %vm9852_vm8, %v2047_v54, %v2052_v62  ;;  %v2079_v54 = vshrl.u32 %v9157_v25, 16  ;;  %v2094_v62 = vshrl.u32 %v9175_v42, 16  ;;  %v2099_v9 = vshll.u32 %v9177_v56, 16  ;;  %v14811_v25 = vld [vmem:[#allocation44_spill] sm:$0xff] }
 0x26c   : > { %3325 = vst [vmem:[#allocation1 + $0x2] ss:$9 sm:$0xff] %v9996_v33  ;;  %v10020_v39 = vsel %vm9852_vm8, %v2031_v23, %v2035_v24  ;;  %v2059_v23 = vshll.u32 %v9147_v15, 16  ;;  %v2055_v24 = vshrl.u32 %v9140_v5, 16  ;;  %v2091_v33 = vshll.u32 %v9175_v42, 16 }
 0x26d   : > { %14788 = vst [vmem:[#allocation208_spill] sm:$0xff] %v10008_v51  ;;  %v2147_v4 = vshll.u32 %v14811_v25, 16 }
 0x26e   : > { %3327 = vst [vmem:[#allocation1 + $0x3] ss:$9 sm:$0xff] %v10002_v31  ;;  %v10052_v31 = vsel %vm9852_vm8, %v2055_v24, %v2059_v23  ;;  %v10066_v23 = vsel %vm9852_vm8, %v2070_v34, %v2075_v37  ;;  %v2086_v24 = vshrl.u32 %v9168_v52, 16  ;;  %v10084_v34 = vsel %vm9852_vm8, %v2094_v62, %v2099_v9  ;;  %v14808_v62 = vld [vmem:[#allocation42_spill] sm:$0xff] }
 0x26f   : > { %3329 = vst [vmem:[#allocation1 + $0x4] ss:$9 sm:$0xff] %v10008_v51 }
 0x270   : > { %14790 = vst [vmem:[#allocation210_spill] sm:$0xff] %v10020_v39 }
 0x271   : > { %3331 = vst [vmem:[#allocation1 + $0x5] ss:$9 sm:$0xff] %v10014_v6  ;;  %v2083_v6 = vshll.u32 %v9168_v52, 16 }
 0x272   : > { %3333 = vst [vmem:[#allocation1 + $0x6] ss:$9 sm:$0xff] %v10020_v39  ;;  %v10040_v39 = vrot.slane %v9173_v55, 3 }
 0x273   : > { %3335 = vst [vmem:[#allocation1 + $0x7] ss:$9 sm:$0xff] %v10025_v1  ;;  %v2062_v1 = vshrl.u32 %v9147_v15, 16 }
 0x274   : > { %14792 = vst [vmem:[#allocation212_spill] sm:$0xff] %v10030_v30  ;;  %v2107_v35 = vshll.u32 %v10040_v39, 16 }
 0x275   : > { %14793 = vst [vmem:[#allocation213_spill] sm:$0xff] %v10040_v39  ;;  %v10058_v55 = vsel %vm9852_vm8, %v2062_v1, %v2067_v46  ;;  %v10074_v1 = vsel %vm9852_vm8, %v2079_v54, %v2083_v6  ;;  %v10079_v46 = vsel %vm9852_vm8, %v2086_v24, %v2091_v33  ;;  %v14803_v6 = vld [vmem:[#allocation41_spill] sm:$0xff] }
 0x276   : > { %14794 = vst [vmem:[#allocation214_spill] sm:$0xff] %v10044_v22  ;;  %v14111_v54 = vrot.slane %v14803_v6, 2  ;;  %v14804_v33 = vld [vmem:[#allocation37_spill] sm:$0xff]  ;;  %v2158_v6 = vshrl.u32 %v14813_v19, 16 }
 0x277   : > { %14796 = vst [vmem:[#allocation216_spill] sm:$0xff] %v10052_v31  ;;  %v14805_v24 = vrot.slane %v14804_v33, 2 }
 0x278   : > { %14797 = vst [vmem:[#allocation217_spill] sm:$0xff] %v10058_v55 }
 0x279   : > { %14798 = vst [vmem:[#allocation218_spill] sm:$0xff] %v10066_v23 }
 0x27a   : > { %v10048_v51 = vld [vmem:[#allocation1] sm:$0xff]  ;;  %14799 = vst [vmem:[#allocation219_spill] sm:$0xff] %v10074_v1 }
 0x27b   : > { %14795 = vst [vmem:[#allocation215_spill] sm:$0xff] %v10048_v51  ;;  %v2131_v51 = vshll.u32 %v14808_v62, 16 }
 0x27c   : > { %3339 = vst [vmem:[#allocation1] ss:$9 sm:$0xff] %v10044_v22  ;;  %v2102_v22 = vshrl.u32 %v9177_v56, 16 }
 0x27d   : > { %3341 = vst [vmem:[#allocation1 + $0x1] ss:$9 sm:$0xff] %v10052_v31  ;;  %v14807_v31 = vld [vmem:[#allocation40_spill] sm:$0xff] }
 0x27e   : > { %3343 = vst [vmem:[#allocation1 + $0x2] ss:$9 sm:$0xff] %v10058_v55  ;;  %v10089_v37 = vsel %vm9852_vm8, %v2102_v22, %v2107_v35  ;;  %v2123_v9 = vshll.u32 %v14807_v31, 16  ;;  %v2134_v35 = vshrl.u32 %v14808_v62, 16  ;;  %v2139_v22 = vshll.u32 %v14111_v54, 16 }
 0x27f   : > { %3345 = vst [vmem:[#allocation1 + $0x3] ss:$9 sm:$0xff] %v10066_v23  ;;  %v2111_v23 = vshrl.u32 %v14805_v24, 16  ;;  %v2126_v24 = vshrl.u32 %v14807_v31, 16 }
 0x280   : > { %14800 = vst [vmem:[#allocation220_spill] sm:$0xff] %v10079_v46  ;;  %v2141_v62 = vsel %vm9852_vm8, %v2134_v35, %v2139_v22  ;;  %v14822_v35 = vld [vmem:[#allocation51_spill] sm:$0xff] }
 0x281   : > { %3347 = vst [vmem:[#allocation1 + $0x4] ss:$9 sm:$0xff] %v10074_v1  ;;  %v14806_v1 = vld [vmem:[#allocation38_spill] sm:$0xff]  ;;  %v2133_v54 = vsel %vm9852_vm8, %v2126_v24, %v2131_v51  ;;  %v2174_v22 = vshrl.u32 %v14822_v35, 16  ;;  %v14823_v24 = vld [vmem:[#allocation49_spill] sm:$0xff] }
 0x282   : > { %14801 = vst [vmem:[#allocation221_spill] sm:$0xff] %v10084_v34  ;;  %v2116_v55 = vshll.u32 %v14806_v1, 16 }
 0x283   : > { %3349 = vst [vmem:[#allocation1 + $0x5] ss:$9 sm:$0xff] %v10079_v46  ;;  %v2119_v46 = vshrl.u32 %v14806_v1, 16 }
 0x284   : > { %14802 = vst [vmem:[#allocation222_spill] sm:$0xff] %v10089_v37  ;;  %v2118_v33 = vsel %vm9852_vm8, %v2111_v23, %v2116_v55  ;;  %v14815_v55 = vld [vmem:[#allocation47_spill] sm:$0xff] }
 0x285   : > { %3351 = vst [vmem:[#allocation1 + $0x6] ss:$9 sm:$0xff] %v10084_v34  ;;  %v14809_v34 = vld [vmem:[#allocation45_spill] sm:$0xff]  ;;  %v2125_v63 = vsel %vm9852_vm8, %v2119_v46, %v2123_v9  ;;  %v2163_v23 = vshll.u32 %v14815_v55, 16  ;;  %v2166_v46 = vshrl.u32 %v14815_v55, 16 }
 0x286   : > { %3353 = vst [vmem:[#allocation1 + $0x7] ss:$9 sm:$0xff] %v10089_v37  ;;  %v10104_v37 = vrot.slane %v14809_v34, 3  ;;  %v14814_v34 = vld [vmem:[#allocation43_spill] sm:$0xff] }
 0x287   : > { %v2143_v47 = vshrl.u32 %v14814_v34, 16 }
 0x288   : > { %14810 = vst [vmem:[#allocation37_spill] sm:$0xff] %v10104_v37  ;;  %v2171_v9 = vshll.u32 %v10104_v37, 16 }
 0x289   : > { %v10127_v51 = vsel %vm9852_vm8, %v2143_v47, %v2147_v4  ;;  %v14820_v47 = vld [vmem:[#allocation48_spill] sm:$0xff] }
 0x28a   : > { %14816 = vst [vmem:[#allocation40_spill] sm:$0xff] %v10127_v51  ;;  %v2179_v4 = vshll.u32 %v14820_v47, 16 }
 0x28d   : > { %v10110_v26 = vld [vmem:[#allocation1] sm:$0xff] }
 0x28e   : > { %14812 = vst [vmem:[#allocation38_spill] sm:$0xff] %v10110_v26  ;;  %v2150_v26 = vshrl.u32 %v14811_v25, 16 }
 0x28f   : > { %3357 = vst [vmem:[#allocation1] ss:$9 sm:$0xff] %v2118_v33 }
 0x290   : > { %3359 = vst [vmem:[#allocation1 + $0x1] ss:$9 sm:$0xff] %v2125_v63  ;;  %v10131_v33 = vsel %vm9852_vm8, %v2150_v26, %v2155_v11  ;;  %v10136_v63 = vsel %vm9852_vm8, %v2158_v6, %v2163_v23  ;;  %v2182_v11 = vshrl.u32 %v14820_v47, 16  ;;  %v14821_v26 = vld [vmem:[#allocation52_spill] sm:$0xff]  ;;  %v2195_v23 = vshll.u32 %v14823_v24, 16  ;;  %v14829_v47 = vld [vmem:[#allocation55_spill] sm:$0xff] }
 0x291   : > { %3361 = vst [vmem:[#allocation1 + $0x2] ss:$9 sm:$0xff] %v2133_v54  ;;  %v10141_v54 = vsel %vm9852_vm8, %v2166_v46, %v2171_v9  ;;  %v2190_v6 = vshrl.u32 %v14821_v26, 16  ;;  %v14825_v46 = vld [vmem:[#allocation58_spill] sm:$0xff]  ;;  %v2211_v37 = vshll.u32 %v14829_v47, 16 }
 0x292   : > { %3363 = vst [vmem:[#allocation1 + $0x3] ss:$9 sm:$0xff] %v2141_v62  ;;  %v2187_v62 = vshll.u32 %v14821_v26, 16  ;;  %v10153_v9 = vrot.slane %v14825_v46, 1  ;;  %v2198_v26 = vshrl.u32 %v14823_v24, 16  ;;  %v14832_v46 = vld [vmem:[#allocation56_spill] sm:$0xff] }
 0x293   : > { %14817 = vst [vmem:[#allocation45_spill] sm:$0xff] %v10131_v33  ;;  %v2219_v19 = vshll.u32 %v14832_v46, 16 }
 0x294   : > { %3365 = vst [vmem:[#allocation1 + $0x4] ss:$9 sm:$0xff] %v10127_v51  ;;  %v10165_v35 = vsel %vm9852_vm8, %v2182_v11, %v2187_v62  ;;  %v2234_v62 = vshll.u32 %v10153_v9, 16 }
 0x295   : > { %14818 = vst [vmem:[#allocation44_spill] sm:$0xff] %v10136_v63 }
 0x296   : > { %3367 = vst [vmem:[#allocation1 + $0x5] ss:$9 sm:$0xff] %v10131_v33  ;;  %v14824_v33 = vld [vmem:[#allocation53_spill] sm:$0xff] }
 0x297   : > { %14819 = vst [vmem:[#allocation223_spill] sm:$0xff] %v10141_v54  ;;  %v2202_v51 = vshll.u32 %v14824_v33, 16  ;;  %v2214_v33 = vshrl.u32 %v14829_v47, 16 }
 0x298   : > { %3369 = vst [vmem:[#allocation1 + $0x6] ss:$9 sm:$0xff] %v10136_v63  ;;  %v14828_v63 = vld [vmem:[#allocation54_spill] sm:$0xff] }
 0x299   : > { %3371 = vst [vmem:[#allocation1 + $0x7] ss:$9 sm:$0xff] %v10141_v54  ;;  %v10157_v54 = vsel %vm9852_vm8, %v2174_v22, %v2179_v4  ;;  %v2206_v34 = vshrl.u32 %v14828_v63, 16  ;;  %v10173_v4 = vsel %vm9852_vm8, %v2190_v6, %v2195_v23  ;;  %v14834_v22 = vld [vmem:[#allocation57_spill] sm:$0xff]  ;;  %v10179_v11 = vsel %vm9852_vm8, %v2198_v26, %v2202_v51 }
 0x29a   : > { %14826 = vst [vmem:[#allocation58_spill] sm:$0xff] %v10153_v9  ;;  %v2226_v63 = vshll.u32 %v14834_v22, 16  ;;  %v10191_v6 = vsel %vm9852_vm8, %v2214_v33, %v2219_v19  ;;  %v2229_v23 = vshrl.u32 %v14834_v22, 16  ;;  %v14840_v19 = vld [vmem:[#allocation63_spill] sm:$0xff] }
 0x29b   : > { %14827 = vst [vmem:[#allocation224_spill] sm:$0xff] %v10157_v54  ;;  %v14842_v33 = vld [vmem:[#allocation59_spill] sm:$0xff] }
 0x29c   : > { %14831 = vst [vmem:[#allocation226_spill] sm:$0xff] %v10165_v35  ;;  %v2238_v26 = vshrl.u32 %v14842_v33, 16  ;;  %v14849_v33 = vld [vmem:[#allocation66_spill] sm:$0xff] }
 0x29d   : > { %14833 = vst [vmem:[#allocation227_spill] sm:$0xff] %v10173_v4  ;;  %v2274_v22 = vshll.u32 %v14849_v33, 16 }
 0x29e   : > { %14835 = vst [vmem:[#allocation228_spill] sm:$0xff] %v10179_v11 }
 0x29f   : > { %14837 = vst [vmem:[#allocation230_spill] sm:$0xff] %v10191_v6 }
 0x2a0   : > { %v10161_v55 = vld [vmem:[#allocation1] sm:$0xff] }
 0x2a1   : > { %14830 = vst [vmem:[#allocation225_spill] sm:$0xff] %v10161_v55  ;;  %v10185_v55 = vsel %vm9852_vm8, %v2206_v34, %v2211_v37  ;;  %v10202_v37 = vsel %vm9852_vm8, %v2229_v23, %v2234_v62  ;;  %v10207_v34 = vrot.slane %v14840_v19, 2 }
 0x2a2   : > { %3375 = vst [vmem:[#allocation1] ss:$9 sm:$0xff] %v10157_v54  ;;  %v2222_v54 = vshrl.u32 %v14832_v46, 16 }
 0x2a3   : > { %3377 = vst [vmem:[#allocation1 + $0x1] ss:$9 sm:$0xff] %v10165_v35  ;;  %v2266_v23 = vshll.u32 %v10207_v34, 16 }
 0x2a4   : > { %3379 = vst [vmem:[#allocation1 + $0x2] ss:$9 sm:$0xff] %v10173_v4  ;;  %v10197_v51 = vsel %vm9852_vm8, %v2222_v54, %v2226_v63  ;;  %v14844_v4 = vld [vmem:[#allocation62_spill] sm:$0xff]  ;;  %v14845_v54 = vld [vmem:[#allocation64_spill] sm:$0xff] }
 0x2a5   : > { %14836 = vst [vmem:[#allocation229_spill] sm:$0xff] %v10185_v55  ;;  %v2250_v63 = vshll.u32 %v14844_v4, 16  ;;  %v2258_v35 = vshll.u32 %v14845_v54, 16  ;;  %v2261_v62 = vshrl.u32 %v14845_v54, 16  ;;  %v14852_v54 = vld [vmem:[#allocation68_spill] sm:$0xff] }
 0x2a6   : > { %3381 = vst [vmem:[#allocation1 + $0x3] ss:$9 sm:$0xff] %v10179_v11  ;;  %v2282_v47 = vshll.u32 %v14852_v54, 16 }
 0x2a7   : > { %3383 = vst [vmem:[#allocation1 + $0x4] ss:$9 sm:$0xff] %v10185_v55  ;;  %v14843_v55 = vld [vmem:[#allocation60_spill] sm:$0xff] }
 0x2a8   : > { %14838 = vst [vmem:[#allocation231_spill] sm:$0xff] %v10197_v51  ;;  %v2243_v11 = vshll.u32 %v14843_v55, 16 }
 0x2a9   : > { %3385 = vst [vmem:[#allocation1 + $0x5] ss:$9 sm:$0xff] %v10191_v6  ;;  %v2246_v6 = vshrl.u32 %v14843_v55, 16 }
 0x2aa   : > { %14839 = vst [vmem:[#allocation232_spill] sm:$0xff] %v10202_v37  ;;  %v10221_v19 = vsel %vm9852_vm8, %v2238_v26, %v2243_v11  ;;  %v14854_v11 = vld [vmem:[#allocation65_spill] sm:$0xff] }
 0x2ab   : > { %3387 = vst [vmem:[#allocation1 + $0x6] ss:$9 sm:$0xff] %v10197_v51  ;;  %v14846_v51 = vld [vmem:[#allocation67_spill] sm:$0xff]  ;;  %v10229_v55 = vsel %vm9852_vm8, %v2246_v6, %v2250_v63  ;;  %v2270_v26 = vshrl.u32 %v14854_v11, 16  ;;  %v10243_v6 = vsel %vm9852_vm8, %v2261_v62, %v2266_v23  ;;  %v2277_v63 = vshrl.u32 %v14849_v33, 16 }
 0x2ac   : > { %3389 = vst [vmem:[#allocation1 + $0x7] ss:$9 sm:$0xff] %v10202_v37  ;;  %v10217_v9 = vrot.slane %v14846_v51, 3  ;;  %v2253_v37 = vshrl.u32 %v14844_v4, 16  ;;  %v14855_v4 = vld [vmem:[#allocation69_spill] sm:$0xff] }
 0x2ad   : > { %14841 = vst [vmem:[#allocation63_spill] sm:$0xff] %v10207_v34  ;;  %v2285_v34 = vshrl.u32 %v14852_v54, 16  ;;  %v2290_v24 = vshll.u32 %v14855_v4, 16 }
 0x2ae   : > { %14847 = vst [vmem:[#allocation67_spill] sm:$0xff] %v10217_v9  ;;  %v10235_v51 = vsel %vm9852_vm8, %v2253_v37, %v2258_v35  ;;  %v10251_v35 = vsel %vm9852_vm8, %v2270_v26, %v2274_v22  ;;  %v10256_v37 = vsel %vm9852_vm8, %v2277_v63, %v2282_v47  ;;  %v2306_v22 = vshll.u32 %v9373_v7, 16  ;;  %v14861_v26 = vld [vmem:[#allocation71_spill] sm:$0xff] }
 0x2af   : > { %14848 = vst [vmem:[#allocation233_spill] sm:$0xff] %v10221_v19  ;;  %v10261_v62 = vsel %vm9852_vm8, %v2285_v34, %v2290_v24  ;;  %v2309_v47 = vshrl.u32 %v9373_v7, 16  ;;  %v2314_v63 = vshll.u32 %v14861_v26, 16  ;;  %v2317_v24 = vshrl.u32 %v14861_v26, 16  ;;  %v14863_v34 = vld [vmem:[#allocation74_spill] sm:$0xff]  ;;  %v14869_v7 = vld [vmem:[#allocation77_spill] sm:$0xff] }
 0x2b0   : > { %14851 = vst [vmem:[#allocation235_spill] sm:$0xff] %v10229_v55  ;;  %v2325_v26 = vshrl.u32 %v14863_v34, 16 }
 0x2b1   : > { %14853 = vst [vmem:[#allocation236_spill] sm:$0xff] %v10235_v51 }
 0x2b2   : > { %14856 = vst [vmem:[#allocation237_spill] sm:$0xff] %v10243_v6 }
 0x2b3   : > { %v10225_v46 = vld [vmem:[#allocation1] sm:$0xff]  ;;  %14857 = vst [vmem:[#allocation238_spill] sm:$0xff] %v10251_v35 }
 0x2b4   : > { %14850 = vst [vmem:[#allocation234_spill] sm:$0xff] %v10225_v46  ;;  %v2298_v46 = vshll.u32 %v10217_v9, 16  ;;  %v2338_v9 = vshll.u32 %v14869_v7, 16 }
 0x2b5   : > { %3393 = vst [vmem:[#allocation1] ss:$9 sm:$0xff] %v10221_v19  ;;  %v2293_v19 = vshrl.u32 %v14855_v4, 16 }
 0x2b6   : > { %3395 = vst [vmem:[#allocation1 + $0x1] ss:$9 sm:$0xff] %v10229_v55 }
 0x2b7   : > { %3397 = vst [vmem:[#allocation1 + $0x2] ss:$9 sm:$0xff] %v10235_v51  ;;  %v10266_v23 = vsel %vm9852_vm8, %v2293_v19, %v2298_v46  ;;  %v14864_v51 = vld [vmem:[#allocation75_spill] sm:$0xff]  ;;  %v14865_v46 = vld [vmem:[#allocation80_spill] sm:$0xff] }
 0x2b8   : > { %3399 = vst [vmem:[#allocation1 + $0x3] ss:$9 sm:$0xff] %v10243_v6  ;;  %v2329_v55 = vshll.u32 %v14864_v51, 16  ;;  %v10278_v19 = vrot.slane %v14865_v46, 1  ;;  %v2341_v51 = vshrl.u32 %v14869_v7, 16  ;;  %v14872_v46 = vld [vmem:[#allocation78_spill] sm:$0xff] }
 0x2b9   : > { %14858 = vst [vmem:[#allocation239_spill] sm:$0xff] %v10256_v37  ;;  %v2346_v54 = vshll.u32 %v14872_v46, 16 }
 0x2ba   : > { %3401 = vst [vmem:[#allocation1 + $0x4] ss:$9 sm:$0xff] %v10251_v35  ;;  %v14862_v35 = vld [vmem:[#allocation73_spill] sm:$0xff] }
 0x2bb   : > { %14859 = vst [vmem:[#allocation240_spill] sm:$0xff] %v10261_v62  ;;  %v2301_v6 = vshrl.u32 %v14862_v35, 16  ;;  %v10290_v35 = vsel %vm9852_vm8, %v2309_v47, %v2314_v63  ;;  %v10304_v47 = vsel %vm9852_vm8, %v2325_v26, %v2329_v55  ;;  %v2361_v63 = vshll.u32 %v10278_v19, 16  ;;  %v14881_v26 = vld [vmem:[#allocation93_spill] sm:$0xff] }
 0x2bc   : > { %3403 = vst [vmem:[#allocation1 + $0x5] ss:$9 sm:$0xff] %v10256_v37  ;;  %v2322_v37 = vshll.u32 %v14863_v34, 16 }
 0x2bd   : > { %14860 = vst [vmem:[#allocation241_spill] sm:$0xff] %v10266_v23 }
 0x2be   : > { %3405 = vst [vmem:[#allocation1 + $0x6] ss:$9 sm:$0xff] %v10261_v62  ;;  %v14868_v62 = vld [vmem:[#allocation76_spill] sm:$0xff] }
 0x2bf   : > { %3407 = vst [vmem:[#allocation1 + $0x7] ss:$9 sm:$0xff] %v10266_v23  ;;  %v10282_v23 = vsel %vm9852_vm8, %v2301_v6, %v2306_v22  ;;  %v2333_v11 = vshrl.u32 %v14868_v62, 16  ;;  %v10298_v6 = vsel %vm9852_vm8, %v2317_v24, %v2322_v37  ;;  %v14874_v22 = vld [vmem:[#allocation79_spill] sm:$0xff]  ;;  %v10316_v37 = vsel %vm9852_vm8, %v2341_v51, %v2346_v54  ;;  %v14880_v54 = vld [vmem:[#allocation92_spill] sm:$0xff] }
 0x2c0   : > { %14866 = vst [vmem:[#allocation80_spill] sm:$0xff] %v10278_v19  ;;  %v2353_v62 = vshll.u32 %v14874_v22, 16  ;;  %v2356_v24 = vshrl.u32 %v14874_v22, 16  ;;  %v2369_v51 = vshll.u32 %v14880_v54, 16 }
 0x2c1   : > { %14867 = vst [vmem:[#allocation242_spill] sm:$0xff] %v10282_v23 }
 0x2c2   : > { %14871 = vst [vmem:[#allocation244_spill] sm:$0xff] %v10290_v35 }
 0x2c3   : > { %14873 = vst [vmem:[#allocation245_spill] sm:$0xff] %v10298_v6 }
 0x2c4   : > { %14875 = vst [vmem:[#allocation246_spill] sm:$0xff] %v10304_v47 }
 0x2c5   : > { %14877 = vst [vmem:[#allocation248_spill] sm:$0xff] %v10316_v37 }
 0x2c6   : > { %v10286_v4 = vld [vmem:[#allocation1] sm:$0xff] }
 0x2c7   : > { %14870 = vst [vmem:[#allocation243_spill] sm:$0xff] %v10286_v4  ;;  %v10310_v4 = vsel %vm9852_vm8, %v2333_v11, %v2338_v9  ;;  %v10327_v9 = vsel %vm9852_vm8, %v2356_v24, %v2361_v63  ;;  %v2372_v11 = vshrl.u32 %v14880_v54, 16  ;;  %v14885_v63 = vld [vmem:[#allocation100_spill] sm:$0xff] }
 0x2c8   : > { %3411 = vst [vmem:[#allocation1] ss:$9 sm:$0xff] %v10282_v23  ;;  %v2349_v23 = vshrl.u32 %v14872_v46, 16  ;;  %v10339_v24 = vrot.slane %v14885_v63, 1  ;;  %v14888_v46 = vld [vmem:[#allocation97_spill] sm:$0xff]  ;;  %v15066_v44 = vld [vmem:[#allocation80_spill] sm:$0xff] }
 0x2c9   : > { %3413 = vst [vmem:[#allocation1 + $0x1] ss:$9 sm:$0xff] %v10290_v35  ;;  %v14884_v35 = vld [vmem:[#allocation95_spill] sm:$0xff]  ;;  %v2401_v54 = vshll.u32 %v14888_v46, 16  ;;  %v2404_v34 = vshrl.u32 %v14888_v46, 16 }
 0x2ca   : > { %3415 = vst [vmem:[#allocation1 + $0x2] ss:$9 sm:$0xff] %v10298_v6  ;;  %v10322_v55 = vsel %vm9852_vm8, %v2349_v23, %v2353_v62  ;;  %v2380_v62 = vshrl.u32 %v14881_v26, 16  ;;  %v14883_v23 = vld [vmem:[#allocation94_spill] sm:$0xff]  ;;  %v2392_v19 = vshll.u32 %v14884_v35, 16 }
 0x2cb   : > { %14876 = vst [vmem:[#allocation247_spill] sm:$0xff] %v10310_v4  ;;  %v14890_v35 = vld [vmem:[#allocation98_spill] sm:$0xff] }
 0x2cc   : > { %3417 = vst [vmem:[#allocation1 + $0x3] ss:$9 sm:$0xff] %v10304_v47  ;;  %v14882_v47 = vld [vmem:[#allocation91_spill] sm:$0xff]  ;;  %v2409_v33 = vshll.u32 %v14890_v35, 16 }
 0x2cd   : > { %3419 = vst [vmem:[#allocation1 + $0x4] ss:$9 sm:$0xff] %v10310_v4  ;;  %v2377_v4 = vshll.u32 %v14881_v26, 16  ;;  %v2364_v6 = vshrl.u32 %v14882_v47, 16  ;;  %v2388_v26 = vshrl.u32 %v14883_v23, 16 }
 0x2ce   : > { %14878 = vst [vmem:[#allocation249_spill] sm:$0xff] %v10322_v55 }
 0x2cf   : > { %3421 = vst [vmem:[#allocation1 + $0x5] ss:$9 sm:$0xff] %v10316_v37  ;;  %v2385_v37 = vshll.u32 %v14883_v23, 16  ;;  %v2379_v47 = vsel %vm9852_vm8, %v2372_v11, %v2377_v4  ;;  %v2412_v11 = vshrl.u32 %v14890_v35, 16 }
 0x2d0   : > { %14879 = vst [vmem:[#allocation250_spill] sm:$0xff] %v10327_v9 }
 0x2d1   : > { %3423 = vst [vmem:[#allocation1 + $0x6] ss:$9 sm:$0xff] %v10322_v55  ;;  %v14887_v55 = vld [vmem:[#allocation96_spill] sm:$0xff]  ;;  %v2387_v63 = vsel %vm9852_vm8, %v2380_v62, %v2385_v37 }
 0x2d2   : > { %3425 = vst [vmem:[#allocation1 + $0x7] ss:$9 sm:$0xff] %v10327_v9  ;;  %v2371_v9 = vsel %vm9852_vm8, %v2364_v6, %v2369_v51  ;;  %v2396_v22 = vshrl.u32 %v14887_v55, 16  ;;  %v14891_v6 = vld [vmem:[#allocation99_spill] sm:$0xff]  ;;  %v2394_v55 = vsel %vm9852_vm8, %v2388_v26, %v2392_v19  ;;  %v14899_v62 = vld [vmem:[#allocation104_spill] sm:$0xff] }
 0x2d3   : > { %14886 = vst [vmem:[#allocation91_spill] sm:$0xff] %v10339_v24  ;;  %v2416_v51 = vshll.u32 %v14891_v6, 16  ;;  %v2419_v37 = vshrl.u32 %v14891_v6, 16 }
 0x2d4   : > { %v10360_v4 = vsel %vm9852_vm8, %v2396_v22, %v2401_v54  ;;  %v14898_v54 = vld [vmem:[#allocation102_spill] sm:$0xff] }
 0x2d5   : > { %14892 = vst [vmem:[#allocation100_spill] sm:$0xff] %v10360_v4  ;;  %v10371_v19 = vsel %vm9852_vm8, %v2412_v11, %v2416_v51  ;;  %v2433_v26 = vshll.u32 %v14898_v54, 16  ;;  %v2436_v11 = vshrl.u32 %v14898_v54, 16 }
 0x2d6   : > { %14894 = vst [vmem:[#allocation252_spill] sm:$0xff] %v10371_v19 }
 0x2d9   : > { %v10345_v7 = vld [vmem:[#allocation1] sm:$0xff] }
 0x2da   : > { %14889 = vst [vmem:[#allocation94_spill] sm:$0xff] %v10345_v7  ;;  %v2424_v7 = vshll.u32 %v10339_v24, 16 }
 0x2db   : > { %3429 = vst [vmem:[#allocation1] ss:$9 sm:$0xff] %v2371_v9  ;;  %v10365_v9 = vsel %vm9852_vm8, %v2404_v34, %v2409_v33  ;;  %v10381_v33 = vrot.slane %v9527_v13, 2  ;;  %v14897_v34 = vld [vmem:[#allocation101_spill] sm:$0xff] }
 0x2dc   : > { %3431 = vst [vmem:[#allocation1 + $0x1] ss:$9 sm:$0xff] %v2379_v47  ;;  %v10376_v22 = vsel %vm9852_vm8, %v2419_v37, %v2424_v7  ;;  %v2440_v47 = vshll.u32 %v14899_v62, 16 }
 0x2dd   : > { %3433 = vst [vmem:[#allocation1 + $0x2] ss:$9 sm:$0xff] %v2387_v63  ;;  %v14900_v63 = vld [vmem:[#allocation105_spill] sm:$0xff]  ;;  %v2456_v37 = vshll.u32 %v10381_v33, 16 }
 0x2de   : > { %3435 = vst [vmem:[#allocation1 + $0x3] ss:$9 sm:$0xff] %v2394_v55  ;;  %v2428_v55 = vshrl.u32 %v14897_v34, 16  ;;  %v2448_v51 = vshll.u32 %v14900_v63, 16  ;;  %v2451_v7 = vshrl.u32 %v14900_v63, 16  ;;  %v10403_v54 = vsel %vm9852_vm8, %v2436_v11, %v2440_v47  ;;  %v14907_v63 = vld [vmem:[#allocation109_spill] sm:$0xff] }
 0x2df   : > { %14893 = vst [vmem:[#allocation251_spill] sm:$0xff] %v10365_v9  ;;  %v2472_v6 = vshll.u32 %v14907_v63, 16 }
 0x2e0   : > { %3437 = vst [vmem:[#allocation1 + $0x4] ss:$9 sm:$0xff] %v10360_v4  ;;  %v10395_v13 = vsel %vm9852_vm8, %v2428_v55, %v2433_v26  ;;  %v14904_v4 = vld [vmem:[#allocation107_spill] sm:$0xff]  ;;  %v14909_v55 = vld [vmem:[#allocation106_spill] sm:$0xff]  ;;  %v10417_v47 = vsel %vm9852_vm8, %v2451_v7, %v2456_v37 }
 0x2e1   : > { %3439 = vst [vmem:[#allocation1 + $0x5] ss:$9 sm:$0xff] %v10365_v9  ;;  %v2464_v34 = vshll.u32 %v14904_v4, 16  ;;  %v2460_v26 = vshrl.u32 %v14909_v55, 16  ;;  %v2467_v11 = vshrl.u32 %v14904_v4, 16  ;;  %v14923_v55 = vld [vmem:[#allocation118_spill] sm:$0xff] }
 0x2e2   : > { %14895 = vst [vmem:[#allocation253_spill] sm:$0xff] %v10376_v22 }
 0x2e3   : > { %3441 = vst [vmem:[#allocation1 + $0x6] ss:$9 sm:$0xff] %v10371_v19  ;;  %v14901_v19 = vld [vmem:[#allocation108_spill] sm:$0xff] }
 0x2e4   : > { %3443 = vst [vmem:[#allocation1 + $0x7] ss:$9 sm:$0xff] %v10376_v22  ;;  %v10391_v9 = vrot.slane %v14901_v19, 3  ;;  %v2443_v22 = vshrl.u32 %v14899_v62, 16  ;;  %v14910_v62 = vld [vmem:[#allocation110_spill] sm:$0xff] }
 0x2e5   : > { %14896 = vst [vmem:[#allocation254_spill] sm:$0xff] %v10381_v33  ;;  %v2475_v33 = vshrl.u32 %v14907_v63, 16  ;;  %v2480_v35 = vshll.u32 %v14910_v62, 16 }
 0x2e6   : > { %14902 = vst [vmem:[#allocation108_spill] sm:$0xff] %v10391_v9  ;;  %v10409_v19 = vsel %vm9852_vm8, %v2443_v22, %v2448_v51  ;;  %v10425_v22 = vsel %vm9852_vm8, %v2460_v26, %v2464_v34  ;;  %v10430_v51 = vsel %vm9852_vm8, %v2467_v11, %v2472_v6  ;;  %v2496_v34 = vshll.u32 %v9562_v38, 16  ;;  %v14916_v11 = vld [vmem:[#allocation114_spill] sm:$0xff] }
 0x2e7   : > { %14903 = vst [vmem:[#allocation255_spill] sm:$0xff] %v10395_v13  ;;  %v10435_v7 = vsel %vm9852_vm8, %v2475_v33, %v2480_v35  ;;  %v2499_v6 = vshrl.u32 %v9562_v38, 16  ;;  %v2504_v26 = vshll.u32 %v9564_v20, 16  ;;  %v2507_v35 = vshrl.u32 %v9564_v20, 16  ;;  %v14917_v33 = vld [vmem:[#allocation115_spill] sm:$0xff] }
 0x2e8   : > { %14906 = vst [vmem:[#allocation257_spill] sm:$0xff] %v10403_v54  ;;  %v2528_v38 = vshll.u32 %v14923_v55, 16  ;;  %v2515_v20 = vshrl.u32 %v14917_v33, 16 }
 0x2e9   : > { %14908 = vst [vmem:[#allocation258_spill] sm:$0xff] %v10409_v19 }
 0x2ea   : > { %14911 = vst [vmem:[#allocation259_spill] sm:$0xff] %v10417_v47 }
 0x2eb   : > { %v10399_v24 = vld [vmem:[#allocation1] sm:$0xff]  ;;  %14912 = vst [vmem:[#allocation260_spill] sm:$0xff] %v10425_v22 }
 0x2ec   : > { %14905 = vst [vmem:[#allocation256_spill] sm:$0xff] %v10399_v24  ;;  %v2488_v24 = vshll.u32 %v10391_v9, 16 }
 0x2ed   : > { %3447 = vst [vmem:[#allocation1] ss:$9 sm:$0xff] %v10395_v13  ;;  %v2483_v13 = vshrl.u32 %v14910_v62, 16 }
 0x2ee   : > { %3449 = vst [vmem:[#allocation1 + $0x1] ss:$9 sm:$0xff] %v10403_v54 }
 0x2ef   : > { %3451 = vst [vmem:[#allocation1 + $0x2] ss:$9 sm:$0xff] %v10409_v19  ;;  %v10440_v37 = vsel %vm9852_vm8, %v2483_v13, %v2488_v24  ;;  %v14919_v24 = vld [vmem:[#allocation121_spill] sm:$0xff] }
 0x2f0   : > { %3453 = vst [vmem:[#allocation1 + $0x3] ss:$9 sm:$0xff] %v10417_v47  ;;  %v14918_v47 = vld [vmem:[#allocation116_spill] sm:$0xff]  ;;  %v10452_v13 = vrot.slane %v14919_v24, 1  ;;  %v14926_v24 = vld [vmem:[#allocation119_spill] sm:$0xff] }
 0x2f1   : > { %14913 = vst [vmem:[#allocation261_spill] sm:$0xff] %v10430_v51  ;;  %v2519_v19 = vshll.u32 %v14918_v47, 16  ;;  %v2531_v47 = vshrl.u32 %v14923_v55, 16  ;;  %v2536_v62 = vshll.u32 %v14926_v24, 16 }
 0x2f2   : > { %3455 = vst [vmem:[#allocation1 + $0x4] ss:$9 sm:$0xff] %v10425_v22  ;;  %v2491_v22 = vshrl.u32 %v14916_v11, 16  ;;  %v10464_v11 = vsel %vm9852_vm8, %v2499_v6, %v2504_v26  ;;  %v2551_v26 = vshll.u32 %v10452_v13, 16 }
 0x2f3   : > { %14914 = vst [vmem:[#allocation262_spill] sm:$0xff] %v10435_v7  ;;  %v10478_v6 = vsel %vm9852_vm8, %v2515_v20, %v2519_v19  ;;  %v14935_v19 = vld [vmem:[#allocation123_spill] sm:$0xff] }
 0x2f4   : > { %3457 = vst [vmem:[#allocation1 + $0x5] ss:$9 sm:$0xff] %v10430_v51  ;;  %v2512_v51 = vshll.u32 %v14917_v33, 16 }
 0x2f5   : > { %14915 = vst [vmem:[#allocation263_spill] sm:$0xff] %v10440_v37 }
 0x2f6   : > { %3459 = vst [vmem:[#allocation1 + $0x6] ss:$9 sm:$0xff] %v10435_v7  ;;  %v14922_v7 = vld [vmem:[#allocation117_spill] sm:$0xff] }
 0x2f7   : > { %3461 = vst [vmem:[#allocation1 + $0x7] ss:$9 sm:$0xff] %v10440_v37  ;;  %v10456_v37 = vsel %vm9852_vm8, %v2491_v22, %v2496_v34  ;;  %v2523_v54 = vshrl.u32 %v14922_v7, 16  ;;  %v10472_v22 = vsel %vm9852_vm8, %v2507_v35, %v2512_v51  ;;  %v14928_v34 = vld [vmem:[#allocation120_spill] sm:$0xff]  ;;  %v10490_v51 = vsel %vm9852_vm8, %v2531_v47, %v2536_v62 }
 0x2f8   : > { %14920 = vst [vmem:[#allocation121_spill] sm:$0xff] %v10452_v13  ;;  %v2543_v7 = vshll.u32 %v14928_v34, 16  ;;  %v2546_v35 = vshrl.u32 %v14928_v34, 16  ;;  %v2555_v62 = vshrl.u32 %v9604_v60, 16  ;;  %v2560_v47 = vshll.u32 %v14935_v19, 16 }
 0x2f9   : > { %14921 = vst [vmem:[#allocation264_spill] sm:$0xff] %v10456_v37 }
 0x2fa   : > { %14925 = vst [vmem:[#allocation266_spill] sm:$0xff] %v10464_v11 }
 0x2fb   : > { %14927 = vst [vmem:[#allocation267_spill] sm:$0xff] %v10472_v22 }
 0x2fc   : > { %14929 = vst [vmem:[#allocation268_spill] sm:$0xff] %v10478_v6 }
 0x2fd   : > { %14931 = vst [vmem:[#allocation270_spill] sm:$0xff] %v10490_v51 }
 0x2fe   : > { %v10460_v9 = vld [vmem:[#allocation1] sm:$0xff] }
 0x2ff   : > { %14924 = vst [vmem:[#allocation265_spill] sm:$0xff] %v10460_v9  ;;  %v10484_v9 = vsel %vm9852_vm8, %v2523_v54, %v2528_v38  ;;  %v10501_v38 = vsel %vm9852_vm8, %v2546_v35, %v2551_v26  ;;  %v10506_v54 = vrot.slane %v9615_v10, 2  ;;  %v10520_v10 = vsel %vm9852_vm8, %v2555_v62, %v2560_v47  ;;  %v14946_v62 = vld [vmem:[#allocation127_spill] sm:$0xff] }
 0x300   : > { %3465 = vst [vmem:[#allocation1] ss:$9 sm:$0xff] %v10456_v37  ;;  %v2539_v37 = vshrl.u32 %v14926_v24, 16  ;;  %v2587_v47 = vshrl.u32 %v14946_v62, 16 }
 0x301   : > { %3467 = vst [vmem:[#allocation1 + $0x1] ss:$9 sm:$0xff] %v10464_v11  ;;  %v2583_v35 = vshll.u32 %v10506_v54, 16  ;;  %v14941_v11 = vld [vmem:[#allocation129_spill] sm:$0xff] }
 0x302   : > { %3469 = vst [vmem:[#allocation1 + $0x2] ss:$9 sm:$0xff] %v10472_v22  ;;  %v10496_v20 = vsel %vm9852_vm8, %v2539_v37, %v2543_v7  ;;  %v14937_v37 = vld [vmem:[#allocation126_spill] sm:$0xff]  ;;  %v2591_v60 = vshll.u32 %v14941_v11, 16 }
 0x303   : > { %14930 = vst [vmem:[#allocation269_spill] sm:$0xff] %v10484_v9  ;;  %v2578_v26 = vshrl.u32 %v14937_v37, 16 }
 0x304   : > { %3471 = vst [vmem:[#allocation1 + $0x3] ss:$9 sm:$0xff] %v10478_v6  ;;  %v2575_v6 = vshll.u32 %v14937_v37, 16  ;;  %v14944_v37 = vld [vmem:[#allocation131_spill] sm:$0xff] }
 0x305   : > { %3473 = vst [vmem:[#allocation1 + $0x4] ss:$9 sm:$0xff] %v10484_v9  ;;  %v14936_v9 = vld [vmem:[#allocation125_spill] sm:$0xff]  ;;  %v2599_v34 = vshll.u32 %v14944_v37, 16 }
 0x306   : > { %14932 = vst [vmem:[#allocation271_spill] sm:$0xff] %v10496_v20  ;;  %v2567_v7 = vshll.u32 %v14936_v9, 16 }
 0x307   : > { %3475 = vst [vmem:[#allocation1 + $0x5] ss:$9 sm:$0xff] %v10490_v51  ;;  %v2563_v51 = vshrl.u32 %v14935_v19, 16 }
 0x308   : > { %14933 = vst [vmem:[#allocation272_spill] sm:$0xff] %v10501_v38 }
 0x309   : > { %3477 = vst [vmem:[#allocation1 + $0x6] ss:$9 sm:$0xff] %v10496_v20  ;;  %v14938_v20 = vld [vmem:[#allocation130_spill] sm:$0xff]  ;;  %v10528_v19 = vsel %vm9852_vm8, %v2563_v51, %v2567_v7  ;;  %v10542_v51 = vsel %vm9852_vm8, %v2578_v26, %v2583_v35  ;;  %v2594_v7 = vshrl.u32 %v14941_v11, 16  ;;  %v14963_v11 = vld [vmem:[#allocation149_spill] sm:$0xff] }
 0x30a   : > { %3479 = vst [vmem:[#allocation1 + $0x7] ss:$9 sm:$0xff] %v10501_v38  ;;  %v10516_v22 = vrot.slane %v14938_v20, 3  ;;  %v2570_v38 = vshrl.u32 %v14936_v9, 16  ;;  %v14947_v9 = vld [vmem:[#allocation132_spill] sm:$0xff]  ;;  %v2666_v55 = vshrl.u32 %v14963_v11, 16 }
 0x30b   : > { %14934 = vst [vmem:[#allocation273_spill] sm:$0xff] %v10506_v54  ;;  %v2602_v54 = vshrl.u32 %v14944_v37, 16  ;;  %v2607_v24 = vshll.u32 %v14947_v9, 16 }
 0x30c   : > { %14939 = vst [vmem:[#allocation130_spill] sm:$0xff] %v10516_v22  ;;  %v10534_v20 = vsel %vm9852_vm8, %v2570_v38, %v2575_v6  ;;  %v10550_v6 = vsel %vm9852_vm8, %v2587_v47, %v2591_v60  ;;  %v10555_v38 = vsel %vm9852_vm8, %v2594_v7, %v2599_v34  ;;  %v14953_v60 = vld [vmem:[#allocation144_spill] sm:$0xff] }
 0x30d   : > { %14940 = vst [vmem:[#allocation274_spill] sm:$0xff] %v10520_v10  ;;  %v10560_v26 = vsel %vm9852_vm8, %v2602_v54, %v2607_v24  ;;  %v14286_v47 = vrot.slane %v14953_v60, 2  ;;  %v14954_v34 = vld [vmem:[#allocation140_spill] sm:$0xff]  ;;  %v14958_v54 = vld [vmem:[#allocation145_spill] sm:$0xff] }
 0x30e   : > { %14943 = vst [vmem:[#allocation276_spill] sm:$0xff] %v10528_v19  ;;  %v14955_v7 = vrot.slane %v14954_v34, 2  ;;  %v2639_v62 = vshll.u32 %v14958_v54, 16 }
 0x30f   : > { %14945 = vst [vmem:[#allocation277_spill] sm:$0xff] %v10534_v20 }
 0x310   : > { %14948 = vst [vmem:[#allocation278_spill] sm:$0xff] %v10542_v51 }
 0x311   : > { %v10524_v13 = vld [vmem:[#allocation1] sm:$0xff]  ;;  %14949 = vst [vmem:[#allocation279_spill] sm:$0xff] %v10550_v6 }
 0x312   : > { %14942 = vst [vmem:[#allocation275_spill] sm:$0xff] %v10524_v13  ;;  %v2610_v13 = vshrl.u32 %v14947_v9, 16 }
 0x313   : > { %3483 = vst [vmem:[#allocation1] ss:$9 sm:$0xff] %v10520_v10  ;;  %v2615_v10 = vshll.u32 %v10516_v22, 16  ;;  %v14961_v22 = vld [vmem:[#allocation147_spill] sm:$0xff] }
 0x314   : > { %3485 = vst [vmem:[#allocation1 + $0x1] ss:$9 sm:$0xff] %v10528_v19  ;;  %v14957_v19 = vld [vmem:[#allocation143_spill] sm:$0xff]  ;;  %v2655_v9 = vshll.u32 %v14961_v22, 16 }
 0x315   : > { %3487 = vst [vmem:[#allocation1 + $0x2] ss:$9 sm:$0xff] %v10534_v20  ;;  %v10565_v35 = vsel %vm9852_vm8, %v2610_v13, %v2615_v10  ;;  %v2631_v24 = vshll.u32 %v14957_v19, 16  ;;  %v2642_v13 = vshrl.u32 %v14958_v54, 16  ;;  %v2647_v10 = vshll.u32 %v14286_v47, 16 }
 0x316   : > { %3489 = vst [vmem:[#allocation1 + $0x3] ss:$9 sm:$0xff] %v10542_v51  ;;  %v2619_v51 = vshrl.u32 %v14955_v7, 16  ;;  %v2634_v7 = vshrl.u32 %v14957_v19, 16  ;;  %v2663_v54 = vshll.u32 %v14963_v11, 16 }
 0x317   : > { %14950 = vst [vmem:[#allocation280_spill] sm:$0xff] %v10555_v38  ;;  %v2649_v19 = vsel %vm9852_vm8, %v2642_v13, %v2647_v10  ;;  %v14972_v13 = vld [vmem:[#allocation154_spill] sm:$0xff] }
 0x318   : > { %3491 = vst [vmem:[#allocation1 + $0x4] ss:$9 sm:$0xff] %v10550_v6  ;;  %v14956_v6 = vld [vmem:[#allocation141_spill] sm:$0xff]  ;;  %v2641_v47 = vsel %vm9852_vm8, %v2634_v7, %v2639_v62  ;;  %v2682_v10 = vshrl.u32 %v14972_v13, 16  ;;  %v14973_v7 = vld [vmem:[#allocation155_spill] sm:$0xff] }
 0x319   : > { %14951 = vst [vmem:[#allocation281_spill] sm:$0xff] %v10560_v26  ;;  %v2624_v20 = vshll.u32 %v14956_v6, 16 }
 0x31a   : > { %3493 = vst [vmem:[#allocation1 + $0x5] ss:$9 sm:$0xff] %v10555_v38  ;;  %v2627_v38 = vshrl.u32 %v14956_v6, 16 }
 0x31b   : > { %14952 = vst [vmem:[#allocation282_spill] sm:$0xff] %v10565_v35  ;;  %v2626_v34 = vsel %vm9852_vm8, %v2619_v51, %v2624_v20  ;;  %v14965_v20 = vld [vmem:[#allocation150_spill] sm:$0xff] }
 0x31c   : > { %3495 = vst [vmem:[#allocation1 + $0x6] ss:$9 sm:$0xff] %v10560_v26  ;;  %v14959_v26 = vld [vmem:[#allocation148_spill] sm:$0xff]  ;;  %v2633_v6 = vsel %vm9852_vm8, %v2627_v38, %v2631_v24  ;;  %v2671_v51 = vshll.u32 %v14965_v20, 16  ;;  %v2674_v38 = vshrl.u32 %v14965_v20, 16 }
 0x31d   : > { %3497 = vst [vmem:[#allocation1 + $0x7] ss:$9 sm:$0xff] %v10565_v35  ;;  %v10580_v35 = vrot.slane %v14959_v26, 3  ;;  %v14964_v26 = vld [vmem:[#allocation146_spill] sm:$0xff] }
 0x31e   : > { %v2651_v60 = vshrl.u32 %v14964_v26, 16 }
 0x31f   : > { %14960 = vst [vmem:[#allocation140_spill] sm:$0xff] %v10580_v35  ;;  %v2679_v24 = vshll.u32 %v10580_v35, 16 }
 0x320   : > { %v10603_v62 = vsel %vm9852_vm8, %v2651_v60, %v2655_v9  ;;  %v14970_v9 = vld [vmem:[#allocation151_spill] sm:$0xff]  ;;  %v14971_v60 = vld [vmem:[#allocation152_spill] sm:$0xff] }
 0x321   : > { %14966 = vst [vmem:[#allocation283_spill] sm:$0xff] %v10603_v62 }
 0x324   : > { %v10586_v37 = vld [vmem:[#allocation1] sm:$0xff] }
 0x325   : > { %14962 = vst [vmem:[#allocation148_spill] sm:$0xff] %v10586_v37  ;;  %v2658_v37 = vshrl.u32 %v14961_v22, 16 }
 0x326   : > { %3501 = vst [vmem:[#allocation1] ss:$9 sm:$0xff] %v2626_v34 }
 0x327   : > { %3503 = vst [vmem:[#allocation1 + $0x1] ss:$9 sm:$0xff] %v2633_v6  ;;  %v10607_v34 = vsel %vm9852_vm8, %v2658_v37, %v2663_v54  ;;  %v10612_v6 = vsel %vm9852_vm8, %v2666_v55, %v2671_v51  ;;  %v2690_v37 = vshrl.u32 %v14970_v9, 16  ;;  %v2695_v54 = vshll.u32 %v14971_v60, 16 }
 0x328   : > { %3505 = vst [vmem:[#allocation1 + $0x2] ss:$9 sm:$0xff] %v2641_v47  ;;  %v10617_v47 = vsel %vm9852_vm8, %v2674_v38, %v2679_v24  ;;  %v2698_v55 = vshrl.u32 %v14971_v60, 16  ;;  %v2703_v51 = vshll.u32 %v14973_v7, 16  ;;  %v14975_v38 = vld [vmem:[#allocation161_spill] sm:$0xff]  ;;  %v2706_v60 = vshrl.u32 %v14973_v7, 16 }
 0x329   : > { %3507 = vst [vmem:[#allocation1 + $0x3] ss:$9 sm:$0xff] %v2649_v19  ;;  %v2687_v19 = vshll.u32 %v14970_v9, 16  ;;  %v10629_v24 = vrot.slane %v14975_v38, 1  ;;  %v14979_v9 = vld [vmem:[#allocation158_spill] sm:$0xff]  ;;  %v10641_v13 = vsel %vm9852_vm8, %v2690_v37, %v2695_v54  ;;  %v14982_v38 = vld [vmem:[#allocation159_spill] sm:$0xff] }
 0x32a   : > { %14967 = vst [vmem:[#allocation284_spill] sm:$0xff] %v10607_v34  ;;  %v2719_v35 = vshll.u32 %v14979_v9, 16  ;;  %v2727_v11 = vshll.u32 %v14982_v38, 16 }
 0x32b   : > { %3509 = vst [vmem:[#allocation1 + $0x4] ss:$9 sm:$0xff] %v10603_v62  ;;  %v2742_v54 = vshll.u32 %v10629_v24, 16 }
 0x32c   : > { %14968 = vst [vmem:[#allocation285_spill] sm:$0xff] %v10612_v6 }
 0x32d   : > { %3511 = vst [vmem:[#allocation1 + $0x5] ss:$9 sm:$0xff] %v10607_v34  ;;  %v14974_v34 = vld [vmem:[#allocation156_spill] sm:$0xff] }
 0x32e   : > { %14969 = vst [vmem:[#allocation286_spill] sm:$0xff] %v10617_v47  ;;  %v2710_v62 = vshll.u32 %v14974_v34, 16  ;;  %v2722_v34 = vshrl.u32 %v14979_v9, 16 }
 0x32f   : > { %3513 = vst [vmem:[#allocation1 + $0x6] ss:$9 sm:$0xff] %v10612_v6  ;;  %v14978_v6 = vld [vmem:[#allocation157_spill] sm:$0xff] }
 0x330   : > { %3515 = vst [vmem:[#allocation1 + $0x7] ss:$9 sm:$0xff] %v10617_v47  ;;  %v10633_v47 = vsel %vm9852_vm8, %v2682_v10, %v2687_v19  ;;  %v2714_v26 = vshrl.u32 %v14978_v6, 16  ;;  %v10649_v19 = vsel %vm9852_vm8, %v2698_v55, %v2703_v51  ;;  %v14984_v10 = vld [vmem:[#allocation160_spill] sm:$0xff]  ;;  %v10655_v37 = vsel %vm9852_vm8, %v2706_v60, %v2710_v62  ;;  %v14992_v60 = vld [vmem:[#allocation163_spill] sm:$0xff] }
 0x331   : > { %14976 = vst [vmem:[#allocation161_spill] sm:$0xff] %v10629_v24  ;;  %v2734_v6 = vshll.u32 %v14984_v10, 16  ;;  %v10667_v55 = vsel %vm9852_vm8, %v2722_v34, %v2727_v11  ;;  %v2737_v51 = vshrl.u32 %v14984_v10, 16  ;;  %v10683_v11 = vrot.slane %v9775_v17, 2 }
 0x332   : > { %14977 = vst [vmem:[#allocation287_spill] sm:$0xff] %v10633_v47 }
 0x333   : > { %14981 = vst [vmem:[#allocation289_spill] sm:$0xff] %v10641_v13 }
 0x334   : > { %14983 = vst [vmem:[#allocation290_spill] sm:$0xff] %v10649_v19 }
 0x335   : > { %14985 = vst [vmem:[#allocation291_spill] sm:$0xff] %v10655_v37 }
 0x336   : > { %14987 = vst [vmem:[#allocation293_spill] sm:$0xff] %v10667_v55 }
 0x337   : > { %v10637_v20 = vld [vmem:[#allocation1] sm:$0xff]  ;;  %14990 = vst [vmem:[#allocation296_spill] sm:$0xff] %v10683_v11 }
 0x338   : > { %14980 = vst [vmem:[#allocation288_spill] sm:$0xff] %v10637_v20  ;;  %v10661_v20 = vsel %vm9852_vm8, %v2714_v26, %v2719_v35  ;;  %v10678_v35 = vsel %vm9852_vm8, %v2737_v51, %v2742_v54  ;;  %v14991_v26 = vld [vmem:[#allocation162_spill] sm:$0xff]  ;;  %v2774_v51 = vshll.u32 %v10683_v11, 16 }
 0x339   : > { %3519 = vst [vmem:[#allocation1] ss:$9 sm:$0xff] %v10633_v47  ;;  %v2730_v47 = vshrl.u32 %v14982_v38, 16  ;;  %v2746_v34 = vshrl.u32 %v14991_v26, 16 }
 0x33a   : > { %3521 = vst [vmem:[#allocation1 + $0x1] ss:$9 sm:$0xff] %v10641_v13  ;;  %v14997_v13 = vld [vmem:[#allocation168_spill] sm:$0xff] }
 0x33b   : > { %3523 = vst [vmem:[#allocation1 + $0x2] ss:$9 sm:$0xff] %v10649_v19  ;;  %v10673_v62 = vsel %vm9852_vm8, %v2730_v47, %v2734_v6  ;;  %v14994_v47 = vld [vmem:[#allocation166_spill] sm:$0xff]  ;;  %v2782_v26 = vshll.u32 %v14997_v13, 16 }
 0x33c   : > { %14986 = vst [vmem:[#allocation292_spill] sm:$0xff] %v10661_v20  ;;  %v2766_v19 = vshll.u32 %v14994_v47, 16  ;;  %v2769_v54 = vshrl.u32 %v14994_v47, 16  ;;  %v15000_v47 = vld [vmem:[#allocation169_spill] sm:$0xff] }
 0x33d   : > { %3525 = vst [vmem:[#allocation1 + $0x3] ss:$9 sm:$0xff] %v10655_v37  ;;  %v14993_v37 = vld [vmem:[#allocation165_spill] sm:$0xff]  ;;  %v2790_v10 = vshll.u32 %v15000_v47, 16  ;;  %v2793_v11 = vshrl.u32 %v15000_v47, 16 }
 0x33e   : > { %3527 = vst [vmem:[#allocation1 + $0x4] ss:$9 sm:$0xff] %v10661_v20  ;;  %v2751_v20 = vshll.u32 %v14992_v60, 16  ;;  %v2758_v6 = vshll.u32 %v14993_v37, 16 }
 0x33f   : > { %14988 = vst [vmem:[#allocation294_spill] sm:$0xff] %v10673_v62 }
 0x340   : > { %3529 = vst [vmem:[#allocation1 + $0x5] ss:$9 sm:$0xff] %v10667_v55  ;;  %v2754_v55 = vshrl.u32 %v14992_v60, 16  ;;  %v10697_v17 = vsel %vm9852_vm8, %v2746_v34, %v2751_v20  ;;  %v15002_v20 = vld [vmem:[#allocation167_spill] sm:$0xff] }
 0x341   : > { %14989 = vst [vmem:[#allocation295_spill] sm:$0xff] %v10678_v35  ;;  %v2778_v34 = vshrl.u32 %v15002_v20, 16 }
 0x342   : > { %3531 = vst [vmem:[#allocation1 + $0x6] ss:$9 sm:$0xff] %v10673_v62  ;;  %v10693_v62 = vrot.slane %v9794_v53, 3  ;;  %v10705_v60 = vsel %vm9852_vm8, %v2754_v55, %v2758_v6  ;;  %v10719_v55 = vsel %vm9852_vm8, %v2769_v54, %v2774_v51  ;;  %v2785_v6 = vshrl.u32 %v14997_v13, 16 }
 0x343   : > { %3533 = vst [vmem:[#allocation1 + $0x7] ss:$9 sm:$0xff] %v10678_v35  ;;  %v2761_v35 = vshrl.u32 %v14993_v37, 16  ;;  %v15003_v37 = vld [vmem:[#allocation170_spill] sm:$0xff] }
 0x344   : > { %14995 = vst [vmem:[#allocation297_spill] sm:$0xff] %v10693_v62  ;;  %v2798_v38 = vshll.u32 %v15003_v37, 16 }
 0x345   : > { %14996 = vst [vmem:[#allocation298_spill] sm:$0xff] %v10697_v17  ;;  %v10711_v53 = vsel %vm9852_vm8, %v2761_v35, %v2766_v19  ;;  %v10727_v19 = vsel %vm9852_vm8, %v2778_v34, %v2782_v26  ;;  %v10732_v35 = vsel %vm9852_vm8, %v2785_v6, %v2790_v10  ;;  %v2814_v26 = vshll.u32 %v9807_v3, 16 }
 0x346   : > { %14999 = vst [vmem:[#allocation300_spill] sm:$0xff] %v10705_v60  ;;  %v10737_v54 = vsel %vm9852_vm8, %v2793_v11, %v2798_v38  ;;  %v2817_v10 = vshrl.u32 %v9807_v3, 16  ;;  %v2822_v34 = vshll.u32 %v9809_v2, 16  ;;  %v2809_v6 = vshrl.u32 %v9814_v29, 16  ;;  %v15009_v11 = vld [vmem:[#allocation175_spill] sm:$0xff] }
 0x347   : > { %15001 = vst [vmem:[#allocation301_spill] sm:$0xff] %v10711_v53  ;;  %v2825_v38 = vshrl.u32 %v9809_v2, 16  ;;  %v2833_v2 = vshrl.u32 %v15009_v11, 16 }
 0x348   : > { %15004 = vst [vmem:[#allocation302_spill] sm:$0xff] %v10719_v55  ;;  %v10766_v29 = vsel %vm9852_vm8, %v2817_v10, %v2822_v34 }
 0x349   : > { %15005 = vst [vmem:[#allocation303_spill] sm:$0xff] %v10727_v19 }
 0x34a   : > { %v10701_v24 = vld [vmem:[#allocation1] sm:$0xff]  ;;  %15006 = vst [vmem:[#allocation304_spill] sm:$0xff] %v10732_v35 }
 0x34b   : > { %14998 = vst [vmem:[#allocation299_spill] sm:$0xff] %v10701_v24  ;;  %v2806_v24 = vshll.u32 %v10693_v62, 16 }
 0x34c   : > { %3537 = vst [vmem:[#allocation1] ss:$9 sm:$0xff] %v10697_v17  ;;  %v2801_v17 = vshrl.u32 %v15003_v37, 16 }
 0x34d   : > { %3539 = vst [vmem:[#allocation1 + $0x1] ss:$9 sm:$0xff] %v10705_v60  ;;  %v15015_v60 = vld [vmem:[#allocation178_spill] sm:$0xff] }
 0x34e   : > { %3541 = vst [vmem:[#allocation1 + $0x2] ss:$9 sm:$0xff] %v10711_v53  ;;  %v10742_v51 = vsel %vm9852_vm8, %v2801_v17, %v2806_v24  ;;  %v15011_v24 = vld [vmem:[#allocation181_spill] sm:$0xff]  ;;  %v2846_v20 = vshll.u32 %v15015_v60, 16 }
 0x34f   : > { %3543 = vst [vmem:[#allocation1 + $0x3] ss:$9 sm:$0xff] %v10719_v55  ;;  %v10754_v17 = vrot.slane %v15011_v24, 1  ;;  %v15018_v24 = vld [vmem:[#allocation179_spill] sm:$0xff] }
 0x350   : > { %3545 = vst [vmem:[#allocation1 + $0x4] ss:$9 sm:$0xff] %v10727_v19  ;;  %v15010_v19 = vld [vmem:[#allocation176_spill] sm:$0xff]  ;;  %v2854_v62 = vshll.u32 %v15018_v24, 16 }
 0x351   : > { %15007 = vst [vmem:[#allocation305_spill] sm:$0xff] %v10737_v54  ;;  %v2837_v55 = vshll.u32 %v15010_v19, 16  ;;  %v2849_v19 = vshrl.u32 %v15015_v60, 16  ;;  %v2869_v34 = vshll.u32 %v10754_v17, 16 }
 0x352   : > { %3547 = vst [vmem:[#allocation1 + $0x5] ss:$9 sm:$0xff] %v10732_v35  ;;  %v2830_v35 = vshll.u32 %v15009_v11, 16 }
 0x353   : > { %15008 = vst [vmem:[#allocation306_spill] sm:$0xff] %v10742_v51  ;;  %v10780_v10 = vsel %vm9852_vm8, %v2833_v2, %v2837_v55  ;;  %v15028_v55 = vld [vmem:[#allocation6_spill] sm:$0xff] }
 0x354   : > { %3549 = vst [vmem:[#allocation1 + $0x6] ss:$9 sm:$0xff] %v10737_v54  ;;  %v15014_v54 = vld [vmem:[#allocation177_spill] sm:$0xff] }
 0x355   : > { %3551 = vst [vmem:[#allocation1 + $0x7] ss:$9 sm:$0xff] %v10742_v51  ;;  %v10758_v51 = vsel %vm9852_vm8, %v2809_v6, %v2814_v26  ;;  %v2841_v53 = vshrl.u32 %v15014_v54, 16  ;;  %v10774_v26 = vsel %vm9852_vm8, %v2825_v38, %v2830_v35  ;;  %v15020_v6 = vld [vmem:[#allocation180_spill] sm:$0xff]  ;;  %v10792_v35 = vsel %vm9852_vm8, %v2849_v19, %v2854_v62  ;;  %v15029_v19 = vld [vmem:[#allocation7_spill] sm:$0xff] }
 0x356   : > { %15012 = vst [vmem:[#allocation181_spill] sm:$0xff] %v10754_v17  ;;  %v2861_v54 = vshll.u32 %v15020_v6, 16  ;;  %v2864_v38 = vshrl.u32 %v15020_v6, 16 }
 0x357   : > { %15013 = vst [vmem:[#allocation307_spill] sm:$0xff] %v10758_v51 }
 0x358   : > { %15017 = vst [vmem:[#allocation309_spill] sm:$0xff] %v10766_v29 }
 0x359   : > { %15019 = vst [vmem:[#allocation310_spill] sm:$0xff] %v10774_v26 }
 0x35a   : > { %15021 = vst [vmem:[#allocation311_spill] sm:$0xff] %v10780_v10 }
 0x35b   : > { %15023 = vst [vmem:[#allocation313_spill] sm:$0xff] %v10792_v35 }
 0x35c   : > { %v10762_v3 = vld [vmem:[#allocation1] sm:$0xff] }
 0x35d   : > { %15016 = vst [vmem:[#allocation308_spill] sm:$0xff] %v10762_v3  ;;  %v10786_v3 = vsel %vm9852_vm8, %v2841_v53, %v2846_v20  ;;  %v10803_v53 = vsel %vm9852_vm8, %v2864_v38, %v2869_v34  ;;  %v15027_v20 = vld [vmem:[#allocation5_spill] sm:$0xff]  ;;  %v15034_v38 = vld [vmem:[#allocation42_spill] sm:$0xff] }
 0x35e   : > { %3555 = vst [vmem:[#allocation1] ss:$9 sm:$0xff] %v10758_v51  ;;  %v2857_v51 = vshrl.u32 %v15018_v24, 16 }
 0x35f   : > { %3557 = vst [vmem:[#allocation1 + $0x1] ss:$9 sm:$0xff] %v10766_v29  ;;  %v15061_v29 = vld [vmem:[#allocation74_spill] sm:$0xff] }
 0x360   : > { %3559 = vst [vmem:[#allocation1 + $0x2] ss:$9 sm:$0xff] %v10774_v26  ;;  %v10798_v2 = vsel %vm9852_vm8, %v2857_v51, %v2861_v54  ;;  %v15060_v26 = vld [vmem:[#allocation71_spill] sm:$0xff] }
 0x361   : > { %15022 = vst [vmem:[#allocation312_spill] sm:$0xff] %v10786_v3 }
 0x362   : > { %3561 = vst [vmem:[#allocation1 + $0x3] ss:$9 sm:$0xff] %v10780_v10 }
 0x363   : > { %3563 = vst [vmem:[#allocation1 + $0x4] ss:$9 sm:$0xff] %v10786_v3  ;;  %v15057_v3 = vld [vmem:[#allocation67_spill] sm:$0xff] }
 0x364   : > { %15024 = vst [vmem:[#allocation314_spill] sm:$0xff] %v10798_v2 }
 0x365   : > { %3565 = vst [vmem:[#allocation1 + $0x5] ss:$9 sm:$0xff] %v10792_v35  ;;  %v15056_v35 = vld [vmem:[#allocation69_spill] sm:$0xff] }
 0x366   : > { %15025 = vst [vmem:[#allocation315_spill] sm:$0xff] %v10803_v53 }
 0x367   : > { %3567 = vst [vmem:[#allocation1 + $0x6] ss:$9 sm:$0xff] %v10798_v2  ;;  %v15054_v2 = vld [vmem:[#allocation66_spill] sm:$0xff] }
 0x368   : > { %3569 = vst [vmem:[#allocation1 + $0x7] ss:$9 sm:$0xff] %v10803_v53  ;;  %v15053_v53 = vld [vmem:[#allocation63_spill] sm:$0xff] }
 0x36f   : > { %v10807_v62 = vld [vmem:[#allocation1] sm:$0xff] }
 0x370   : > { %15026 = vst [vmem:[#allocation316_spill] sm:$0xff] %v10807_v62  ;;  %v15062_v62 = vld [vmem:[#allocation75_spill] sm:$0xff] }
 0x371   : > { %3604 = vst [vmem:[#allocation1] ss:$9 sm:$0xff] %v15027_v20  ;;  %v15035_v20 = vld [vmem:[#allocation41_spill] sm:$0xff] }
 0x372   : > { %3606 = vst [vmem:[#allocation1 + $0x1] ss:$9 sm:$0xff] %v15028_v55  ;;  %v15036_v55 = vrot.slane %v15035_v20, 2  ;;  %v15045_v20 = vld [vmem:[#allocation55_spill] sm:$0xff] }
 0x373   : > { %3608 = vst [vmem:[#allocation1 + $0x2] ss:$9 sm:$0xff] %v9002_v32 }
 0x374   : > { %3610 = vst [vmem:[#allocation1 + $0x3] ss:$9 sm:$0xff] %v15029_v19  ;;  %v15037_v19 = vld [vmem:[#allocation46_spill] sm:$0xff] }
 0x375   : > { %3612 = vst [vmem:[#allocation1 + $0x4] ss:$9 sm:$0xff] %v9018_v48 }
 0x376   : > { %3614 = vst [vmem:[#allocation1 + $0x5] ss:$9 sm:$0xff] %v9020_v49 }
 0x377   : > { %3616 = vst [vmem:[#allocation1 + $0x6] ss:$9 sm:$0xff] %v9031_v61 }
 0x378   : > { %3618 = vst [vmem:[#allocation1 + $0x7] ss:$9 sm:$0xff] %v9863_v8  ;;  %v15052_v8 = vld [vmem:[#allocation64_spill] sm:$0xff] }
 0x37f   : > { %v10817_v54 = vld [vmem:[#allocation1] sm:$0xff] }
 0x380   : > { %15030 = vst [vmem:[#allocation5_spill] sm:$0xff] %v10817_v54  ;;  %v15039_v54 = vld [vmem:[#allocation37_spill] sm:$0xff] }
 0x381   : > { %3621 = vst [vmem:[#allocation1] ss:$9 sm:$0xff] %v9043_v12 }
 0x382   : > { %3622 = vst [vmem:[#allocation1 + $0x1] ss:$9 sm:$0xff] %v9048_v14 }
 0x383   : > { %3623 = vst [vmem:[#allocation1 + $0x2] ss:$9 sm:$0xff] %v9056_v18 }
 0x384   : > { %3624 = vst [vmem:[#allocation1 + $0x3] ss:$9 sm:$0xff] %v9905_v43  ;;  %v15051_v43 = vld [vmem:[#allocation62_spill] sm:$0xff] }
 0x385   : > { %3625 = vst [vmem:[#allocation1 + $0x4] ss:$9 sm:$0xff] %v9070_v36 }
 0x386   : > { %3626 = vst [vmem:[#allocation1 + $0x5] ss:$9 sm:$0xff] %v9077_v40 }
 0x387   : > { %3627 = vst [vmem:[#allocation1 + $0x6] ss:$9 sm:$0xff] %v9079_v41 }
 0x388   : > { %3628 = vst [vmem:[#allocation1 + $0x7] ss:$9 sm:$0xff] %v9915_v50 }
 0x38f   : > { %v10827_v32 = vld [vmem:[#allocation1] sm:$0xff] }
 0x390   : > { %15031 = vst [vmem:[#allocation6_spill] sm:$0xff] %v10827_v32  ;;  %v15038_v32 = vld [vmem:[#allocation47_spill] sm:$0xff] }
 0x391   : > { %3631 = vst [vmem:[#allocation1] ss:$9 sm:$0xff] %v9091_v59 }
 0x392   : > { %3632 = vst [vmem:[#allocation1 + $0x1] ss:$9 sm:$0xff] %v9096_v0 }
 0x393   : > { %3633 = vst [vmem:[#allocation1 + $0x2] ss:$9 sm:$0xff] %v9089_v57 }
 0x394   : > { %3634 = vst [vmem:[#allocation1 + $0x3] ss:$9 sm:$0xff] %v9110_v21  ;;  %v15048_v21 = vld [vmem:[#allocation58_spill] sm:$0xff] }
 0x395   : > { %3635 = vst [vmem:[#allocation1 + $0x4] ss:$9 sm:$0xff] %v9117_v27 }
 0x396   : > { %3636 = vst [vmem:[#allocation1 + $0x5] ss:$9 sm:$0xff] %v9119_v28 }
 0x397   : > { %3637 = vst [vmem:[#allocation1 + $0x6] ss:$9 sm:$0xff] %v9127_v45 }
 0x398   : > { %3638 = vst [vmem:[#allocation1 + $0x7] ss:$9 sm:$0xff] %v9976_v16  ;;  %v15047_v16 = vld [vmem:[#allocation57_spill] sm:$0xff] }
 0x39f   : > { %v10837_v51 = vld [vmem:[#allocation1] sm:$0xff] }
 0x3a0   : > { %15032 = vst [vmem:[#allocation7_spill] sm:$0xff] %v10837_v51  ;;  %v15070_v51 = vld [vmem:[#allocation95_spill] sm:$0xff] }
 0x3a1   : > { %3641 = vst [vmem:[#allocation1] ss:$9 sm:$0xff] %v9140_v5 }
 0x3a2   : > { %3642 = vst [vmem:[#allocation1 + $0x1] ss:$9 sm:$0xff] %v9147_v15 }
 0x3a3   : > { %3643 = vst [vmem:[#allocation1 + $0x2] ss:$9 sm:$0xff] %v9155_v58 }
 0x3a4   : > { %3644 = vst [vmem:[#allocation1 + $0x3] ss:$9 sm:$0xff] %v10030_v30  ;;  %v15041_v30 = vld [vmem:[#allocation48_spill] sm:$0xff] }
 0x3a5   : > { %3645 = vst [vmem:[#allocation1 + $0x4] ss:$9 sm:$0xff] %v9168_v52 }
 0x3a6   : > { %3646 = vst [vmem:[#allocation1 + $0x5] ss:$9 sm:$0xff] %v9175_v42 }
 0x3a7   : > { %3647 = vst [vmem:[#allocation1 + $0x6] ss:$9 sm:$0xff] %v9177_v56 }
 0x3a8   : > { %3648 = vst [vmem:[#allocation1 + $0x7] ss:$9 sm:$0xff] %v10040_v39 }
 0x3af   : > { %v10847_v34 = vld [vmem:[#allocation1] sm:$0xff] }
 0x3b0   : > { %15033 = vst [vmem:[#allocation317_spill] sm:$0xff] %v10847_v34 }
 0x3b1   : > { %3651 = vst [vmem:[#allocation1] ss:$9 sm:$0xff] %v14806_v1  ;;  %v15042_v1 = vld [vmem:[#allocation52_spill] sm:$0xff] }
 0x3b2   : > { %3652 = vst [vmem:[#allocation1 + $0x1] ss:$9 sm:$0xff] %v14807_v31  ;;  %v15043_v31 = vld [vmem:[#allocation49_spill] sm:$0xff] }
 0x3b3   : > { %3653 = vst [vmem:[#allocation1 + $0x2] ss:$9 sm:$0xff] %v15034_v38  ;;  %v15044_v38 = vld [vmem:[#allocation53_spill] sm:$0xff] }
 0x3b4   : > { %3654 = vst [vmem:[#allocation1 + $0x3] ss:$9 sm:$0xff] %v15036_v55  ;;  %v15046_v55 = vld [vmem:[#allocation56_spill] sm:$0xff] }
 0x3b5   : > { %3655 = vst [vmem:[#allocation1 + $0x4] ss:$9 sm:$0xff] %v14811_v25 }
 0x3b6   : > { %3656 = vst [vmem:[#allocation1 + $0x5] ss:$9 sm:$0xff] %v15037_v19 }
 0x3b7   : > { %3657 = vst [vmem:[#allocation1 + $0x6] ss:$9 sm:$0xff] %v15038_v32 }
 0x3b8   : > { %3658 = vst [vmem:[#allocation1 + $0x7] ss:$9 sm:$0xff] %v15039_v54  ;;  %v15050_v54 = vld [vmem:[#allocation60_spill] sm:$0xff] }
 0x3bf   : > { %v10858_v39 = vld [vmem:[#allocation1] sm:$0xff] }
 0x3c0   : > { %15040 = vst [vmem:[#allocation42_spill] sm:$0xff] %v10858_v39  ;;  %v15065_v39 = vld [vmem:[#allocation79_spill] sm:$0xff] }
 0x3c1   : > { %3661 = vst [vmem:[#allocation1] ss:$9 sm:$0xff] %v15041_v30 }
 0x3c2   : > { %3662 = vst [vmem:[#allocation1 + $0x1] ss:$9 sm:$0xff] %v15042_v1 }
 0x3c3   : > { %3663 = vst [vmem:[#allocation1 + $0x2] ss:$9 sm:$0xff] %v15043_v31 }
 0x3c4   : > { %3664 = vst [vmem:[#allocation1 + $0x3] ss:$9 sm:$0xff] %v15044_v38  ;;  %v15055_v38 = vld [vmem:[#allocation68_spill] sm:$0xff] }
 0x3c5   : > { %3665 = vst [vmem:[#allocation1 + $0x4] ss:$9 sm:$0xff] %v15045_v20 }
 0x3c6   : > { %3666 = vst [vmem:[#allocation1 + $0x5] ss:$9 sm:$0xff] %v15046_v55 }
 0x3c7   : > { %3667 = vst [vmem:[#allocation1 + $0x6] ss:$9 sm:$0xff] %v15047_v16 }
 0x3c8   : > { %3668 = vst [vmem:[#allocation1 + $0x7] ss:$9 sm:$0xff] %v15048_v21  ;;  %v15059_v21 = vld [vmem:[#allocation70_spill] sm:$0xff] }
 0x3cf   : > { %v10868_v50 = vld [vmem:[#allocation1] sm:$0xff] }
 0x3d0   : > { %15049 = vst [vmem:[#allocation41_spill] sm:$0xff] %v10868_v50  ;;  %v15063_v50 = vld [vmem:[#allocation77_spill] sm:$0xff] }
 0x3d1   : > { %3671 = vst [vmem:[#allocation1] ss:$9 sm:$0xff] %v15050_v54 }
 0x3d2   : > { %3672 = vst [vmem:[#allocation1 + $0x1] ss:$9 sm:$0xff] %v15051_v43 }
 0x3d3   : > { %3673 = vst [vmem:[#allocation1 + $0x2] ss:$9 sm:$0xff] %v15052_v8 }
 0x3d4   : > { %3674 = vst [vmem:[#allocation1 + $0x3] ss:$9 sm:$0xff] %v15053_v53  ;;  %v15064_v53 = vld [vmem:[#allocation78_spill] sm:$0xff] }
 0x3d5   : > { %3675 = vst [vmem:[#allocation1 + $0x4] ss:$9 sm:$0xff] %v15054_v2 }
 0x3d6   : > { %3676 = vst [vmem:[#allocation1 + $0x5] ss:$9 sm:$0xff] %v15055_v38 }
 0x3d7   : > { %3677 = vst [vmem:[#allocation1 + $0x6] ss:$9 sm:$0xff] %v15056_v35 }
 0x3d8   : > { %3678 = vst [vmem:[#allocation1 + $0x7] ss:$9 sm:$0xff] %v15057_v3  ;;  %v15068_v3 = vld [vmem:[#allocation92_spill] sm:$0xff] }
 0x3df   : > { %v10878_v10 = vld [vmem:[#allocation1] sm:$0xff] }
 0x3e0   : > { %15058 = vst [vmem:[#allocation46_spill] sm:$0xff] %v10878_v10  ;;  %v15069_v10 = vld [vmem:[#allocation93_spill] sm:$0xff] }
 0x3e1   : > { %3681 = vst [vmem:[#allocation1] ss:$9 sm:$0xff] %v15059_v21 }
 0x3e2   : > { %3682 = vst [vmem:[#allocation1 + $0x1] ss:$9 sm:$0xff] %v15060_v26 }
 0x3e3   : > { %3683 = vst [vmem:[#allocation1 + $0x2] ss:$9 sm:$0xff] %v15061_v29 }
 0x3e4   : > { %3684 = vst [vmem:[#allocation1 + $0x3] ss:$9 sm:$0xff] %v15062_v62  ;;  %v15071_v62 = vld [vmem:[#allocation98_spill] sm:$0xff] }
 0x3e5   : > { %3685 = vst [vmem:[#allocation1 + $0x4] ss:$9 sm:$0xff] %v15063_v50  ;;  %v15072_v50 = vld [vmem:[#allocation99_spill] sm:$0xff] }
 0x3e6   : > { %3686 = vst [vmem:[#allocation1 + $0x5] ss:$9 sm:$0xff] %v15064_v53  ;;  %v15073_v53 = vld [vmem:[#allocation91_spill] sm:$0xff] }
 0x3e7   : > { %3687 = vst [vmem:[#allocation1 + $0x6] ss:$9 sm:$0xff] %v15065_v39 }
 0x3e8   : > { %3688 = vst [vmem:[#allocation1 + $0x7] ss:$9 sm:$0xff] %v15066_v44  ;;  %v15075_v44 = vld [vmem:[#allocation102_spill] sm:$0xff] }
 0x3ef   : > { %v10888_v34 = vld [vmem:[#allocation1] sm:$0xff] }
 0x3f0   : > { %15067 = vst [vmem:[#allocation318_spill] sm:$0xff] %v10888_v34  ;;  %v15076_v34 = vld [vmem:[#allocation104_spill] sm:$0xff] }
 0x3f1   : > { %3691 = vst [vmem:[#allocation1] ss:$9 sm:$0xff] %v15068_v3  ;;  %v15077_v3 = vld [vmem:[#allocation105_spill] sm:$0xff] }
 0x3f2   : > { %3692 = vst [vmem:[#allocation1 + $0x1] ss:$9 sm:$0xff] %v15069_v10  ;;  %v15078_v10 = vld [vmem:[#allocation254_spill] sm:$0xff] }
 0x3f3   : > { %3693 = vst [vmem:[#allocation1 + $0x2] ss:$9 sm:$0xff] %v14883_v23  ;;  %v15079_v23 = vld [vmem:[#allocation110_spill] sm:$0xff] }
 0x3f4   : > { %3694 = vst [vmem:[#allocation1 + $0x3] ss:$9 sm:$0xff] %v15070_v51  ;;  %v15080_v51 = vld [vmem:[#allocation108_spill] sm:$0xff] }
 0x3f5   : > { %3695 = vst [vmem:[#allocation1 + $0x4] ss:$9 sm:$0xff] %v14888_v46 }
 0x3f6   : > { %3696 = vst [vmem:[#allocation1 + $0x5] ss:$9 sm:$0xff] %v15071_v62 }
 0x3f7   : > { %3697 = vst [vmem:[#allocation1 + $0x6] ss:$9 sm:$0xff] %v15072_v50 }
 0x3f8   : > { %3698 = vst [vmem:[#allocation1 + $0x7] ss:$9 sm:$0xff] %v15073_v53  ;;  %v15082_v53 = vld [vmem:[#allocation111_spill] sm:$0xff] }
 0x3ff   : > { %v10898_v39 = vld [vmem:[#allocation1] sm:$0xff] }
 0x400   : > { %15074 = vst [vmem:[#allocation92_spill] sm:$0xff] %v10898_v39  ;;  %v15083_v39 = vld [vmem:[#allocation112_spill] sm:$0xff] }
 0x401   : > { %3701 = vst [vmem:[#allocation1] ss:$9 sm:$0xff] %v15075_v44 }
 0x402   : > { %3702 = vst [vmem:[#allocation1 + $0x1] ss:$9 sm:$0xff] %v15076_v34  ;;  %v15084_v34 = vld [vmem:[#allocation116_spill] sm:$0xff] }
 0x403   : > { %3703 = vst [vmem:[#allocation1 + $0x2] ss:$9 sm:$0xff] %v15077_v3  ;;  %v15085_v3 = vld [vmem:[#allocation118_spill] sm:$0xff] }
 0x404   : > { %3704 = vst [vmem:[#allocation1 + $0x3] ss:$9 sm:$0xff] %v15078_v10  ;;  %v15086_v10 = vld [vmem:[#allocation119_spill] sm:$0xff] }
 0x405   : > { %3705 = vst [vmem:[#allocation1 + $0x4] ss:$9 sm:$0xff] %v14904_v4  ;;  %v15087_v4 = vld [vmem:[#allocation120_spill] sm:$0xff] }
 0x406   : > { %3706 = vst [vmem:[#allocation1 + $0x5] ss:$9 sm:$0xff] %v14907_v63  ;;  %v15088_v63 = vld [vmem:[#allocation121_spill] sm:$0xff] }
 0x407   : > { %3707 = vst [vmem:[#allocation1 + $0x6] ss:$9 sm:$0xff] %v15079_v23 }
 0x408   : > { %3708 = vst [vmem:[#allocation1 + $0x7] ss:$9 sm:$0xff] %v15080_v51  ;;  %v15090_v51 = vld [vmem:[#allocation123_spill] sm:$0xff] }
 0x40f   : > { %v10908_v50 = vld [vmem:[#allocation1] sm:$0xff] }
 0x410   : > { %15081 = vst [vmem:[#allocation93_spill] sm:$0xff] %v10908_v50  ;;  %v15091_v50 = vld [vmem:[#allocation125_spill] sm:$0xff] }
 0x411   : > { %3711 = vst [vmem:[#allocation1] ss:$9 sm:$0xff] %v15082_v53  ;;  %v15092_v53 = vld [vmem:[#allocation126_spill] sm:$0xff] }
 0x412   : > { %3712 = vst [vmem:[#allocation1 + $0x1] ss:$9 sm:$0xff] %v15083_v39  ;;  %v15093_v39 = vld [vmem:[#allocation273_spill] sm:$0xff] }
 0x413   : > { %3713 = vst [vmem:[#allocation1 + $0x2] ss:$9 sm:$0xff] %v14917_v33  ;;  %v15094_v33 = vld [vmem:[#allocation129_spill] sm:$0xff] }
 0x414   : > { %3714 = vst [vmem:[#allocation1 + $0x3] ss:$9 sm:$0xff] %v15084_v34  ;;  %v15095_v34 = vld [vmem:[#allocation131_spill] sm:$0xff] }
 0x415   : > { %3715 = vst [vmem:[#allocation1 + $0x4] ss:$9 sm:$0xff] %v15085_v3  ;;  %v15096_v3 = vld [vmem:[#allocation132_spill] sm:$0xff] }
 0x416   : > { %3716 = vst [vmem:[#allocation1 + $0x5] ss:$9 sm:$0xff] %v15086_v10  ;;  %v15097_v10 = vld [vmem:[#allocation130_spill] sm:$0xff] }
 0x417   : > { %3717 = vst [vmem:[#allocation1 + $0x6] ss:$9 sm:$0xff] %v15087_v4 }
 0x418   : > { %3718 = vst [vmem:[#allocation1 + $0x7] ss:$9 sm:$0xff] %v15088_v63  ;;  %v15099_v63 = vld [vmem:[#allocation141_spill] sm:$0xff] }
 0x41f   : > { %v10918_v23 = vld [vmem:[#allocation1] sm:$0xff] }
 0x420   : > { %15089 = vst [vmem:[#allocation95_spill] sm:$0xff] %v10918_v23  ;;  %v15100_v23 = vld [vmem:[#allocation143_spill] sm:$0xff] }
 0x421   : > { %3721 = vst [vmem:[#allocation1] ss:$9 sm:$0xff] %v15090_v51  ;;  %v15101_v51 = vld [vmem:[#allocation145_spill] sm:$0xff] }
 0x422   : > { %3722 = vst [vmem:[#allocation1 + $0x1] ss:$9 sm:$0xff] %v15091_v50  ;;  %v15102_v50 = vld [vmem:[#allocation144_spill] sm:$0xff] }
 0x423   : > { %3723 = vst [vmem:[#allocation1 + $0x2] ss:$9 sm:$0xff] %v15092_v53  ;;  %v15103_v53 = vrot.slane %v15102_v50, 2  ;;  %v15111_v50 = vld [vmem:[#allocation159_spill] sm:$0xff] }
 0x424   : > { %3724 = vst [vmem:[#allocation1 + $0x3] ss:$9 sm:$0xff] %v15093_v39  ;;  %v15104_v39 = vld [vmem:[#allocation149_spill] sm:$0xff] }
 0x425   : > { %3725 = vst [vmem:[#allocation1 + $0x4] ss:$9 sm:$0xff] %v15094_v33 }
 0x426   : > { %3726 = vst [vmem:[#allocation1 + $0x5] ss:$9 sm:$0xff] %v15095_v34  ;;  %v15105_v34 = vld [vmem:[#allocation150_spill] sm:$0xff] }
 0x427   : > { %3727 = vst [vmem:[#allocation1 + $0x6] ss:$9 sm:$0xff] %v15096_v3  ;;  %v15106_v3 = vld [vmem:[#allocation140_spill] sm:$0xff] }
 0x428   : > { %3728 = vst [vmem:[#allocation1 + $0x7] ss:$9 sm:$0xff] %v15097_v10 }
 0x42f   : > { %v10928_v4 = vld [vmem:[#allocation1] sm:$0xff] }
 0x430   : > { %15098 = vst [vmem:[#allocation319_spill] sm:$0xff] %v10928_v4  ;;  %v15108_v4 = vld [vmem:[#allocation151_spill] sm:$0xff] }
 0x431   : > { %3731 = vst [vmem:[#allocation1] ss:$9 sm:$0xff] %v15099_v63  ;;  %v15109_v63 = vld [vmem:[#allocation152_spill] sm:$0xff] }
 0x432   : > { %3732 = vst [vmem:[#allocation1 + $0x1] ss:$9 sm:$0xff] %v15100_v23  ;;  %v15110_v23 = vld [vmem:[#allocation156_spill] sm:$0xff] }
 0x433   : > { %3733 = vst [vmem:[#allocation1 + $0x2] ss:$9 sm:$0xff] %v15101_v51  ;;  %v15113_v51 = vld [vmem:[#allocation161_spill] sm:$0xff] }
 0x434   : > { %3734 = vst [vmem:[#allocation1 + $0x3] ss:$9 sm:$0xff] %v15103_v53  ;;  %v15112_v53 = vld [vmem:[#allocation160_spill] sm:$0xff] }
 0x435   : > { %3735 = vst [vmem:[#allocation1 + $0x4] ss:$9 sm:$0xff] %v14961_v22 }
 0x436   : > { %3736 = vst [vmem:[#allocation1 + $0x5] ss:$9 sm:$0xff] %v15104_v39 }
 0x437   : > { %3737 = vst [vmem:[#allocation1 + $0x6] ss:$9 sm:$0xff] %v15105_v34 }
 0x438   : > { %3738 = vst [vmem:[#allocation1 + $0x7] ss:$9 sm:$0xff] %v15106_v3  ;;  %v15115_v3 = vld [vmem:[#allocation163_spill] sm:$0xff] }
 0x43f   : > { %v10939_v10 = vld [vmem:[#allocation1] sm:$0xff] }
 0x440   : > { %15107 = vst [vmem:[#allocation141_spill] sm:$0xff] %v10939_v10  ;;  %v15116_v10 = vld [vmem:[#allocation165_spill] sm:$0xff] }
 0x441   : > { %3741 = vst [vmem:[#allocation1] ss:$9 sm:$0xff] %v15108_v4  ;;  %v15117_v4 = vld [vmem:[#allocation166_spill] sm:$0xff] }
 0x442   : > { %3742 = vst [vmem:[#allocation1 + $0x1] ss:$9 sm:$0xff] %v15109_v63  ;;  %v15118_v63 = vld [vmem:[#allocation296_spill] sm:$0xff] }
 0x443   : > { %3743 = vst [vmem:[#allocation1 + $0x2] ss:$9 sm:$0xff] %v14973_v7 }
 0x444   : > { %3744 = vst [vmem:[#allocation1 + $0x3] ss:$9 sm:$0xff] %v15110_v23  ;;  %v15119_v23 = vld [vmem:[#allocation297_spill] sm:$0xff] }
 0x445   : > { %3745 = vst [vmem:[#allocation1 + $0x4] ss:$9 sm:$0xff] %v14979_v9 }
 0x446   : > { %3746 = vst [vmem:[#allocation1 + $0x5] ss:$9 sm:$0xff] %v15111_v50 }
 0x447   : > { %3747 = vst [vmem:[#allocation1 + $0x6] ss:$9 sm:$0xff] %v15112_v53 }
 0x448   : > { %3748 = vst [vmem:[#allocation1 + $0x7] ss:$9 sm:$0xff] %v15113_v51  ;;  %v15121_v51 = vld [vmem:[#allocation171_spill] sm:$0xff] }
 0x44f   : > { %v10949_v34 = vld [vmem:[#allocation1] sm:$0xff] }
 0x450   : > { %15114 = vst [vmem:[#allocation143_spill] sm:$0xff] %v10949_v34  ;;  %v15122_v34 = vld [vmem:[#allocation172_spill] sm:$0xff] }
 0x451   : > { %3751 = vst [vmem:[#allocation1] ss:$9 sm:$0xff] %v15115_v3 }
 0x452   : > { %3752 = vst [vmem:[#allocation1 + $0x1] ss:$9 sm:$0xff] %v15116_v10  ;;  %v15123_v10 = vld [vmem:[#allocation176_spill] sm:$0xff] }
 0x453   : > { %3753 = vst [vmem:[#allocation1 + $0x2] ss:$9 sm:$0xff] %v15117_v4 }
 0x454   : > { %3754 = vst [vmem:[#allocation1 + $0x3] ss:$9 sm:$0xff] %v15118_v63 }
 0x455   : > { %3755 = vst [vmem:[#allocation1 + $0x4] ss:$9 sm:$0xff] %v14997_v13 }
 0x456   : > { %3756 = vst [vmem:[#allocation1 + $0x5] ss:$9 sm:$0xff] %v15000_v47 }
 0x457   : > { %3757 = vst [vmem:[#allocation1 + $0x6] ss:$9 sm:$0xff] %v15003_v37 }
 0x458   : > { %3758 = vst [vmem:[#allocation1 + $0x7] ss:$9 sm:$0xff] %v15119_v23  ;;  %v15124_v23 = vld [vmem:[#allocation8_spill] sm:$0xff] }
 0x45f   : > { %v10959_v53 = vld [vmem:[#allocation1] sm:$0xff] }
 0x460   : > { %15120 = vst [vmem:[#allocation145_spill] sm:$0xff] %v10959_v53  ;;  %v15125_v53 = vld [vmem:[#allocation9_spill] sm:$0xff] }
 0x461   : > { %3761 = vst [vmem:[#allocation1] ss:$9 sm:$0xff] %v15121_v51 }
 0x462   : > { %3762 = vst [vmem:[#allocation1 + $0x1] ss:$9 sm:$0xff] %v15122_v34 }
 0x463   : > { %3763 = vst [vmem:[#allocation1 + $0x2] ss:$9 sm:$0xff] %v15009_v11 }
 0x464   : > { %3764 = vst [vmem:[#allocation1 + $0x3] ss:$9 sm:$0xff] %v15123_v10 }
 0x465   : > { %3765 = vst [vmem:[#allocation1 + $0x4] ss:$9 sm:$0xff] %v15015_v60 }
 0x466   : > { %3766 = vst [vmem:[#allocation1 + $0x5] ss:$9 sm:$0xff] %v15018_v24 }
 0x467   : > { %3767 = vst [vmem:[#allocation1 + $0x6] ss:$9 sm:$0xff] %v15020_v6 }
 0x468   : > { %3768 = vst [vmem:[#allocation1 + $0x7] ss:$9 sm:$0xff] %v10754_v17  ;;  %v15127_v17 = vld [vmem:[#allocation13_spill] sm:$0xff] }
 0x46f   : > { %v10969_v63 = vld [vmem:[#allocation1] sm:$0xff] }
 0x470   : > { %3803 = vst [vmem:[#allocation1] ss:$9 sm:$0xff] %v15124_v23  ;;  %v15128_v23 = vld [vmem:[#allocation16_spill] sm:$0xff] }
 0x471   : > { %3805 = vst [vmem:[#allocation1 + $0x1] ss:$9 sm:$0xff] %v9018_v48 }
 0x472   : > { %3807 = vst [vmem:[#allocation1 + $0x2] ss:$9 sm:$0xff] %v9020_v49 }
 0x473   : > { %3809 = vst [vmem:[#allocation1 + $0x3] ss:$9 sm:$0xff] %v9031_v61 }
 0x474   : > { %3811 = vst [vmem:[#allocation1 + $0x4] ss:$9 sm:$0xff] %v15125_v53 }
 0x475   : > { %3813 = vst [vmem:[#allocation1 + $0x5] ss:$9 sm:$0xff] %v9043_v12 }
 0x476   : > { %3815 = vst [vmem:[#allocation1 + $0x6] ss:$9 sm:$0xff] %v9048_v14 }
 0x477   : > { %3817 = vst [vmem:[#allocation1 + $0x7] ss:$9 sm:$0xff] %v9056_v18  ;;  %v15130_v18 = vld [vmem:[#allocation19_spill] sm:$0xff] }
 0x47e   : > { %v10979_v10 = vld [vmem:[#allocation1] sm:$0xff] }
 0x47f   : > { %15126 = vst [vmem:[#allocation144_spill] sm:$0xff] %v10979_v10  ;;  %v15131_v10 = vld [vmem:[#allocation27_spill] sm:$0xff] }
 0x480   : > { %3820 = vst [vmem:[#allocation1] ss:$9 sm:$0xff] %v15127_v17  ;;  %v1048_v17 = vmax.f32 %v15131_v10, 0.0 }
 0x481   : > { %3821 = vst [vmem:[#allocation1 + $0x1] ss:$9 sm:$0xff] %v9070_v36 }
 0x482   : > { %3822 = vst [vmem:[#allocation1 + $0x2] ss:$9 sm:$0xff] %v9077_v40 }
 0x483   : > { %3823 = vst [vmem:[#allocation1 + $0x3] ss:$9 sm:$0xff] %v9079_v41  ;;  %v15132_v41 = vld [vmem:[#allocation22_spill] sm:$0xff] }
 0x484   : > { %3824 = vst [vmem:[#allocation1 + $0x4] ss:$9 sm:$0xff] %v15128_v23  ;;  %v1098_v23 = vpack.c.bf16 %v1048_v17, %v1048_v17 }
 0x485   : > { %3825 = vst [vmem:[#allocation1 + $0x5] ss:$9 sm:$0xff] %v9091_v59 }
 0x486   : > { %3826 = vst [vmem:[#allocation1 + $0x6] ss:$9 sm:$0xff] %v9096_v0 }
 0x487   : > { %3827 = vst [vmem:[#allocation1 + $0x7] ss:$9 sm:$0xff] %v9089_v57 }
 0x48e   : > { %v10989_v53 = vld [vmem:[#allocation1] sm:$0xff] }
 0x48f   : > { %15129 = vst [vmem:[#allocation8_spill] sm:$0xff] %v10989_v53  ;;  %v1198_v53 = vrot.slane %v1098_v23, 3 }
 0x490   : > { %3830 = vst [vmem:[#allocation1] ss:$9 sm:$0xff] %v15130_v18 }
 0x491   : > { %3831 = vst [vmem:[#allocation1 + $0x1] ss:$9 sm:$0xff] %v9117_v27  ;;  %v1364_v18 = vsel %vm1241_vm3, %v1098_v23, %v1198_v53  ;;  %v15133_v27 = vld [vmem:[#allocation26_spill] sm:$0xff]  ;;  %v1367_v10 = vsel %vm1245_vm4, %v1098_v23, %v1198_v53 }
 0x492   : > { %3832 = vst [vmem:[#allocation1 + $0x2] ss:$9 sm:$0xff] %v9119_v28  ;;  %v11011_v17 = vrot.slane %v1364_v18, 1  ;;  %v15138_v18 = vld [vmem:[#allocation51_spill] sm:$0xff] }
 0x493   : > { %3833 = vst [vmem:[#allocation1 + $0x3] ss:$9 sm:$0xff] %v9127_v45 }
 0x494   : > { %3834 = vst [vmem:[#allocation1 + $0x4] ss:$9 sm:$0xff] %v15132_v41  ;;  %v1370_v41 = vsel %vm1249_vm5, %v1098_v23, %v1198_v53 }
 0x495   : > { %3835 = vst [vmem:[#allocation1 + $0x5] ss:$9 sm:$0xff] %v9140_v5 }
 0x496   : > { %3836 = vst [vmem:[#allocation1 + $0x6] ss:$9 sm:$0xff] %v9147_v15  ;;  %v11009_v15 = vsel %vm763_vm0, %v1098_v23, %v1198_v53  ;;  %v15137_v53 = vld [vmem:[#allocation43_spill] sm:$0xff]  ;;  %v15139_v23 = vld [vmem:[#allocation54_spill] sm:$0xff] }
 0x497   : > { %3837 = vst [vmem:[#allocation1 + $0x7] ss:$9 sm:$0xff] %v9155_v58  ;;  %v11014_v58 = vrot.slane %v1367_v10, 2  ;;  %v15140_v10 = vld [vmem:[#allocation59_spill] sm:$0xff] }
 0x498   : > { %15134 = vst [vmem:[#allocation27_spill] sm:$0xff] %v11009_v15 }
 0x499   : > { %15135 = vst [vmem:[#allocation320_spill] sm:$0xff] %v11014_v58 }
 0x49e   : > { %v11000_v57 = vld [vmem:[#allocation1] sm:$0xff] }
 0x49f   : > { %3840 = vst [vmem:[#allocation1] ss:$9 sm:$0xff] %v15133_v27  ;;  %v11017_v27 = vrot.slane %v1370_v41, 3  ;;  %3974 = vrot.lane.b32.xlu1 %v11000_v57, %s8796_s14 }
 0x4a0   : > { %3841 = vst [vmem:[#allocation1 + $0x1] ss:$9 sm:$0xff] %v9168_v52 }
 0x4a1   : > { %3842 = vst [vmem:[#allocation1 + $0x2] ss:$9 sm:$0xff] %v9175_v42 }
 0x4a2   : > { %3843 = vst [vmem:[#allocation1 + $0x3] ss:$9 sm:$0xff] %v9177_v56 }
 0x4a3   : > { %3844 = vst [vmem:[#allocation1 + $0x4] ss:$9 sm:$0xff] %v11009_v15 }
 0x4a4   : > { %15136 = vst [vmem:[#allocation321_spill] sm:$0xff] %v11017_v27 }
 0x4a5   : > { %3845 = vst [vmem:[#allocation1 + $0x5] ss:$9 sm:$0xff] %v11011_v17 }
 0x4a6   : > { %3846 = vst [vmem:[#allocation1 + $0x6] ss:$9 sm:$0xff] %v11014_v58 }
 0x4a7   : > { %3847 = vst [vmem:[#allocation1 + $0x7] ss:$9 sm:$0xff] %v11017_v27 }
 0x4ae   : > { %v11022_v42 = vld [vmem:[#allocation1] sm:$0xff] }
 0x4af   : > { %3850 = vst [vmem:[#allocation1] ss:$9 sm:$0xff] %v15137_v53  ;;  %v15141_v53 = vld [vmem:[#allocation215_spill] sm:$0xff] }
 0x4b0   : > { %3851 = vst [vmem:[#allocation1 + $0x1] ss:$9 sm:$0xff] %v14811_v25  ;;  %3576 = vrot.lane.b32.xlu0 %v15141_v53, %s8794_s21  ;;  %v15144_v53 = vld [vmem:[#allocation76_spill] sm:$0xff] }
 0x4b1   : > { %3852 = vst [vmem:[#allocation1 + $0x2] ss:$9 sm:$0xff] %v15037_v19 }
 0x4b2   : > { %3853 = vst [vmem:[#allocation1 + $0x3] ss:$9 sm:$0xff] %v15038_v32  ;;  %v15248_v32 = vld [vmem:[#allocation222_spill] sm:$0xff] }
 0x4b3   : > { %3854 = vst [vmem:[#allocation1 + $0x4] ss:$9 sm:$0xff] %v15138_v18 }
 0x4b4   : > { %3855 = vst [vmem:[#allocation1 + $0x5] ss:$9 sm:$0xff] %v15041_v30 }
 0x4b5   : > { %3856 = vst [vmem:[#allocation1 + $0x6] ss:$9 sm:$0xff] %v15042_v1 }
 0x4b6   : > { %3857 = vst [vmem:[#allocation1 + $0x7] ss:$9 sm:$0xff] %v15043_v31  ;;  %v15172_v31 = vld [vmem:[#allocation120_spill] sm:$0xff] }
 0x4bd   : > { %v11032_v41 = vld [vmem:[#allocation1] sm:$0xff] }
 0x4be   : > { %3860 = vst [vmem:[#allocation1] ss:$9 sm:$0xff] %v15139_v23  ;;  %v15142_v23 = vld [vmem:[#allocation65_spill] sm:$0xff] }
 0x4bf   : > { %3861 = vst [vmem:[#allocation1 + $0x1] ss:$9 sm:$0xff] %v15045_v20  ;;  %v15169_v20 = vld [vmem:[#allocation118_spill] sm:$0xff] }
 0x4c0   : > { %3862 = vst [vmem:[#allocation1 + $0x2] ss:$9 sm:$0xff] %v15046_v55  ;;  %v15161_v55 = vld [vmem:[#allocation107_spill] sm:$0xff] }
 0x4c1   : > { %3863 = vst [vmem:[#allocation1 + $0x3] ss:$9 sm:$0xff] %v15047_v16 }
 0x4c2   : > { %3864 = vst [vmem:[#allocation1 + $0x4] ss:$9 sm:$0xff] %v15140_v10  ;;  %v15143_v10 = vld [vmem:[#allocation73_spill] sm:$0xff] }
 0x4c3   : > { %3865 = vst [vmem:[#allocation1 + $0x5] ss:$9 sm:$0xff] %v15050_v54  ;;  %v15148_v54 = vld [vmem:[#allocation83_spill] sm:$0xff] }
 0x4c4   : > { %3866 = vst [vmem:[#allocation1 + $0x6] ss:$9 sm:$0xff] %v15051_v43  ;;  %v15145_v43 = vld [vmem:[#allocation77_spill] sm:$0xff] }
 0x4c5   : > { %3867 = vst [vmem:[#allocation1 + $0x7] ss:$9 sm:$0xff] %v15052_v8 }
 0x4cc   : > { %v11044_v18 = vld [vmem:[#allocation1] sm:$0xff] }
 0x4cd   : > { %3870 = vst [vmem:[#allocation1] ss:$9 sm:$0xff] %v15142_v23  ;;  %v15146_v23 = vld [vmem:[#allocation81_spill] sm:$0xff] }
 0x4ce   : > { %3871 = vst [vmem:[#allocation1 + $0x1] ss:$9 sm:$0xff] %v15054_v2  ;;  %v11059_v2 = vrot.slane %v15146_v23, 2 }
 0x4cf   : > { %3872 = vst [vmem:[#allocation1 + $0x2] ss:$9 sm:$0xff] %v15055_v38  ;;  %v15147_v38 = vld [vmem:[#allocation84_spill] sm:$0xff] }
 0x4d0   : > { %3873 = vst [vmem:[#allocation1 + $0x3] ss:$9 sm:$0xff] %v15056_v35  ;;  %v1520_v35 = vsel %vm1241_vm3, %v15148_v54, %v15147_v38 }
 0x4d1   : > { %3874 = vst [vmem:[#allocation1 + $0x4] ss:$9 sm:$0xff] %v15143_v10  ;;  %v15149_v10 = vld [vmem:[#allocation78_spill] sm:$0xff]  ;;  %v11075_v23 = vrot.slane %v1520_v35, 1  ;;  %v15158_v35 = vld [vmem:[#allocation104_spill] sm:$0xff] }
 0x4d2   : > { %3875 = vst [vmem:[#allocation1 + $0x5] ss:$9 sm:$0xff] %v15059_v21  ;;  %v15150_v21 = vld [vmem:[#allocation82_spill] sm:$0xff] }
 0x4d3   : > { %3876 = vst [vmem:[#allocation1 + $0x6] ss:$9 sm:$0xff] %v15060_v26  ;;  %v11066_v16 = vrot.slane %v15150_v21, 3  ;;  %v15152_v26 = vld [vmem:[#allocation79_spill] sm:$0xff]  ;;  %v15155_v21 = vld [vmem:[#allocation96_spill] sm:$0xff]  ;;  %v2924_v57 = vshll.u32 %v11075_v23, 16 }
 0x4d4   : > { %3877 = vst [vmem:[#allocation1 + $0x7] ss:$9 sm:$0xff] %v15061_v29  ;;  %v15160_v29 = vld [vmem:[#allocation106_spill] sm:$0xff] }
 0x4d5   : > { %15151 = vst [vmem:[#allocation43_spill] sm:$0xff] %v11066_v16 }
 0x4d6   : > { %15154 = vst [vmem:[#allocation81_spill] sm:$0xff] %v11075_v23 }
 0x4db   : > { %v11054_v8 = vld [vmem:[#allocation1] sm:$0xff] }
 0x4dc   : > { %3880 = vst [vmem:[#allocation1] ss:$9 sm:$0xff] %v15144_v53  ;;  %v11073_v53 = vsel %vm763_vm0, %v15148_v54, %v15147_v38  ;;  %v15157_v54 = vld [vmem:[#allocation101_spill] sm:$0xff] }
 0x4dd   : > { %3881 = vst [vmem:[#allocation1 + $0x1] ss:$9 sm:$0xff] %v15145_v43  ;;  %v15159_v38 = vld [vmem:[#allocation105_spill] sm:$0xff] }
 0x4de   : > { %3882 = vst [vmem:[#allocation1 + $0x2] ss:$9 sm:$0xff] %v15149_v10 }
 0x4df   : > { %3883 = vst [vmem:[#allocation1 + $0x3] ss:$9 sm:$0xff] %v15152_v26  ;;  %v15156_v26 = vld [vmem:[#allocation99_spill] sm:$0xff] }
 0x4e0   : > { %3884 = vst [vmem:[#allocation1 + $0x4] ss:$9 sm:$0xff] %v11059_v2 }
 0x4e1   : > { %15153 = vst [vmem:[#allocation215_spill] sm:$0xff] %v11073_v53 }
 0x4e2   : > { %3885 = vst [vmem:[#allocation1 + $0x5] ss:$9 sm:$0xff] %v11066_v16 }
 0x4e3   : > { %3886 = vst [vmem:[#allocation1 + $0x6] ss:$9 sm:$0xff] %v11073_v53 }
 0x4e4   : > { %3887 = vst [vmem:[#allocation1 + $0x7] ss:$9 sm:$0xff] %v11075_v23 }
 0x4eb   : > { %v11080_v10 = vld [vmem:[#allocation1] sm:$0xff] }
 0x4ec   : > { %3890 = vst [vmem:[#allocation1] ss:$9 sm:$0xff] %v15155_v21  ;;  %v15162_v21 = vld [vmem:[#allocation109_spill] sm:$0xff] }
 0x4ed   : > { %3891 = vst [vmem:[#allocation1 + $0x1] ss:$9 sm:$0xff] %v14888_v46  ;;  %v15163_v46 = vld [vmem:[#allocation110_spill] sm:$0xff] }
 0x4ee   : > { %3892 = vst [vmem:[#allocation1 + $0x2] ss:$9 sm:$0xff] %v15071_v62  ;;  %v15164_v62 = vld [vmem:[#allocation114_spill] sm:$0xff] }
 0x4ef   : > { %3893 = vst [vmem:[#allocation1 + $0x3] ss:$9 sm:$0xff] %v15156_v26  ;;  %v15165_v26 = vld [vmem:[#allocation111_spill] sm:$0xff] }
 0x4f0   : > { %3894 = vst [vmem:[#allocation1 + $0x4] ss:$9 sm:$0xff] %v15157_v54  ;;  %v15166_v54 = vld [vmem:[#allocation112_spill] sm:$0xff] }
 0x4f1   : > { %3895 = vst [vmem:[#allocation1 + $0x5] ss:$9 sm:$0xff] %v15075_v44  ;;  %v15167_v44 = vld [vmem:[#allocation115_spill] sm:$0xff] }
 0x4f2   : > { %3896 = vst [vmem:[#allocation1 + $0x6] ss:$9 sm:$0xff] %v15158_v35 }
 0x4f3   : > { %3897 = vst [vmem:[#allocation1 + $0x7] ss:$9 sm:$0xff] %v15159_v38  ;;  %v15168_v38 = vld [vmem:[#allocation117_spill] sm:$0xff] }
 0x4fa   : > { %v11090_v43 = vld [vmem:[#allocation1] sm:$0xff] }
 0x4fb   : > { %3900 = vst [vmem:[#allocation1] ss:$9 sm:$0xff] %v15160_v29  ;;  %v15170_v29 = vld [vmem:[#allocation119_spill] sm:$0xff] }
 0x4fc   : > { %3901 = vst [vmem:[#allocation1 + $0x1] ss:$9 sm:$0xff] %v15161_v55  ;;  %v15171_v55 = vld [vmem:[#allocation128_spill] sm:$0xff] }
 0x4fd   : > { %3902 = vst [vmem:[#allocation1 + $0x2] ss:$9 sm:$0xff] %v15162_v21  ;;  %v1073_v21 = vmax.f32 %v15171_v55, 0.0 }
 0x4fe   : > { %3903 = vst [vmem:[#allocation1 + $0x3] ss:$9 sm:$0xff] %v15163_v46  ;;  %v15173_v46 = vld [vmem:[#allocation122_spill] sm:$0xff] }
 0x4ff   : > { %3904 = vst [vmem:[#allocation1 + $0x4] ss:$9 sm:$0xff] %v15164_v62  ;;  %v15174_v62 = vld [vmem:[#allocation123_spill] sm:$0xff] }
 0x500   : > { %3905 = vst [vmem:[#allocation1 + $0x5] ss:$9 sm:$0xff] %v15165_v26  ;;  %v15175_v26 = vld [vmem:[#allocation125_spill] sm:$0xff] }
 0x501   : > { %3906 = vst [vmem:[#allocation1 + $0x6] ss:$9 sm:$0xff] %v15166_v54  ;;  %v1123_v54 = vpack.c.bf16 %v1073_v21, %v1073_v21 }
 0x502   : > { %3907 = vst [vmem:[#allocation1 + $0x7] ss:$9 sm:$0xff] %v15167_v44  ;;  %v15176_v44 = vld [vmem:[#allocation126_spill] sm:$0xff] }
 0x503   : > { %v1223_v1 = vrot.slane %v1123_v54, 3 }
 0x505   : > { %v1667_v55 = vsel %vm1245_vm4, %v1123_v54, %v1223_v1 }
 0x509   : > { %v11100_v35 = vld [vmem:[#allocation1] sm:$0xff] }
 0x50a   : > { %3910 = vst [vmem:[#allocation1] ss:$9 sm:$0xff] %v15168_v38  ;;  %v1664_v38 = vsel %vm1241_vm3, %v1123_v54, %v1223_v1 }
 0x50b   : > { %3911 = vst [vmem:[#allocation1 + $0x1] ss:$9 sm:$0xff] %v15169_v20  ;;  %v15177_v20 = vld [vmem:[#allocation127_spill] sm:$0xff]  ;;  %v11122_v21 = vrot.slane %v1664_v38, 1  ;;  %v15186_v38 = vld [vmem:[#allocation154_spill] sm:$0xff] }
 0x50c   : > { %3912 = vst [vmem:[#allocation1 + $0x2] ss:$9 sm:$0xff] %v15170_v29 }
 0x50d   : > { %3913 = vst [vmem:[#allocation1 + $0x3] ss:$9 sm:$0xff] %v15172_v31  ;;  %v15178_v31 = vld [vmem:[#allocation131_spill] sm:$0xff] }
 0x50e   : > { %3914 = vst [vmem:[#allocation1 + $0x4] ss:$9 sm:$0xff] %v15173_v46  ;;  %v1670_v46 = vsel %vm1249_vm5, %v1123_v54, %v1223_v1 }
 0x50f   : > { %3915 = vst [vmem:[#allocation1 + $0x5] ss:$9 sm:$0xff] %v15174_v62  ;;  %v11125_v62 = vrot.slane %v1667_v55, 2  ;;  %v15188_v55 = vld [vmem:[#allocation152_spill] sm:$0xff] }
 0x510   : > { %3916 = vst [vmem:[#allocation1 + $0x6] ss:$9 sm:$0xff] %v15175_v26  ;;  %v11120_v26 = vsel %vm763_vm0, %v1123_v54, %v1223_v1  ;;  %v15184_v1 = vld [vmem:[#allocation146_spill] sm:$0xff] }
 0x511   : > { %3917 = vst [vmem:[#allocation1 + $0x7] ss:$9 sm:$0xff] %v15176_v44  ;;  %v15181_v44 = vld [vmem:[#allocation132_spill] sm:$0xff]  ;;  %v15185_v54 = vld [vmem:[#allocation150_spill] sm:$0xff] }
 0x512   : > { %15179 = vst [vmem:[#allocation84_spill] sm:$0xff] %v11120_v26 }
 0x513   : > { %15180 = vst [vmem:[#allocation83_spill] sm:$0xff] %v11122_v21 }
 0x514   : > { %15182 = vst [vmem:[#allocation82_spill] sm:$0xff] %v11125_v62 }
 0x518   : > { %v11111_v30 = vld [vmem:[#allocation1] sm:$0xff] }
 0x519   : > { %3920 = vst [vmem:[#allocation1] ss:$9 sm:$0xff] %v15177_v20  ;;  %v11128_v20 = vrot.slane %v1670_v46, 3  ;;  %v15187_v46 = vld [vmem:[#allocation151_spill] sm:$0xff] }
 0x51a   : > { %3921 = vst [vmem:[#allocation1 + $0x1] ss:$9 sm:$0xff] %v15094_v33  ;;  %v15189_v33 = vld [vmem:[#allocation157_spill] sm:$0xff] }
 0x51b   : > { %3922 = vst [vmem:[#allocation1 + $0x2] ss:$9 sm:$0xff] %v15178_v31 }
 0x51c   : > { %3923 = vst [vmem:[#allocation1 + $0x3] ss:$9 sm:$0xff] %v15181_v44 }
 0x51d   : > { %3924 = vst [vmem:[#allocation1 + $0x4] ss:$9 sm:$0xff] %v11120_v26 }
 0x51e   : > { %15183 = vst [vmem:[#allocation96_spill] sm:$0xff] %v11128_v20 }
 0x51f   : > { %3925 = vst [vmem:[#allocation1 + $0x5] ss:$9 sm:$0xff] %v11122_v21 }
 0x520   : > { %3926 = vst [vmem:[#allocation1 + $0x6] ss:$9 sm:$0xff] %v11125_v62 }
 0x521   : > { %3927 = vst [vmem:[#allocation1 + $0x7] ss:$9 sm:$0xff] %v11128_v20 }
 0x528   : > { %v11133_v31 = vld [vmem:[#allocation1] sm:$0xff] }
 0x529   : > { %3930 = vst [vmem:[#allocation1] ss:$9 sm:$0xff] %v15184_v1  ;;  %v15190_v1 = vld [vmem:[#allocation160_spill] sm:$0xff] }
 0x52a   : > { %3931 = vst [vmem:[#allocation1 + $0x1] ss:$9 sm:$0xff] %v14961_v22  ;;  %v15244_v22 = vld [vmem:[#allocation220_spill] sm:$0xff] }
 0x52b   : > { %3932 = vst [vmem:[#allocation1 + $0x2] ss:$9 sm:$0xff] %v15104_v39  ;;  %v15191_v39 = vld [vmem:[#allocation162_spill] sm:$0xff] }
 0x52c   : > { %3933 = vst [vmem:[#allocation1 + $0x3] ss:$9 sm:$0xff] %v15185_v54  ;;  %v15239_v54 = vld [vmem:[#allocation31_spill] sm:$0xff] }
 0x52d   : > { %3934 = vst [vmem:[#allocation1 + $0x4] ss:$9 sm:$0xff] %v15186_v38  ;;  %v15192_v38 = vld [vmem:[#allocation165_spill] sm:$0xff] }
 0x52e   : > { %3935 = vst [vmem:[#allocation1 + $0x5] ss:$9 sm:$0xff] %v15187_v46  ;;  %v15218_v46 = vld [vmem:[#allocation256_spill] sm:$0xff] }
 0x52f   : > { %3936 = vst [vmem:[#allocation1 + $0x6] ss:$9 sm:$0xff] %v15188_v55  ;;  %v899_v55 = vpop.f32.mrf.mxu0 }
 0x530   : > { %3937 = vst [vmem:[#allocation1 + $0x7] ss:$9 sm:$0xff] %v14973_v7 }
 0x537   : > { %v11143_v44 = vld [vmem:[#allocation1] sm:$0xff] }
 0x538   : > { %3940 = vst [vmem:[#allocation1] ss:$9 sm:$0xff] %v15189_v33  ;;  %v11158_v33 = vld [vmem:[%s13831_s2] ss:$0 sm:$0xff] }
 0x539   : > { %3941 = vst [vmem:[#allocation1 + $0x1] ss:$9 sm:$0xff] %v14979_v9  ;;  %v15193_v9 = vld [vmem:[#allocation167_spill] sm:$0xff] }
 0x53a   : > { %3942 = vst [vmem:[#allocation1 + $0x2] ss:$9 sm:$0xff] %v15111_v50  ;;  %v900_v50 = vadd.f32 %v11158_v33, %v899_v55 }
 0x53b   : > { %3943 = vst [vmem:[#allocation1 + $0x3] ss:$9 sm:$0xff] %v15190_v1  ;;  %v1033_v1 = vpop.f32.mrf.mxu1 }
 0x53c   : > { %3944 = vst [vmem:[#allocation1 + $0x4] ss:$9 sm:$0xff] %v15191_v39  ;;  %v1034_v39 = vadd.f32 %v1033_v1, %v900_v50  ;;  %v15198_v50 = vld [vmem:[#allocation225_spill] sm:$0xff]  ;;  %v15199_v1 = vld [vmem:[#allocation182_spill] sm:$0xff] }
 0x53d   : > { %3945 = vst [vmem:[#allocation1 + $0x5] ss:$9 sm:$0xff] %v15115_v3  ;;  %v15196_v3 = vld [vmem:[#allocation174_spill] sm:$0xff] }
 0x53e   : > { %3946 = vst [vmem:[#allocation1 + $0x6] ss:$9 sm:$0xff] %v15192_v38  ;;  %v15195_v38 = vld [vmem:[#allocation317_spill] sm:$0xff]  ;;  %v1086_v55 = vmax.f32 %v1034_v39, 0.0 }
 0x53f   : > { %3947 = vst [vmem:[#allocation1 + $0x7] ss:$9 sm:$0xff] %v15117_v4  ;;  %v15194_v4 = vld [vmem:[#allocation7_spill] sm:$0xff]  ;;  %3777 = vrot.lane.b32.xlu2 %v15195_v38, %s8795_s29 }
 0x540   : > { %3775 = vrot.lane.b32.xlu0 %v15194_v4, %s8795_s29  ;;  %v15201_v38 = vld [vmem:[#allocation183_spill] sm:$0xff] }
 0x546   : > { %v11153_v7 = vld [vmem:[#allocation1] sm:$0xff] }
 0x547   : > { %3950 = vst [vmem:[#allocation1] ss:$9 sm:$0xff] %v15193_v9  ;;  %v11173_v9 = vpack.c.bf16 %v1086_v55, %v1086_v55  ;;  %v15204_v55 = vld [vmem:[#allocation177_spill] sm:$0xff]  ;;  %3976 = vrot.lane.b32.xlu2 %v11022_v42, %s8796_s14  ;;  %v2912_v42 = vshrl.u32 %v11066_v16, 16 }
 0x548   : > { %3951 = vst [vmem:[#allocation1 + $0x1] ss:$9 sm:$0xff] %v14997_v13  ;;  %3580 = vrot.lane.b32.xlu0 %v15198_v50, %s8794_s21  ;;  %v15205_v50 = vld [vmem:[#allocation234_spill] sm:$0xff]  ;;  %v15216_v13 = vld [vmem:[#allocation196_spill] sm:$0xff] }
 0x549   : > { %3952 = vst [vmem:[#allocation1 + $0x2] ss:$9 sm:$0xff] %v15000_v47  ;;  %v11183_v47 = vrot.slane %v15201_v38, 3 }
 0x54a   : > { %3953 = vst [vmem:[#allocation1 + $0x3] ss:$9 sm:$0xff] %v15003_v37  ;;  %v11178_v37 = vrot.slane %v15199_v1, 2 }
 0x54b   : > { %3954 = vst [vmem:[#allocation1 + $0x4] ss:$9 sm:$0xff] %v15196_v3  ;;  %v11187_v3 = vrot.slane %v11173_v9, 3 }
 0x54c   : > { %3955 = vst [vmem:[#allocation1 + $0x5] ss:$9 sm:$0xff] %v15121_v51  ;;  %v15215_v51 = vld [vmem:[#allocation94_spill] sm:$0xff] }
 0x54d   : > { %3956 = vst [vmem:[#allocation1 + $0x6] ss:$9 sm:$0xff] %v15122_v34  ;;  %v1820_v39 = vsel %vm1241_vm3, %v11173_v9, %v11187_v3  ;;  %v11202_v1 = vsel %vm763_vm0, %v11173_v9, %v11187_v3  ;;  %v15213_v34 = vld [vmem:[#allocation193_spill] sm:$0xff] }
 0x54e   : > { %3957 = vst [vmem:[#allocation1 + $0x7] ss:$9 sm:$0xff] %v15009_v11  ;;  %v11204_v38 = vrot.slane %v1820_v39, 1  ;;  %v15212_v11 = vld [vmem:[#allocation190_spill] sm:$0xff]  ;;  %v15214_v39 = vld [vmem:[#allocation195_spill] sm:$0xff] }
 0x54f   : > { %15197 = vst [vmem:[#allocation128_spill] sm:$0xff] %v11173_v9  ;;  %3978 = vrot.lane.b32.xlu2 %v11032_v41, %s8796_s14 }
 0x550   : > { %15200 = vst [vmem:[#allocation146_spill] sm:$0xff] %v11178_v37  ;;  %3582 = vrot.lane.b32.xlu0 %v15205_v50, %s8794_s21  ;;  %v15210_v50 = vld [vmem:[#allocation188_spill] sm:$0xff] }
 0x551   : > { %15202 = vst [vmem:[#allocation7_spill] sm:$0xff] %v11183_v47 }
 0x552   : > { %15203 = vst [vmem:[#allocation317_spill] sm:$0xff] %v11187_v3 }
 0x553   : > { %15206 = vst [vmem:[#allocation225_spill] sm:$0xff] %v11202_v1 }
 0x554   : > { %15207 = vst [vmem:[#allocation182_spill] sm:$0xff] %v11204_v38 }
 0x555   : > { %v11180_v4 = vld [vmem:[#allocation1] sm:$0xff] }
 0x556   : > { %3963 = vst [vmem:[#allocation1 + $0x3] ss:$9 sm:$0xff] %v15020_v6 }
 0x557   : > { %3964 = vst [vmem:[#allocation1 + $0x4] ss:$9 sm:$0xff] %v11178_v37  ;;  %3980 = vrot.lane.b32.xlu2 %v11044_v18, %s8796_s14  ;;  %v15301_v18 = vld [vmem:[#allocation258_spill] sm:$0xff] }
 0x558   : > { %3965 = vst [vmem:[#allocation1 + $0x5] ss:$9 sm:$0xff] %v11183_v47 }
 0x559   : > { %3960 = vst [vmem:[#allocation1] ss:$9 sm:$0xff] %v15204_v55  ;;  %v15208_v55 = vld [vmem:[#allocation243_spill] sm:$0xff] }
 0x55a   : > { %3961 = vst [vmem:[#allocation1 + $0x1] ss:$9 sm:$0xff] %v15015_v60  ;;  %3584 = vrot.lane.b32.xlu0 %v15208_v55, %s8794_s21  ;;  %v15209_v60 = vld [vmem:[#allocation187_spill] sm:$0xff]  ;;  %v15217_v55 = vld [vmem:[#allocation197_spill] sm:$0xff] }
 0x55b   : > { %3962 = vst [vmem:[#allocation1 + $0x2] ss:$9 sm:$0xff] %v15018_v24  ;;  %v15211_v24 = vld [vmem:[#allocation189_spill] sm:$0xff] }
 0x55c   : > { %3966 = vst [vmem:[#allocation1 + $0x6] ss:$9 sm:$0xff] %v11202_v1 }
 0x55d   : > { %3967 = vst [vmem:[#allocation1 + $0x7] ss:$9 sm:$0xff] %v11204_v38 }
 0x55f   : > { %3982 = vrot.lane.b32.xlu2 %v11054_v8, %s8796_s14  ;;  %v15307_v8 = vld [vmem:[#allocation261_spill] sm:$0xff] }
 0x562   : > { %3586 = vrot.lane.b32.xlu0 %v15215_v51, %s8794_s21  ;;  %v15225_v51 = vld [vmem:[#allocation205_spill] sm:$0xff] }
 0x564   : > { %v11210_v6 = vld [vmem:[#allocation1] sm:$0xff] }
 0x565   : > { %4002 = vst [vmem:[#allocation1] ss:$9 sm:$0xff] %v15209_v60 }
 0x566   : > { %4004 = vst [vmem:[#allocation1 + $0x1] ss:$9 sm:$0xff] %v15210_v50  ;;  %v15220_v50 = vld [vmem:[#allocation198_spill] sm:$0xff] }
 0x567   : > { %4006 = vst [vmem:[#allocation1 + $0x2] ss:$9 sm:$0xff] %v15211_v24  ;;  %v15221_v24 = vld [vmem:[#allocation199_spill] sm:$0xff]  ;;  %3984 = vrot.lane.b32.xlu2 %v11080_v10, %s8796_s14  ;;  %v15313_v10 = vld [vmem:[#allocation318_spill] sm:$0xff] }
 0x568   : > { %4008 = vst [vmem:[#allocation1 + $0x3] ss:$9 sm:$0xff] %v15212_v11  ;;  %v15222_v11 = vld [vmem:[#allocation200_spill] sm:$0xff] }
 0x569   : > { %4010 = vst [vmem:[#allocation1 + $0x4] ss:$9 sm:$0xff] %v15213_v34  ;;  %v15223_v34 = vld [vmem:[#allocation201_spill] sm:$0xff] }
 0x56a   : > { %4012 = vst [vmem:[#allocation1 + $0x5] ss:$9 sm:$0xff] %v15214_v39  ;;  %3588 = vrot.lane.b32.xlu0 %v15218_v46, %s8794_s21  ;;  %v15224_v39 = vld [vmem:[#allocation203_spill] sm:$0xff] }
 0x56b   : > { %4014 = vst [vmem:[#allocation1 + $0x6] ss:$9 sm:$0xff] %v15216_v13  ;;  %v15226_v13 = vld [vmem:[#allocation206_spill] sm:$0xff]  ;;  %v15228_v46 = vld [vmem:[#allocation207_spill] sm:$0xff] }
 0x56c   : > { %4016 = vst [vmem:[#allocation1 + $0x7] ss:$9 sm:$0xff] %v15217_v55  ;;  %v15227_v55 = vld [vmem:[#allocation265_spill] sm:$0xff] }
 0x56f   : > { %3986 = vrot.lane.b32.xlu2 %v11090_v43, %s8796_s14  ;;  %v15322_v43 = vld [vmem:[#allocation276_spill] sm:$0xff] }
 0x572   : > { %3590 = vrot.lane.b32.xlu0 %v15227_v55, %s8794_s21  ;;  %v15237_v55 = vld [vmem:[#allocation217_spill] sm:$0xff] }
 0x573   : > { %v11224_v60 = vld [vmem:[#allocation1] sm:$0xff] }
 0x574   : > { %15219 = vst [vmem:[#allocation183_spill] sm:$0xff] %v11224_v60 }
 0x575   : > { %4018 = vst [vmem:[#allocation1] ss:$9 sm:$0xff] %v15220_v50  ;;  %v15230_v50 = vld [vmem:[#allocation299_spill] sm:$0xff] }
 0x576   : > { %4019 = vst [vmem:[#allocation1 + $0x1] ss:$9 sm:$0xff] %v15221_v24  ;;  %v15231_v24 = vld [vmem:[#allocation208_spill] sm:$0xff] }
 0x577   : > { %4020 = vst [vmem:[#allocation1 + $0x2] ss:$9 sm:$0xff] %v15222_v11  ;;  %v15232_v11 = vld [vmem:[#allocation209_spill] sm:$0xff]  ;;  %3988 = vrot.lane.b32.xlu2 %v11100_v35, %s8796_s14  ;;  %v15326_v35 = vld [vmem:[#allocation275_spill] sm:$0xff] }
 0x578   : > { %4021 = vst [vmem:[#allocation1 + $0x3] ss:$9 sm:$0xff] %v15223_v34  ;;  %v15233_v34 = vld [vmem:[#allocation210_spill] sm:$0xff] }
 0x579   : > { %4022 = vst [vmem:[#allocation1 + $0x4] ss:$9 sm:$0xff] %v15224_v39  ;;  %v15234_v39 = vld [vmem:[#allocation211_spill] sm:$0xff] }
 0x57a   : > { %4023 = vst [vmem:[#allocation1 + $0x5] ss:$9 sm:$0xff] %v15225_v51  ;;  %3598 = vrot.lane.b32.xlu0 %v15230_v50, %s8794_s21  ;;  %v15235_v51 = vld [vmem:[#allocation214_spill] sm:$0xff] }
 0x57b   : > { %4024 = vst [vmem:[#allocation1 + $0x6] ss:$9 sm:$0xff] %v15226_v13  ;;  %v15236_v13 = vld [vmem:[#allocation216_spill] sm:$0xff]  ;;  %v15240_v50 = vld [vmem:[#allocation30_spill] sm:$0xff] }
 0x57c   : > { %4025 = vst [vmem:[#allocation1 + $0x7] ss:$9 sm:$0xff] %v15228_v46  ;;  %v15238_v46 = vld [vmem:[#allocation218_spill] sm:$0xff] }
 0x57f   : > { %3592 = vrot.lane.b32.xlu2 %v15326_v35, %s8794_s21  ;;  %v2935_v35 = vshrl.u32 %v11120_v26, 16  ;;  %v15442_v26 = vld [vmem:[#allocation116_spill] sm:$0xff] }
 0x582   : > { %3996 = vrot.lane.b32.xlu0 %v11153_v7, %s8796_s14  ;;  %v2927_v7 = vshrl.u32 %v11075_v23, 16 }
 0x583   : > { %v11236_v60 = vld [vmem:[#allocation1] sm:$0xff] }
 0x584   : > { %15229 = vst [vmem:[#allocation234_spill] sm:$0xff] %v11236_v60  ;;  %v2877_v60 = vshll.u32 %v11011_v17, 16 }
 0x585   : > { %4027 = vst [vmem:[#allocation1] ss:$9 sm:$0xff] %v15231_v24  ;;  %v11252_v24 = vsel %vm763_vm0, %v15240_v50, %v15239_v54  ;;  %v15245_v54 = vld [vmem:[#allocation221_spill] sm:$0xff]  ;;  %v15426_v50 = vld [vmem:[#allocation80_spill] sm:$0xff] }
 0x586   : > { %4028 = vst [vmem:[#allocation1 + $0x1] ss:$9 sm:$0xff] %v15232_v11  ;;  %v2900_v29 = vshll.u32 %v11252_v24, 16 }
 0x587   : > { %4029 = vst [vmem:[#allocation1 + $0x2] ss:$9 sm:$0xff] %v15233_v34  ;;  %v2880_v34 = vshrl.u32 %v11011_v17, 16  ;;  %3990 = vrot.lane.b32.xlu2 %v11111_v30, %s8796_s14 }
 0x588   : > { %4030 = vst [vmem:[#allocation1 + $0x3] ss:$9 sm:$0xff] %v15234_v39  ;;  %v2885_v39 = vshll.u32 %v11014_v58, 16 }
 0x589   : > { %4031 = vst [vmem:[#allocation1 + $0x4] ss:$9 sm:$0xff] %v15235_v51  ;;  %v15243_v51 = vld [vmem:[#allocation219_spill] sm:$0xff] }
 0x58a   : > { %4032 = vst [vmem:[#allocation1 + $0x5] ss:$9 sm:$0xff] %v15236_v13  ;;  %v2872_v13 = vshrl.u32 %v11009_v15, 16  ;;  %v2896_v15 = vshrl.u32 %v11017_v27, 16 }
 0x58b   : > { %4033 = vst [vmem:[#allocation1 + $0x6] ss:$9 sm:$0xff] %v15237_v55  ;;  %v2888_v55 = vshrl.u32 %v11014_v58, 16 }
 0x58c   : > { %4034 = vst [vmem:[#allocation1 + $0x7] ss:$9 sm:$0xff] %v15238_v46  ;;  %v2893_v46 = vshll.u32 %v11017_v27, 16 }
 0x58d   : > { %15241 = vst [vmem:[#allocation243_spill] sm:$0xff] %v11252_v24 }
 0x593   : > { %v11254_v11 = vld [vmem:[#allocation1] sm:$0xff] }
 0x594   : > { %15242 = vst [vmem:[#allocation187_spill] sm:$0xff] %v11254_v11  ;;  %v11267_v11 = vsel %vm9852_vm8, %v2872_v13, %v2877_v60  ;;  %v11283_v13 = vsel %vm9852_vm8, %v2896_v15, %v2900_v29  ;;  %v15254_v60 = vld [vmem:[#allocation45_spill] sm:$0xff]  ;;  %v15259_v15 = vld [vmem:[#allocation227_spill] sm:$0xff]  ;;  %v15260_v29 = vld [vmem:[#allocation228_spill] sm:$0xff] }
 0x595   : > { %4036 = vst [vmem:[#allocation1] ss:$9 sm:$0xff] %v15243_v51  ;;  %v11272_v51 = vsel %vm9852_vm8, %v2880_v34, %v2885_v39  ;;  %v15253_v39 = vld [vmem:[#allocation40_spill] sm:$0xff] }
 0x596   : > { %4037 = vst [vmem:[#allocation1 + $0x1] ss:$9 sm:$0xff] %v15244_v22  ;;  %v11278_v22 = vsel %vm9852_vm8, %v2888_v55, %v2893_v46  ;;  %v15256_v46 = vld [vmem:[#allocation223_spill] sm:$0xff]  ;;  %v15257_v55 = vld [vmem:[#allocation224_spill] sm:$0xff] }
 0x597   : > { %4038 = vst [vmem:[#allocation1 + $0x2] ss:$9 sm:$0xff] %v15245_v54  ;;  %v15430_v54 = vld [vmem:[#allocation91_spill] sm:$0xff] }
 0x598   : > { %15247 = vst [vmem:[#allocation188_spill] sm:$0xff] %v11267_v11 }
 0x599   : > { %4039 = vst [vmem:[#allocation1 + $0x3] ss:$9 sm:$0xff] %v15248_v32  ;;  %v15429_v32 = vld [vmem:[#allocation99_spill] sm:$0xff] }
 0x59a   : > { %15249 = vst [vmem:[#allocation189_spill] sm:$0xff] %v11272_v51 }
 0x59b   : > { %4041 = vst [vmem:[#allocation1 + $0x4] ss:$9 sm:$0xff] %v11267_v11  ;;  %v15255_v11 = vld [vmem:[#allocation44_spill] sm:$0xff] }
 0x59c   : > { %15250 = vst [vmem:[#allocation190_spill] sm:$0xff] %v11278_v22 }
 0x59d   : > { %4043 = vst [vmem:[#allocation1 + $0x5] ss:$9 sm:$0xff] %v11272_v51  ;;  %v15258_v51 = vld [vmem:[#allocation226_spill] sm:$0xff] }
 0x59e   : > { %15251 = vst [vmem:[#allocation94_spill] sm:$0xff] %v11283_v13 }
 0x59f   : > { %4045 = vst [vmem:[#allocation1 + $0x6] ss:$9 sm:$0xff] %v11278_v22 }
 0x5a0   : > { %4047 = vst [vmem:[#allocation1 + $0x7] ss:$9 sm:$0xff] %v11283_v13  ;;  %v15262_v13 = vld [vmem:[#allocation229_spill] sm:$0xff] }
 0x5a7   : > { %v11287_v34 = vld [vmem:[#allocation1] sm:$0xff] }
 0x5a8   : > { %15252 = vst [vmem:[#allocation256_spill] sm:$0xff] %v11287_v34  ;;  %v15263_v34 = vld [vmem:[#allocation230_spill] sm:$0xff] }
 0x5a9   : > { %4049 = vst [vmem:[#allocation1] ss:$9 sm:$0xff] %v15253_v39  ;;  %v15264_v39 = vld [vmem:[#allocation231_spill] sm:$0xff] }
 0x5aa   : > { %4050 = vst [vmem:[#allocation1 + $0x1] ss:$9 sm:$0xff] %v15254_v60  ;;  %v15265_v60 = vld [vmem:[#allocation232_spill] sm:$0xff] }
 0x5ab   : > { %4051 = vst [vmem:[#allocation1 + $0x2] ss:$9 sm:$0xff] %v15255_v11  ;;  %v15266_v11 = vld [vmem:[#allocation233_spill] sm:$0xff] }
 0x5ac   : > { %4052 = vst [vmem:[#allocation1 + $0x3] ss:$9 sm:$0xff] %v15256_v46  ;;  %v15267_v46 = vld [vmem:[#allocation235_spill] sm:$0xff] }
 0x5ad   : > { %4053 = vst [vmem:[#allocation1 + $0x4] ss:$9 sm:$0xff] %v15257_v55  ;;  %v15268_v55 = vld [vmem:[#allocation236_spill] sm:$0xff] }
 0x5ae   : > { %4054 = vst [vmem:[#allocation1 + $0x5] ss:$9 sm:$0xff] %v15258_v51  ;;  %v15269_v51 = vld [vmem:[#allocation237_spill] sm:$0xff] }
 0x5af   : > { %4055 = vst [vmem:[#allocation1 + $0x6] ss:$9 sm:$0xff] %v15259_v15 }
 0x5b0   : > { %4056 = vst [vmem:[#allocation1 + $0x7] ss:$9 sm:$0xff] %v15260_v29  ;;  %v15271_v29 = vld [vmem:[#allocation238_spill] sm:$0xff] }
 0x5b7   : > { %v11297_v22 = vld [vmem:[#allocation1] sm:$0xff] }
 0x5b8   : > { %15261 = vst [vmem:[#allocation265_spill] sm:$0xff] %v11297_v22  ;;  %v15272_v22 = vld [vmem:[#allocation239_spill] sm:$0xff] }
 0x5b9   : > { %4058 = vst [vmem:[#allocation1] ss:$9 sm:$0xff] %v15262_v13  ;;  %v15273_v13 = vld [vmem:[#allocation240_spill] sm:$0xff] }
 0x5ba   : > { %4059 = vst [vmem:[#allocation1 + $0x1] ss:$9 sm:$0xff] %v15263_v34  ;;  %v15274_v34 = vld [vmem:[#allocation241_spill] sm:$0xff] }
 0x5bb   : > { %4060 = vst [vmem:[#allocation1 + $0x2] ss:$9 sm:$0xff] %v15264_v39  ;;  %v15275_v39 = vld [vmem:[#allocation242_spill] sm:$0xff] }
 0x5bc   : > { %4061 = vst [vmem:[#allocation1 + $0x3] ss:$9 sm:$0xff] %v15265_v60  ;;  %v15276_v60 = vld [vmem:[#allocation244_spill] sm:$0xff] }
 0x5bd   : > { %4062 = vst [vmem:[#allocation1 + $0x4] ss:$9 sm:$0xff] %v15266_v11  ;;  %v15277_v11 = vld [vmem:[#allocation245_spill] sm:$0xff] }
 0x5be   : > { %4063 = vst [vmem:[#allocation1 + $0x5] ss:$9 sm:$0xff] %v15267_v46  ;;  %v15278_v46 = vld [vmem:[#allocation246_spill] sm:$0xff] }
 0x5bf   : > { %4064 = vst [vmem:[#allocation1 + $0x6] ss:$9 sm:$0xff] %v15268_v55  ;;  %v15286_v55 = vld [vmem:[#allocation250_spill] sm:$0xff] }
 0x5c0   : > { %4065 = vst [vmem:[#allocation1 + $0x7] ss:$9 sm:$0xff] %v15269_v51 }
 0x5c7   : > { %v11307_v15 = vld [vmem:[#allocation1] sm:$0xff] }
 0x5c8   : > { %15270 = vst [vmem:[#allocation299_spill] sm:$0xff] %v11307_v15  ;;  %v15279_v15 = vld [vmem:[#allocation85_spill] sm:$0xff] }
 0x5c9   : > { %4067 = vst [vmem:[#allocation1] ss:$9 sm:$0xff] %v15271_v29  ;;  %v15284_v29 = vld [vmem:[#allocation249_spill] sm:$0xff] }
 0x5ca   : > { %4068 = vst [vmem:[#allocation1 + $0x1] ss:$9 sm:$0xff] %v15272_v22  ;;  %v15283_v22 = vld [vmem:[#allocation248_spill] sm:$0xff] }
 0x5cb   : > { %4069 = vst [vmem:[#allocation1 + $0x2] ss:$9 sm:$0xff] %v15273_v13  ;;  %v15282_v13 = vld [vmem:[#allocation247_spill] sm:$0xff] }
 0x5cc   : > { %4070 = vst [vmem:[#allocation1 + $0x3] ss:$9 sm:$0xff] %v15274_v34  ;;  %v11324_v34 = vrot.slane %v15279_v15, 2 }
 0x5cd   : > { %4071 = vst [vmem:[#allocation1 + $0x4] ss:$9 sm:$0xff] %v15275_v39  ;;  %v2904_v39 = vshrl.u32 %v11059_v2, 16 }
 0x5ce   : > { %4072 = vst [vmem:[#allocation1 + $0x5] ss:$9 sm:$0xff] %v15276_v60  ;;  %v2909_v60 = vshll.u32 %v11066_v16, 16  ;;  %v2932_v15 = vshll.u32 %v11324_v34, 16 }
 0x5cf   : > { %4073 = vst [vmem:[#allocation1 + $0x6] ss:$9 sm:$0xff] %v15277_v11 }
 0x5d0   : > { %4074 = vst [vmem:[#allocation1 + $0x7] ss:$9 sm:$0xff] %v15278_v46  ;;  %v2916_v46 = vshll.u32 %v11073_v53, 16  ;;  %v11340_v51 = vsel %vm9852_vm8, %v2904_v39, %v2909_v60  ;;  %v15290_v60 = vld [vmem:[#allocation308_spill] sm:$0xff] }
 0x5d1   : > { %15280 = vst [vmem:[#allocation31_spill] sm:$0xff] %v11324_v34  ;;  %3600 = vrot.lane.b32.xlu0 %v15290_v60, %s8794_s21  ;;  %v15299_v60 = vld [vmem:[#allocation257_spill] sm:$0xff] }
 0x5d2   : > { %15285 = vst [vmem:[#allocation40_spill] sm:$0xff] %v11340_v51 }
 0x5d7   : > { %v11328_v11 = vld [vmem:[#allocation1] sm:$0xff] }
 0x5d8   : > { %15281 = vst [vmem:[#allocation30_spill] sm:$0xff] %v11328_v11  ;;  %v2919_v11 = vshrl.u32 %v11073_v53, 16 }
 0x5d9   : > { %4076 = vst [vmem:[#allocation1] ss:$9 sm:$0xff] %v15282_v13  ;;  %v11346_v13 = vsel %vm9852_vm8, %v2912_v42, %v2916_v46  ;;  %v11362_v46 = vsel %vm9852_vm8, %v2927_v7, %v2932_v15  ;;  %3998 = vrot.lane.b32.xlu0 %v11180_v4, %s8796_s14  ;;  %v15296_v42 = vld [vmem:[#allocation252_spill] sm:$0xff]  ;;  %v15297_v7 = vld [vmem:[#allocation253_spill] sm:$0xff]  ;;  %v15298_v15 = vld [vmem:[#allocation255_spill] sm:$0xff] }
 0x5da   : > { %4077 = vst [vmem:[#allocation1 + $0x1] ss:$9 sm:$0xff] %v15283_v22  ;;  %v15288_v22 = vld [vmem:[#allocation38_spill] sm:$0xff]  ;;  %v11355_v39 = vsel %vm9852_vm8, %v2919_v11, %v2924_v57  ;;  %v15294_v11 = vld [vmem:[#allocation100_spill] sm:$0xff]  ;;  %v15295_v57 = vld [vmem:[#allocation251_spill] sm:$0xff] }
 0x5db   : > { %4078 = vst [vmem:[#allocation1 + $0x2] ss:$9 sm:$0xff] %v15284_v29  ;;  %3578 = vrot.lane.b32.xlu1 %v15288_v22, %s8794_s21  ;;  %v15292_v22 = vld [vmem:[#allocation42_spill] sm:$0xff]  ;;  %v15302_v4 = vld [vmem:[#allocation316_spill] sm:$0xff]  ;;  %v15425_v29 = vld [vmem:[#allocation79_spill] sm:$0xff] }
 0x5dc   : > { %4079 = vst [vmem:[#allocation1 + $0x3] ss:$9 sm:$0xff] %v15286_v55  ;;  %v15423_v55 = vld [vmem:[#allocation77_spill] sm:$0xff] }
 0x5dd   : > { %15287 = vst [vmem:[#allocation45_spill] sm:$0xff] %v11346_v13 }
 0x5de   : > { %4081 = vst [vmem:[#allocation1 + $0x4] ss:$9 sm:$0xff] %v11340_v51  ;;  %v15422_v51 = vld [vmem:[#allocation75_spill] sm:$0xff] }
 0x5df   : > { %15289 = vst [vmem:[#allocation44_spill] sm:$0xff] %v11355_v39 }
 0x5e0   : > { %4083 = vst [vmem:[#allocation1 + $0x5] ss:$9 sm:$0xff] %v11346_v13  ;;  %v15421_v13 = vld [vmem:[#allocation74_spill] sm:$0xff] }
 0x5e1   : > { %15291 = vst [vmem:[#allocation223_spill] sm:$0xff] %v11362_v46  ;;  %3602 = vrot.lane.b32.xlu0 %v15302_v4, %s8794_s21  ;;  %v15309_v4 = vld [vmem:[#allocation263_spill] sm:$0xff] }
 0x5e2   : > { %4085 = vst [vmem:[#allocation1 + $0x6] ss:$9 sm:$0xff] %v11355_v39  ;;  %v15420_v39 = vld [vmem:[#allocation71_spill] sm:$0xff] }
 0x5e3   : > { %4087 = vst [vmem:[#allocation1 + $0x7] ss:$9 sm:$0xff] %v11362_v46  ;;  %3779 = vrot.lane.b32.xlu1 %v15292_v22, %s8795_s29  ;;  %v15300_v22 = vld [vmem:[#allocation41_spill] sm:$0xff]  ;;  %v15418_v46 = vld [vmem:[#allocation67_spill] sm:$0xff] }
 0x5e9   : > { %4000 = vrot.lane.b32.xlu0 %v11210_v6, %s8796_s14  ;;  %v15314_v6 = vld [vmem:[#allocation268_spill] sm:$0xff] }
 0x5ea   : > { %v11372_v41 = vld [vmem:[#allocation1] sm:$0xff] }
 0x5eb   : > { %15293 = vst [vmem:[#allocation85_spill] sm:$0xff] %v11372_v41  ;;  %3781 = vrot.lane.b32.xlu1 %v15300_v22, %s8795_s29  ;;  %v15308_v22 = vld [vmem:[#allocation262_spill] sm:$0xff]  ;;  %v15310_v41 = vld [vmem:[#allocation264_spill] sm:$0xff] }
 0x5ec   : > { %4089 = vst [vmem:[#allocation1] ss:$9 sm:$0xff] %v15294_v11  ;;  %v15303_v11 = vld [vmem:[#allocation259_spill] sm:$0xff] }
 0x5ed   : > { %4090 = vst [vmem:[#allocation1 + $0x1] ss:$9 sm:$0xff] %v15295_v57  ;;  %v15304_v57 = vld [vmem:[#allocation46_spill] sm:$0xff] }
 0x5ee   : > { %4091 = vst [vmem:[#allocation1 + $0x2] ss:$9 sm:$0xff] %v15296_v42 }
 0x5ef   : > { %4092 = vst [vmem:[#allocation1 + $0x3] ss:$9 sm:$0xff] %v15297_v7  ;;  %v15306_v7 = vld [vmem:[#allocation260_spill] sm:$0xff] }
 0x5f0   : > { %4093 = vst [vmem:[#allocation1 + $0x4] ss:$9 sm:$0xff] %v15298_v15  ;;  %v15417_v15 = vld [vmem:[#allocation69_spill] sm:$0xff] }
 0x5f1   : > { %4094 = vst [vmem:[#allocation1 + $0x5] ss:$9 sm:$0xff] %v15299_v60  ;;  %v15415_v60 = vld [vmem:[#allocation66_spill] sm:$0xff] }
 0x5f2   : > { %4095 = vst [vmem:[#allocation1 + $0x6] ss:$9 sm:$0xff] %v15301_v18  ;;  %v2959_v18 = vshrl.u32 %v11128_v20, 16 }
 0x5f3   : > { %4096 = vst [vmem:[#allocation1 + $0x7] ss:$9 sm:$0xff] %v15303_v11  ;;  %3783 = vrot.lane.b32.xlu1 %v15304_v57, %s8795_s29  ;;  %v15311_v11 = vld [vmem:[#allocation266_spill] sm:$0xff]  ;;  %v15312_v57 = vld [vmem:[#allocation267_spill] sm:$0xff] }
 0x5fa   : > { %v11392_v42 = vld [vmem:[#allocation1] sm:$0xff] }
 0x5fb   : > { %15305 = vst [vmem:[#allocation38_spill] sm:$0xff] %v11392_v42  ;;  %3785 = vrot.lane.b32.xlu1 %v15313_v10, %s8795_s29  ;;  %v15320_v10 = vld [vmem:[#allocation272_spill] sm:$0xff] }
 0x5fc   : > { %4098 = vst [vmem:[#allocation1] ss:$9 sm:$0xff] %v15306_v7  ;;  %v15334_v7 = vld [vmem:[#allocation281_spill] sm:$0xff] }
 0x5fd   : > { %4099 = vst [vmem:[#allocation1 + $0x1] ss:$9 sm:$0xff] %v15307_v8  ;;  %v2951_v8 = vshrl.u32 %v11125_v62, 16 }
 0x5fe   : > { %4100 = vst [vmem:[#allocation1 + $0x2] ss:$9 sm:$0xff] %v15308_v22  ;;  %v15316_v22 = vld [vmem:[#allocation92_spill] sm:$0xff] }
 0x5ff   : > { %4101 = vst [vmem:[#allocation1 + $0x3] ss:$9 sm:$0xff] %v15309_v4  ;;  %v15321_v4 = vld [vmem:[#allocation274_spill] sm:$0xff] }
 0x600   : > { %4102 = vst [vmem:[#allocation1 + $0x4] ss:$9 sm:$0xff] %v15310_v41  ;;  %v15317_v41 = vld [vmem:[#allocation269_spill] sm:$0xff] }
 0x601   : > { %4103 = vst [vmem:[#allocation1 + $0x5] ss:$9 sm:$0xff] %v15311_v11  ;;  %v15318_v11 = vld [vmem:[#allocation270_spill] sm:$0xff] }
 0x602   : > { %4104 = vst [vmem:[#allocation1 + $0x6] ss:$9 sm:$0xff] %v15312_v57  ;;  %v15319_v57 = vld [vmem:[#allocation271_spill] sm:$0xff] }
 0x603   : > { %4105 = vst [vmem:[#allocation1 + $0x7] ss:$9 sm:$0xff] %v15314_v6  ;;  %3787 = vrot.lane.b32.xlu1 %v15316_v22, %s8795_s29  ;;  %v15323_v6 = vld [vmem:[#allocation277_spill] sm:$0xff] }
 0x604   : > { %v15325_v22 = vld [vmem:[#allocation93_spill] sm:$0xff] }
 0x60a   : > { %v11408_v42 = vld [vmem:[#allocation1] sm:$0xff] }
 0x60b   : > { %15315 = vst [vmem:[#allocation308_spill] sm:$0xff] %v11408_v42  ;;  %v15324_v42 = vld [vmem:[#allocation278_spill] sm:$0xff]  ;;  %3789 = vrot.lane.b32.xlu1 %v15325_v22, %s8795_s29  ;;  %v15332_v22 = vld [vmem:[#allocation143_spill] sm:$0xff] }
 0x60c   : > { %4107 = vst [vmem:[#allocation1] ss:$9 sm:$0xff] %v15317_v41  ;;  %v15327_v41 = vld [vmem:[#allocation134_spill] sm:$0xff] }
 0x60d   : > { %4108 = vst [vmem:[#allocation1 + $0x1] ss:$9 sm:$0xff] %v15318_v11  ;;  %v2940_v11 = vshll.u32 %v11122_v21, 16 }
 0x60e   : > { %4109 = vst [vmem:[#allocation1 + $0x2] ss:$9 sm:$0xff] %v15319_v57  ;;  %v15328_v57 = vld [vmem:[#allocation133_spill] sm:$0xff] }
 0x60f   : > { %4110 = vst [vmem:[#allocation1 + $0x3] ss:$9 sm:$0xff] %v15320_v10  ;;  %v11430_v10 = vsel %vm763_vm0, %v15328_v57, %v15327_v41  ;;  %v2956_v41 = vshll.u32 %v11128_v20, 16  ;;  %v15333_v57 = vld [vmem:[#allocation280_spill] sm:$0xff] }
 0x610   : > { %4111 = vst [vmem:[#allocation1 + $0x4] ss:$9 sm:$0xff] %v15321_v4 }
 0x611   : > { %4112 = vst [vmem:[#allocation1 + $0x5] ss:$9 sm:$0xff] %v15322_v43  ;;  %v2943_v43 = vshrl.u32 %v11122_v21, 16 }
 0x612   : > { %4113 = vst [vmem:[#allocation1 + $0x6] ss:$9 sm:$0xff] %v15323_v6  ;;  %v2948_v6 = vshll.u32 %v11125_v62, 16 }
 0x613   : > { %4114 = vst [vmem:[#allocation1 + $0x7] ss:$9 sm:$0xff] %v15324_v42  ;;  %v15331_v42 = vld [vmem:[#allocation279_spill] sm:$0xff]  ;;  %3797 = vrot.lane.b32.xlu1 %v15332_v22, %s8795_s29  ;;  %v15336_v22 = vld [vmem:[#allocation282_spill] sm:$0xff] }
 0x614   : > { %15329 = vst [vmem:[#allocation42_spill] sm:$0xff] %v11430_v10  ;;  %v11454_v30 = vsel %vm9852_vm8, %v2943_v43, %v2948_v6  ;;  %v15340_v6 = vld [vmem:[#allocation95_spill] sm:$0xff]  ;;  %v15341_v43 = vld [vmem:[#allocation148_spill] sm:$0xff] }
 0x615   : > { %15337 = vst [vmem:[#allocation252_spill] sm:$0xff] %v11454_v30  ;;  %3594 = vrot.lane.b32.xlu2 %v15341_v43, %s8794_s21  ;;  %v15350_v43 = vld [vmem:[#allocation290_spill] sm:$0xff] }
 0x61a   : > { %v11432_v4 = vld [vmem:[#allocation1] sm:$0xff] }
 0x61b   : > { %15330 = vst [vmem:[#allocation100_spill] sm:$0xff] %v11432_v4  ;;  %v2963_v4 = vshll.u32 %v11430_v10, 16  ;;  %3791 = vrot.lane.b32.xlu1 %v15340_v6, %s8795_s29  ;;  %v15348_v6 = vld [vmem:[#allocation287_spill] sm:$0xff] }
 0x61c   : > { %4116 = vst [vmem:[#allocation1] ss:$9 sm:$0xff] %v15331_v42  ;;  %v11449_v42 = vsel %vm9852_vm8, %v2935_v35, %v2940_v11 }
 0x61d   : > { %4117 = vst [vmem:[#allocation1 + $0x1] ss:$9 sm:$0xff] %v15333_v57  ;;  %v11460_v57 = vsel %vm9852_vm8, %v2951_v8, %v2956_v41  ;;  %v11465_v11 = vsel %vm9852_vm8, %v2959_v18, %v2963_v4  ;;  %v15343_v8 = vld [vmem:[#allocation283_spill] sm:$0xff]  ;;  %v15344_v41 = vld [vmem:[#allocation284_spill] sm:$0xff]  ;;  %3992 = vrot.lane.b32.xlu2 %v11133_v31, %s8796_s14  ;;  %v15346_v18 = vld [vmem:[#allocation285_spill] sm:$0xff] }
 0x61e   : > { %4118 = vst [vmem:[#allocation1 + $0x2] ss:$9 sm:$0xff] %v15334_v7  ;;  %v15347_v4 = vld [vmem:[#allocation286_spill] sm:$0xff]  ;;  %v15355_v31 = vld [vmem:[#allocation292_spill] sm:$0xff]  ;;  %v15414_v7 = vld [vmem:[#allocation63_spill] sm:$0xff] }
 0x61f   : > { %15335 = vst [vmem:[#allocation251_spill] sm:$0xff] %v11449_v42 }
 0x620   : > { %4119 = vst [vmem:[#allocation1 + $0x3] ss:$9 sm:$0xff] %v15336_v22  ;;  %v15413_v22 = vld [vmem:[#allocation64_spill] sm:$0xff] }
 0x621   : > { %4121 = vst [vmem:[#allocation1 + $0x4] ss:$9 sm:$0xff] %v11449_v42  ;;  %v15379_v42 = vld [vmem:[#allocation315_spill] sm:$0xff] }
 0x622   : > { %15338 = vst [vmem:[#allocation253_spill] sm:$0xff] %v11460_v57 }
 0x623   : > { %4123 = vst [vmem:[#allocation1 + $0x5] ss:$9 sm:$0xff] %v11454_v30  ;;  %v15345_v30 = vld [vmem:[#allocation145_spill] sm:$0xff] }
 0x624   : > { %15339 = vst [vmem:[#allocation41_spill] sm:$0xff] %v11465_v11  ;;  %3799 = vrot.lane.b32.xlu1 %v15345_v30, %s8795_s29  ;;  %v15353_v30 = vld [vmem:[#allocation288_spill] sm:$0xff] }
 0x625   : > { %4125 = vst [vmem:[#allocation1 + $0x6] ss:$9 sm:$0xff] %v11460_v57  ;;  %3596 = vrot.lane.b32.xlu2 %v15353_v30, %s8794_s21  ;;  %v15361_v30 = vld [vmem:[#allocation301_spill] sm:$0xff]  ;;  %v15377_v57 = vld [vmem:[#allocation314_spill] sm:$0xff] }
 0x626   : > { %4127 = vst [vmem:[#allocation1 + $0x7] ss:$9 sm:$0xff] %v11465_v11  ;;  %v15349_v11 = vld [vmem:[#allocation289_spill] sm:$0xff] }
 0x62d   : > { %v11473_v35 = vld [vmem:[#allocation1] sm:$0xff]  ;;  %3994 = vrot.lane.b32.xlu2 %v11143_v44, %s8796_s14  ;;  %v15367_v44 = vld [vmem:[#allocation305_spill] sm:$0xff] }
 0x62e   : > { %15342 = vst [vmem:[#allocation316_spill] sm:$0xff] %v11473_v35  ;;  %v15351_v35 = vld [vmem:[#allocation291_spill] sm:$0xff] }
 0x62f   : > { %4129 = vst [vmem:[#allocation1] ss:$9 sm:$0xff] %v15343_v8  ;;  %v15352_v8 = vld [vmem:[#allocation319_spill] sm:$0xff] }
 0x630   : > { %4130 = vst [vmem:[#allocation1 + $0x1] ss:$9 sm:$0xff] %v15344_v41  ;;  %3793 = vrot.lane.b32.xlu1 %v15352_v8, %s8795_s29  ;;  %v15359_v8 = vld [vmem:[#allocation298_spill] sm:$0xff] }
 0x631   : > { %4131 = vst [vmem:[#allocation1 + $0x2] ss:$9 sm:$0xff] %v15346_v18  ;;  %v15356_v18 = vld [vmem:[#allocation293_spill] sm:$0xff] }
 0x632   : > { %4132 = vst [vmem:[#allocation1 + $0x3] ss:$9 sm:$0xff] %v15347_v4  ;;  %v15357_v4 = vld [vmem:[#allocation294_spill] sm:$0xff] }
 0x633   : > { %4133 = vst [vmem:[#allocation1 + $0x4] ss:$9 sm:$0xff] %v15348_v6  ;;  %v2975_v6 = vshrl.u32 %v11183_v47, 16 }
 0x634   : > { %4134 = vst [vmem:[#allocation1 + $0x5] ss:$9 sm:$0xff] %v15349_v11  ;;  %v15362_v11 = vld [vmem:[#allocation302_spill] sm:$0xff] }
 0x635   : > { %4135 = vst [vmem:[#allocation1 + $0x6] ss:$9 sm:$0xff] %v15350_v43  ;;  %v15360_v43 = vld [vmem:[#allocation300_spill] sm:$0xff] }
 0x636   : > { %4136 = vst [vmem:[#allocation1 + $0x7] ss:$9 sm:$0xff] %v15351_v35  ;;  %v15358_v35 = vld [vmem:[#allocation295_spill] sm:$0xff] }
 0x638   : > { %3801 = vrot.lane.b32.xlu1 %v10969_v63, %s8795_s29  ;;  %v15366_v63 = vld [vmem:[#allocation304_spill] sm:$0xff] }
 0x63d   : > { %v11491_v41 = vld [vmem:[#allocation1] sm:$0xff] }
 0x63e   : > { %15354 = vst [vmem:[#allocation46_spill] sm:$0xff] %v11491_v41 }
 0x63f   : > { %4138 = vst [vmem:[#allocation1] ss:$9 sm:$0xff] %v15355_v31  ;;  %v15365_v31 = vld [vmem:[#allocation303_spill] sm:$0xff] }
 0x640   : > { %4139 = vst [vmem:[#allocation1 + $0x1] ss:$9 sm:$0xff] %v15356_v18  ;;  %v15363_v18 = vld [vmem:[#allocation141_spill] sm:$0xff] }
 0x641   : > { %4140 = vst [vmem:[#allocation1 + $0x2] ss:$9 sm:$0xff] %v15357_v4  ;;  %3795 = vrot.lane.b32.xlu1 %v15363_v18, %s8795_s29  ;;  %v1823_v18 = vsel %vm1245_vm4, %v11173_v9, %v11187_v3  ;;  %v15435_v9 = vld [vmem:[#allocation107_spill] sm:$0xff] }
 0x642   : > { %4141 = vst [vmem:[#allocation1 + $0x3] ss:$9 sm:$0xff] %v15358_v35  ;;  %v15368_v35 = vld [vmem:[#allocation306_spill] sm:$0xff]  ;;  %v15441_v3 = vld [vmem:[#allocation115_spill] sm:$0xff] }
 0x643   : > { %4142 = vst [vmem:[#allocation1 + $0x4] ss:$9 sm:$0xff] %v15359_v8  ;;  %v15369_v8 = vld [vmem:[#allocation307_spill] sm:$0xff] }
 0x644   : > { %4143 = vst [vmem:[#allocation1 + $0x5] ss:$9 sm:$0xff] %v15360_v43  ;;  %v15370_v43 = vld [vmem:[#allocation309_spill] sm:$0xff] }
 0x645   : > { %4144 = vst [vmem:[#allocation1 + $0x6] ss:$9 sm:$0xff] %v15361_v30  ;;  %v15371_v30 = vld [vmem:[#allocation310_spill] sm:$0xff] }
 0x646   : > { %4145 = vst [vmem:[#allocation1 + $0x7] ss:$9 sm:$0xff] %v15362_v11  ;;  %v15372_v11 = vld [vmem:[#allocation311_spill] sm:$0xff] }
 0x64d   : > { %v11507_v4 = vld [vmem:[#allocation1] sm:$0xff] }
 0x64e   : > { %15364 = vst [vmem:[#allocation318_spill] sm:$0xff] %v11507_v4  ;;  %v11520_v4 = vrot.slane %v1823_v18, 2  ;;  %v2990_v18 = vshrl.u32 %v11204_v38, 16 }
 0x64f   : > { %4147 = vst [vmem:[#allocation1] ss:$9 sm:$0xff] %v15365_v31 }
 0x650   : > { %4148 = vst [vmem:[#allocation1 + $0x1] ss:$9 sm:$0xff] %v15366_v63  ;;  %v2967_v63 = vshrl.u32 %v11178_v37, 16  ;;  %v2995_v41 = vshll.u32 %v11520_v4, 16  ;;  %v15432_v37 = vld [vmem:[#allocation104_spill] sm:$0xff] }
 0x651   : > { %4149 = vst [vmem:[#allocation1 + $0x2] ss:$9 sm:$0xff] %v15367_v44  ;;  %v2972_v44 = vshll.u32 %v11183_v47, 16 }
 0x652   : > { %4150 = vst [vmem:[#allocation1 + $0x3] ss:$9 sm:$0xff] %v15368_v35  ;;  %v15375_v35 = vld [vmem:[#allocation312_spill] sm:$0xff] }
 0x653   : > { %4151 = vst [vmem:[#allocation1 + $0x4] ss:$9 sm:$0xff] %v15369_v8  ;;  %v2979_v8 = vshll.u32 %v11202_v1, 16 }
 0x654   : > { %4152 = vst [vmem:[#allocation1 + $0x5] ss:$9 sm:$0xff] %v15370_v43  ;;  %v15376_v43 = vld [vmem:[#allocation313_spill] sm:$0xff] }
 0x655   : > { %4153 = vst [vmem:[#allocation1 + $0x6] ss:$9 sm:$0xff] %v15371_v30  ;;  %v2982_v30 = vshrl.u32 %v11202_v1, 16 }
 0x656   : > { %4154 = vst [vmem:[#allocation1 + $0x7] ss:$9 sm:$0xff] %v15372_v11  ;;  %v2987_v11 = vshll.u32 %v11204_v38, 16 }
 0x657   : > { %15373 = vst [vmem:[#allocation92_spill] sm:$0xff] %v11520_v4 }
 0x65d   : > { %v11524_v31 = vld [vmem:[#allocation1] sm:$0xff] }
 0x65e   : > { %15374 = vst [vmem:[#allocation93_spill] sm:$0xff] %v11524_v31  ;;  %v11537_v31 = vsel %vm9852_vm8, %v2967_v63, %v2972_v44 }
 0x65f   : > { %4156 = vst [vmem:[#allocation1] ss:$9 sm:$0xff] %v15375_v35  ;;  %v11542_v35 = vsel %vm9852_vm8, %v2975_v6, %v2979_v8  ;;  %v15385_v6 = vld [vmem:[#allocation12_spill] sm:$0xff] }
 0x660   : > { %4157 = vst [vmem:[#allocation1 + $0x1] ss:$9 sm:$0xff] %v15376_v43  ;;  %v11547_v43 = vsel %vm9852_vm8, %v2982_v30, %v2987_v11  ;;  %v15384_v11 = vld [vmem:[#allocation185_spill] sm:$0xff]  ;;  %v15390_v30 = vld [vmem:[#allocation18_spill] sm:$0xff] }
 0x661   : > { %4158 = vst [vmem:[#allocation1 + $0x2] ss:$9 sm:$0xff] %v15377_v57  ;;  %v11552_v57 = vsel %vm9852_vm8, %v2990_v18, %v2995_v41  ;;  %v15386_v41 = vld [vmem:[#allocation191_spill] sm:$0xff]  ;;  %v15391_v18 = vld [vmem:[#allocation20_spill] sm:$0xff] }
 0x662   : > { %15378 = vst [vmem:[#allocation275_spill] sm:$0xff] %v11537_v31 }
 0x663   : > { %4159 = vst [vmem:[#allocation1 + $0x3] ss:$9 sm:$0xff] %v15379_v42 }
 0x664   : > { %15380 = vst [vmem:[#allocation134_spill] sm:$0xff] %v11542_v35 }
 0x665   : > { %4161 = vst [vmem:[#allocation1 + $0x4] ss:$9 sm:$0xff] %v11537_v31 }
 0x666   : > { %15381 = vst [vmem:[#allocation133_spill] sm:$0xff] %v11547_v43 }
 0x667   : > { %4163 = vst [vmem:[#allocation1 + $0x5] ss:$9 sm:$0xff] %v11542_v35 }
 0x668   : > { %15382 = vst [vmem:[#allocation143_spill] sm:$0xff] %v11552_v57 }
 0x669   : > { %4165 = vst [vmem:[#allocation1 + $0x6] ss:$9 sm:$0xff] %v11547_v43 }
 0x66a   : > { %4167 = vst [vmem:[#allocation1 + $0x7] ss:$9 sm:$0xff] %v11552_v57  ;;  %v1035_v57 = vpop.f32.mrf.mxu1 }
 0x671   : > { %v11556_v63 = vld [vmem:[#allocation1] sm:$0xff] }
 0x672   : > { %15383 = vst [vmem:[#allocation95_spill] sm:$0xff] %v11556_v63  ;;  %v901_v63 = vpop.f32.mrf.mxu0 }
 0x673   : > { %4169 = vst [vmem:[#allocation1] ss:$9 sm:$0xff] %v9018_v48  ;;  %v15387_v48 = vld [vmem:[#allocation14_spill] sm:$0xff] }
 0x674   : > { %4171 = vst [vmem:[#allocation1 + $0x1] ss:$9 sm:$0xff] %v9020_v49  ;;  %v15388_v49 = vld [vmem:[#allocation192_spill] sm:$0xff] }
 0x675   : > { %4173 = vst [vmem:[#allocation1 + $0x2] ss:$9 sm:$0xff] %v9031_v61  ;;  %v15389_v61 = vld [vmem:[#allocation15_spill] sm:$0xff] }
 0x676   : > { %4175 = vst [vmem:[#allocation1 + $0x3] ss:$9 sm:$0xff] %v15384_v11  ;;  %v15392_v11 = vld [vmem:[#allocation202_spill] sm:$0xff] }
 0x677   : > { %4177 = vst [vmem:[#allocation1 + $0x4] ss:$9 sm:$0xff] %v9043_v12 }
 0x678   : > { %4179 = vst [vmem:[#allocation1 + $0x5] ss:$9 sm:$0xff] %v9048_v14 }
 0x679   : > { %4181 = vst [vmem:[#allocation1 + $0x6] ss:$9 sm:$0xff] %v15385_v6 }
 0x67a   : > { %4183 = vst [vmem:[#allocation1 + $0x7] ss:$9 sm:$0xff] %v15386_v41  ;;  %v15395_v41 = vld [vmem:[#allocation212_spill] sm:$0xff] }
 0x681   : > { %v4184_v8 = vld [vmem:[#allocation1] sm:$0xff] }
 0x682   : > { %4186 = vst [vmem:[#allocation1] ss:$9 sm:$0xff] %v9070_v36  ;;  %4336 = vrot.lane.b32.xlu0 %v4184_v8, %s8794_s21  ;;  %v15393_v8 = vld [vmem:[#allocation24_spill] sm:$0xff] }
 0x683   : > { %4187 = vst [vmem:[#allocation1 + $0x1] ss:$9 sm:$0xff] %v9077_v40 }
 0x684   : > { %4188 = vst [vmem:[#allocation1 + $0x2] ss:$9 sm:$0xff] %v15387_v48 }
 0x685   : > { %4189 = vst [vmem:[#allocation1 + $0x3] ss:$9 sm:$0xff] %v15388_v49  ;;  %v15394_v49 = vld [vmem:[#allocation25_spill] sm:$0xff] }
 0x686   : > { %4190 = vst [vmem:[#allocation1 + $0x4] ss:$9 sm:$0xff] %v9091_v59 }
 0x687   : > { %4191 = vst [vmem:[#allocation1 + $0x5] ss:$9 sm:$0xff] %v9096_v0 }
 0x688   : > { %4192 = vst [vmem:[#allocation1 + $0x6] ss:$9 sm:$0xff] %v15389_v61 }
 0x689   : > { %4193 = vst [vmem:[#allocation1 + $0x7] ss:$9 sm:$0xff] %v15390_v30  ;;  %v902_v30 = vadd.f32 %v11158_v33, %v901_v63  ;;  %v15399_v33 = vld [vmem:[#allocation213_spill] sm:$0xff] }
 0x68a   : > { %v15402_v63 = vld [vmem:[#allocation37_spill] sm:$0xff] }
 0x68b   : > { %v1036_v43 = vadd.f32 %v1035_v57, %v902_v30  ;;  %v15403_v30 = vld [vmem:[#allocation48_spill] sm:$0xff] }
 0x690   : > { %v4194_v44 = vld [vmem:[#allocation1] sm:$0xff] }
 0x691   : > { %4196 = vst [vmem:[#allocation1] ss:$9 sm:$0xff] %v15391_v18  ;;  %4338 = vrot.lane.b32.xlu0 %v4194_v44, %s8794_s21  ;;  %v1087_v44 = vmax.f32 %v1036_v43, 0.0 }
 0x692   : > { %4197 = vst [vmem:[#allocation1 + $0x1] ss:$9 sm:$0xff] %v9119_v28 }
 0x693   : > { %4198 = vst [vmem:[#allocation1 + $0x2] ss:$9 sm:$0xff] %v9127_v45  ;;  %v11585_v35 = vpack.c.bf16 %v1087_v44, %v1087_v44  ;;  %v15404_v44 = vld [vmem:[#allocation52_spill] sm:$0xff] }
 0x694   : > { %4199 = vst [vmem:[#allocation1 + $0x3] ss:$9 sm:$0xff] %v15392_v11  ;;  %v15397_v11 = vld [vmem:[#allocation28_spill] sm:$0xff] }
 0x695   : > { %4200 = vst [vmem:[#allocation1 + $0x4] ss:$9 sm:$0xff] %v9140_v5  ;;  %v11591_v42 = vrot.slane %v11585_v35, 3 }
 0x696   : > { %4201 = vst [vmem:[#allocation1 + $0x5] ss:$9 sm:$0xff] %v15393_v8 }
 0x697   : > { %4202 = vst [vmem:[#allocation1 + $0x6] ss:$9 sm:$0xff] %v15394_v49  ;;  %v11598_v57 = vsel %vm1249_vm5, %v11585_v35, %v11591_v42 }
 0x698   : > { %4203 = vst [vmem:[#allocation1 + $0x7] ss:$9 sm:$0xff] %v15395_v41  ;;  %v15406_v41 = vld [vmem:[#allocation53_spill] sm:$0xff] }
 0x699   : > { %15396 = vst [vmem:[#allocation148_spill] sm:$0xff] %v11585_v35  ;;  %v15433_v35 = vld [vmem:[#allocation105_spill] sm:$0xff] }
 0x69a   : > { %15398 = vst [vmem:[#allocation283_spill] sm:$0xff] %v11591_v42  ;;  %v15434_v42 = vld [vmem:[#allocation254_spill] sm:$0xff] }
 0x69b   : > { %15400 = vst [vmem:[#allocation284_spill] sm:$0xff] %v11598_v57  ;;  %v15407_v57 = vld [vmem:[#allocation55_spill] sm:$0xff] }
 0x69f   : > { %v4204_v31 = vld [vmem:[#allocation1] sm:$0xff] }
 0x6a0   : > { %4206 = vst [vmem:[#allocation1] ss:$9 sm:$0xff] %v9168_v52  ;;  %4340 = vrot.lane.b32.xlu0 %v4204_v31, %s8794_s21  ;;  %v15401_v31 = vld [vmem:[#allocation47_spill] sm:$0xff] }
 0x6a1   : > { %4207 = vst [vmem:[#allocation1 + $0x1] ss:$9 sm:$0xff] %v15397_v11 }
 0x6a2   : > { %4208 = vst [vmem:[#allocation1 + $0x2] ss:$9 sm:$0xff] %v9177_v56 }
 0x6a3   : > { %4209 = vst [vmem:[#allocation1 + $0x3] ss:$9 sm:$0xff] %v15399_v33  ;;  %v15405_v33 = vld [vmem:[#allocation49_spill] sm:$0xff] }
 0x6a4   : > { %4210 = vst [vmem:[#allocation1 + $0x4] ss:$9 sm:$0xff] %v11011_v17 }
 0x6a5   : > { %4211 = vst [vmem:[#allocation1 + $0x5] ss:$9 sm:$0xff] %v11014_v58 }
 0x6a6   : > { %4212 = vst [vmem:[#allocation1 + $0x6] ss:$9 sm:$0xff] %v11017_v27 }
 0x6a7   : > { %4213 = vst [vmem:[#allocation1 + $0x7] ss:$9 sm:$0xff] %v11252_v24 }
 0x6ae   : > { %v4214_v43 = vld [vmem:[#allocation1] sm:$0xff] }
 0x6af   : > { %4216 = vst [vmem:[#allocation1] ss:$9 sm:$0xff] %v14811_v25  ;;  %4342 = vrot.lane.b32.xlu0 %v4214_v43, %s8794_s21  ;;  %v15408_v25 = vld [vmem:[#allocation56_spill] sm:$0xff]  ;;  %v15410_v43 = vld [vmem:[#allocation58_spill] sm:$0xff] }
 0x6b0   : > { %4217 = vst [vmem:[#allocation1 + $0x1] ss:$9 sm:$0xff] %v15037_v19  ;;  %v15409_v19 = vld [vmem:[#allocation57_spill] sm:$0xff] }
 0x6b1   : > { %4218 = vst [vmem:[#allocation1 + $0x2] ss:$9 sm:$0xff] %v15401_v31  ;;  %v15411_v31 = vld [vmem:[#allocation60_spill] sm:$0xff] }
 0x6b2   : > { %4219 = vst [vmem:[#allocation1 + $0x3] ss:$9 sm:$0xff] %v15402_v63  ;;  %v15412_v63 = vld [vmem:[#allocation62_spill] sm:$0xff] }
 0x6b3   : > { %4220 = vst [vmem:[#allocation1 + $0x4] ss:$9 sm:$0xff] %v15403_v30 }
 0x6b4   : > { %4221 = vst [vmem:[#allocation1 + $0x5] ss:$9 sm:$0xff] %v15404_v44 }
 0x6b5   : > { %4222 = vst [vmem:[#allocation1 + $0x6] ss:$9 sm:$0xff] %v15405_v33 }
 0x6b6   : > { %4223 = vst [vmem:[#allocation1 + $0x7] ss:$9 sm:$0xff] %v15406_v41 }
 0x6bd   : > { %v4224_v24 = vld [vmem:[#allocation1] sm:$0xff] }
 0x6be   : > { %4226 = vst [vmem:[#allocation1] ss:$9 sm:$0xff] %v15407_v57  ;;  %4344 = vrot.lane.b32.xlu0 %v4224_v24, %s8794_s21  ;;  %v15416_v24 = vld [vmem:[#allocation68_spill] sm:$0xff] }
 0x6bf   : > { %4227 = vst [vmem:[#allocation1 + $0x1] ss:$9 sm:$0xff] %v15408_v25 }
 0x6c0   : > { %4228 = vst [vmem:[#allocation1 + $0x2] ss:$9 sm:$0xff] %v15409_v19 }
 0x6c1   : > { %4229 = vst [vmem:[#allocation1 + $0x3] ss:$9 sm:$0xff] %v15410_v43  ;;  %v15419_v43 = vld [vmem:[#allocation70_spill] sm:$0xff] }
 0x6c2   : > { %4230 = vst [vmem:[#allocation1 + $0x4] ss:$9 sm:$0xff] %v15411_v31 }
 0x6c3   : > { %4231 = vst [vmem:[#allocation1 + $0x5] ss:$9 sm:$0xff] %v15412_v63 }
 0x6c4   : > { %4232 = vst [vmem:[#allocation1 + $0x6] ss:$9 sm:$0xff] %v15413_v22 }
 0x6c5   : > { %4233 = vst [vmem:[#allocation1 + $0x7] ss:$9 sm:$0xff] %v15414_v7 }
 0x6cc   : > { %v4234_v41 = vld [vmem:[#allocation1] sm:$0xff] }
 0x6cd   : > { %4236 = vst [vmem:[#allocation1] ss:$9 sm:$0xff] %v15415_v60  ;;  %4346 = vrot.lane.b32.xlu0 %v4234_v41, %s8794_s21  ;;  %v15424_v41 = vld [vmem:[#allocation78_spill] sm:$0xff] }
 0x6ce   : > { %4237 = vst [vmem:[#allocation1 + $0x1] ss:$9 sm:$0xff] %v15416_v24 }
 0x6cf   : > { %4238 = vst [vmem:[#allocation1 + $0x2] ss:$9 sm:$0xff] %v15417_v15 }
 0x6d0   : > { %4239 = vst [vmem:[#allocation1 + $0x3] ss:$9 sm:$0xff] %v15418_v46  ;;  %v15427_v46 = vld [vmem:[#allocation97_spill] sm:$0xff] }
 0x6d1   : > { %4240 = vst [vmem:[#allocation1 + $0x4] ss:$9 sm:$0xff] %v15419_v43 }
 0x6d2   : > { %4241 = vst [vmem:[#allocation1 + $0x5] ss:$9 sm:$0xff] %v15420_v39 }
 0x6d3   : > { %4242 = vst [vmem:[#allocation1 + $0x6] ss:$9 sm:$0xff] %v15421_v13 }
 0x6d4   : > { %4243 = vst [vmem:[#allocation1 + $0x7] ss:$9 sm:$0xff] %v15422_v51 }
 0x6db   : > { %v4244_v7 = vld [vmem:[#allocation1] sm:$0xff] }
 0x6dc   : > { %4246 = vst [vmem:[#allocation1] ss:$9 sm:$0xff] %v15423_v55  ;;  %4348 = vrot.lane.b32.xlu0 %v4244_v7, %s8794_s21  ;;  %v15428_v7 = vld [vmem:[#allocation98_spill] sm:$0xff] }
 0x6dd   : > { %4247 = vst [vmem:[#allocation1 + $0x1] ss:$9 sm:$0xff] %v15424_v41 }
 0x6de   : > { %4248 = vst [vmem:[#allocation1 + $0x2] ss:$9 sm:$0xff] %v15425_v29 }
 0x6df   : > { %4249 = vst [vmem:[#allocation1 + $0x3] ss:$9 sm:$0xff] %v15426_v50  ;;  %v15431_v50 = vld [vmem:[#allocation102_spill] sm:$0xff] }
 0x6e0   : > { %4250 = vst [vmem:[#allocation1 + $0x4] ss:$9 sm:$0xff] %v11066_v16 }
 0x6e1   : > { %4251 = vst [vmem:[#allocation1 + $0x5] ss:$9 sm:$0xff] %v11073_v53 }
 0x6e2   : > { %4252 = vst [vmem:[#allocation1 + $0x6] ss:$9 sm:$0xff] %v11075_v23 }
 0x6e3   : > { %4253 = vst [vmem:[#allocation1 + $0x7] ss:$9 sm:$0xff] %v11324_v34 }
 0x6ea   : > { %v4254_v51 = vld [vmem:[#allocation1] sm:$0xff] }
 0x6eb   : > { %4256 = vst [vmem:[#allocation1] ss:$9 sm:$0xff] %v15427_v46  ;;  %4350 = vrot.lane.b32.xlu0 %v4254_v51, %s8794_s21  ;;  %v15436_v51 = vld [vmem:[#allocation109_spill] sm:$0xff]  ;;  %v15437_v46 = vld [vmem:[#allocation110_spill] sm:$0xff] }
 0x6ec   : > { %4257 = vst [vmem:[#allocation1 + $0x1] ss:$9 sm:$0xff] %v15428_v7  ;;  %v15440_v7 = vld [vmem:[#allocation112_spill] sm:$0xff] }
 0x6ed   : > { %4258 = vst [vmem:[#allocation1 + $0x2] ss:$9 sm:$0xff] %v15429_v32  ;;  %v15438_v32 = vld [vmem:[#allocation108_spill] sm:$0xff] }
 0x6ee   : > { %4259 = vst [vmem:[#allocation1 + $0x3] ss:$9 sm:$0xff] %v15430_v54  ;;  %v15439_v54 = vld [vmem:[#allocation111_spill] sm:$0xff] }
 0x6ef   : > { %4260 = vst [vmem:[#allocation1 + $0x4] ss:$9 sm:$0xff] %v15431_v50 }
 0x6f0   : > { %4261 = vst [vmem:[#allocation1 + $0x5] ss:$9 sm:$0xff] %v15432_v37 }
 0x6f1   : > { %4262 = vst [vmem:[#allocation1 + $0x6] ss:$9 sm:$0xff] %v15433_v35  ;;  %v15443_v35 = vld [vmem:[#allocation118_spill] sm:$0xff] }
 0x6f2   : > { %4263 = vst [vmem:[#allocation1 + $0x7] ss:$9 sm:$0xff] %v15434_v42 }
 0x6f9   : > { %v4264_v34 = vld [vmem:[#allocation1] sm:$0xff] }
 0x6fa   : > { %4266 = vst [vmem:[#allocation1] ss:$9 sm:$0xff] %v15435_v9  ;;  %4352 = vrot.lane.b32.xlu0 %v4264_v34, %s8794_s21  ;;  %v15444_v34 = vld [vmem:[#allocation119_spill] sm:$0xff] }
 0x6fb   : > { %4267 = vst [vmem:[#allocation1 + $0x1] ss:$9 sm:$0xff] %v15436_v51  ;;  %v15445_v51 = vld [vmem:[#allocation120_spill] sm:$0xff]  ;;  %v15480_v9 = vld [vmem:[#allocation171_spill] sm:$0xff] }
 0x6fc   : > { %4268 = vst [vmem:[#allocation1 + $0x2] ss:$9 sm:$0xff] %v15437_v46  ;;  %v15446_v46 = vld [vmem:[#allocation121_spill] sm:$0xff] }
 0x6fd   : > { %4269 = vst [vmem:[#allocation1 + $0x3] ss:$9 sm:$0xff] %v15438_v32  ;;  %v15447_v32 = vld [vmem:[#allocation123_spill] sm:$0xff] }
 0x6fe   : > { %4270 = vst [vmem:[#allocation1 + $0x4] ss:$9 sm:$0xff] %v15439_v54  ;;  %v15448_v54 = vld [vmem:[#allocation125_spill] sm:$0xff] }
 0x6ff   : > { %4271 = vst [vmem:[#allocation1 + $0x5] ss:$9 sm:$0xff] %v15440_v7  ;;  %v15449_v7 = vld [vmem:[#allocation126_spill] sm:$0xff] }
 0x700   : > { %4272 = vst [vmem:[#allocation1 + $0x6] ss:$9 sm:$0xff] %v15441_v3  ;;  %v15450_v3 = vld [vmem:[#allocation273_spill] sm:$0xff] }
 0x701   : > { %4273 = vst [vmem:[#allocation1 + $0x7] ss:$9 sm:$0xff] %v15442_v26  ;;  %v8608_v26 = vld [vmem:[%s13832_s3 + $0x38] sm:$0xff] }
 0x702   : > { %8663 = vmatpush.bf16.msra.mxu2 %v8608_v26  ;;  %8664 = vmatpush.bf16.msra.mxu3 %v8608_v26 }
 0x703   : > { %5340 = vmatpush.bf16.msrb.mxu1 %v8608_v26  ;;  %v8606_v26 = vld [vmem:[%s13832_s3 + $0x28] sm:$0xff] }
 0x708   : > { %v4274_v42 = vld [vmem:[#allocation1] sm:$0xff] }
 0x709   : > { %4276 = vst [vmem:[#allocation1] ss:$9 sm:$0xff] %v15443_v35  ;;  %4354 = vrot.lane.b32.xlu0 %v4274_v42, %s8794_s21  ;;  %v15451_v42 = vld [vmem:[#allocation129_spill] sm:$0xff] }
 0x70a   : > { %4277 = vst [vmem:[#allocation1 + $0x1] ss:$9 sm:$0xff] %v15444_v34  ;;  %v15479_v34 = vld [vmem:[#allocation297_spill] sm:$0xff] }
 0x70b   : > { %4278 = vst [vmem:[#allocation1 + $0x2] ss:$9 sm:$0xff] %v15445_v51  ;;  %v15469_v51 = vld [vmem:[#allocation161_spill] sm:$0xff] }
 0x70c   : > { %4279 = vst [vmem:[#allocation1 + $0x3] ss:$9 sm:$0xff] %v15446_v46  ;;  %v15452_v46 = vld [vmem:[#allocation131_spill] sm:$0xff] }
 0x70d   : > { %4280 = vst [vmem:[#allocation1 + $0x4] ss:$9 sm:$0xff] %v15447_v32  ;;  %v15468_v32 = vld [vmem:[#allocation160_spill] sm:$0xff] }
 0x70e   : > { %4281 = vst [vmem:[#allocation1 + $0x5] ss:$9 sm:$0xff] %v15448_v54  ;;  %v15453_v54 = vld [vmem:[#allocation132_spill] sm:$0xff] }
 0x70f   : > { %4282 = vst [vmem:[#allocation1 + $0x6] ss:$9 sm:$0xff] %v15449_v7  ;;  %v8607_v7 = vld [vmem:[%s13832_s3 + $0x30] sm:$0xff] }
 0x710   : > { %4283 = vst [vmem:[#allocation1 + $0x7] ss:$9 sm:$0xff] %v15450_v3  ;;  %v15454_v3 = vld [vmem:[#allocation130_spill] sm:$0xff]  ;;  %8665 = vmatpush.bf16.msra.mxu2 %v8607_v7  ;;  %8666 = vmatpush.bf16.msra.mxu3 %v8607_v7 }
 0x711   : > { %5341 = vmatpush.bf16.msrb.mxu1 %v8607_v7  ;;  %v8604_v7 = vld [vmem:[%s13832_s3 + $0x18] sm:$0xff] }
 0x714   : > { %8667 = vmatpush.bf16.msra.mxu2 %v8606_v26  ;;  %8668 = vmatpush.bf16.msra.mxu3 %v8606_v26 }
 0x715   : > { %5342 = vmatpush.bf16.msrb.mxu1 %v8606_v26  ;;  %v15457_v26 = vld [vmem:[#allocation150_spill] sm:$0xff] }
 0x717   : > { %v4284_v35 = vld [vmem:[#allocation1] sm:$0xff] }
 0x718   : > { %4286 = vst [vmem:[#allocation1] ss:$9 sm:$0xff] %v15451_v42  ;;  %4356 = vrot.lane.b32.xlu0 %v4284_v35, %s8794_s21  ;;  %v8605_v35 = vld [vmem:[%s13832_s3 + $0x20] sm:$0xff] }
 0x719   : > { %4287 = vst [vmem:[#allocation1 + $0x1] ss:$9 sm:$0xff] %v15452_v46  ;;  %8669 = vmatpush.bf16.msra.mxu2 %v8605_v35  ;;  %8670 = vmatpush.bf16.msra.mxu3 %v8605_v35  ;;  %v15467_v42 = vld [vmem:[#allocation159_spill] sm:$0xff] }
 0x71a   : > { %4288 = vst [vmem:[#allocation1 + $0x2] ss:$9 sm:$0xff] %v15453_v54  ;;  %5343 = vmatpush.bf16.msrb.mxu1 %v8605_v35  ;;  %v8603_v35 = vld [vmem:[%s13832_s3 + $0x10] sm:$0xff]  ;;  %v15459_v54 = vld [vmem:[#allocation151_spill] sm:$0xff] }
 0x71b   : > { %4289 = vst [vmem:[#allocation1 + $0x3] ss:$9 sm:$0xff] %v15454_v3 }
 0x71c   : > { %4290 = vst [vmem:[#allocation1 + $0x4] ss:$9 sm:$0xff] %v11122_v21  ;;  %v15458_v21 = vld [vmem:[#allocation140_spill] sm:$0xff] }
 0x71d   : > { %4291 = vst [vmem:[#allocation1 + $0x5] ss:$9 sm:$0xff] %v11125_v62  ;;  %v15455_v62 = vld [vmem:[#allocation147_spill] sm:$0xff]  ;;  %8671 = vmatpush.bf16.msra.mxu2 %v8604_v7  ;;  %8672 = vmatpush.bf16.msra.mxu3 %v8604_v7 }
 0x71e   : > { %4292 = vst [vmem:[#allocation1 + $0x6] ss:$9 sm:$0xff] %v11128_v20  ;;  %5344 = vmatpush.bf16.msrb.mxu1 %v8604_v7  ;;  %v3577_v20 = vpop.permute.xlu0 %3576  ;;  %v15462_v7 = vld [vmem:[#allocation156_spill] sm:$0xff] }
 0x71f   : > { %4293 = vst [vmem:[#allocation1 + $0x7] ss:$9 sm:$0xff] %v11430_v10  ;;  %v15456_v10 = vld [vmem:[#allocation149_spill] sm:$0xff] }
 0x721   : > { %8673 = vmatpush.bf16.msra.mxu2 %v8603_v35  ;;  %8674 = vmatpush.bf16.msra.mxu3 %v8603_v35 }
 0x722   : > { %5345 = vmatpush.bf16.msrb.mxu1 %v8603_v35  ;;  %v8601_v35 = vld [vmem:[%s13832_s3] sm:$0xff] }
 0x726   : > { %v4294_v3 = vld [vmem:[#allocation1] sm:$0xff] }
 0x727   : > { %4296 = vst [vmem:[#allocation1] ss:$9 sm:$0xff] %v15455_v62  ;;  %4358 = vrot.lane.b32.xlu0 %v4294_v3, %s8794_s21  ;;  %v15460_v62 = vld [vmem:[#allocation152_spill] sm:$0xff] }
 0x728   : > { %4297 = vst [vmem:[#allocation1 + $0x1] ss:$9 sm:$0xff] %v15456_v10  ;;  %v15461_v10 = vld [vmem:[#allocation155_spill] sm:$0xff]  ;;  %v8602_v3 = vld [vmem:[%s13832_s3 + $0x8] sm:$0xff] }
 0x729   : > { %4298 = vst [vmem:[#allocation1 + $0x2] ss:$9 sm:$0xff] %v15457_v26  ;;  %8675 = vmatpush.bf16.msra.mxu2 %v8602_v3  ;;  %8676 = vmatpush.bf16.msra.mxu3 %v8602_v3  ;;  %v3776_v26 = vpop.permute.xlu0 %3775 }
 0x72a   : > { %4299 = vst [vmem:[#allocation1 + $0x3] ss:$9 sm:$0xff] %v15458_v21  ;;  %v15463_v21 = vld [vmem:[#allocation194_spill] sm:$0xff]  ;;  %5346 = vmatpush.bf16.msrb.mxu1 %v8602_v3 }
 0x72b   : > { %4300 = vst [vmem:[#allocation1 + $0x4] ss:$9 sm:$0xff] %v15459_v54  ;;  %v3975_v54 = vpop.permute.xlu1 %3974 }
 0x72c   : > { %4301 = vst [vmem:[#allocation1 + $0x5] ss:$9 sm:$0xff] %v15460_v62 }
 0x72d   : > { %4302 = vst [vmem:[#allocation1 + $0x6] ss:$9 sm:$0xff] %v15461_v10  ;;  %v15464_v10 = vld [vmem:[#allocation23_spill] sm:$0xff]  ;;  %8677 = vmatpush.bf16.msra.mxu2 %v8601_v35  ;;  %8678 = vmatpush.bf16.msra.mxu3 %v8601_v35 }
 0x72e   : > { %4303 = vst [vmem:[#allocation1 + $0x7] ss:$9 sm:$0xff] %v15462_v7  ;;  %v4939_v62 = vsel %vm4933_vm9, %v15464_v10, %v3577_v20  ;;  %5347 = vmatpush.bf16.msrb.mxu1 %v8601_v35  ;;  %v15470_v20 = vld [vmem:[#allocation163_spill] sm:$0xff]  ;;  %v15471_v10 = vld [vmem:[#allocation165_spill] sm:$0xff] }
 0x72f   : > { %3572 = vrot.lane.b32.xlu0 %v15463_v21, %s8794_s21  ;;  %v4972_v7 = vsel %vm4966_vm10, %v4939_v62, %v3776_v26  ;;  %v15466_v21 = vld [vmem:[#allocation158_spill] sm:$0xff]  ;;  %v3778_v26 = vpop.permute.xlu2 %3777 }
 0x730   : > { %v5007_v3 = vsel %vm4999_vm11, %v4972_v7, %v3975_v54  ;;  %v15472_v62 = vld [vmem:[#allocation166_spill] sm:$0xff]  ;;  %v15474_v54 = vld [vmem:[#allocation39_spill] sm:$0xff] }
 0x731   : > { %5358 = vmatmul.bf16.vlgmr.msra.gmra.mxu2 %v5007_v3 }
 0x733   : > { %v3579_v35 = vpop.permute.xlu1 %3578 }
 0x734   : > { %v4941_v7 = vsel %vm4933_vm9, %v15474_v54, %v3579_v35  ;;  %v15481_v35 = vld [vmem:[#allocation172_spill] sm:$0xff] }
 0x735   : > { %v11714_v46 = vld [vmem:[#allocation1] sm:$0xff]  ;;  %v4974_v3 = vsel %vm4966_vm10, %v4941_v7, %v3778_v26  ;;  %v15483_v54 = vld [vmem:[#allocation176_spill] sm:$0xff]  ;;  %v15484_v7 = vld [vmem:[#allocation50_spill] sm:$0xff] }
 0x736   : > { %15465 = vst [vmem:[#allocation145_spill] sm:$0xff] %v11714_v46  ;;  %v15473_v46 = vld [vmem:[#allocation296_spill] sm:$0xff]  ;;  %v15482_v26 = vld [vmem:[#allocation175_spill] sm:$0xff] }
 0x737   : > { %4306 = vst [vmem:[#allocation1] ss:$9 sm:$0xff] %v15466_v21  ;;  %v15476_v21 = vld [vmem:[#allocation168_spill] sm:$0xff] }
 0x738   : > { %4307 = vst [vmem:[#allocation1 + $0x1] ss:$9 sm:$0xff] %v15467_v42 }
 0x739   : > { %4308 = vst [vmem:[#allocation1 + $0x2] ss:$9 sm:$0xff] %v15468_v32  ;;  %v3977_v32 = vpop.permute.xlu2 %3976 }
 0x73a   : > { %4309 = vst [vmem:[#allocation1 + $0x3] ss:$9 sm:$0xff] %v15469_v51  ;;  %v5010_v51 = vsel %vm4999_vm11, %v4974_v3, %v3977_v32 }
 0x73b   : > { %4310 = vst [vmem:[#allocation1 + $0x4] ss:$9 sm:$0xff] %v15470_v20  ;;  %v15477_v20 = vld [vmem:[#allocation169_spill] sm:$0xff] }
 0x73c   : > { %4311 = vst [vmem:[#allocation1 + $0x5] ss:$9 sm:$0xff] %v15471_v10  ;;  %v3780_v10 = vpop.permute.xlu1 %3779 }
 0x73d   : > { %4312 = vst [vmem:[#allocation1 + $0x6] ss:$9 sm:$0xff] %v15472_v62  ;;  %v15478_v62 = vld [vmem:[#allocation170_spill] sm:$0xff] }
 0x73e   : > { %4313 = vst [vmem:[#allocation1 + $0x7] ss:$9 sm:$0xff] %v15473_v46  ;;  %v3581_v46 = vpop.permute.xlu0 %3580 }
 0x73f   : > { %v4943_v32 = vsel %vm4933_vm9, %v15484_v7, %v3581_v46  ;;  %v15490_v7 = vld [vmem:[#allocation61_spill] sm:$0xff] }
 0x741   : > { %5363 = vmatmul.bf16.gmra.mxu2 %v5010_v51  ;;  %v4976_v51 = vsel %vm4966_vm10, %v4943_v32, %v3780_v10 }
 0x744   : > { %v3782_v3 = vpop.permute.xlu1 %3781 }
 0x745   : > { %v11728_v42 = vld [vmem:[#allocation1] sm:$0xff] }
 0x746   : > { %15475 = vst [vmem:[#allocation285_spill] sm:$0xff] %v11728_v42  ;;  %v3583_v42 = vpop.permute.xlu0 %3582 }
 0x747   : > { %4316 = vst [vmem:[#allocation1] ss:$9 sm:$0xff] %v15476_v21  ;;  %v15487_v21 = vld [vmem:[#allocation179_spill] sm:$0xff]  ;;  %v4945_v32 = vsel %vm4933_vm9, %v15490_v7, %v3583_v42 }
 0x748   : > { %4317 = vst [vmem:[#allocation1 + $0x1] ss:$9 sm:$0xff] %v15477_v20  ;;  %v15486_v20 = vld [vmem:[#allocation178_spill] sm:$0xff] }
 0x749   : > { %4318 = vst [vmem:[#allocation1 + $0x2] ss:$9 sm:$0xff] %v15478_v62 }
 0x74a   : > { %4319 = vst [vmem:[#allocation1 + $0x3] ss:$9 sm:$0xff] %v15479_v34  ;;  %v3979_v34 = vpop.permute.xlu2 %3978 }
 0x74b   : > { %4320 = vst [vmem:[#allocation1 + $0x4] ss:$9 sm:$0xff] %v15480_v9  ;;  %v15488_v9 = vld [vmem:[#allocation180_spill] sm:$0xff] }
 0x74c   : > { %4321 = vst [vmem:[#allocation1 + $0x5] ss:$9 sm:$0xff] %v15481_v35  ;;  %v5013_v35 = vsel %vm4999_vm11, %v4976_v51, %v3979_v34  ;;  %v3784_v46 = vpop.permute.xlu1 %3783  ;;  %v4978_v34 = vsel %vm4966_vm10, %v4945_v32, %v3782_v3  ;;  %v15493_v32 = vld [vmem:[#allocation72_spill] sm:$0xff] }
 0x74d   : > { %4322 = vst [vmem:[#allocation1 + $0x6] ss:$9 sm:$0xff] %v15482_v26 }
 0x74e   : > { %4323 = vst [vmem:[#allocation1 + $0x7] ss:$9 sm:$0xff] %v15483_v54  ;;  %v15489_v54 = vld [vmem:[#allocation181_spill] sm:$0xff]  ;;  %v3585_v10 = vpop.permute.xlu0 %3584 }
 0x751   : > { %5368 = vmatmul.bf16.gmra.mxu2 %v5013_v35  ;;  %v15491_v35 = vld [vmem:[#allocation9_spill] sm:$0xff] }
 0x752   : > { %v3981_v51 = vpop.permute.xlu2 %3980 }
 0x755   : > { %v11742_v62 = vld [vmem:[#allocation1] sm:$0xff] }
 0x756   : > { %15485 = vst [vmem:[#allocation286_spill] sm:$0xff] %v11742_v62 }
 0x757   : > { %4326 = vst [vmem:[#allocation1] ss:$9 sm:$0xff] %v15486_v20 }
 0x758   : > { %4327 = vst [vmem:[#allocation1 + $0x1] ss:$9 sm:$0xff] %v15487_v21 }
 0x759   : > { %4328 = vst [vmem:[#allocation1 + $0x2] ss:$9 sm:$0xff] %v15488_v9 }
 0x75a   : > { %4329 = vst [vmem:[#allocation1 + $0x3] ss:$9 sm:$0xff] %v15489_v54  ;;  %v3786_v54 = vpop.permute.xlu1 %3785 }
 0x75b   : > { %4330 = vst [vmem:[#allocation1 + $0x4] ss:$9 sm:$0xff] %v11183_v47  ;;  %v5016_v47 = vsel %vm4999_vm11, %v4978_v34, %v3981_v51  ;;  %v15495_v51 = vld [vmem:[#allocation19_spill] sm:$0xff] }
 0x75c   : > { %4331 = vst [vmem:[#allocation1 + $0x5] ss:$9 sm:$0xff] %v11202_v1 }
 0x75d   : > { %4332 = vst [vmem:[#allocation1 + $0x6] ss:$9 sm:$0xff] %v11204_v38  ;;  %v15492_v38 = vld [vmem:[#allocation13_spill] sm:$0xff] }
 0x75e   : > { %4333 = vst [vmem:[#allocation1 + $0x7] ss:$9 sm:$0xff] %v11520_v4  ;;  %v3587_v4 = vpop.permute.xlu0 %3586 }
 0x761   : > { %5373 = vmatmul.bf16.gmra.mxu2 %v5016_v47  ;;  %v3983_v47 = vpop.permute.xlu2 %3982 }
 0x762   : > { %v3788_v42 = vpop.permute.xlu1 %3787 }
 0x765   : > { %v11755_v62 = vld [vmem:[#allocation1] sm:$0xff] }
 0x766   : > { %4368 = vst [vmem:[#allocation1] ss:$9 sm:$0xff] %v15491_v35  ;;  %v3589_v3 = vpop.permute.xlu0 %3588  ;;  %v4947_v35 = vsel %vm4933_vm9, %v15493_v32, %v3585_v10  ;;  %v15497_v32 = vld [vmem:[#allocation90_spill] sm:$0xff] }
 0x767   : > { %4370 = vst [vmem:[#allocation1 + $0x1] ss:$9 sm:$0xff] %v9043_v12  ;;  %v4980_v34 = vsel %vm4966_vm10, %v4947_v35, %v3784_v46  ;;  %v4949_v35 = vsel %vm4933_vm9, %v15497_v32, %v3587_v4  ;;  %v15499_v4 = vld [vmem:[#allocation164_spill] sm:$0xff] }
 0x768   : > { %4372 = vst [vmem:[#allocation1 + $0x2] ss:$9 sm:$0xff] %v9048_v14  ;;  %v15494_v14 = vld [vmem:[#allocation16_spill] sm:$0xff] }
 0x769   : > { %4374 = vst [vmem:[#allocation1 + $0x3] ss:$9 sm:$0xff] %v15385_v6 }
 0x76a   : > { %4376 = vst [vmem:[#allocation1 + $0x4] ss:$9 sm:$0xff] %v15492_v38  ;;  %v5019_v38 = vsel %vm4999_vm11, %v4980_v34, %v3983_v47  ;;  %v4982_v34 = vsel %vm4966_vm10, %v4949_v35, %v3786_v54 }
 0x76b   : > { %4378 = vst [vmem:[#allocation1 + $0x5] ss:$9 sm:$0xff] %v9070_v36 }
 0x76c   : > { %4380 = vst [vmem:[#allocation1 + $0x6] ss:$9 sm:$0xff] %v9077_v40 }
 0x76d   : > { %4382 = vst [vmem:[#allocation1 + $0x7] ss:$9 sm:$0xff] %v15387_v48 }
 0x76e   : > { %v3591_v46 = vpop.permute.xlu0 %3590 }
 0x771   : > { %5378 = vmatmul.bf16.gmra.mxu2 %v5019_v38 }
 0x774   : > { %v4383_v7 = vld [vmem:[#allocation1] sm:$0xff] }
 0x775   : > { %4385 = vst [vmem:[#allocation1] ss:$9 sm:$0xff] %v15494_v14  ;;  %4535 = vrot.lane.b32.xlu1 %v4383_v7, %s8795_s29  ;;  %v3790_v14 = vpop.permute.xlu1 %3789  ;;  %v15496_v7 = vld [vmem:[#allocation22_spill] sm:$0xff] }
 0x776   : > { %4386 = vst [vmem:[#allocation1 + $0x1] ss:$9 sm:$0xff] %v9091_v59  ;;  %v3599_v38 = vpop.permute.xlu0 %3598 }
 0x777   : > { %4387 = vst [vmem:[#allocation1 + $0x2] ss:$9 sm:$0xff] %v9096_v0  ;;  %v4961_v54 = vsel %vm4933_vm9, %v15499_v4, %v3599_v38  ;;  %v15503_v4 = vld [vmem:[#allocation33_spill] sm:$0xff] }
 0x778   : > { %4388 = vst [vmem:[#allocation1 + $0x3] ss:$9 sm:$0xff] %v15389_v61 }
 0x779   : > { %4389 = vst [vmem:[#allocation1 + $0x4] ss:$9 sm:$0xff] %v15495_v51  ;;  %v3985_v51 = vpop.permute.xlu2 %3984 }
 0x77a   : > { %4390 = vst [vmem:[#allocation1 + $0x5] ss:$9 sm:$0xff] %v15391_v18 }
 0x77b   : > { %4391 = vst [vmem:[#allocation1 + $0x6] ss:$9 sm:$0xff] %v9119_v28 }
 0x77c   : > { %4392 = vst [vmem:[#allocation1 + $0x7] ss:$9 sm:$0xff] %v9127_v45  ;;  %v15498_v45 = vld [vmem:[#allocation26_spill] sm:$0xff] }
 0x77d   : > { %v3798_v47 = vpop.permute.xlu1 %3797 }
 0x77e   : > { %v3997_v32 = vpop.permute.xlu0 %3996 }
 0x783   : > { %v4393_v10 = vld [vmem:[#allocation1] sm:$0xff] }
 0x784   : > { %4395 = vst [vmem:[#allocation1] ss:$9 sm:$0xff] %v15496_v7  ;;  %4537 = vrot.lane.b32.xlu1 %v4393_v10, %s8795_s29  ;;  %v5022_v7 = vsel %vm4999_vm11, %v4982_v34, %v3985_v51  ;;  %v4994_v10 = vsel %vm4966_vm10, %v4961_v54, %v3798_v47  ;;  %v15500_v34 = vld [vmem:[#allocation27_spill] sm:$0xff]  ;;  %v11806_v54 = vrot.slane %v15503_v4, 2 }
 0x785   : > { %4396 = vst [vmem:[#allocation1 + $0x1] ss:$9 sm:$0xff] %v9140_v5  ;;  %5383 = vmatmul.bf16.gmra.mxu2 %v5022_v7  ;;  %v3792_v35 = vpop.permute.xlu1 %3791  ;;  %v15501_v51 = vld [vmem:[#allocation103_spill] sm:$0xff] }
 0x786   : > { %4397 = vst [vmem:[#allocation1 + $0x2] ss:$9 sm:$0xff] %v15393_v8  ;;  %v3987_v8 = vpop.permute.xlu2 %3986  ;;  %v4951_v7 = vsel %vm4933_vm9, %v15501_v51, %v3589_v3  ;;  %v15506_v51 = vld [vmem:[#allocation173_spill] sm:$0xff] }
 0x787   : > { %4398 = vst [vmem:[#allocation1 + $0x3] ss:$9 sm:$0xff] %v15394_v49  ;;  %v5040_v49 = vsel %vm4999_vm11, %v4994_v10, %v3997_v32  ;;  %v4984_v47 = vsel %vm4966_vm10, %v4951_v7, %v3788_v42  ;;  %v3601_v32 = vpop.permute.xlu0 %3600  ;;  %v15505_v42 = vld [vmem:[#allocation35_spill] sm:$0xff] }
 0x788   : > { %4399 = vst [vmem:[#allocation1 + $0x4] ss:$9 sm:$0xff] %v15498_v45  ;;  %5413 = vmatmul.bf16.vlgmr.msra.gmra.mxu3 %v5040_v49  ;;  %v15504_v49 = vld [vmem:[#allocation34_spill] sm:$0xff]  ;;  %v5025_v3 = vsel %vm4999_vm11, %v4984_v47, %v3987_v8  ;;  %v4963_v7 = vsel %vm4933_vm9, %v15506_v51, %v3601_v32  ;;  %v15508_v8 = vld [vmem:[#allocation113_spill] sm:$0xff] }
 0x789   : > { %4400 = vst [vmem:[#allocation1 + $0x5] ss:$9 sm:$0xff] %v9168_v52  ;;  %v11810_v10 = vrot.slane %v15504_v49, 3  ;;  %v4953_v47 = vsel %vm4933_vm9, %v15508_v8, %v3591_v46  ;;  %v15509_v51 = vld [vmem:[#allocation54_spill] sm:$0xff] }
 0x78a   : > { %4401 = vst [vmem:[#allocation1 + $0x6] ss:$9 sm:$0xff] %v15397_v11 }
 0x78b   : > { %4402 = vst [vmem:[#allocation1 + $0x7] ss:$9 sm:$0xff] %v9177_v56  ;;  %v15502_v56 = vld [vmem:[#allocation32_spill] sm:$0xff] }
 0x78c   : > { %v14481_v38 = vrot.slane %v15502_v56, 1 }
 0x78f   : > { %v3999_v4 = vpop.permute.xlu0 %3998 }
 0x792   : > { %v4403_v45 = vld [vmem:[#allocation1] sm:$0xff] }
 0x793   : > { %4405 = vst [vmem:[#allocation1] ss:$9 sm:$0xff] %v15500_v34  ;;  %4539 = vrot.lane.b32.xlu1 %v4403_v45, %s8795_s29  ;;  %v3800_v45 = vpop.permute.xlu1 %3799  ;;  %v3989_v34 = vpop.permute.xlu2 %3988 }
 0x794   : > { %4406 = vst [vmem:[#allocation1 + $0x1] ss:$9 sm:$0xff] %v11011_v17  ;;  %v4996_v49 = vsel %vm4966_vm10, %v4963_v7, %v3800_v45  ;;  %v4986_v45 = vsel %vm4966_vm10, %v4953_v47, %v3790_v14 }
 0x795   : > { %4407 = vst [vmem:[#allocation1 + $0x2] ss:$9 sm:$0xff] %v11014_v58  ;;  %5388 = vmatmul.bf16.gmra.mxu2 %v5025_v3  ;;  %v15507_v58 = vld [vmem:[#allocation51_spill] sm:$0xff] }
 0x796   : > { %4408 = vst [vmem:[#allocation1 + $0x3] ss:$9 sm:$0xff] %v11017_v27 }
 0x797   : > { %4409 = vst [vmem:[#allocation1 + $0x4] ss:$9 sm:$0xff] %v14481_v38  ;;  %v5043_v38 = vsel %vm4999_vm11, %v4996_v49, %v3999_v4 }
 0x798   : > { %4410 = vst [vmem:[#allocation1 + $0x5] ss:$9 sm:$0xff] %v11806_v54  ;;  %5418 = vmatmul.bf16.gmra.mxu3 %v5043_v38  ;;  %v15510_v38 = vld [vmem:[#allocation186_spill] sm:$0xff] }
 0x799   : > { %4411 = vst [vmem:[#allocation1 + $0x6] ss:$9 sm:$0xff] %v11810_v10 }
 0x79a   : > { %4412 = vst [vmem:[#allocation1 + $0x7] ss:$9 sm:$0xff] %v15505_v42 }
 0x79b   : > { %v3794_v3 = vpop.permute.xlu1 %3793  ;;  %v3593_v32 = vpop.permute.xlu2 %3592 }
 0x7a1   : > { %v4413_v27 = vld [vmem:[#allocation1] sm:$0xff] }
 0x7a2   : > { %4415 = vst [vmem:[#allocation1] ss:$9 sm:$0xff] %v15507_v58  ;;  %4541 = vrot.lane.b32.xlu1 %v4413_v27, %s8795_s29  ;;  %v3603_v58 = vpop.permute.xlu0 %3602  ;;  %v5028_v27 = vsel %vm4999_vm11, %v4986_v45, %v3989_v34  ;;  %v15512_v34 = vld [vmem:[#allocation124_spill] sm:$0xff] }
 0x7a3   : > { %4416 = vst [vmem:[#allocation1 + $0x1] ss:$9 sm:$0xff] %v15403_v30  ;;  %v4965_v46 = vsel %vm4933_vm9, %v15510_v38, %v3603_v58  ;;  %v3802_v7 = vpop.permute.xlu1 %3801  ;;  %v3991_v4 = vpop.permute.xlu2 %3990  ;;  %v4955_v45 = vsel %vm4933_vm9, %v15512_v34, %v3593_v32  ;;  %v15513_v58 = vld [vmem:[#allocation65_spill] sm:$0xff]  ;;  %v15515_v32 = vld [vmem:[#allocation76_spill] sm:$0xff] }
 0x7a4   : > { %4417 = vst [vmem:[#allocation1 + $0x2] ss:$9 sm:$0xff] %v15404_v44  ;;  %v4998_v14 = vsel %vm4966_vm10, %v4965_v46, %v3802_v7 }
 0x7a5   : > { %4418 = vst [vmem:[#allocation1 + $0x3] ss:$9 sm:$0xff] %v15405_v33  ;;  %5393 = vmatmul.bf16.gmra.mxu2 %v5028_v27  ;;  %v4988_v27 = vsel %vm4966_vm10, %v4955_v45, %v3792_v35  ;;  %v15517_v45 = vld [vmem:[#allocation88_spill] sm:$0xff] }
 0x7a6   : > { %4419 = vst [vmem:[#allocation1 + $0x4] ss:$9 sm:$0xff] %v15509_v51  ;;  %v15511_v51 = vld [vmem:[#allocation59_spill] sm:$0xff]  ;;  %v5031_v38 = vsel %vm4999_vm11, %v4988_v27, %v3991_v4 }
 0x7a7   : > { %4420 = vst [vmem:[#allocation1 + $0x5] ss:$9 sm:$0xff] %v15407_v57 }
 0x7a8   : > { %4421 = vst [vmem:[#allocation1 + $0x6] ss:$9 sm:$0xff] %v15408_v25 }
 0x7a9   : > { %4422 = vst [vmem:[#allocation1 + $0x7] ss:$9 sm:$0xff] %v15409_v19 }
 0x7aa   : > { %v4001_v49 = vpop.permute.xlu0 %4000 }
 0x7ab   : > { %v5046_v47 = vsel %vm4999_vm11, %v4998_v14, %v4001_v49  ;;  %v3595_v46 = vpop.permute.xlu2 %3594  ;;  %v15514_v49 = vld [vmem:[#allocation73_spill] sm:$0xff]  ;;  %v15516_v14 = vld [vmem:[#allocation142_spill] sm:$0xff] }
 0x7ac   : > { %5423 = vmatmul.bf16.gmra.mxu3 %v5046_v47 }
 0x7b0   : > { %v4423_v8 = vld [vmem:[#allocation1] sm:$0xff] }
 0x7b1   : > { %4425 = vst [vmem:[#allocation1] ss:$9 sm:$0xff] %v15511_v51  ;;  %4543 = vrot.lane.b32.xlu1 %v4423_v8, %s8795_s29  ;;  %v4957_v8 = vsel %vm4933_vm9, %v15516_v14, %v3595_v46 }
 0x7b2   : > { %4426 = vst [vmem:[#allocation1 + $0x1] ss:$9 sm:$0xff] %v15411_v31  ;;  %v4990_v4 = vsel %vm4966_vm10, %v4957_v8, %v3794_v3  ;;  %v15519_v3 = vld [vmem:[#allocation86_spill] sm:$0xff] }
 0x7b3   : > { %4427 = vst [vmem:[#allocation1 + $0x2] ss:$9 sm:$0xff] %v15412_v63  ;;  %v3993_v35 = vpop.permute.xlu2 %3992  ;;  %v15674_v63 = vld [vmem:[#allocation279_spill] sm:$0xff] }
 0x7b4   : > { %4428 = vst [vmem:[#allocation1 + $0x3] ss:$9 sm:$0xff] %v15413_v22  ;;  %v5034_v47 = vsel %vm4999_vm11, %v4990_v4, %v3993_v35  ;;  %v15673_v22 = vld [vmem:[#allocation308_spill] sm:$0xff] }
 0x7b5   : > { %4429 = vst [vmem:[#allocation1 + $0x4] ss:$9 sm:$0xff] %v15513_v58  ;;  %5398 = vmatmul.bf16.gmra.mxu2 %v5031_v38  ;;  %v15518_v58 = vld [vmem:[#allocation87_spill] sm:$0xff]  ;;  %v14484_v38 = vrot.slane %v15519_v3, 3 }
 0x7b6   : > { %4430 = vst [vmem:[#allocation1 + $0x5] ss:$9 sm:$0xff] %v15415_v60  ;;  %v1532_v27 = vsel %vm1241_vm3, %v15518_v58, %v15517_v45  ;;  %v1535_v46 = vsel %vm1245_vm4, %v15518_v58, %v15517_v45  ;;  %v15649_v60 = vld [vmem:[#allocation44_spill] sm:$0xff] }
 0x7b7   : > { %4431 = vst [vmem:[#allocation1 + $0x6] ss:$9 sm:$0xff] %v15416_v24  ;;  %v11886_v35 = vrot.slane %v1535_v46, 2  ;;  %v15528_v46 = vld [vmem:[#allocation109_spill] sm:$0xff] }
 0x7b8   : > { %4432 = vst [vmem:[#allocation1 + $0x7] ss:$9 sm:$0xff] %v15417_v15 }
 0x7b9   : > { %15522 = vst [vmem:[#allocation141_spill] sm:$0xff] %v11886_v35  ;;  %v3054_v15 = vshrl.u32 %v11886_v35, 16 }
 0x7bb   : > { %v3597_v51 = vpop.permute.xlu2 %3596 }
 0x7bf   : > { %v4433_v7 = vld [vmem:[#allocation1] sm:$0xff] }
 0x7c0   : > { %4435 = vst [vmem:[#allocation1] ss:$9 sm:$0xff] %v15514_v49  ;;  %4545 = vrot.lane.b32.xlu1 %v4433_v7, %s8795_s29  ;;  %v3796_v7 = vpop.permute.xlu1 %3795  ;;  %v11882_v49 = vrot.slane %v1532_v27, 1  ;;  %v15527_v27 = vld [vmem:[#allocation107_spill] sm:$0xff] }
 0x7c1   : > { %4436 = vst [vmem:[#allocation1 + $0x1] ss:$9 sm:$0xff] %v15419_v43  ;;  %v15647_v43 = vld [vmem:[#allocation45_spill] sm:$0xff] }
 0x7c2   : > { %4437 = vst [vmem:[#allocation1 + $0x2] ss:$9 sm:$0xff] %v15420_v39  ;;  %v3051_v39 = vshll.u32 %v11886_v35, 16 }
 0x7c3   : > { %4438 = vst [vmem:[#allocation1 + $0x3] ss:$9 sm:$0xff] %v15421_v13  ;;  %v3995_v4 = vpop.permute.xlu2 %3994 }
 0x7c4   : > { %4439 = vst [vmem:[#allocation1 + $0x4] ss:$9 sm:$0xff] %v15515_v32  ;;  %v15523_v32 = vld [vmem:[#allocation153_spill] sm:$0xff] }
 0x7c5   : > { %4440 = vst [vmem:[#allocation1 + $0x5] ss:$9 sm:$0xff] %v15423_v55  ;;  %5403 = vmatmul.bf16.gmra.mxu2 %v5034_v47  ;;  %v4959_v14 = vsel %vm4933_vm9, %v15523_v32, %v3597_v51  ;;  %v15525_v51 = vld [vmem:[#allocation105_spill] sm:$0xff] }
 0x7c6   : > { %4441 = vst [vmem:[#allocation1 + $0x6] ss:$9 sm:$0xff] %v15424_v41  ;;  %v4992_v8 = vsel %vm4966_vm10, %v4959_v14, %v3796_v7  ;;  %v15529_v7 = vld [vmem:[#allocation110_spill] sm:$0xff] }
 0x7c7   : > { %4442 = vst [vmem:[#allocation1 + $0x7] ss:$9 sm:$0xff] %v15425_v29  ;;  %v5037_v47 = vsel %vm4999_vm11, %v4992_v8, %v3995_v4  ;;  %v15530_v14 = vld [vmem:[#allocation114_spill] sm:$0xff]  ;;  %v15531_v8 = vld [vmem:[#allocation111_spill] sm:$0xff]  ;;  %v15532_v4 = vld [vmem:[#allocation112_spill] sm:$0xff] }
 0x7c8   : > { %15521 = vst [vmem:[#allocation288_spill] sm:$0xff] %v11882_v49  ;;  %v15643_v29 = vld [vmem:[#allocation250_spill] sm:$0xff] }
 0x7ce   : > { %v4443_v34 = vld [vmem:[#allocation1] sm:$0xff] }
 0x7cf   : > { %4445 = vst [vmem:[#allocation1] ss:$9 sm:$0xff] %v11059_v2  ;;  %4547 = vrot.lane.b32.xlu1 %v4443_v34, %s8795_s29  ;;  %v11880_v2 = vsel %vm763_vm0, %v15518_v58, %v15517_v45  ;;  %v15524_v45 = vld [vmem:[#allocation101_spill] sm:$0xff]  ;;  %v15526_v58 = vld [vmem:[#allocation106_spill] sm:$0xff] }
 0x7d0   : > { %4446 = vst [vmem:[#allocation1 + $0x1] ss:$9 sm:$0xff] %v11066_v16  ;;  %v12058_v16 = vpop.permute.xlu0 %4336 }
 0x7d1   : > { %4447 = vst [vmem:[#allocation1 + $0x2] ss:$9 sm:$0xff] %v11073_v53  ;;  %v15619_v53 = vld [vmem:[#allocation94_spill] sm:$0xff] }
 0x7d2   : > { %4448 = vst [vmem:[#allocation1 + $0x3] ss:$9 sm:$0xff] %v11075_v23  ;;  %v3015_v23 = vshrl.u32 %v11810_v10, 16 }
 0x7d3   : > { %15520 = vst [vmem:[#allocation319_spill] sm:$0xff] %v11880_v2 }
 0x7d4   : > { %4449 = vst [vmem:[#allocation1 + $0x4] ss:$9 sm:$0xff] %v14484_v38  ;;  %v15537_v38 = vld [vmem:[#allocation120_spill] sm:$0xff] }
 0x7d5   : > { %4450 = vst [vmem:[#allocation1 + $0x5] ss:$9 sm:$0xff] %v11880_v2  ;;  %5408 = vmatmul.bf16.gmra.mxu2 %v5037_v47  ;;  %v15533_v47 = vld [vmem:[#allocation115_spill] sm:$0xff] }
 0x7d6   : > { %4451 = vst [vmem:[#allocation1 + $0x6] ss:$9 sm:$0xff] %v11882_v49 }
 0x7d7   : > { %4452 = vst [vmem:[#allocation1 + $0x7] ss:$9 sm:$0xff] %v11886_v35  ;;  %v15667_v35 = vld [vmem:[#allocation272_spill] sm:$0xff] }
 0x7de   : > { %v4453_v34 = vld [vmem:[#allocation1] sm:$0xff] }
 0x7df   : > { %4455 = vst [vmem:[#allocation1] ss:$9 sm:$0xff] %v15524_v45  ;;  %4549 = vrot.lane.b32.xlu1 %v4453_v34, %s8795_s29  ;;  %v15534_v34 = vld [vmem:[#allocation117_spill] sm:$0xff]  ;;  %v15535_v45 = vld [vmem:[#allocation118_spill] sm:$0xff] }
 0x7e0   : > { %4456 = vst [vmem:[#allocation1 + $0x1] ss:$9 sm:$0xff] %v15431_v50  ;;  %v15564_v50 = vld [vmem:[#allocation162_spill] sm:$0xff] }
 0x7e1   : > { %4457 = vst [vmem:[#allocation1 + $0x2] ss:$9 sm:$0xff] %v15432_v37  ;;  %v15563_v37 = vld [vmem:[#allocation145_spill] sm:$0xff] }
 0x7e2   : > { %4458 = vst [vmem:[#allocation1 + $0x3] ss:$9 sm:$0xff] %v15525_v51  ;;  %v15562_v51 = vld [vmem:[#allocation160_spill] sm:$0xff] }
 0x7e3   : > { %4459 = vst [vmem:[#allocation1 + $0x4] ss:$9 sm:$0xff] %v15526_v58  ;;  %v15536_v58 = vld [vmem:[#allocation119_spill] sm:$0xff] }
 0x7e4   : > { %4460 = vst [vmem:[#allocation1 + $0x5] ss:$9 sm:$0xff] %v15527_v27 }
 0x7e5   : > { %4461 = vst [vmem:[#allocation1 + $0x6] ss:$9 sm:$0xff] %v15528_v46  ;;  %v15538_v46 = vld [vmem:[#allocation122_spill] sm:$0xff] }
 0x7e6   : > { %4462 = vst [vmem:[#allocation1 + $0x7] ss:$9 sm:$0xff] %v15529_v7 }
 0x7ed   : > { %v4463_v32 = vld [vmem:[#allocation1] sm:$0xff] }
 0x7ee   : > { %4465 = vst [vmem:[#allocation1] ss:$9 sm:$0xff] %v15530_v14  ;;  %4551 = vrot.lane.b32.xlu1 %v4463_v32, %s8795_s29  ;;  %v15539_v32 = vld [vmem:[#allocation123_spill] sm:$0xff]  ;;  %v15540_v14 = vld [vmem:[#allocation125_spill] sm:$0xff] }
 0x7ef   : > { %4466 = vst [vmem:[#allocation1 + $0x1] ss:$9 sm:$0xff] %v15531_v8  ;;  %v15546_v8 = vld [vmem:[#allocation84_spill] sm:$0xff] }
 0x7f0   : > { %4467 = vst [vmem:[#allocation1 + $0x2] ss:$9 sm:$0xff] %v15532_v4  ;;  %v15541_v4 = vld [vmem:[#allocation126_spill] sm:$0xff] }
 0x7f1   : > { %4468 = vst [vmem:[#allocation1 + $0x3] ss:$9 sm:$0xff] %v15533_v47  ;;  %v15542_v47 = vld [vmem:[#allocation127_spill] sm:$0xff] }
 0x7f2   : > { %4469 = vst [vmem:[#allocation1 + $0x4] ss:$9 sm:$0xff] %v15534_v34  ;;  %v15543_v34 = vld [vmem:[#allocation129_spill] sm:$0xff] }
 0x7f3   : > { %4470 = vst [vmem:[#allocation1 + $0x5] ss:$9 sm:$0xff] %v15535_v45  ;;  %v15544_v45 = vld [vmem:[#allocation131_spill] sm:$0xff] }
 0x7f4   : > { %4471 = vst [vmem:[#allocation1 + $0x6] ss:$9 sm:$0xff] %v15536_v58  ;;  %v15545_v58 = vld [vmem:[#allocation132_spill] sm:$0xff] }
 0x7f5   : > { %4472 = vst [vmem:[#allocation1 + $0x7] ss:$9 sm:$0xff] %v15537_v38 }
 0x7fc   : > { %v4473_v7 = vld [vmem:[#allocation1] sm:$0xff] }
 0x7fd   : > { %4475 = vst [vmem:[#allocation1] ss:$9 sm:$0xff] %v15538_v46  ;;  %4553 = vrot.lane.b32.xlu1 %v4473_v7, %s8795_s29  ;;  %v15547_v46 = vld [vmem:[#allocation83_spill] sm:$0xff] }
 0x7fe   : > { %4476 = vst [vmem:[#allocation1 + $0x1] ss:$9 sm:$0xff] %v15539_v32  ;;  %v15548_v7 = vld [vmem:[#allocation135_spill] sm:$0xff] }
 0x7ff   : > { %4477 = vst [vmem:[#allocation1 + $0x2] ss:$9 sm:$0xff] %v15540_v14  ;;  %v14485_v32 = vrot.slane %v15548_v7, 1  ;;  %v15549_v14 = vld [vmem:[#allocation82_spill] sm:$0xff] }
 0x800   : > { %4478 = vst [vmem:[#allocation1 + $0x3] ss:$9 sm:$0xff] %v15541_v4  ;;  %v15550_v4 = vld [vmem:[#allocation136_spill] sm:$0xff] }
 0x801   : > { %4479 = vst [vmem:[#allocation1 + $0x4] ss:$9 sm:$0xff] %v15542_v47  ;;  %v11928_v27 = vrot.slane %v15550_v4, 2  ;;  %v15552_v47 = vld [vmem:[#allocation96_spill] sm:$0xff]  ;;  %v15556_v4 = vld [vmem:[#allocation151_spill] sm:$0xff] }
 0x802   : > { %4480 = vst [vmem:[#allocation1 + $0x5] ss:$9 sm:$0xff] %v15543_v34  ;;  %v15553_v34 = vld [vmem:[#allocation137_spill] sm:$0xff] }
 0x803   : > { %4481 = vst [vmem:[#allocation1 + $0x6] ss:$9 sm:$0xff] %v15544_v45  ;;  %v11932_v45 = vrot.slane %v15553_v34, 3  ;;  %v15558_v34 = vld [vmem:[#allocation155_spill] sm:$0xff] }
 0x804   : > { %4482 = vst [vmem:[#allocation1 + $0x7] ss:$9 sm:$0xff] %v15545_v58  ;;  %v15561_v58 = vld [vmem:[#allocation159_spill] sm:$0xff] }
 0x805   : > { %15551 = vst [vmem:[#allocation185_spill] sm:$0xff] %v11928_v27 }
 0x80b   : > { %v4483_v38 = vld [vmem:[#allocation1] sm:$0xff] }
 0x80c   : > { %4485 = vst [vmem:[#allocation1] ss:$9 sm:$0xff] %v15546_v8  ;;  %4555 = vrot.lane.b32.xlu1 %v4483_v38, %s8795_s29  ;;  %v15554_v38 = vld [vmem:[#allocation138_spill] sm:$0xff] }
 0x80d   : > { %4486 = vst [vmem:[#allocation1 + $0x1] ss:$9 sm:$0xff] %v15547_v46  ;;  %v15555_v46 = vld [vmem:[#allocation154_spill] sm:$0xff] }
 0x80e   : > { %4487 = vst [vmem:[#allocation1 + $0x2] ss:$9 sm:$0xff] %v15549_v14  ;;  %v15559_v14 = vld [vmem:[#allocation157_spill] sm:$0xff] }
 0x80f   : > { %4488 = vst [vmem:[#allocation1 + $0x3] ss:$9 sm:$0xff] %v15552_v47  ;;  %v15557_v47 = vld [vmem:[#allocation152_spill] sm:$0xff] }
 0x810   : > { %4489 = vst [vmem:[#allocation1 + $0x4] ss:$9 sm:$0xff] %v14485_v32  ;;  %v15560_v32 = vld [vmem:[#allocation158_spill] sm:$0xff] }
 0x811   : > { %4490 = vst [vmem:[#allocation1 + $0x5] ss:$9 sm:$0xff] %v11928_v27 }
 0x812   : > { %4491 = vst [vmem:[#allocation1 + $0x6] ss:$9 sm:$0xff] %v11932_v45 }
 0x813   : > { %4492 = vst [vmem:[#allocation1 + $0x7] ss:$9 sm:$0xff] %v15554_v38 }
 0x81a   : > { %v4493_v8 = vld [vmem:[#allocation1] sm:$0xff] }
 0x81b   : > { %4495 = vst [vmem:[#allocation1] ss:$9 sm:$0xff] %v15555_v46  ;;  %4557 = vrot.lane.b32.xlu1 %v4493_v8, %s8795_s29  ;;  %v15565_v8 = vld [vmem:[#allocation163_spill] sm:$0xff] }
 0x81c   : > { %4496 = vst [vmem:[#allocation1 + $0x1] ss:$9 sm:$0xff] %v15556_v4  ;;  %v15615_v4 = vld [vmem:[#allocation188_spill] sm:$0xff] }
 0x81d   : > { %4497 = vst [vmem:[#allocation1 + $0x2] ss:$9 sm:$0xff] %v15557_v47  ;;  %v15571_v47 = vld [vmem:[#allocation169_spill] sm:$0xff] }
 0x81e   : > { %4498 = vst [vmem:[#allocation1 + $0x3] ss:$9 sm:$0xff] %v15558_v34  ;;  %v15566_v34 = vld [vmem:[#allocation144_spill] sm:$0xff] }
 0x81f   : > { %4499 = vst [vmem:[#allocation1 + $0x4] ss:$9 sm:$0xff] %v15559_v14  ;;  %v15567_v14 = vld [vmem:[#allocation165_spill] sm:$0xff] }
 0x820   : > { %4500 = vst [vmem:[#allocation1 + $0x5] ss:$9 sm:$0xff] %v15560_v32  ;;  %v15568_v32 = vld [vmem:[#allocation166_spill] sm:$0xff] }
 0x821   : > { %4501 = vst [vmem:[#allocation1 + $0x6] ss:$9 sm:$0xff] %v15561_v58  ;;  %v15569_v58 = vld [vmem:[#allocation167_spill] sm:$0xff] }
 0x822   : > { %4502 = vst [vmem:[#allocation1 + $0x7] ss:$9 sm:$0xff] %v15562_v51  ;;  %v15570_v51 = vld [vmem:[#allocation168_spill] sm:$0xff] }
 0x823   : > { %4360 = vrot.lane.b32.xlu1 %v15563_v37, %s8794_s21  ;;  %v15572_v37 = vld [vmem:[#allocation170_spill] sm:$0xff] }
 0x829   : > { %v4503_v46 = vld [vmem:[#allocation1] sm:$0xff] }
 0x82a   : > { %4505 = vst [vmem:[#allocation1] ss:$9 sm:$0xff] %v15564_v50  ;;  %4559 = vrot.lane.b32.xlu0 %v4503_v46, %s8795_s29  ;;  %v15573_v50 = vld [vmem:[#allocation204_spill] sm:$0xff]  ;;  %v15574_v46 = vld [vmem:[#allocation285_spill] sm:$0xff] }
 0x82b   : > { %4506 = vst [vmem:[#allocation1 + $0x1] ss:$9 sm:$0xff] %v15565_v8  ;;  %3970 = vrot.lane.b32.xlu1 %v15566_v34, %s8796_s14  ;;  %v15575_v34 = vld [vmem:[#allocation174_spill] sm:$0xff] }
 0x82c   : > { %4507 = vst [vmem:[#allocation1 + $0x2] ss:$9 sm:$0xff] %v15567_v14  ;;  %v15576_v14 = vld [vmem:[#allocation171_spill] sm:$0xff] }
 0x82d   : > { %4508 = vst [vmem:[#allocation1 + $0x3] ss:$9 sm:$0xff] %v15568_v32 }
 0x82e   : > { %4509 = vst [vmem:[#allocation1 + $0x4] ss:$9 sm:$0xff] %v15569_v58  ;;  %v15577_v58 = vld [vmem:[#allocation172_spill] sm:$0xff] }
 0x82f   : > { %4510 = vst [vmem:[#allocation1 + $0x5] ss:$9 sm:$0xff] %v15570_v51  ;;  %v15578_v51 = vld [vmem:[#allocation8_spill] sm:$0xff] }
 0x830   : > { %4511 = vst [vmem:[#allocation1 + $0x6] ss:$9 sm:$0xff] %v15571_v47  ;;  %v15597_v47 = vld [vmem:[#allocation203_spill] sm:$0xff] }
 0x831   : > { %4512 = vst [vmem:[#allocation1 + $0x7] ss:$9 sm:$0xff] %v15572_v37  ;;  %v15579_v37 = vld [vmem:[#allocation177_spill] sm:$0xff] }
 0x832   : > { %3574 = vrot.lane.b32.xlu0 %v15573_v50, %s8794_s21  ;;  %v15580_v50 = vld [vmem:[#allocation286_spill] sm:$0xff] }
 0x833   : > { %4362 = vrot.lane.b32.xlu1 %v15574_v46, %s8794_s21  ;;  %v15581_v46 = vld [vmem:[#allocation317_spill] sm:$0xff] }
 0x838   : > { %v4513_v8 = vld [vmem:[#allocation1] sm:$0xff] }
 0x839   : > { %4515 = vst [vmem:[#allocation1] ss:$9 sm:$0xff] %v15575_v34 }
 0x83a   : > { %4516 = vst [vmem:[#allocation1 + $0x1] ss:$9 sm:$0xff] %v15576_v14  ;;  %4561 = vrot.lane.b32.xlu0 %v4513_v8, %s8795_s29  ;;  %v15582_v8 = vld [vmem:[#allocation128_spill] sm:$0xff] }
 0x83b   : > { %4517 = vst [vmem:[#allocation1 + $0x2] ss:$9 sm:$0xff] %v15577_v58  ;;  %3972 = vrot.lane.b32.xlu1 %v15578_v51, %s8796_s14  ;;  %v11981_v34 = vsel %vm1249_vm5, %v15582_v8, %v15581_v46  ;;  %v15586_v46 = vld [vmem:[#allocation146_spill] sm:$0xff]  ;;  %v15587_v8 = vld [vmem:[#allocation7_spill] sm:$0xff] }
 0x83c   : > { %4518 = vst [vmem:[#allocation1 + $0x3] ss:$9 sm:$0xff] %v15482_v26  ;;  %v14492_v51 = vrot.slane %v11981_v34, 3  ;;  %v15596_v26 = vld [vmem:[#allocation201_spill] sm:$0xff] }
 0x83d   : > { %4519 = vst [vmem:[#allocation1 + $0x4] ss:$9 sm:$0xff] %v15579_v37  ;;  %v15583_v37 = vld [vmem:[#allocation182_spill] sm:$0xff] }
 0x83e   : > { %4520 = vst [vmem:[#allocation1 + $0x5] ss:$9 sm:$0xff] %v15486_v20  ;;  %v15585_v20 = vld [vmem:[#allocation148_spill] sm:$0xff] }
 0x83f   : > { %4521 = vst [vmem:[#allocation1 + $0x6] ss:$9 sm:$0xff] %v15487_v21  ;;  %v15584_v21 = vld [vmem:[#allocation283_spill] sm:$0xff] }
 0x840   : > { %4522 = vst [vmem:[#allocation1 + $0x7] ss:$9 sm:$0xff] %v15488_v9  ;;  %v1832_v9 = vsel %vm1241_vm3, %v15585_v20, %v15584_v21 }
 0x842   : > { %4364 = vrot.lane.b32.xlu0 %v15580_v50, %s8794_s21  ;;  %v1835_v50 = vsel %vm1245_vm4, %v15585_v20, %v15584_v21 }
 0x847   : > { %v4523_v58 = vld [vmem:[#allocation1] sm:$0xff] }
 0x848   : > { %4527 = vst [vmem:[#allocation1 + $0x2] ss:$9 sm:$0xff] %v11202_v1  ;;  %4563 = vrot.lane.b32.xlu1 %v4523_v58, %s8795_s29  ;;  %v12002_v58 = vsel %vm763_vm0, %v15585_v20, %v15584_v21  ;;  %v12006_v1 = vrot.slane %v1835_v50, 2  ;;  %v15592_v21 = vld [vmem:[#allocation197_spill] sm:$0xff]  ;;  %v15594_v20 = vld [vmem:[#allocation199_spill] sm:$0xff]  ;;  %v15595_v50 = vld [vmem:[#allocation200_spill] sm:$0xff] }
 0x849   : > { %4528 = vst [vmem:[#allocation1 + $0x3] ss:$9 sm:$0xff] %v15583_v37  ;;  %v12004_v37 = vrot.slane %v1832_v9, 1  ;;  %v15593_v9 = vld [vmem:[#allocation198_spill] sm:$0xff]  ;;  %vm6574_vm0 = vcmask 1044484  }
 0x84a   : > { %4529 = vst [vmem:[#allocation1 + $0x4] ss:$9 sm:$0xff] %v14492_v51  ;;  %4366 = vrot.lane.b32.xlu0 %v11755_v62, %s8794_s21  ;;  %v15589_v51 = vld [vmem:[#allocation193_spill] sm:$0xff] }
 0x84b   : > { %4525 = vst [vmem:[#allocation1] ss:$9 sm:$0xff] %v15586_v46  ;;  %v15590_v46 = vld [vmem:[#allocation195_spill] sm:$0xff] }
 0x84c   : > { %4526 = vst [vmem:[#allocation1 + $0x1] ss:$9 sm:$0xff] %v15587_v8  ;;  %v15591_v8 = vld [vmem:[#allocation196_spill] sm:$0xff] }
 0x84d   : > { %15588 = vst [vmem:[#allocation12_spill] sm:$0xff] %v12006_v1 }
 0x84e   : > { %4530 = vst [vmem:[#allocation1 + $0x5] ss:$9 sm:$0xff] %v12002_v58 }
 0x84f   : > { %4531 = vst [vmem:[#allocation1 + $0x6] ss:$9 sm:$0xff] %v12004_v37 }
 0x850   : > { %4532 = vst [vmem:[#allocation1 + $0x7] ss:$9 sm:$0xff] %v12006_v1 }
 0x857   : > { %v4533_v62 = vld [vmem:[#allocation1] sm:$0xff] }
 0x858   : > { %4567 = vst [vmem:[#allocation1] ss:$9 sm:$0xff] %v15589_v51  ;;  %4565 = vrot.lane.b32.xlu1 %v4533_v62, %s8795_s29  ;;  %v15598_v51 = vld [vmem:[#allocation205_spill] sm:$0xff]  ;;  %v15599_v62 = vld [vmem:[#allocation206_spill] sm:$0xff] }
 0x859   : > { %4569 = vst [vmem:[#allocation1 + $0x1] ss:$9 sm:$0xff] %v15590_v46  ;;  %v15601_v46 = vld [vmem:[#allocation208_spill] sm:$0xff] }
 0x85a   : > { %4571 = vst [vmem:[#allocation1 + $0x2] ss:$9 sm:$0xff] %v15591_v8  ;;  %v15600_v8 = vld [vmem:[#allocation207_spill] sm:$0xff] }
 0x85b   : > { %4573 = vst [vmem:[#allocation1 + $0x3] ss:$9 sm:$0xff] %v15592_v21  ;;  %v15602_v21 = vld [vmem:[#allocation209_spill] sm:$0xff] }
 0x85c   : > { %4575 = vst [vmem:[#allocation1 + $0x4] ss:$9 sm:$0xff] %v15593_v9  ;;  %v15603_v9 = vld [vmem:[#allocation210_spill] sm:$0xff] }
 0x85d   : > { %4577 = vst [vmem:[#allocation1 + $0x5] ss:$9 sm:$0xff] %v15594_v20  ;;  %v15604_v20 = vld [vmem:[#allocation211_spill] sm:$0xff] }
 0x85e   : > { %4579 = vst [vmem:[#allocation1 + $0x6] ss:$9 sm:$0xff] %v15595_v50  ;;  %v15605_v50 = vld [vmem:[#allocation214_spill] sm:$0xff] }
 0x85f   : > { %4581 = vst [vmem:[#allocation1 + $0x7] ss:$9 sm:$0xff] %v15596_v26 }
 0x866   : > { %v4582_v14 = vld [vmem:[#allocation1] sm:$0xff] }
 0x867   : > { %4584 = vst [vmem:[#allocation1] ss:$9 sm:$0xff] %v15597_v47  ;;  %4750 = vrot.lane.b32.xlu2 %v4582_v14, %s8796_s14  ;;  %v15606_v47 = vld [vmem:[#allocation216_spill] sm:$0xff]  ;;  %v15607_v14 = vld [vmem:[#allocation217_spill] sm:$0xff] }
 0x868   : > { %4585 = vst [vmem:[#allocation1 + $0x1] ss:$9 sm:$0xff] %v15598_v51  ;;  %v15608_v51 = vld [vmem:[#allocation218_spill] sm:$0xff] }
 0x869   : > { %4586 = vst [vmem:[#allocation1 + $0x2] ss:$9 sm:$0xff] %v15599_v62  ;;  %v15609_v62 = vld [vmem:[#allocation219_spill] sm:$0xff] }
 0x86a   : > { %4587 = vst [vmem:[#allocation1 + $0x3] ss:$9 sm:$0xff] %v15600_v8  ;;  %v15610_v8 = vld [vmem:[#allocation220_spill] sm:$0xff] }
 0x86b   : > { %4588 = vst [vmem:[#allocation1 + $0x4] ss:$9 sm:$0xff] %v15601_v46  ;;  %v15611_v46 = vld [vmem:[#allocation221_spill] sm:$0xff] }
 0x86c   : > { %4589 = vst [vmem:[#allocation1 + $0x5] ss:$9 sm:$0xff] %v15602_v21  ;;  %v15612_v21 = vld [vmem:[#allocation222_spill] sm:$0xff] }
 0x86d   : > { %4590 = vst [vmem:[#allocation1 + $0x6] ss:$9 sm:$0xff] %v15603_v9  ;;  %v15613_v9 = vld [vmem:[#allocation36_spill] sm:$0xff] }
 0x86e   : > { %4591 = vst [vmem:[#allocation1 + $0x7] ss:$9 sm:$0xff] %v15604_v20  ;;  %v14497_v20 = vrot.slane %v15613_v9, 1 }
 0x875   : > { %v4592_v26 = vld [vmem:[#allocation1] sm:$0xff] }
 0x876   : > { %4594 = vst [vmem:[#allocation1] ss:$9 sm:$0xff] %v15605_v50  ;;  %4752 = vrot.lane.b32.xlu2 %v4592_v26, %s8796_s14  ;;  %v15614_v50 = vrot.slane %v15502_v56, 1  ;;  %v3004_v26 = vshll.u32 %v11806_v54, 16  ;;  %v15617_v56 = vld [vmem:[#allocation190_spill] sm:$0xff] }
 0x877   : > { %4595 = vst [vmem:[#allocation1 + $0x1] ss:$9 sm:$0xff] %v15606_v47 }
 0x878   : > { %4596 = vst [vmem:[#allocation1 + $0x2] ss:$9 sm:$0xff] %v15607_v14  ;;  %v2999_v32 = vshrl.u32 %v15614_v50, 16  ;;  %v3007_v14 = vshrl.u32 %v11806_v54, 16 }
 0x879   : > { %4597 = vst [vmem:[#allocation1 + $0x3] ss:$9 sm:$0xff] %v15608_v51  ;;  %v3012_v51 = vshll.u32 %v11810_v10, 16 }
 0x87a   : > { %4598 = vst [vmem:[#allocation1 + $0x4] ss:$9 sm:$0xff] %v15609_v62  ;;  %v3019_v62 = vshll.u32 %v15505_v42, 16  ;;  %v3006_v50 = vsel %vm9852_vm8, %v2999_v32, %v3004_v26  ;;  %v12064_v26 = vpop.permute.xlu0 %4338 }
 0x87b   : > { %4599 = vst [vmem:[#allocation1 + $0x5] ss:$9 sm:$0xff] %v15610_v8  ;;  %v15616_v8 = vld [vmem:[#allocation189_spill] sm:$0xff] }
 0x87c   : > { %4600 = vst [vmem:[#allocation1 + $0x6] ss:$9 sm:$0xff] %v15611_v46  ;;  %v3027_v46 = vshll.u32 %v14497_v20, 16  ;;  %v15641_v20 = vld [vmem:[#allocation248_spill] sm:$0xff] }
 0x87d   : > { %4601 = vst [vmem:[#allocation1 + $0x7] ss:$9 sm:$0xff] %v15612_v21  ;;  %v15727_v21 = vld [vmem:[#allocation11_spill] sm:$0xff] }
 0x884   : > { %v4602_v47 = vld [vmem:[#allocation1] sm:$0xff] }
 0x885   : > { %4604 = vst [vmem:[#allocation1] ss:$9 sm:$0xff] %v15615_v4  ;;  %4754 = vrot.lane.b32.xlu2 %v4602_v47, %s8796_s14  ;;  %v3014_v4 = vsel %vm9852_vm8, %v3007_v14, %v3012_v51  ;;  %v3022_v47 = vshrl.u32 %v15505_v42, 16  ;;  %v15621_v14 = vld [vmem:[#allocation226_spill] sm:$0xff]  ;;  %v15622_v51 = vld [vmem:[#allocation227_spill] sm:$0xff] }
 0x886   : > { %4605 = vst [vmem:[#allocation1 + $0x1] ss:$9 sm:$0xff] %v15616_v8  ;;  %v3021_v8 = vsel %vm9852_vm8, %v3015_v23, %v3019_v62  ;;  %v15624_v23 = vld [vmem:[#allocation229_spill] sm:$0xff]  ;;  %v15625_v62 = vld [vmem:[#allocation230_spill] sm:$0xff] }
 0x887   : > { %4606 = vst [vmem:[#allocation1 + $0x2] ss:$9 sm:$0xff] %v15617_v56  ;;  %v3029_v56 = vsel %vm9852_vm8, %v3022_v47, %v3027_v46  ;;  %v15626_v46 = vld [vmem:[#allocation231_spill] sm:$0xff]  ;;  %v12075_v47 = vpop.permute.xlu0 %4340 }
 0x888   : > { %4607 = vst [vmem:[#allocation1 + $0x3] ss:$9 sm:$0xff] %v15619_v53  ;;  %v15620_v53 = vld [vmem:[#allocation224_spill] sm:$0xff] }
 0x889   : > { %4609 = vst [vmem:[#allocation1 + $0x4] ss:$9 sm:$0xff] %v3006_v50  ;;  %v15623_v50 = vld [vmem:[#allocation228_spill] sm:$0xff] }
 0x88a   : > { %4611 = vst [vmem:[#allocation1 + $0x5] ss:$9 sm:$0xff] %v3014_v4  ;;  %v15627_v4 = vld [vmem:[#allocation232_spill] sm:$0xff] }
 0x88b   : > { %4613 = vst [vmem:[#allocation1 + $0x6] ss:$9 sm:$0xff] %v3021_v8 }
 0x88c   : > { %4615 = vst [vmem:[#allocation1 + $0x7] ss:$9 sm:$0xff] %v3029_v56  ;;  %v15628_v56 = vld [vmem:[#allocation233_spill] sm:$0xff] }
 0x893   : > { %v4616_v32 = vld [vmem:[#allocation1] sm:$0xff] }
 0x894   : > { %4618 = vst [vmem:[#allocation1] ss:$9 sm:$0xff] %v15620_v53  ;;  %4756 = vrot.lane.b32.xlu2 %v4616_v32, %s8796_s14  ;;  %v15629_v32 = vld [vmem:[#allocation235_spill] sm:$0xff]  ;;  %v15630_v53 = vld [vmem:[#allocation236_spill] sm:$0xff] }
 0x895   : > { %4619 = vst [vmem:[#allocation1 + $0x1] ss:$9 sm:$0xff] %v15621_v14  ;;  %v15631_v14 = vld [vmem:[#allocation237_spill] sm:$0xff] }
 0x896   : > { %4620 = vst [vmem:[#allocation1 + $0x2] ss:$9 sm:$0xff] %v15622_v51  ;;  %v15632_v51 = vld [vmem:[#allocation238_spill] sm:$0xff] }
 0x897   : > { %4621 = vst [vmem:[#allocation1 + $0x3] ss:$9 sm:$0xff] %v15623_v50  ;;  %v12083_v50 = vpop.permute.xlu0 %4342 }
 0x898   : > { %4622 = vst [vmem:[#allocation1 + $0x4] ss:$9 sm:$0xff] %v15624_v23  ;;  %v15633_v23 = vld [vmem:[#allocation239_spill] sm:$0xff] }
 0x899   : > { %4623 = vst [vmem:[#allocation1 + $0x5] ss:$9 sm:$0xff] %v15625_v62  ;;  %v15634_v62 = vld [vmem:[#allocation240_spill] sm:$0xff] }
 0x89a   : > { %4624 = vst [vmem:[#allocation1 + $0x6] ss:$9 sm:$0xff] %v15626_v46  ;;  %v12087_v46 = vpop.permute.xlu1 %4535 }
 0x89b   : > { %4625 = vst [vmem:[#allocation1 + $0x7] ss:$9 sm:$0xff] %v15627_v4  ;;  %v15635_v4 = vld [vmem:[#allocation241_spill] sm:$0xff] }
 0x8a2   : > { %v4626_v8 = vld [vmem:[#allocation1] sm:$0xff] }
 0x8a3   : > { %4628 = vst [vmem:[#allocation1] ss:$9 sm:$0xff] %v15628_v56  ;;  %4758 = vrot.lane.b32.xlu2 %v4626_v8, %s8796_s14  ;;  %v12090_v8 = vpop.permute.xlu0 %4344 }
 0x8a4   : > { %4629 = vst [vmem:[#allocation1 + $0x1] ss:$9 sm:$0xff] %v15629_v32  ;;  %v12092_v32 = vpop.permute.xlu1 %4537 }
 0x8a5   : > { %4630 = vst [vmem:[#allocation1 + $0x2] ss:$9 sm:$0xff] %v15630_v53  ;;  %v15636_v53 = vld [vmem:[#allocation242_spill] sm:$0xff] }
 0x8a6   : > { %4631 = vst [vmem:[#allocation1 + $0x3] ss:$9 sm:$0xff] %v15631_v14  ;;  %v15637_v14 = vld [vmem:[#allocation244_spill] sm:$0xff] }
 0x8a7   : > { %4632 = vst [vmem:[#allocation1 + $0x4] ss:$9 sm:$0xff] %v15632_v51  ;;  %v15638_v51 = vld [vmem:[#allocation245_spill] sm:$0xff] }
 0x8a8   : > { %4633 = vst [vmem:[#allocation1 + $0x5] ss:$9 sm:$0xff] %v15633_v23  ;;  %v15639_v23 = vld [vmem:[#allocation246_spill] sm:$0xff] }
 0x8a9   : > { %4634 = vst [vmem:[#allocation1 + $0x6] ss:$9 sm:$0xff] %v15634_v62  ;;  %v15640_v62 = vld [vmem:[#allocation247_spill] sm:$0xff] }
 0x8aa   : > { %4635 = vst [vmem:[#allocation1 + $0x7] ss:$9 sm:$0xff] %v15635_v4  ;;  %v15642_v4 = vld [vmem:[#allocation249_spill] sm:$0xff] }
 0x8ab   : > { %v12105_v55 = vpop.permute.xlu0 %4346 }
 0x8ac   : > { %v12103_v41 = vpop.permute.xlu1 %4539 }
 0x8b1   : > { %v4636_v56 = vld [vmem:[#allocation1] sm:$0xff] }
 0x8b2   : > { %4638 = vst [vmem:[#allocation1] ss:$9 sm:$0xff] %v15636_v53  ;;  %4760 = vrot.lane.b32.xlu2 %v4636_v56, %s8796_s14  ;;  %v15644_v53 = vld [vmem:[#allocation89_spill] sm:$0xff]  ;;  %v3038_v56 = vshrl.u32 %v11880_v2, 16 }
 0x8b3   : > { %4639 = vst [vmem:[#allocation1 + $0x1] ss:$9 sm:$0xff] %v15637_v14  ;;  %v3035_v14 = vshll.u32 %v11880_v2, 16  ;;  %v15648_v24 = vrot.slane %v15644_v53, 3  ;;  %v15666_v53 = vld [vmem:[#allocation271_spill] sm:$0xff] }
 0x8b4   : > { %4640 = vst [vmem:[#allocation1 + $0x2] ss:$9 sm:$0xff] %v15638_v51  ;;  %v3043_v51 = vshll.u32 %v11882_v49, 16 }
 0x8b5   : > { %4641 = vst [vmem:[#allocation1 + $0x3] ss:$9 sm:$0xff] %v15639_v23  ;;  %v15645_v23 = vld [vmem:[#allocation40_spill] sm:$0xff] }
 0x8b6   : > { %4642 = vst [vmem:[#allocation1 + $0x4] ss:$9 sm:$0xff] %v15640_v62  ;;  %v12111_v62 = vpop.permute.xlu1 %4541 }
 0x8b7   : > { %4643 = vst [vmem:[#allocation1 + $0x5] ss:$9 sm:$0xff] %v15641_v20  ;;  %v15646_v20 = vrot.slane %v15519_v3, 3  ;;  %v15650_v3 = vld [vmem:[#allocation223_spill] sm:$0xff] }
 0x8b8   : > { %4644 = vst [vmem:[#allocation1 + $0x6] ss:$9 sm:$0xff] %v15642_v4  ;;  %v3046_v4 = vshrl.u32 %v11882_v49, 16  ;;  %v12129_v49 = vpop.permute.xlu0 %4348 }
 0x8b9   : > { %4645 = vst [vmem:[#allocation1 + $0x7] ss:$9 sm:$0xff] %v15643_v29  ;;  %v3031_v29 = vshrl.u32 %v15646_v20, 16  ;;  %v3045_v20 = vsel %vm9852_vm8, %v3038_v56, %v3043_v51  ;;  %v15652_v56 = vld [vmem:[#allocation257_spill] sm:$0xff] }
 0x8c0   : > { %v4646_v13 = vld [vmem:[#allocation1] sm:$0xff] }
 0x8c1   : > { %4648 = vst [vmem:[#allocation1] ss:$9 sm:$0xff] %v15645_v23  ;;  %4762 = vrot.lane.b32.xlu2 %v4646_v13, %s8796_s14  ;;  %v3059_v23 = vshll.u32 %v15648_v24, 16  ;;  %v3037_v13 = vsel %vm9852_vm8, %v3031_v29, %v3035_v14  ;;  %v12137_v29 = vpop.permute.xlu0 %4350 }
 0x8c2   : > { %4649 = vst [vmem:[#allocation1 + $0x1] ss:$9 sm:$0xff] %v15647_v43  ;;  %v3053_v43 = vsel %vm9852_vm8, %v3046_v4, %v3051_v39  ;;  %v15653_v39 = vld [vmem:[#allocation258_spill] sm:$0xff]  ;;  %v15654_v4 = vld [vmem:[#allocation259_spill] sm:$0xff] }
 0x8c3   : > { %4650 = vst [vmem:[#allocation1 + $0x2] ss:$9 sm:$0xff] %v15649_v60  ;;  %v3061_v24 = vsel %vm9852_vm8, %v3054_v15, %v3059_v23  ;;  %v12135_v60 = vpop.permute.xlu1 %4543  ;;  %v15655_v15 = vld [vmem:[#allocation260_spill] sm:$0xff]  ;;  %v15656_v23 = vld [vmem:[#allocation261_spill] sm:$0xff] }
 0x8c4   : > { %4651 = vst [vmem:[#allocation1 + $0x3] ss:$9 sm:$0xff] %v15650_v3  ;;  %v15651_v3 = vld [vmem:[#allocation255_spill] sm:$0xff] }
 0x8c5   : > { %4653 = vst [vmem:[#allocation1 + $0x4] ss:$9 sm:$0xff] %v3037_v13  ;;  %v15657_v13 = vld [vmem:[#allocation262_spill] sm:$0xff] }
 0x8c6   : > { %4655 = vst [vmem:[#allocation1 + $0x5] ss:$9 sm:$0xff] %v3045_v20  ;;  %v15658_v20 = vld [vmem:[#allocation263_spill] sm:$0xff] }
 0x8c7   : > { %4657 = vst [vmem:[#allocation1 + $0x6] ss:$9 sm:$0xff] %v3053_v43 }
 0x8c8   : > { %4659 = vst [vmem:[#allocation1 + $0x7] ss:$9 sm:$0xff] %v3061_v24 }
 0x8c9   : > { %v12150_v43 = vpop.permute.xlu0 %4352 }
 0x8ca   : > { %15659 = vst [vmem:[#allocation14_spill] sm:$0xff] %v12150_v43 }
 0x8cb   : > { %v12142_v51 = vpop.permute.xlu1 %4545 }
 0x8cf   : > { %v4660_v14 = vld [vmem:[#allocation1] sm:$0xff] }
 0x8d0   : > { %4662 = vst [vmem:[#allocation1] ss:$9 sm:$0xff] %v15651_v3  ;;  %4764 = vrot.lane.b32.xlu2 %v4660_v14, %s8796_s14  ;;  %v15660_v3 = vld [vmem:[#allocation264_spill] sm:$0xff] }
 0x8d1   : > { %4663 = vst [vmem:[#allocation1 + $0x1] ss:$9 sm:$0xff] %v15652_v56  ;;  %v15661_v56 = vld [vmem:[#allocation266_spill] sm:$0xff] }
 0x8d2   : > { %4664 = vst [vmem:[#allocation1 + $0x2] ss:$9 sm:$0xff] %v15653_v39  ;;  %v15662_v39 = vld [vmem:[#allocation267_spill] sm:$0xff] }
 0x8d3   : > { %4665 = vst [vmem:[#allocation1 + $0x3] ss:$9 sm:$0xff] %v15654_v4  ;;  %v12152_v24 = vpop.permute.xlu1 %4547 }
 0x8d4   : > { %4666 = vst [vmem:[#allocation1 + $0x4] ss:$9 sm:$0xff] %v15655_v15  ;;  %v15663_v15 = vld [vmem:[#allocation268_spill] sm:$0xff] }
 0x8d5   : > { %4667 = vst [vmem:[#allocation1 + $0x5] ss:$9 sm:$0xff] %v15656_v23  ;;  %v15664_v23 = vld [vmem:[#allocation269_spill] sm:$0xff] }
 0x8d6   : > { %4668 = vst [vmem:[#allocation1 + $0x6] ss:$9 sm:$0xff] %v15657_v13  ;;  %v4355_v13 = vpop.permute.xlu0 %4354 }
 0x8d7   : > { %4669 = vst [vmem:[#allocation1 + $0x7] ss:$9 sm:$0xff] %v15658_v20  ;;  %v15665_v20 = vld [vmem:[#allocation270_spill] sm:$0xff] }
 0x8db   : > { %v12158_v4 = vpop.permute.xlu1 %4549 }
 0x8de   : > { %v4670_v14 = vld [vmem:[#allocation1] sm:$0xff]  ;;  %v4357_v2 = vpop.permute.xlu0 %4356 }
 0x8df   : > { %4672 = vst [vmem:[#allocation1] ss:$9 sm:$0xff] %v15660_v3  ;;  %4766 = vrot.lane.b32.xlu2 %v4670_v14, %s8796_s14 }
 0x8e0   : > { %4673 = vst [vmem:[#allocation1 + $0x1] ss:$9 sm:$0xff] %v15661_v56  ;;  %v15669_v56 = vld [vmem:[#allocation274_spill] sm:$0xff] }
 0x8e1   : > { %4674 = vst [vmem:[#allocation1 + $0x2] ss:$9 sm:$0xff] %v15662_v39  ;;  %v15670_v39 = vld [vmem:[#allocation276_spill] sm:$0xff] }
 0x8e2   : > { %4675 = vst [vmem:[#allocation1 + $0x3] ss:$9 sm:$0xff] %v15663_v15  ;;  %v15671_v15 = vld [vmem:[#allocation277_spill] sm:$0xff] }
 0x8e3   : > { %4676 = vst [vmem:[#allocation1 + $0x4] ss:$9 sm:$0xff] %v15664_v23  ;;  %v12165_v3 = vpop.permute.xlu1 %4551  ;;  %v15672_v23 = vld [vmem:[#allocation278_spill] sm:$0xff] }
 0x8e4   : > { %4677 = vst [vmem:[#allocation1 + $0x5] ss:$9 sm:$0xff] %v15665_v20  ;;  %v5067_v20 = vsel %vm4933_vm9, %v15673_v22, %v4355_v13  ;;  %v8615_v22 = vld [vmem:[%s13832_s3 + $0x70] sm:$0xff] }
 0x8e5   : > { %4678 = vst [vmem:[#allocation1 + $0x6] ss:$9 sm:$0xff] %v15666_v53 }
 0x8e6   : > { %4679 = vst [vmem:[#allocation1 + $0x7] ss:$9 sm:$0xff] %v15667_v35  ;;  %v4359_v13 = vpop.permute.xlu0 %4358 }
 0x8e7   : > { %15668 = vst [vmem:[#allocation15_spill] sm:$0xff] %v12165_v3  ;;  %v3068_v3 = vshll.u32 %v11928_v27, 16 }
 0x8eb   : > { %v4554_v53 = vpop.permute.xlu1 %4553 }
 0x8ec   : > { %v12176_v35 = vsel %vm4966_vm10, %v5067_v20, %v4554_v53 }
 0x8ed   : > { %v4680_v14 = vld [vmem:[#allocation1] sm:$0xff]  ;;  %15675 = vst [vmem:[#allocation20_spill] sm:$0xff] %v12176_v35  ;;  %v3086_v35 = vshrl.u32 %v15554_v38, 16 }
 0x8ee   : > { %4682 = vst [vmem:[#allocation1] ss:$9 sm:$0xff] %v15669_v56  ;;  %4768 = vrot.lane.b32.xlu2 %v4680_v14, %s8796_s14  ;;  %v8616_v56 = vld [vmem:[%s13832_s3 + $0x78] sm:$0xff]  ;;  %v15676_v14 = vld [vmem:[#allocation280_spill] sm:$0xff] }
 0x8ef   : > { %4683 = vst [vmem:[#allocation1 + $0x1] ss:$9 sm:$0xff] %v15670_v39  ;;  %v15677_v39 = vld [vmem:[#allocation281_spill] sm:$0xff]  ;;  %5429 = vmatpush.bf16.msrb.mxu3 %v8616_v56  ;;  %v15681_v56 = vld [vmem:[#allocation139_spill] sm:$0xff] }
 0x8f0   : > { %4684 = vst [vmem:[#allocation1 + $0x2] ss:$9 sm:$0xff] %v15671_v15  ;;  %v15678_v15 = vld [vmem:[#allocation282_spill] sm:$0xff] }
 0x8f1   : > { %4685 = vst [vmem:[#allocation1 + $0x3] ss:$9 sm:$0xff] %v15672_v23 }
 0x8f2   : > { %4686 = vst [vmem:[#allocation1 + $0x4] ss:$9 sm:$0xff] %v15674_v63  ;;  %v15679_v63 = vld [vmem:[#allocation100_spill] sm:$0xff] }
 0x8f3   : > { %4687 = vst [vmem:[#allocation1 + $0x5] ss:$9 sm:$0xff] %v15676_v14  ;;  %5430 = vmatpush.bf16.msrb.mxu3 %v8615_v22  ;;  %v5069_v23 = vsel %vm4933_vm9, %v15679_v63, %v4357_v2  ;;  %v4556_v20 = vpop.permute.xlu1 %4555  ;;  %v8614_v14 = vld [vmem:[%s13832_s3 + $0x68] sm:$0xff]  ;;  %v3071_v22 = vshrl.u32 %v11928_v27, 16  ;;  %v3076_v2 = vshll.u32 %v11932_v45, 16  ;;  %v15683_v63 = vld [vmem:[#allocation251_spill] sm:$0xff] }
 0x8f4   : > { %4688 = vst [vmem:[#allocation1 + $0x6] ss:$9 sm:$0xff] %v15677_v39  ;;  %v12190_v53 = vsel %vm4966_vm10, %v5069_v23, %v4556_v20  ;;  %v14516_v39 = vrot.slane %v15681_v56, 1  ;;  %v3083_v23 = vshll.u32 %v15554_v38, 16  ;;  %v15684_v20 = vld [vmem:[#allocation252_spill] sm:$0xff] }
 0x8f5   : > { %4689 = vst [vmem:[#allocation1 + $0x7] ss:$9 sm:$0xff] %v15678_v15  ;;  %v15682_v15 = vrot.slane %v15548_v7, 1  ;;  %v8613_v7 = vld [vmem:[%s13832_s3 + $0x60] sm:$0xff]  ;;  %v15687_v56 = vld [vmem:[#allocation316_spill] sm:$0xff] }
 0x8f6   : > { %15680 = vst [vmem:[#allocation28_spill] sm:$0xff] %v12190_v53  ;;  %v15686_v53 = vld [vmem:[#allocation41_spill] sm:$0xff] }
 0x8f7   : > { %v3063_v31 = vshrl.u32 %v15682_v15, 16  ;;  %5431 = vmatpush.bf16.msrb.mxu3 %v8614_v14  ;;  %v3091_v15 = vshll.u32 %v14516_v39, 16  ;;  %v15685_v14 = vld [vmem:[#allocation253_spill] sm:$0xff]  ;;  %v5071_v39 = vsel %vm4933_vm9, %v15687_v56, %v4359_v13 }
 0x8f8   : > { %v8611_v13 = vld [vmem:[%s13832_s3 + $0x50] sm:$0xff] }
 0x8f9   : > { %v3070_v27 = vsel %vm9852_vm8, %v3063_v31, %v3068_v3 }
 0x8fb   : > { %5432 = vmatpush.bf16.msrb.mxu3 %v8613_v7  ;;  %v4558_v19 = vpop.permute.xlu1 %4557 }
 0x8fc   : > { %v4690_v43 = vld [vmem:[#allocation1] sm:$0xff]  ;;  %v12227_v3 = vsel %vm4966_vm10, %v5071_v39, %v4558_v19  ;;  %v15688_v19 = vld [vmem:[#allocation46_spill] sm:$0xff] }
 0x8fd   : > { %4692 = vst [vmem:[#allocation1] ss:$9 sm:$0xff] %v15683_v63  ;;  %4770 = vrot.lane.b32.xlu2 %v4690_v43, %s8796_s14  ;;  %v3079_v63 = vshrl.u32 %v11932_v45, 16  ;;  %v12215_v43 = vpop.f32.mrf.mxu2 }
 0x8fe   : > { %4693 = vst [vmem:[#allocation1 + $0x1] ss:$9 sm:$0xff] %v15684_v20  ;;  %v3078_v20 = vsel %vm9852_vm8, %v3071_v22, %v3076_v2 }
 0x8ff   : > { %4694 = vst [vmem:[#allocation1 + $0x2] ss:$9 sm:$0xff] %v15685_v14  ;;  %v12222_v14 = vpop.permute.xlu0 %3572  ;;  %v3085_v31 = vsel %vm9852_vm8, %v3079_v63, %v3083_v23  ;;  %v8610_v23 = vld [vmem:[%s13832_s3 + $0x48] sm:$0xff]  ;;  %v15690_v63 = vld [vmem:[#allocation289_spill] sm:$0xff] }
 0x900   : > { %4695 = vst [vmem:[#allocation1 + $0x3] ss:$9 sm:$0xff] %v15686_v53  ;;  %v8612_v53 = vld [vmem:[%s13832_s3 + $0x58] sm:$0xff] }
 0x901   : > { %4697 = vst [vmem:[#allocation1 + $0x4] ss:$9 sm:$0xff] %v3070_v27  ;;  %v3093_v27 = vsel %vm9852_vm8, %v3086_v35, %v3091_v15  ;;  %5433 = vmatpush.bf16.msrb.mxu3 %v8612_v53  ;;  %v15689_v15 = vld [vmem:[#allocation287_spill] sm:$0xff] }
 0x902   : > { %4699 = vst [vmem:[#allocation1 + $0x5] ss:$9 sm:$0xff] %v3078_v20  ;;  %v15691_v20 = vld [vmem:[#allocation290_spill] sm:$0xff]  ;;  %v15692_v53 = vld [vmem:[#allocation291_spill] sm:$0xff] }
 0x903   : > { %4701 = vst [vmem:[#allocation1 + $0x6] ss:$9 sm:$0xff] %v3085_v31  ;;  %v4361_v56 = vpop.permute.xlu1 %4360  ;;  %v8609_v31 = vld [vmem:[%s13832_s3 + $0x40] sm:$0xff] }
 0x904   : > { %4703 = vst [vmem:[#allocation1 + $0x7] ss:$9 sm:$0xff] %v3093_v27  ;;  %v5073_v39 = vsel %vm4933_vm9, %v15688_v19, %v4361_v56  ;;  %v15693_v27 = vld [vmem:[#allocation292_spill] sm:$0xff]  ;;  %v15695_v56 = vld [vmem:[#allocation183_spill] sm:$0xff]  ;;  %v15696_v19 = vld [vmem:[#allocation294_spill] sm:$0xff] }
 0x905   : > { %5434 = vmatpush.bf16.msrb.mxu3 %v8611_v13  ;;  %v12237_v2 = vpop.f32.mrf.mxu2  ;;  %v15694_v13 = vld [vmem:[#allocation293_spill] sm:$0xff] }
 0x907   : > { %v4560_v22 = vpop.permute.xlu0 %4559 }
 0x908   : > { %v12245_v7 = vsel %vm4966_vm10, %v5073_v39, %v4560_v22  ;;  %v5049_v22 = vsel %vm4933_vm9, %v15695_v56, %v12058_v16  ;;  %v15700_v16 = vld [vmem:[#allocation300_spill] sm:$0xff] }
 0x909   : > { %5435 = vmatpush.bf16.msrb.mxu3 %v8610_v23  ;;  %v5081_v39 = vsel %vm4966_vm10, %v5049_v22, %v12087_v46  ;;  %v4751_v23 = vpop.permute.xlu2 %4750  ;;  %v15701_v46 = vld [vmem:[#allocation301_spill] sm:$0xff]  ;;  %v15704_v22 = vld [vmem:[#allocation303_spill] sm:$0xff] }
 0x90b   : > { %v4704_v35 = vld [vmem:[#allocation1] sm:$0xff] }
 0x90c   : > { %4706 = vst [vmem:[#allocation1] ss:$9 sm:$0xff] %v15689_v15  ;;  %4772 = vrot.lane.b32.xlu2 %v4704_v35, %s8796_s14  ;;  %v15697_v35 = vld [vmem:[#allocation295_spill] sm:$0xff]  ;;  %v5113_v15 = vsel %vm4999_vm11, %v5081_v39, %v4751_v23  ;;  %v15706_v39 = vld [vmem:[#allocation305_spill] sm:$0xff]  ;;  %v15707_v23 = vld [vmem:[#allocation234_spill] sm:$0xff] }
 0x90d   : > { %4707 = vst [vmem:[#allocation1 + $0x1] ss:$9 sm:$0xff] %v15690_v63  ;;  %5436 = vmatpush.bf16.msrb.mxu3 %v8609_v31  ;;  %v12265_v63 = vpop.f32.mrf.mxu2 }
 0x90e   : > { %4708 = vst [vmem:[#allocation1 + $0x2] ss:$9 sm:$0xff] %v15691_v20  ;;  %v15698_v20 = vld [vmem:[#allocation5_spill] sm:$0xff] }
 0x90f   : > { %4709 = vst [vmem:[#allocation1 + $0x3] ss:$9 sm:$0xff] %v15692_v53 }
 0x910   : > { %4710 = vst [vmem:[#allocation1 + $0x4] ss:$9 sm:$0xff] %v15693_v27  ;;  %5437 = vmatmul.bf16.vlgmr.msrb.gmra.mxu3 %v5113_v15  ;;  %v15699_v27 = vld [vmem:[#allocation298_spill] sm:$0xff] }
 0x911   : > { %4711 = vst [vmem:[#allocation1 + $0x5] ss:$9 sm:$0xff] %v15694_v13  ;;  %v4753_v53 = vpop.permute.xlu2 %4752  ;;  %v15702_v13 = vld [vmem:[#allocation302_spill] sm:$0xff] }
 0x912   : > { %4712 = vst [vmem:[#allocation1 + $0x6] ss:$9 sm:$0xff] %v15696_v19  ;;  %v15705_v19 = vld [vmem:[#allocation304_spill] sm:$0xff]  ;;  %v15708_v15 = vld [vmem:[#allocation306_spill] sm:$0xff] }
 0x913   : > { %4713 = vst [vmem:[#allocation1 + $0x7] ss:$9 sm:$0xff] %v15697_v35  ;;  %v5051_v35 = vsel %vm4933_vm9, %v15707_v23, %v12064_v26  ;;  %v15712_v26 = vld [vmem:[#allocation310_spill] sm:$0xff]  ;;  %v15714_v23 = vld [vmem:[#allocation312_spill] sm:$0xff] }
 0x914   : > { %3771 = vrot.lane.b32.xlu2 %v15698_v20, %s8795_s29  ;;  %v5083_v20 = vsel %vm4966_vm10, %v5051_v35, %v12092_v32  ;;  %v15713_v32 = vld [vmem:[#allocation311_spill] sm:$0xff]  ;;  %v15715_v35 = vld [vmem:[#allocation313_spill] sm:$0xff] }
 0x915   : > { %v12274_v56 = vpop.f32.mrf.mxu2 }
 0x916   : > { %15703 = vst [vmem:[#allocation47_spill] sm:$0xff] %v12274_v56 }
 0x91a   : > { %v4714_v31 = vld [vmem:[#allocation1] sm:$0xff] }
 0x91b   : > { %4716 = vst [vmem:[#allocation1] ss:$9 sm:$0xff] %v15699_v27  ;;  %v5116_v27 = vsel %vm4999_vm11, %v5083_v20, %v4753_v53  ;;  %v8618_v53 = vld [vmem:[%s13832_s3 + $0x88] sm:$0xff]  ;;  %v8617_v20 = vld [vmem:[%s13832_s3 + $0x80] sm:$0xff] }
 0x91c   : > { %4717 = vst [vmem:[#allocation1 + $0x1] ss:$9 sm:$0xff] %v15700_v16  ;;  %4774 = vrot.lane.b32.xlu2 %v4714_v31, %s8796_s14  ;;  %v4755_v31 = vpop.permute.xlu2 %4754  ;;  %v15709_v16 = vld [vmem:[#allocation6_spill] sm:$0xff]  ;;  %5524 = vmatpush.bf16.msrb.mxu2 %v8618_v53 }
 0x91d   : > { %4718 = vst [vmem:[#allocation1 + $0x2] ss:$9 sm:$0xff] %v15701_v46  ;;  %v12288_v46 = vpop.f32.mrf.mxu2 }
 0x91e   : > { %4719 = vst [vmem:[#allocation1 + $0x3] ss:$9 sm:$0xff] %v15702_v13 }
 0x91f   : > { %4720 = vst [vmem:[#allocation1 + $0x4] ss:$9 sm:$0xff] %v15704_v22  ;;  %v15710_v22 = vld [vmem:[#allocation307_spill] sm:$0xff] }
 0x920   : > { %4721 = vst [vmem:[#allocation1 + $0x5] ss:$9 sm:$0xff] %v15705_v19  ;;  %5442 = vmatmul.bf16.gmra.mxu3 %v5116_v27  ;;  %v15717_v27 = vld [vmem:[#allocation315_spill] sm:$0xff]  ;;  %5525 = vmatpush.bf16.msrb.mxu2 %v8617_v20  ;;  %v15723_v20 = vld [vmem:[#allocation134_spill] sm:$0xff] }
 0x921   : > { %4722 = vst [vmem:[#allocation1 + $0x6] ss:$9 sm:$0xff] %v15706_v39  ;;  %v15711_v39 = vld [vmem:[#allocation309_spill] sm:$0xff] }
 0x922   : > { %4723 = vst [vmem:[#allocation1 + $0x7] ss:$9 sm:$0xff] %v15708_v15  ;;  %v15716_v15 = vld [vmem:[#allocation314_spill] sm:$0xff] }
 0x924   : > { %3773 = vrot.lane.b32.xlu2 %v15709_v16, %s8795_s29  ;;  %v4757_v19 = vpop.permute.xlu2 %4756  ;;  %v15718_v16 = vld [vmem:[#allocation187_spill] sm:$0xff] }
 0x929   : > { %v4724_v13 = vld [vmem:[#allocation1] sm:$0xff] }
 0x92a   : > { %4726 = vst [vmem:[#allocation1] ss:$9 sm:$0xff] %v15710_v22  ;;  %v12308_v22 = vpop.f32.mrf.mxu2 }
 0x92b   : > { %4727 = vst [vmem:[#allocation1 + $0x1] ss:$9 sm:$0xff] %v15711_v39 }
 0x92c   : > { %4728 = vst [vmem:[#allocation1 + $0x2] ss:$9 sm:$0xff] %v15712_v26  ;;  %4776 = vrot.lane.b32.xlu2 %v4724_v13, %s8796_s14  ;;  %v5053_v13 = vsel %vm4933_vm9, %v15718_v16, %v12075_v47  ;;  %v3102_v47 = vshrl.u32 %v12002_v58, 16  ;;  %v3107_v16 = vshll.u32 %v12004_v37, 16 }
 0x92d   : > { %4729 = vst [vmem:[#allocation1 + $0x3] ss:$9 sm:$0xff] %v15713_v32  ;;  %v5085_v39 = vsel %vm4966_vm10, %v5053_v13, %v12103_v41  ;;  %v4759_v32 = vpop.permute.xlu2 %4758  ;;  %v3110_v41 = vshrl.u32 %v12004_v37, 16 }
 0x92e   : > { %4730 = vst [vmem:[#allocation1 + $0x4] ss:$9 sm:$0xff] %v15714_v23  ;;  %v5119_v26 = vsel %vm4999_vm11, %v5085_v39, %v4755_v31  ;;  %v15720_v23 = vld [vmem:[#allocation284_spill] sm:$0xff]  ;;  %v3115_v31 = vshll.u32 %v12006_v1, 16  ;;  %v15724_v39 = vld [vmem:[#allocation133_spill] sm:$0xff] }
 0x92f   : > { %4731 = vst [vmem:[#allocation1 + $0x5] ss:$9 sm:$0xff] %v15715_v35  ;;  %v14519_v53 = vrot.slane %v15720_v23, 3  ;;  %v15721_v35 = vrot.slane %v11981_v34, 3  ;;  %v3118_v34 = vshrl.u32 %v12006_v1, 16 }
 0x930   : > { %4732 = vst [vmem:[#allocation1 + $0x6] ss:$9 sm:$0xff] %v15716_v15  ;;  %5447 = vmatmul.bf16.gmra.mxu3 %v5119_v26 }
 0x931   : > { %4733 = vst [vmem:[#allocation1 + $0x7] ss:$9 sm:$0xff] %v15717_v27  ;;  %v3095_v15 = vshrl.u32 %v15721_v35, 16  ;;  %v3099_v27 = vshll.u32 %v12002_v58, 16  ;;  %v3123_v13 = vshll.u32 %v14519_v53, 16  ;;  %v15725_v35 = vld [vmem:[#allocation143_spill] sm:$0xff] }
 0x932   : > { %15719 = vst [vmem:[#allocation37_spill] sm:$0xff] %v12308_v22  ;;  %v15722_v22 = vld [vmem:[#allocation275_spill] sm:$0xff] }
 0x933   : > { %v3101_v26 = vsel %vm9852_vm8, %v3095_v15, %v3099_v27  ;;  %v3125_v53 = vsel %vm9852_vm8, %v3118_v34, %v3123_v13  ;;  %v15726_v15 = vld [vmem:[#allocation256_spill] sm:$0xff] }
 0x934   : > { %v5055_v27 = vsel %vm4933_vm9, %v15726_v15, %v12083_v50 }
 0x935   : > { %v4761_v1 = vpop.permute.xlu2 %4760 }
 0x938   : > { %v4734_v56 = vld [vmem:[#allocation1] sm:$0xff] }
 0x939   : > { %4736 = vst [vmem:[#allocation1] ss:$9 sm:$0xff] %v15722_v22  ;;  %4778 = vrot.lane.b32.xlu2 %v4734_v56, %s8796_s14  ;;  %v12331_v22 = vpop.f32.mrf.mxu2  ;;  %v3109_v56 = vsel %vm9852_vm8, %v3102_v47, %v3107_v16 }
 0x93a   : > { %4737 = vst [vmem:[#allocation1 + $0x1] ss:$9 sm:$0xff] %v15723_v20  ;;  %v3117_v20 = vsel %vm9852_vm8, %v3110_v41, %v3115_v31 }
 0x93b   : > { %4738 = vst [vmem:[#allocation1 + $0x2] ss:$9 sm:$0xff] %v15724_v39  ;;  %v5087_v39 = vsel %vm4966_vm10, %v5055_v27, %v12111_v62  ;;  %v15729_v62 = vld [vmem:[#allocation192_spill] sm:$0xff] }
 0x93c   : > { %4739 = vst [vmem:[#allocation1 + $0x3] ss:$9 sm:$0xff] %v15725_v35  ;;  %v5122_v47 = vsel %vm4999_vm11, %v5087_v39, %v4757_v19  ;;  %v15735_v27 = vld [vmem:[#allocation24_spill] sm:$0xff] }
 0x93d   : > { %4741 = vst [vmem:[#allocation1 + $0x4] ss:$9 sm:$0xff] %v3101_v26  ;;  %v4763_v41 = vpop.permute.xlu2 %4762  ;;  %v15733_v26 = vld [vmem:[#allocation202_spill] sm:$0xff]  ;;  %v15737_v39 = vld [vmem:[#allocation212_spill] sm:$0xff] }
 0x93e   : > { %4743 = vst [vmem:[#allocation1 + $0x5] ss:$9 sm:$0xff] %v3109_v56 }
 0x93f   : > { %4745 = vst [vmem:[#allocation1 + $0x6] ss:$9 sm:$0xff] %v3117_v20 }
 0x940   : > { %4747 = vst [vmem:[#allocation1 + $0x7] ss:$9 sm:$0xff] %v3125_v53  ;;  %5452 = vmatmul.bf16.gmra.mxu3 %v5122_v47  ;;  %v15728_v53 = vld [vmem:[#allocation191_spill] sm:$0xff] }
 0x941   : > { %v12345_v16 = vpop.f32.mrf.mxu2 }
 0x945   : > { %v12355_v50 = vpop.permute.xlu2 %4764 }
 0x947   : > { %v4748_v31 = vld [vmem:[#allocation1] sm:$0xff] }
 0x948   : > { %4782 = vst [vmem:[#allocation1] ss:$9 sm:$0xff] %v9043_v12  ;;  %4780 = vrot.lane.b32.xlu2 %v4748_v31, %s8796_s14  ;;  %v15730_v12 = vld [vmem:[#allocation265_spill] sm:$0xff]  ;;  %s7650_s14 = sshll.u32 %s323_s25, 2 }
 0x949   : > { %4784 = vst [vmem:[#allocation1 + $0x1] ss:$9 sm:$0xff] %v15727_v21  ;;  %v12358_v19 = vpop.f32.mrf.mxu2  ;;  %v5057_v34 = vsel %vm4933_vm9, %v15730_v12, %v12090_v8  ;;  %v15731_v8 = vld [vmem:[#allocation18_spill] sm:$0xff] }
 0x94a   : > { %4786 = vst [vmem:[#allocation1 + $0x2] ss:$9 sm:$0xff] %v15385_v6  ;;  %v5089_v6 = vsel %vm4966_vm10, %v5057_v34, %v12135_v60  ;;  %v12377_v60 = vpop.f32.mrf.mxu3  ;;  %v15741_v21 = vld [vmem:[#allocation30_spill] sm:$0xff] }
 0x94b   : > { %4788 = vst [vmem:[#allocation1 + $0x3] ss:$9 sm:$0xff] %v15728_v53  ;;  %v5125_v13 = vsel %vm4999_vm11, %v5089_v6, %v4759_v32  ;;  %v15732_v32 = vld [vmem:[#allocation21_spill] sm:$0xff]  ;;  %v5061_v53 = vsel %vm4933_vm9, %v15741_v21, %v12129_v49  ;;  %v15742_v34 = vld [vmem:[#allocation10_spill] sm:$0xff] }
 0x94c   : > { %4790 = vst [vmem:[#allocation1 + $0x4] ss:$9 sm:$0xff] %v9070_v36  ;;  %v4935_v6 = vsel %vm4933_vm9, %v15742_v34, %v12222_v14  ;;  %v15744_v49 = vld [vmem:[#allocation321_spill] sm:$0xff]  ;;  %v15747_v14 = vrot.slane %v15613_v9, 1  ;;  %v15759_v34 = vld [vmem:[#allocation60_spill] sm:$0xff] }
 0x94d   : > { %4792 = vst [vmem:[#allocation1 + $0x5] ss:$9 sm:$0xff] %v9077_v40  ;;  %v12366_v40 = vpop.permute.xlu2 %4766 }
 0x94e   : > { %4794 = vst [vmem:[#allocation1 + $0x6] ss:$9 sm:$0xff] %v15387_v48 }
 0x94f   : > { %4796 = vst [vmem:[#allocation1 + $0x7] ss:$9 sm:$0xff] %v15729_v62  ;;  %v5093_v62 = vsel %vm4966_vm10, %v5061_v53, %v12152_v24 }
 0x950   : > { %5457 = vmatmul.bf16.gmra.mxu3 %v5125_v13  ;;  %v15743_v13 = vld [vmem:[#allocation320_spill] sm:$0xff] }
 0x951   : > { %v12372_v48 = vpop.f32.mrf.mxu2 }
 0x952   : > { %v12394_v15 = vpop.f32.mrf.mxu3 }
 0x955   : > { %v12381_v35 = vpop.permute.xlu2 %4768 }
 0x956   : > { %v4797_v36 = vld [vmem:[#allocation1] sm:$0xff] }
 0x957   : > { %8145 = vmatmul.msk.bf16.vlgmr.msrb.gmra.mxu2 %vm4933_vm9, %v4797_v36  ;;  %4798 = vst [vmem:[#allocation1] ss:$9 sm:$0xff] %v9091_v59  ;;  %v15734_v59 = vld [vmem:[#allocation299_spill] sm:$0xff] }
 0x958   : > { %4799 = vst [vmem:[#allocation1 + $0x1] ss:$9 sm:$0xff] %v9096_v0  ;;  %v5059_v0 = vsel %vm4933_vm9, %v15734_v59, %v12105_v55  ;;  %v15736_v55 = vld [vmem:[#allocation25_spill] sm:$0xff] }
 0x959   : > { %4800 = vst [vmem:[#allocation1 + $0x2] ss:$9 sm:$0xff] %v15389_v61  ;;  %v5091_v61 = vsel %vm4966_vm10, %v5059_v0, %v12142_v51  ;;  %v15739_v51 = vld [vmem:[#allocation213_spill] sm:$0xff] }
 0x95a   : > { %4801 = vst [vmem:[#allocation1 + $0x3] ss:$9 sm:$0xff] %v15731_v8  ;;  %v5128_v56 = vsel %vm4999_vm11, %v5091_v61, %v4761_v1  ;;  %v15738_v1 = vld [vmem:[#allocation29_spill] sm:$0xff]  ;;  %v12408_v31 = vpop.f32.mrf.mxu3 }
 0x95b   : > { %4802 = vst [vmem:[#allocation1 + $0x4] ss:$9 sm:$0xff] %v15391_v18  ;;  %v12389_v18 = vpop.f32.mrf.mxu2  ;;  %v15748_v0 = vld [vmem:[#allocation85_spill] sm:$0xff] }
 0x95c   : > { %4803 = vst [vmem:[#allocation1 + $0x5] ss:$9 sm:$0xff] %v9119_v28  ;;  %v5063_v61 = vsel %vm4933_vm9, %v15748_v0, %v12137_v29  ;;  %v15768_v0 = vld [vmem:[#allocation28_spill] sm:$0xff] }
 0x95d   : > { %4804 = vst [vmem:[#allocation1 + $0x6] ss:$9 sm:$0xff] %v15732_v32  ;;  %v12392_v20 = vpop.permute.xlu2 %4770 }
 0x95e   : > { %4805 = vst [vmem:[#allocation1 + $0x7] ss:$9 sm:$0xff] %v15733_v26 }
 0x95f   : > { %15740 = vst [vmem:[#allocation48_spill] sm:$0xff] %v12408_v31 }
 0x960   : > { %5462 = vmatmul.bf16.gmra.mxu3 %v5128_v56 }
 0x965   : > { %v4806_v28 = vld [vmem:[#allocation1] sm:$0xff] }
 0x966   : > { %4807 = vst [vmem:[#allocation1] ss:$9 sm:$0xff] %v9140_v5  ;;  %v12404_v5 = vpop.f32.mrf.mxu2  ;;  %v12406_v47 = vpop.permute.xlu2 %4772 }
 0x967   : > { %8146 = vmatmul.msk.bf16.gmra.mxu2 %vm4933_vm9, %v4806_v28  ;;  %4808 = vst [vmem:[#allocation1 + $0x1] ss:$9 sm:$0xff] %v15735_v27  ;;  %v15750_v27 = vld [vmem:[#allocation17_spill] sm:$0xff] }
 0x968   : > { %4809 = vst [vmem:[#allocation1 + $0x2] ss:$9 sm:$0xff] %v15736_v55 }
 0x969   : > { %4810 = vst [vmem:[#allocation1 + $0x3] ss:$9 sm:$0xff] %v15737_v39 }
 0x96a   : > { %4811 = vst [vmem:[#allocation1 + $0x4] ss:$9 sm:$0xff] %v9168_v52  ;;  %v3971_v52 = vpop.permute.xlu1 %3970 }
 0x96b   : > { %4812 = vst [vmem:[#allocation1 + $0x5] ss:$9 sm:$0xff] %v15397_v11  ;;  %v5131_v11 = vsel %vm4999_vm11, %v5093_v62, %v4763_v41  ;;  %v15745_v41 = vld [vmem:[#allocation243_spill] sm:$0xff]  ;;  %v15756_v62 = vld [vmem:[#allocation14_spill] sm:$0xff] }
 0x96c   : > { %4813 = vst [vmem:[#allocation1 + $0x6] ss:$9 sm:$0xff] %v15738_v1  ;;  %v15753_v1 = vld [vmem:[#allocation58_spill] sm:$0xff] }
 0x96d   : > { %4814 = vst [vmem:[#allocation1 + $0x7] ss:$9 sm:$0xff] %v15739_v51 }
 0x96e   : > { %v3772_v36 = vpop.permute.xlu2 %3771  ;;  %v12424_v8 = vpop.f32.mrf.mxu2 }
 0x96f   : > { %v4968_v24 = vsel %vm4966_vm10, %v4935_v6, %v3772_v36 }
 0x970   : > { %5467 = vmatmul.bf16.gmra.mxu3 %v5131_v11  ;;  %v5001_v32 = vsel %vm4999_vm11, %v4968_v24, %v3971_v52  ;;  %v15757_v52 = vld [vmem:[#allocation38_spill] sm:$0xff]  ;;  %v15758_v11 = vld [vmem:[#allocation15_spill] sm:$0xff] }
 0x971   : > { %5348 = vmatmul.bf16.vlgmr.msrb.gmra.mxu1 %v5001_v32  ;;  %v15764_v24 = vld [vmem:[#allocation66_spill] sm:$0xff]  ;;  %v15765_v32 = vld [vmem:[#allocation68_spill] sm:$0xff] }
 0x972   : > { %v12435_v26 = vpop.permute.xlu1 %4362 }
 0x974   : > { %v4815_v12 = vld [vmem:[#allocation1] sm:$0xff] }
 0x975   : > { %4816 = vst [vmem:[#allocation1] ss:$9 sm:$0xff] %v11011_v17  ;;  %v12430_v17 = vpop.f32.mrf.mxu3 }
 0x976   : > { %4817 = vst [vmem:[#allocation1 + $0x1] ss:$9 sm:$0xff] %v15743_v13  ;;  %v12437_v59 = vpop.permute.xlu2 %4774  ;;  %v12442_v56 = vpop.f32.mrf.mxu2  ;;  %v15760_v13 = vld [vmem:[#allocation62_spill] sm:$0xff] }
 0x977   : > { %8147 = vmatmul.msk.bf16.gmra.mxu2 %vm4933_vm9, %v4815_v12  ;;  %4818 = vst [vmem:[#allocation1 + $0x2] ss:$9 sm:$0xff] %v15744_v49  ;;  %v15763_v49 = vld [vmem:[#allocation63_spill] sm:$0xff] }
 0x978   : > { %4819 = vst [vmem:[#allocation1 + $0x3] ss:$9 sm:$0xff] %v15745_v41 }
 0x979   : > { %4820 = vst [vmem:[#allocation1 + $0x4] ss:$9 sm:$0xff] %v11806_v54  ;;  %v5095_v54 = vsel %vm4966_vm10, %v5063_v61, %v12158_v4  ;;  %v15751_v4 = vld [vmem:[#allocation53_spill] sm:$0xff]  ;;  %v5143_v61 = vsel %vm4999_vm11, %v15768_v0, %v12392_v20  ;;  %v15789_v0 = vld [vmem:[#allocation102_spill] sm:$0xff] }
 0x97a   : > { %4821 = vst [vmem:[#allocation1 + $0x5] ss:$9 sm:$0xff] %v11810_v10  ;;  %v3575_v10 = vpop.permute.xlu0 %3574  ;;  %v3973_v39 = vpop.permute.xlu1 %3972 }
 0x97b   : > { %15746 = vst [vmem:[#allocation52_spill] sm:$0xff] %v12430_v17  ;;  %v4937_v29 = vsel %vm4933_vm9, %v15750_v27, %v3575_v10  ;;  %v15770_v27 = vld [vmem:[#allocation71_spill] sm:$0xff] }
 0x97c   : > { %4822 = vst [vmem:[#allocation1 + $0x6] ss:$9 sm:$0xff] %v15505_v42  ;;  %v5134_v42 = vsel %vm4999_vm11, %v5095_v54, %v12355_v50 }
 0x97d   : > { %4823 = vst [vmem:[#allocation1 + $0x7] ss:$9 sm:$0xff] %v15747_v14  ;;  %v12449_v9 = vpop.f32.mrf.mxu3  ;;  %v15766_v14 = vld [vmem:[#allocation69_spill] sm:$0xff] }
 0x97e   : > { %15749 = vst [vmem:[#allocation49_spill] sm:$0xff] %v12449_v9  ;;  %v3774_v55 = vpop.permute.xlu2 %3773  ;;  %v12466_v21 = vpop.f32.mrf.mxu2  ;;  %v15834_v9 = vld [vmem:[#allocation165_spill] sm:$0xff] }
 0x97f   : > { %v4970_v50 = vsel %vm4966_vm10, %v4937_v29, %v3774_v55  ;;  %v15771_v29 = vld [vmem:[#allocation74_spill] sm:$0xff]  ;;  %v15772_v55 = vld [vmem:[#allocation75_spill] sm:$0xff] }
 0x980   : > { %5472 = vmatmul.bf16.gmra.mxu3 %v5134_v42  ;;  %v15769_v42 = vld [vmem:[#allocation70_spill] sm:$0xff] }
 0x984   : > { %v4824_v28 = vld [vmem:[#allocation1] sm:$0xff] }
 0x985   : > { %4825 = vst [vmem:[#allocation1] ss:$9 sm:$0xff] %v15403_v30  ;;  %v5004_v30 = vsel %vm4999_vm11, %v4970_v50, %v3973_v39  ;;  %v12468_v53 = vpop.f32.mrf.mxu3  ;;  %v15773_v39 = vld [vmem:[#allocation77_spill] sm:$0xff]  ;;  %v15775_v50 = vld [vmem:[#allocation79_spill] sm:$0xff] }
 0x986   : > { %4826 = vst [vmem:[#allocation1 + $0x1] ss:$9 sm:$0xff] %v15404_v44  ;;  %5353 = vmatmul.bf16.gmra.mxu1 %v5004_v30  ;;  %v15752_v44 = vld [vmem:[#allocation57_spill] sm:$0xff]  ;;  %v12480_v36 = vpop.f32.mrf.mxu2  ;;  %v15776_v30 = vld [vmem:[#allocation80_spill] sm:$0xff] }
 0x987   : > { %4827 = vst [vmem:[#allocation1 + $0x2] ss:$9 sm:$0xff] %v15405_v33  ;;  %8148 = vmatmul.msk.bf16.gmra.mxu2 %vm4933_vm9, %v4824_v28  ;;  %v15754_v33 = vld [vmem:[#allocation20_spill] sm:$0xff] }
 0x988   : > { %4828 = vst [vmem:[#allocation1 + $0x3] ss:$9 sm:$0xff] %v15751_v4  ;;  %v5140_v51 = vsel %vm4999_vm11, %v15754_v33, %v12381_v35  ;;  %v15761_v35 = vld [vmem:[#allocation64_spill] sm:$0xff]  ;;  %v15774_v4 = vld [vmem:[#allocation78_spill] sm:$0xff] }
 0x989   : > { %4829 = vst [vmem:[#allocation1 + $0x4] ss:$9 sm:$0xff] %v15407_v57  ;;  %v5065_v57 = vsel %vm4933_vm9, %v15757_v52, %v15756_v62  ;;  %v15778_v62 = vld [vmem:[#allocation43_spill] sm:$0xff] }
 0x98a   : > { %4830 = vst [vmem:[#allocation1 + $0x5] ss:$9 sm:$0xff] %v15408_v25  ;;  %v5097_v25 = vsel %vm4966_vm10, %v5065_v57, %v15758_v11  ;;  %v12519_v52 = vld [vmem:[%s13833_s4] ss:$0 sm:$0xff]  ;;  %v15780_v11 = vld [vmem:[#allocation81_spill] sm:$0xff] }
 0x98b   : > { %4831 = vst [vmem:[#allocation1 + $0x6] ss:$9 sm:$0xff] %v15752_v44  ;;  %v5137_v6 = vsel %vm4999_vm11, %v5097_v25, %v12366_v40  ;;  %v15767_v40 = vld [vmem:[#allocation67_spill] sm:$0xff]  ;;  %v5146_v44 = vsel %vm4999_vm11, %v12227_v3, %v12406_v47  ;;  %v5360_v47 = vadd.f32 %v12519_v52, %v12215_v43  ;;  %v5149_v43 = vsel %vm4999_vm11, %v12245_v7, %v12437_v59 }
 0x98c   : > { %4832 = vst [vmem:[#allocation1 + $0x7] ss:$9 sm:$0xff] %v15753_v1  ;;  %v15779_v57 = vld [vmem:[#allocation215_spill] sm:$0xff] }
 0x98d   : > { %15755 = vst [vmem:[#allocation55_spill] sm:$0xff] %v12468_v53  ;;  %v15783_v3 = vld [vmem:[#allocation319_spill] sm:$0xff] }
 0x98e   : > { %15762 = vst [vmem:[#allocation56_spill] sm:$0xff] %v12480_v36  ;;  %v12495_v10 = vpop.f32.mrf.mxu2 }
 0x990   : > { %5477 = vmatmul.bf16.gmra.mxu3 %v5137_v6  ;;  %v15785_v6 = vld [vmem:[#allocation141_spill] sm:$0xff] }
 0x993   : > { %v4833_v12 = vld [vmem:[#allocation1] sm:$0xff]  ;;  %v12485_v41 = vpop.f32.mrf.mxu3 }
 0x994   : > { %4834 = vst [vmem:[#allocation1] ss:$9 sm:$0xff] %v15759_v34  ;;  %v15784_v34 = vld [vmem:[#allocation288_spill] sm:$0xff] }
 0x995   : > { %4835 = vst [vmem:[#allocation1 + $0x1] ss:$9 sm:$0xff] %v15760_v13 }
 0x996   : > { %4836 = vst [vmem:[#allocation1 + $0x2] ss:$9 sm:$0xff] %v15761_v35  ;;  %v12511_v1 = vpop.f32.mrf.mxu2  ;;  %v15786_v35 = vld [vmem:[#allocation89_spill] sm:$0xff] }
 0x997   : > { %4837 = vst [vmem:[#allocation1 + $0x3] ss:$9 sm:$0xff] %v15763_v49  ;;  %8149 = vmatmul.msk.bf16.gmra.mxu2 %vm4933_vm9, %v4833_v12  ;;  %v15782_v12 = vld [vmem:[#allocation31_spill] sm:$0xff]  ;;  %v15787_v49 = vrot.slane %v15786_v35, 3 }
 0x998   : > { %4838 = vst [vmem:[#allocation1 + $0x4] ss:$9 sm:$0xff] %v15764_v24 }
 0x999   : > { %4839 = vst [vmem:[#allocation1 + $0x5] ss:$9 sm:$0xff] %v15765_v32 }
 0x99a   : > { %4840 = vst [vmem:[#allocation1 + $0x6] ss:$9 sm:$0xff] %v15766_v14 }
 0x99b   : > { %4841 = vst [vmem:[#allocation1 + $0x7] ss:$9 sm:$0xff] %v15767_v40  ;;  %v12493_v54 = vpop.f32.mrf.mxu3 }
 0x99c   : > { %15777 = vst [vmem:[#allocation97_spill] sm:$0xff] %v12511_v1 }
 0x99e   : > { %v12523_v25 = vpop.f32.mrf.mxu2 }
 0x99f   : > { %15781 = vst [vmem:[#allocation98_spill] sm:$0xff] %v12523_v25 }
 0x9a0   : > { %5482 = vmatmul.bf16.gmra.mxu3 %v5140_v51 }
 0x9a2   : > { %v4842_v28 = vld [vmem:[#allocation1] sm:$0xff] }
 0x9a3   : > { %4843 = vst [vmem:[#allocation1] ss:$9 sm:$0xff] %v15769_v42  ;;  %v12504_v20 = vpop.f32.mrf.mxu3  ;;  %v15792_v42 = vld [vmem:[#allocation254_spill] sm:$0xff] }
 0x9a4   : > { %4844 = vst [vmem:[#allocation1 + $0x1] ss:$9 sm:$0xff] %v15770_v27  ;;  %v15793_v27 = vld [vmem:[#allocation107_spill] sm:$0xff] }
 0x9a5   : > { %4845 = vst [vmem:[#allocation1 + $0x2] ss:$9 sm:$0xff] %v15771_v29  ;;  %v15794_v29 = vld [vmem:[#allocation109_spill] sm:$0xff] }
 0x9a6   : > { %4846 = vst [vmem:[#allocation1 + $0x3] ss:$9 sm:$0xff] %v15772_v55  ;;  %v12536_v32 = vpop.f32.mrf.mxu2  ;;  %v5365_v55 = vadd.f32 %v12519_v52, %v12265_v63 }
 0x9a7   : > { %4847 = vst [vmem:[#allocation1 + $0x4] ss:$9 sm:$0xff] %v15773_v39  ;;  %8150 = vmatmul.msk.bf16.gmra.mxu2 %vm4933_vm9, %v4842_v28  ;;  %v15791_v28 = vld [vmem:[#allocation105_spill] sm:$0xff]  ;;  %v15795_v39 = vld [vmem:[#allocation110_spill] sm:$0xff] }
 0x9a8   : > { %4848 = vst [vmem:[#allocation1 + $0x5] ss:$9 sm:$0xff] %v15774_v4  ;;  %v15796_v4 = vld [vmem:[#allocation108_spill] sm:$0xff] }
 0x9a9   : > { %4849 = vst [vmem:[#allocation1 + $0x6] ss:$9 sm:$0xff] %v15775_v50 }
 0x9aa   : > { %4850 = vst [vmem:[#allocation1 + $0x7] ss:$9 sm:$0xff] %v15776_v30 }
 0x9ab   : > { %v12513_v33 = vpop.f32.mrf.mxu3  ;;  %15788 = vst [vmem:[#allocation99_spill] sm:$0xff] %v12536_v32 }
 0x9ae   : > { %v12554_v59 = vpop.f32.mrf.mxu2 }
 0x9af   : > { %15797 = vst [vmem:[#allocation91_spill] sm:$0xff] %v12554_v59 }
 0x9b0   : > { %5487 = vmatmul.bf16.gmra.mxu3 %v5143_v61  ;;  %v15790_v61 = vld [vmem:[#allocation104_spill] sm:$0xff] }
 0x9b1   : > { %v4851_v51 = vld [vmem:[#allocation1] sm:$0xff] }
 0x9b2   : > { %4852 = vst [vmem:[#allocation1] ss:$9 sm:$0xff] %v15778_v62  ;;  %v15799_v62 = vld [vmem:[#allocation112_spill] sm:$0xff] }
 0x9b3   : > { %4853 = vst [vmem:[#allocation1 + $0x1] ss:$9 sm:$0xff] %v15779_v57  ;;  %v5448_v13 = vpop.f32.mrf.mxu3  ;;  %v15800_v57 = vld [vmem:[#allocation115_spill] sm:$0xff] }
 0x9b4   : > { %4854 = vst [vmem:[#allocation1 + $0x2] ss:$9 sm:$0xff] %v15780_v11  ;;  %v12534_v24 = vadd.f32 %v5448_v13, %v5360_v47  ;;  %v15802_v11 = vld [vmem:[#allocation116_spill] sm:$0xff] }
 0x9b5   : > { %4855 = vst [vmem:[#allocation1 + $0x3] ss:$9 sm:$0xff] %v15782_v12  ;;  %v15803_v12 = vld [vmem:[#allocation118_spill] sm:$0xff]  ;;  %v15805_v47 = vld [vmem:[#allocation120_spill] sm:$0xff] }
 0x9b6   : > { %4856 = vst [vmem:[#allocation1 + $0x4] ss:$9 sm:$0xff] %v15783_v3  ;;  %v12563_v63 = vpop.f32.mrf.mxu2  ;;  %v15804_v3 = vld [vmem:[#allocation119_spill] sm:$0xff] }
 0x9b7   : > { %4857 = vst [vmem:[#allocation1 + $0x5] ss:$9 sm:$0xff] %v15784_v34  ;;  %8151 = vmatmul.msk.bf16.gmra.mxu2 %vm4933_vm9, %v4851_v51  ;;  %v15798_v51 = vld [vmem:[#allocation111_spill] sm:$0xff]  ;;  %v5370_v34 = vadd.f32 %v12519_v52, %v12288_v46  ;;  %v15810_v46 = vld [vmem:[#allocation126_spill] sm:$0xff] }
 0x9b8   : > { %4858 = vst [vmem:[#allocation1 + $0x6] ss:$9 sm:$0xff] %v15785_v6  ;;  %v15806_v6 = vld [vmem:[#allocation121_spill] sm:$0xff] }
 0x9b9   : > { %4859 = vst [vmem:[#allocation1 + $0x7] ss:$9 sm:$0xff] %v15787_v49 }
 0x9ba   : > { %15801 = vst [vmem:[#allocation147_spill] sm:$0xff] %v12563_v63 }
 0x9bb   : > { %v12538_v40 = vpop.f32.mrf.mxu3 }
 0x9c0   : > { %v4860_v14 = vld [vmem:[#allocation1] sm:$0xff]  ;;  %5492 = vmatmul.bf16.gmra.mxu3 %v5146_v44 }
 0x9c1   : > { %4861 = vst [vmem:[#allocation1] ss:$9 sm:$0xff] %v15789_v0  ;;  %v15807_v0 = vld [vmem:[#allocation123_spill] sm:$0xff] }
 0x9c2   : > { %4862 = vst [vmem:[#allocation1 + $0x1] ss:$9 sm:$0xff] %v15790_v61  ;;  %v15808_v61 = vld [vmem:[#allocation318_spill] sm:$0xff] }
 0x9c3   : > { %4863 = vst [vmem:[#allocation1 + $0x2] ss:$9 sm:$0xff] %v15791_v28  ;;  %v5453_v7 = vpop.f32.mrf.mxu3  ;;  %v4562_v28 = vpop.permute.xlu0 %4561 }
 0x9c4   : > { %4864 = vst [vmem:[#allocation1 + $0x3] ss:$9 sm:$0xff] %v15792_v42  ;;  %v12556_v50 = vadd.f32 %v5453_v7, %v5365_v55  ;;  %v15809_v42 = vld [vmem:[#allocation125_spill] sm:$0xff]  ;;  %v15813_v7 = vld [vmem:[#allocation131_spill] sm:$0xff] }
 0x9c5   : > { %4865 = vst [vmem:[#allocation1 + $0x4] ss:$9 sm:$0xff] %v15793_v27  ;;  %v4777_v27 = vpop.permute.xlu2 %4776 }
 0x9c6   : > { %4866 = vst [vmem:[#allocation1 + $0x5] ss:$9 sm:$0xff] %v15794_v29  ;;  %v15811_v29 = vld [vmem:[#allocation273_spill] sm:$0xff] }
 0x9c7   : > { %4867 = vst [vmem:[#allocation1 + $0x6] ss:$9 sm:$0xff] %v15795_v39  ;;  %8152 = vmatmul.msk.bf16.gmra.mxu2 %vm4933_vm9, %v4860_v14 }
 0x9c8   : > { %4868 = vst [vmem:[#allocation1 + $0x7] ss:$9 sm:$0xff] %v15796_v4  ;;  %v15812_v4 = vld [vmem:[#allocation129_spill] sm:$0xff] }
 0x9cb   : > { %v12559_v44 = vpop.f32.mrf.mxu3 }
 0x9cf   : > { %v4869_v30 = vld [vmem:[#allocation1] sm:$0xff] }
 0x9d0   : > { %4870 = vst [vmem:[#allocation1] ss:$9 sm:$0xff] %v15798_v51  ;;  %5497 = vmatmul.bf16.gmra.mxu3 %v5149_v43  ;;  %v5075_v43 = vsel %vm4933_vm9, %v15808_v61, %v12435_v26  ;;  %v15814_v51 = vld [vmem:[#allocation132_spill] sm:$0xff]  ;;  %v15815_v26 = vld [vmem:[#allocation130_spill] sm:$0xff]  ;;  %v15820_v61 = vld [vmem:[#allocation93_spill] sm:$0xff] }
 0x9d1   : > { %4871 = vst [vmem:[#allocation1 + $0x1] ss:$9 sm:$0xff] %v15799_v62  ;;  %v5107_v55 = vsel %vm4966_vm10, %v5075_v43, %v4562_v28 }
 0x9d2   : > { %4872 = vst [vmem:[#allocation1 + $0x2] ss:$9 sm:$0xff] %v15800_v57 }
 0x9d3   : > { %4873 = vst [vmem:[#allocation1 + $0x3] ss:$9 sm:$0xff] %v15802_v11  ;;  %v5458_v13 = vpop.f32.mrf.mxu3  ;;  %v15816_v11 = vld [vmem:[#allocation83_spill] sm:$0xff] }
 0x9d4   : > { %4874 = vst [vmem:[#allocation1 + $0x4] ss:$9 sm:$0xff] %v15803_v12  ;;  %v12573_v35 = vadd.f32 %v5458_v13, %v5370_v34  ;;  %v4564_v34 = vpop.permute.xlu1 %4563  ;;  %v4779_v13 = vpop.permute.xlu2 %4778 }
 0x9d5   : > { %4875 = vst [vmem:[#allocation1 + $0x5] ss:$9 sm:$0xff] %v15804_v3  ;;  %v4365_v3 = vpop.permute.xlu0 %4364 }
 0x9d6   : > { %4876 = vst [vmem:[#allocation1 + $0x6] ss:$9 sm:$0xff] %v15805_v47  ;;  %v15817_v47 = vld [vmem:[#allocation82_spill] sm:$0xff]  ;;  %v5077_v43 = vsel %vm4933_vm9, %v15820_v61, %v4365_v3  ;;  %v15824_v3 = vld [vmem:[#allocation151_spill] sm:$0xff]  ;;  %v15827_v61 = vld [vmem:[#allocation156_spill] sm:$0xff] }
 0x9d7   : > { %4877 = vst [vmem:[#allocation1 + $0x7] ss:$9 sm:$0xff] %v15806_v6  ;;  %8153 = vmatmul.msk.bf16.gmra.mxu2 %vm4933_vm9, %v4869_v30  ;;  %v5152_v30 = vsel %vm4999_vm11, %v5107_v55, %v4777_v27  ;;  %v15818_v6 = vld [vmem:[#allocation96_spill] sm:$0xff]  ;;  %v5109_v28 = vsel %vm4966_vm10, %v5077_v43, %v4564_v34  ;;  %v5375_v55 = vadd.f32 %v12519_v52, %v12331_v22 }
 0x9d8   : > { %v5155_v27 = vsel %vm4999_vm11, %v5109_v28, %v4779_v13  ;;  %v15825_v34 = vld [vmem:[#allocation152_spill] sm:$0xff]  ;;  %v15829_v28 = vld [vmem:[#allocation158_spill] sm:$0xff] }
 0x9da   : > { %v5527_v49 = vpop.f32.mrf.mxu2 }
 0x9db   : > { %v12594_v12 = vpop.f32.mrf.mxu3 }
 0x9dc   : > { %v4566_v22 = vpop.permute.xlu1 %4565 }
 0x9de   : > { %v4878_v14 = vld [vmem:[#allocation1] sm:$0xff] }
 0x9df   : > { %4879 = vst [vmem:[#allocation1] ss:$9 sm:$0xff] %v15807_v0  ;;  %v15819_v0 = vld [vmem:[#allocation42_spill] sm:$0xff] }
 0x9e0   : > { %4880 = vst [vmem:[#allocation1 + $0x1] ss:$9 sm:$0xff] %v15809_v42  ;;  %5502 = vmatmul.bf16.gmra.mxu3 %v5152_v30 }
 0x9e1   : > { %4881 = vst [vmem:[#allocation1 + $0x2] ss:$9 sm:$0xff] %v15810_v46  ;;  %v15822_v46 = vld [vmem:[#allocation139_spill] sm:$0xff] }
 0x9e2   : > { %4882 = vst [vmem:[#allocation1 + $0x3] ss:$9 sm:$0xff] %v15811_v29  ;;  %v12583_v39 = vpop.f32.mrf.mxu2  ;;  %v15823_v29 = vrot.slane %v15822_v46, 1 }
 0x9e3   : > { %4883 = vst [vmem:[#allocation1 + $0x4] ss:$9 sm:$0xff] %v15812_v4  ;;  %v5463_v4 = vpop.f32.mrf.mxu3 }
 0x9e4   : > { %4884 = vst [vmem:[#allocation1 + $0x5] ss:$9 sm:$0xff] %v15813_v7  ;;  %v12613_v30 = vadd.f32 %v5463_v4, %v5375_v55 }
 0x9e5   : > { %4885 = vst [vmem:[#allocation1 + $0x6] ss:$9 sm:$0xff] %v15814_v51 }
 0x9e6   : > { %4886 = vst [vmem:[#allocation1 + $0x7] ss:$9 sm:$0xff] %v15815_v26 }
 0x9e7   : > { %8154 = vmatmul.msk.bf16.gmra.mxu2 %vm4933_vm9, %v4878_v14  ;;  %v15821_v14 = vld [vmem:[#allocation185_spill] sm:$0xff] }
 0x9ea   : > { %v12591_v62 = vpop.f32.mrf.mxu2 }
 0x9eb   : > { %v12624_v43 = vpop.f32.mrf.mxu3 }
 0x9ed   : > { %v4887_v57 = vld [vmem:[#allocation1] sm:$0xff] }
 0x9ee   : > { %4888 = vst [vmem:[#allocation1] ss:$9 sm:$0xff] %v15816_v11  ;;  %v5349_v7 = vpop.f32.mrf.mxu1 }
 0x9ef   : > { %4889 = vst [vmem:[#allocation1 + $0x1] ss:$9 sm:$0xff] %v15817_v47  ;;  %v5350_v51 = vadd.f32 %v12519_v52, %v5349_v7  ;;  %v4367_v47 = vpop.permute.xlu0 %4366  ;;  %v15831_v7 = vld [vmem:[#allocation160_spill] sm:$0xff] }
 0x9f0   : > { %4890 = vst [vmem:[#allocation1 + $0x2] ss:$9 sm:$0xff] %v15818_v6  ;;  %5507 = vmatmul.bf16.gmra.mxu3 %v5155_v27 }
 0x9f1   : > { %4891 = vst [vmem:[#allocation1 + $0x3] ss:$9 sm:$0xff] %v15819_v0  ;;  %v5362_v0 = vadd.f32 %v12519_v52, %v12237_v2 }
 0x9f2   : > { %4892 = vst [vmem:[#allocation1 + $0x4] ss:$9 sm:$0xff] %v15821_v14  ;;  %v12603_v42 = vpop.f32.mrf.mxu2  ;;  %v4781_v14 = vpop.permute.xlu2 %4780 }
 0x9f3   : > { %4893 = vst [vmem:[#allocation1 + $0x5] ss:$9 sm:$0xff] %v11932_v45  ;;  %v5451_v46 = vadd.f32 %v12538_v40, %v5362_v0  ;;  %v5380_v40 = vadd.f32 %v12519_v52, %v12358_v19 }
 0x9f4   : > { %4894 = vst [vmem:[#allocation1 + $0x6] ss:$9 sm:$0xff] %v15554_v38  ;;  %v5439_v38 = vadd.f32 %v12485_v41, %v5350_v51  ;;  %v15828_v41 = vld [vmem:[#allocation95_spill] sm:$0xff] }
 0x9f5   : > { %4895 = vst [vmem:[#allocation1 + $0x7] ss:$9 sm:$0xff] %v15823_v29  ;;  %v15830_v29 = vld [vmem:[#allocation159_spill] sm:$0xff] }
 0x9f6   : > { %v5528_v13 = vadd.f32 %v5527_v49, %v5439_v38  ;;  %v15832_v38 = vld [vmem:[#allocation161_spill] sm:$0xff] }
 0x9f7   : > { %8155 = vmatmul.msk.bf16.gmra.mxu2 %vm4933_vm9, %v4887_v57  ;;  %v15826_v57 = vld [vmem:[#allocation155_spill] sm:$0xff] }
 0x9f8   : > { %v12633_v51 = vmax.f32 %v5528_v13, 0.0 }
 0x9fa   : > { %v5537_v45 = vpop.f32.mrf.mxu2  ;;  %v5647_v0 = vrot.slane %v12633_v51, 2 }
 0x9fb   : > { %v5538_v26 = vadd.f32 %v5537_v45, %v12534_v24  ;;  %v5079_v24 = vsel %vm4933_vm9, %v15828_v41, %v4367_v47 }
 0x9fc   : > { %v4896_v11 = vld [vmem:[#allocation1] sm:$0xff]  ;;  %v5111_v27 = vsel %vm4966_vm10, %v5079_v24, %v4566_v22 }
 0x9fd   : > { %4897 = vst [vmem:[#allocation1] ss:$9 sm:$0xff] %v15824_v3  ;;  %v5611_v6 = vmax.f32 %v5538_v26, 0.0  ;;  %v5158_v26 = vsel %vm4999_vm11, %v5111_v27, %v4781_v14  ;;  %v5648_v27 = vrot.slane %v12633_v51, 4 }
 0x9fe   : > { %4898 = vst [vmem:[#allocation1 + $0x1] ss:$9 sm:$0xff] %v15825_v34 }
 0x9ff   : > { %4899 = vst [vmem:[#allocation1 + $0x2] ss:$9 sm:$0xff] %v15826_v57  ;;  %v5659_v49 = vrot.slane %v5611_v6, 2  ;;  %v5660_v55 = vrot.slane %v5611_v6, 4  ;;  %v5661_v4 = vrot.slane %v5611_v6, 6  ;;  %v8177_v3 = vrot.slane %v5611_v6, 9 }
 0xa00   : > { %4900 = vst [vmem:[#allocation1 + $0x3] ss:$9 sm:$0xff] %v15827_v61  ;;  %5512 = vmatmul.bf16.gmra.mxu3 %v5158_v26  ;;  %v5351_v61 = vpop.f32.mrf.mxu1 }
 0xa01   : > { %4901 = vst [vmem:[#allocation1 + $0x4] ss:$9 sm:$0xff] %v15829_v28  ;;  %v8178_v34 = vrot.slane %v5659_v49, 9  ;;  %v8179_v22 = vrot.slane %v5660_v55, 9  ;;  %v8180_v57 = vrot.slane %v5661_v4, 9  ;;  %v5807_v14 = vmax.f32 %v5611_v6, %v8177_v3 }
 0xa02   : > { %4902 = vst [vmem:[#allocation1 + $0x5] ss:$9 sm:$0xff] %v15830_v29  ;;  %v5539_v2 = vpop.f32.mrf.mxu2  ;;  %v5352_v19 = vadd.f32 %v12519_v52, %v5351_v61 }
 0xa03   : > { %4903 = vst [vmem:[#allocation1 + $0x6] ss:$9 sm:$0xff] %v15831_v7  ;;  %v5540_v45 = vadd.f32 %v5539_v2, %v5451_v46  ;;  %v5468_v46 = vpop.f32.mrf.mxu3  ;;  %v5808_v26 = vmax.f32 %v5659_v49, %v8178_v34  ;;  %v5809_v63 = vmax.f32 %v5660_v55, %v8179_v22  ;;  %v5810_v59 = vmax.f32 %v5661_v4, %v8180_v57  ;;  %v15838_v22 = vld [vmem:[#allocation296_spill] sm:$0xff]  ;;  %v15839_v57 = vld [vmem:[#allocation47_spill] sm:$0xff] }
 0xa04   : > { %4904 = vst [vmem:[#allocation1 + $0x7] ss:$9 sm:$0xff] %v15832_v38  ;;  %v12642_v29 = vadd.f32 %v5468_v46, %v5380_v40  ;;  %v5441_v1 = vadd.f32 %v12493_v54, %v5352_v19  ;;  %v15833_v40 = vld [vmem:[#allocation163_spill] sm:$0xff]  ;;  %v5649_v46 = vrot.slane %v12633_v51, 6  ;;  %v15837_v54 = vld [vmem:[#allocation166_spill] sm:$0xff] }
 0xa05   : > { %v5612_v47 = vmax.f32 %v5540_v45, 0.0 }
 0xa07   : > { %v5662_v41 = vrot.slane %v5612_v47, 2  ;;  %v5663_v13 = vrot.slane %v5612_v47, 4  ;;  %v5664_v24 = vrot.slane %v5612_v47, 6  ;;  %v8181_v28 = vrot.slane %v5612_v47, 9  ;;  %8156 = vmatmul.msk.bf16.gmra.mxu2 %vm4933_vm9, %v4896_v11 }
 0xa09   : > { %v8182_v2 = vrot.slane %v5662_v41, 9  ;;  %v8183_v7 = vrot.slane %v5663_v13, 9  ;;  %v8184_v45 = vrot.slane %v5664_v24, 9  ;;  %v5811_v38 = vmax.f32 %v5612_v47, %v8181_v28 }
 0xa0a   : > { %v5542_v32 = vpop.f32.mrf.mxu2  ;;  %v5530_v47 = vadd.f32 %v12583_v39, %v5441_v1  ;;  %v8164_v28 = vrot.slane %v5649_v46, 9  ;;  %v15842_v39 = vld [vmem:[#allocation170_spill] sm:$0xff] }
 0xa0b   : > { %v4905_v25 = vld [vmem:[#allocation1] sm:$0xff]  ;;  %v5812_v11 = vmax.f32 %v5662_v41, %v8182_v2  ;;  %v5813_v53 = vmax.f32 %v5663_v13, %v8183_v7  ;;  %v5814_v6 = vmax.f32 %v5664_v24, %v8184_v45  ;;  %v12646_v3 = vmax.f32 %v5807_v14, %v5811_v38  ;;  %v15840_v13 = vld [vmem:[#allocation168_spill] sm:$0xff]  ;;  %v15841_v14 = vld [vmem:[#allocation169_spill] sm:$0xff] }
 0xa0c   : > { %4906 = vst [vmem:[#allocation1] ss:$9 sm:$0xff] %v15833_v40  ;;  %v5543_v61 = vadd.f32 %v5542_v32, %v12556_v50  ;;  %v5367_v32 = vadd.f32 %v12519_v52, %v15839_v57  ;;  %v8161_v50 = vrot.slane %v12633_v51, 9  ;;  %v8162_v41 = vrot.slane %v5647_v0, 9 }
 0xa0d   : > { %4907 = vst [vmem:[#allocation1 + $0x1] ss:$9 sm:$0xff] %v15834_v9  ;;  %v12652_v49 = vmax.f32 %v5808_v26, %v5812_v11  ;;  %v12654_v55 = vmax.f32 %v5809_v63, %v5813_v53  ;;  %v12656_v4 = vmax.f32 %v5810_v59, %v5814_v6  ;;  %v8163_v9 = vrot.slane %v5648_v27, 9  ;;  %v12665_v53 = vpop.f32.mrf.mxu3  ;;  %v15843_v26 = vld [vmem:[#allocation297_spill] sm:$0xff] }
 0xa0e   : > { %4908 = vst [vmem:[#allocation1 + $0x2] ss:$9 sm:$0xff] %v15837_v54  ;;  %v5613_v34 = vmax.f32 %v5543_v61, 0.0  ;;  %v5608_v19 = vmax.f32 %v5530_v47, 0.0  ;;  %v5456_v2 = vadd.f32 %v12559_v44, %v5367_v32  ;;  %v5791_v6 = vmax.f32 %v12633_v51, %v8161_v50 }
 0xa0f   : > { %15835 = vst [vmem:[#allocation149_spill] sm:$0xff] %v12652_v49  ;;  %v5792_v40 = vmax.f32 %v5647_v0, %v8162_v41  ;;  %v5793_v61 = vmax.f32 %v5648_v27, %v8163_v9  ;;  %v5794_v54 = vmax.f32 %v5649_v46, %v8164_v28 }
 0xa10   : > { %15836 = vst [vmem:[#allocation150_spill] sm:$0xff] %v12654_v55  ;;  %v5665_v59 = vrot.slane %v5613_v34, 2  ;;  %v5666_v63 = vrot.slane %v5613_v34, 4  ;;  %v5667_v24 = vrot.slane %v5613_v34, 6  ;;  %v8185_v1 = vrot.slane %v5613_v34, 9 }
 0xa11   : > { %4909 = vst [vmem:[#allocation1 + $0x3] ss:$9 sm:$0xff] %v15838_v22  ;;  %v5652_v49 = vrot.slane %v5608_v19, 6  ;;  %v8165_v44 = vrot.slane %v5608_v19, 9 }
 0xa12   : > { %4910 = vst [vmem:[#allocation1 + $0x4] ss:$9 sm:$0xff] %v15840_v13  ;;  %v8186_v7 = vrot.slane %v5665_v59, 9  ;;  %v8187_v45 = vrot.slane %v5666_v63, 9  ;;  %v5544_v38 = vpop.f32.mrf.mxu2  ;;  %v8188_v11 = vrot.slane %v5667_v24, 9  ;;  %v5815_v57 = vmax.f32 %v5613_v34, %v8185_v1 }
 0xa13   : > { %4911 = vst [vmem:[#allocation1 + $0x5] ss:$9 sm:$0xff] %v15841_v14  ;;  %v5545_v22 = vadd.f32 %v5544_v38, %v5456_v2  ;;  %v5650_v13 = vrot.slane %v5608_v19, 2  ;;  %v5651_v14 = vrot.slane %v5608_v19, 4  ;;  %v8168_v31 = vrot.slane %v5652_v49, 9 }
 0xa14   : > { %4912 = vst [vmem:[#allocation1 + $0x6] ss:$9 sm:$0xff] %v15842_v39  ;;  %v5816_v39 = vmax.f32 %v5665_v59, %v8186_v7  ;;  %v5817_v47 = vmax.f32 %v5666_v63, %v8187_v45  ;;  %v5818_v32 = vmax.f32 %v5667_v24, %v8188_v11  ;;  %v5795_v46 = vmax.f32 %v5608_v19, %v8165_v44  ;;  %v15852_v44 = vld [vmem:[#allocation37_spill] sm:$0xff] }
 0xa15   : > { %4913 = vst [vmem:[#allocation1 + $0x7] ss:$9 sm:$0xff] %v15843_v26  ;;  %v5614_v36 = vmax.f32 %v5545_v22, 0.0  ;;  %v8166_v17 = vrot.slane %v5650_v13, 9  ;;  %v8167_v26 = vrot.slane %v5651_v14, 9  ;;  %v5798_v41 = vmax.f32 %v5652_v49, %v8168_v31  ;;  %v12673_v9 = vpop.f32.mrf.mxu3 }
 0xa16   : > { %v12676_v7 = vmax.f32 %v5791_v6, %v5795_v46 }
 0xa17   : > { %8157 = vmatmul.msk.bf16.gmra.mxu2 %vm4933_vm9, %v4905_v25  ;;  %v5668_v55 = vrot.slane %v5614_v36, 2  ;;  %v5669_v51 = vrot.slane %v5614_v36, 4  ;;  %v5670_v0 = vrot.slane %v5614_v36, 6  ;;  %v8189_v27 = vrot.slane %v5614_v36, 9  ;;  %v15844_v25 = vld [vmem:[#allocation171_spill] sm:$0xff] }
 0xa18   : > { %v5796_v50 = vmax.f32 %v5650_v13, %v8166_v17  ;;  %v5797_v34 = vmax.f32 %v5651_v14, %v8167_v26  ;;  %15845 = vst [vmem:[#allocation140_spill] sm:$0xff] %v12676_v7  ;;  %v12682_v19 = vmax.f32 %v5794_v54, %v5798_v41  ;;  %v15847_v17 = vld [vmem:[#allocation172_spill] sm:$0xff]  ;;  %v5354_v13 = vpop.f32.mrf.mxu1  ;;  %v15851_v54 = vld [vmem:[#allocation178_spill] sm:$0xff] }
 0xa19   : > { %v8190_v63 = vrot.slane %v5668_v55, 9  ;;  %v8191_v28 = vrot.slane %v5669_v51, 9  ;;  %v8192_v1 = vrot.slane %v5670_v0, 9  ;;  %v5819_v24 = vmax.f32 %v5614_v36, %v8189_v27  ;;  %v15849_v36 = vld [vmem:[#allocation175_spill] sm:$0xff]  ;;  %v15850_v14 = vld [vmem:[#allocation176_spill] sm:$0xff]  ;;  %v15855_v27 = vld [vmem:[#allocation181_spill] sm:$0xff] }
 0xa1a   : > { %v5547_v2 = vpop.f32.mrf.mxu2  ;;  %v12678_v45 = vmax.f32 %v5792_v40, %v5796_v50  ;;  %v12680_v38 = vmax.f32 %v5793_v61, %v5797_v34  ;;  %15846 = vst [vmem:[#allocation194_spill] sm:$0xff] %v12682_v19  ;;  %v5355_v26 = vadd.f32 %v12519_v52, %v5354_v13 }
 0xa1b   : > { %v5820_v31 = vmax.f32 %v5668_v55, %v8190_v63  ;;  %v5821_v49 = vmax.f32 %v5669_v51, %v8191_v28  ;;  %v5822_v11 = vmax.f32 %v5670_v0, %v8192_v1  ;;  %v12685_v22 = vmax.f32 %v5815_v57, %v5819_v24  ;;  %v15853_v57 = vld [vmem:[#allocation179_spill] sm:$0xff]  ;;  %v15854_v51 = vld [vmem:[#allocation180_spill] sm:$0xff] }
 0xa1c   : > { %v4914_v59 = vld [vmem:[#allocation1] sm:$0xff]  ;;  %v5372_v55 = vadd.f32 %v12519_v52, %v15852_v44  ;;  %v5444_v46 = vadd.f32 %v12504_v20, %v5355_v26  ;;  %v15858_v44 = vld [vmem:[#allocation182_spill] sm:$0xff] }
 0xa1d   : > { %4915 = vst [vmem:[#allocation1] ss:$9 sm:$0xff] %v15844_v25  ;;  %v12689_v6 = vmax.f32 %v5816_v39, %v5820_v31  ;;  %v12691_v40 = vmax.f32 %v5817_v47, %v5821_v49  ;;  %v12693_v61 = vmax.f32 %v5818_v32, %v5822_v11  ;;  %v5548_v39 = vadd.f32 %v5547_v2, %v12573_v35  ;;  %v12707_v34 = vpop.f32.mrf.mxu3  ;;  %v15856_v31 = vld [vmem:[#allocation7_spill] sm:$0xff] }
 0xa1e   : > { %4916 = vst [vmem:[#allocation1 + $0x1] ss:$9 sm:$0xff] %v15847_v17  ;;  %v5461_v0 = vadd.f32 %v12594_v12, %v5372_v55  ;;  %v5533_v28 = vadd.f32 %v12591_v62, %v5444_v46  ;;  %v15857_v62 = vld [vmem:[#allocation225_spill] sm:$0xff]  ;;  %v5385_v55 = vadd.f32 %v12519_v52, %v12389_v18  ;;  %v5390_v46 = vadd.f32 %v12519_v52, %v12424_v8 }
 0xa1f   : > { %15848 = vst [vmem:[#allocation23_spill] sm:$0xff] %v12685_v22  ;;  %v12704_v32 = vmax.f32 %v5548_v39, 0.0  ;;  %v5377_v18 = vadd.f32 %v12519_v52, %v12345_v16 }
 0xa20   : > { %4917 = vst [vmem:[#allocation1 + $0x2] ss:$9 sm:$0xff] %v15849_v36  ;;  %v5609_v49 = vmax.f32 %v5533_v28, 0.0 }
 0xa21   : > { %4918 = vst [vmem:[#allocation1 + $0x3] ss:$9 sm:$0xff] %v15850_v14  ;;  %v5847_v41 = vrot.slane %v12704_v32, 2  ;;  %v5849_v63 = vrot.slane %v12704_v32, 6  ;;  %v8193_v35 = vrot.slane %v12704_v32, 9 }
 0xa22   : > { %4919 = vst [vmem:[#allocation1 + $0x4] ss:$9 sm:$0xff] %v15851_v54  ;;  %v5549_v47 = vpop.f32.mrf.mxu2  ;;  %v5654_v28 = vrot.slane %v5609_v49, 4 }
 0xa23   : > { %4920 = vst [vmem:[#allocation1 + $0x5] ss:$9 sm:$0xff] %v15853_v57  ;;  %v5550_v50 = vadd.f32 %v5549_v47, %v5461_v0  ;;  %v8194_v12 = vrot.slane %v5847_v41, 9  ;;  %v8196_v25 = vrot.slane %v5849_v63, 9  ;;  %v5991_v13 = vmax.f32 %v12704_v32, %v8193_v35  ;;  %v5356_v57 = vpop.f32.mrf.mxu1 }
 0xa24   : > { %4921 = vst [vmem:[#allocation1 + $0x6] ss:$9 sm:$0xff] %v15854_v51  ;;  %v15859_v51 = vld [vmem:[#allocation92_spill] sm:$0xff]  ;;  %v12733_v35 = vadd.f32 %v12673_v9, %v5385_v55  ;;  %v15863_v9 = vrot.slane %v15720_v23, 3 }
 0xa25   : > { %4922 = vst [vmem:[#allocation1 + $0x7] ss:$9 sm:$0xff] %v15855_v27  ;;  %v12712_v1 = vmax.f32 %v5550_v50, 0.0  ;;  %v5478_v54 = vpop.f32.mrf.mxu3  ;;  %v5992_v26 = vmax.f32 %v5847_v41, %v8194_v12  ;;  %v5994_v0 = vmax.f32 %v5849_v63, %v8196_v25  ;;  %v5653_v50 = vrot.slane %v5609_v49, 2 }
 0xa26   : > { %v5357_v12 = vadd.f32 %v12519_v52, %v5356_v57  ;;  %v8169_v25 = vrot.slane %v5609_v49, 9 }
 0xa27   : > { %8158 = vmatmul.msk.bf16.gmra.mxu2 %vm4933_vm9, %v4914_v59  ;;  %v5850_v24 = vrot.slane %v12712_v1, 2  ;;  %v5852_v20 = vrot.slane %v12712_v1, 6  ;;  %v8197_v17 = vrot.slane %v12712_v1, 9 }
 0xa28   : > { %v5446_v16 = vadd.f32 %v12513_v33, %v5357_v12  ;;  %v8626_v33 = vld [vmem:[%s13834_s5 + $0x38] sm:$0xff] }
 0xa29   : > { %v8198_v36 = vrot.slane %v5850_v24, 9  ;;  %v8200_v14 = vrot.slane %v5852_v20, 9  ;;  %v5995_v59 = vmax.f32 %v12712_v1, %v8197_v17  ;;  %v8170_v17 = vrot.slane %v5653_v50, 9  ;;  %7343 = vmatpush.bf16.msra.mxu3 %v8626_v33 }
 0xa2a   : > { %v5552_v11 = vpop.f32.mrf.mxu2 }
 0xa2b   : > { %v5996_v39 = vmax.f32 %v5850_v24, %v8198_v36  ;;  %v5998_v27 = vmax.f32 %v5852_v20, %v8200_v14  ;;  %v12727_v47 = vmax.f32 %v5991_v13, %v5995_v59  ;;  %v5655_v24 = vrot.slane %v5609_v49, 6 }
 0xa2c   : > { %v4923_v2 = vld [vmem:[#allocation1] sm:$0xff]  ;;  %v5553_v8 = vadd.f32 %v5552_v11, %v12613_v30  ;;  %v12745_v20 = vadd.f32 %v5478_v54, %v5390_v46  ;;  %v5535_v36 = vadd.f32 %v12603_v42, %v5446_v16  ;;  %v5800_v55 = vmax.f32 %v5653_v50, %v8170_v17 }
 0xa2d   : > { %4924 = vst [vmem:[#allocation1] ss:$9 sm:$0xff] %v15856_v31  ;;  %v12738_v41 = vmax.f32 %v5992_v26, %v5996_v39  ;;  %v12740_v63 = vmax.f32 %v5994_v0, %v5998_v27  ;;  %v8171_v31 = vrot.slane %v5654_v28, 9  ;;  %v12754_v59 = vpop.f32.mrf.mxu3  ;;  %v8172_v30 = vrot.slane %v5655_v24, 9 }
 0xa2e   : > { %4925 = vst [vmem:[#allocation1 + $0x1] ss:$9 sm:$0xff] %v15857_v62  ;;  %v12751_v62 = vmax.f32 %v5553_v8, 0.0 }
 0xa2f   : > { %4926 = vst [vmem:[#allocation1 + $0x2] ss:$9 sm:$0xff] %v15858_v44  ;;  %v5799_v44 = vmax.f32 %v5609_v49, %v8169_v25  ;;  %v5801_v26 = vmax.f32 %v5654_v28, %v8171_v31  ;;  %v5802_v27 = vmax.f32 %v5655_v24, %v8172_v30 }
 0xa30   : > { %4927 = vst [vmem:[#allocation1 + $0x3] ss:$9 sm:$0xff] %v15859_v51  ;;  %v5853_v11 = vrot.slane %v12751_v62, 2  ;;  %v5854_v23 = vrot.slane %v12751_v62, 4  ;;  %v8201_v42 = vrot.slane %v12751_v62, 9 }
 0xa31   : > { %15860 = vst [vmem:[#allocation39_spill] sm:$0xff] %v12727_v47 }
 0xa32   : > { %4928 = vst [vmem:[#allocation1 + $0x4] ss:$9 sm:$0xff] %v12002_v58  ;;  %v15862_v58 = vld [vmem:[#allocation12_spill] sm:$0xff]  ;;  %v5554_v13 = vpop.f32.mrf.mxu2  ;;  %v8202_v46 = vrot.slane %v5853_v11, 9  ;;  %v5999_v50 = vmax.f32 %v12751_v62, %v8201_v42 }
 0xa33   : > { %4929 = vst [vmem:[#allocation1 + $0x5] ss:$9 sm:$0xff] %v12004_v37  ;;  %v5466_v37 = vadd.f32 %v12624_v43, %v5377_v18  ;;  %v5610_v43 = vmax.f32 %v5535_v36, 0.0  ;;  %v8203_v18 = vrot.slane %v5854_v23, 9 }
 0xa34   : > { %15861 = vst [vmem:[#allocation50_spill] sm:$0xff] %v12740_v63  ;;  %v6000_v36 = vmax.f32 %v5853_v11, %v8202_v46 }
 0xa35   : > { %4930 = vst [vmem:[#allocation1 + $0x6] ss:$9 sm:$0xff] %v15862_v58  ;;  %v5555_v14 = vadd.f32 %v5554_v13, %v5466_v37  ;;  %v5656_v57 = vrot.slane %v5610_v43, 2  ;;  %v5657_v51 = vrot.slane %v5610_v43, 4  ;;  %v5658_v0 = vrot.slane %v5610_v43, 6  ;;  %v5483_v13 = vpop.f32.mrf.mxu3 }
 0xa36   : > { %4931 = vst [vmem:[#allocation1 + $0x7] ss:$9 sm:$0xff] %v15863_v9  ;;  %v8173_v39 = vrot.slane %v5610_v43, 9  ;;  %v6001_v22 = vmax.f32 %v5854_v23, %v8203_v18  ;;  %v5395_v23 = vadd.f32 %v12519_v52, %v12466_v21 }
 0xa37   : > { %v12761_v54 = vmax.f32 %v5555_v14, 0.0  ;;  %8159 = vmatmul.msk.bf16.gmra.mxu2 %vm4933_vm9, %v4923_v2  ;;  %v8174_v58 = vrot.slane %v5656_v57, 9  ;;  %v8175_v8 = vrot.slane %v5657_v51, 9  ;;  %v8176_v9 = vrot.slane %v5658_v0, 9 }
 0xa38   : > { %v5803_v49 = vmax.f32 %v5610_v43, %v8173_v39 }
 0xa39   : > { %v5856_v12 = vrot.slane %v12761_v54, 2  ;;  %v5857_v28 = vrot.slane %v12761_v54, 4  ;;  %v8205_v37 = vrot.slane %v12761_v54, 9  ;;  %v5804_v17 = vmax.f32 %v5656_v57, %v8174_v58 }
 0xa3a   : > { %v5557_v25 = vpop.f32.mrf.mxu2  ;;  %v5805_v31 = vmax.f32 %v5657_v51, %v8175_v8  ;;  %v5806_v2 = vmax.f32 %v5658_v0, %v8176_v9  ;;  %v12769_v24 = vmax.f32 %v5799_v44, %v5803_v49  ;;  %v5382_v44 = vadd.f32 %v12519_v52, %v12372_v48 }
 0xa3b   : > { %v8206_v16 = vrot.slane %v5856_v12, 9  ;;  %v8207_v14 = vrot.slane %v5857_v28, 9  ;;  %v6003_v30 = vmax.f32 %v12761_v54, %v8205_v37  ;;  %v12772_v43 = vmax.f32 %v5800_v55, %v5804_v17 }
 0xa3c   : > { %v12774_v42 = vmax.f32 %v5801_v26, %v5805_v31  ;;  %v12776_v39 = vmax.f32 %v5802_v27, %v5806_v2  ;;  %v5558_v51 = vadd.f32 %v5557_v25, %v12642_v29  ;;  %v5471_v55 = vadd.f32 %v12665_v53, %v5382_v44 }
 0xa3d   : > { %v6004_v33 = vmax.f32 %v5856_v12, %v8206_v16  ;;  %v6005_v63 = vmax.f32 %v5857_v28, %v8207_v14  ;;  %v12778_v47 = vmax.f32 %v5999_v50, %v6003_v30  ;;  %v12792_v46 = vpop.f32.mrf.mxu3  ;;  %v5400_v49 = vadd.f32 %v12519_v52, %v12495_v10 }
 0xa3e   : > { %v12788_v0 = vmax.f32 %v5558_v51, 0.0  ;;  %v6450_v14 = vpack.c.bf16 %v12656_v4, %v12656_v4  ;;  %v5387_v10 = vadd.f32 %v12519_v52, %v12404_v5  ;;  %v12818_v30 = vadd.f32 %v12519_v52, %v12377_v60  ;;  %v15867_v51 = vld [vmem:[#allocation150_spill] sm:$0xff] }
 0xa3f   : > { %v12780_v57 = vmax.f32 %v6000_v36, %v6004_v33  ;;  %v12784_v11 = vmax.f32 %v6001_v22, %v6005_v63  ;;  %v12798_v22 = vadd.f32 %v5483_v13, %v5395_v23  ;;  %v4932_v63 = vld [vmem:[#allocation1] sm:$0xff]  ;;  %v12828_v44 = vadd.f32 %v12519_v52, %v12442_v56 }
 0xa40   : > { %v5859_v18 = vrot.slane %v12788_v0, 2  ;;  %v5860_v12 = vrot.slane %v12788_v0, 4  ;;  %v6447_v4 = vpack.c.bf16 %v12646_v3, %v12646_v3  ;;  %v6449_v5 = vpack.c.bf16 %v15867_v51, %v15867_v51  ;;  %v15882_v51 = vld [vmem:[#allocation91_spill] sm:$0xff] }
 0xa41   : > { %v5476_v56 = vadd.f32 %v12707_v34, %v5387_v10 }
 0xa42   : > { %v5559_v26 = vpop.f32.mrf.mxu2  ;;  %v8210_v29 = vrot.slane %v5859_v18, 9  ;;  %v8211_v53 = vrot.slane %v5860_v12, 9 }
 0xa43   : > { %v5560_v27 = vadd.f32 %v5559_v26, %v5471_v55  ;;  %v15868_v55 = vld [vmem:[#allocation48_spill] sm:$0xff] }
 0xa44   : > { %v6008_v50 = vmax.f32 %v5859_v18, %v8210_v29  ;;  %v6009_v37 = vmax.f32 %v5860_v12, %v8211_v53  ;;  %v12836_v60 = vadd.f32 %v12519_v52, %v15868_v55  ;;  %v15870_v26 = vld [vmem:[#allocation52_spill] sm:$0xff]  ;;  %v15873_v18 = vld [vmem:[#allocation49_spill] sm:$0xff]  ;;  %v15875_v12 = vld [vmem:[#allocation55_spill] sm:$0xff]  ;;  %v12880_v55 = vadd.f32 %v12519_v52, %v15882_v51 }
 0xa45   : > { %v12796_v48 = vmax.f32 %v5560_v27, 0.0  ;;  %v5488_v31 = vpop.f32.mrf.mxu3  ;;  %v12840_v23 = vadd.f32 %v12519_v52, %v15870_v26  ;;  %v12849_v3 = vadd.f32 %v12519_v52, %v15873_v18  ;;  %v12853_v29 = vadd.f32 %v12519_v52, %v15875_v12  ;;  %v8625_v18 = vld [vmem:[%s13834_s5 + $0x30] sm:$0xff] }
 0xa46   : > { %v12806_v2 = vadd.f32 %v5488_v31, %v5400_v49  ;;  %15869 = vst [vmem:[#allocation72_spill] sm:$0xff] %v12836_v60  ;;  %v15879_v49 = vld [vmem:[#allocation149_spill] sm:$0xff]  ;;  %v6454_v31 = vpack.c.bf16 %v12693_v61, %v12693_v61  ;;  %v6452_v61 = vpack.c.bf16 %v12689_v6, %v12689_v6  ;;  %7344 = vmatpush.bf16.msra.mxu3 %v8625_v18 }
 0xa47   : > { %15864 = vst [vmem:[#allocation61_spill] sm:$0xff] %v12796_v48  ;;  %v5862_v58 = vrot.slane %v12796_v48, 2  ;;  %v5863_v8 = vrot.slane %v12796_v48, 4  ;;  %8160 = vmatmul.msk.bf16.gmra.mxu2 %vm4933_vm9, %v4932_v63  ;;  %v15877_v63 = vld [vmem:[#allocation97_spill] sm:$0xff]  ;;  %v6448_v34 = vpack.c.bf16 %v15879_v49, %v15879_v49 }
 0xa48   : > { %15871 = vst [vmem:[#allocation16_spill] sm:$0xff] %v12840_v23  ;;  %v12857_v53 = vadd.f32 %v12519_v52, %v15877_v63  ;;  %v6991_v6 = vunpack.c.l.b16 %v6454_v31  ;;  %v12909_v19 = vunpack.c.l.b16 %v6452_v61  ;;  %v5855_v61 = vrot.slane %v12751_v62, 6 }
 0xa49   : > { %v8214_v21 = vrot.slane %v5862_v58, 9  ;;  %v8215_v9 = vrot.slane %v5863_v8, 9  ;;  %15874 = vst [vmem:[#allocation19_spill] sm:$0xff] %v12849_v3  ;;  %v6733_v12 = vunpack.c.l.b16 %v6448_v34  ;;  %v5851_v3 = vrot.slane %v12712_v1, 4 }
 0xa4a   : > { %v5562_v28 = vpop.f32.mrf.mxu2  ;;  %15876 = vst [vmem:[#allocation22_spill] sm:$0xff] %v12853_v29  ;;  %v8349_v23 = vunpack.i.l.s16 %v6991_v6  ;;  %v6443_v1 = vpack.c.bf16 %v12769_v24, %v12769_v24 }
 0xa4b   : > { %v6012_v16 = vmax.f32 %v5862_v58, %v8214_v21  ;;  %v6013_v25 = vmax.f32 %v5863_v8, %v8215_v9  ;;  %v5563_v17 = vadd.f32 %v5562_v28, %v12733_v35  ;;  %v12824_v35 = vadd.f32 %v12519_v52, %v12394_v15  ;;  %v15872_v15 = vld [vmem:[#allocation56_spill] sm:$0xff]  ;;  %v15878_v21 = vld [vmem:[#allocation98_spill] sm:$0xff]  ;;  %15887 = vst [vmem:[#allocation103_spill] sm:$0xff] %v12909_v19 }
 0xa4c   : > { %v12844_v27 = vadd.f32 %v12519_v52, %v15872_v15  ;;  %v12859_v58 = vunpack.c.l.b16 %v6450_v14  ;;  %v5405_v9 = vadd.f32 %v12519_v52, %v15878_v21  ;;  %v15881_v14 = vld [vmem:[#allocation99_spill] sm:$0xff]  ;;  %v12950_v24 = vrot.slane %v8349_v23, 5 }
 0xa4d   : > { %v12808_v13 = vmax.f32 %v6008_v50, %v6012_v16  ;;  %v12810_v36 = vmax.f32 %v6009_v37, %v6013_v25  ;;  %v12820_v33 = vmax.f32 %v5563_v17, 0.0  ;;  %15866 = vst [vmem:[#allocation13_spill] sm:$0xff] %v12824_v35  ;;  %v12866_v37 = vpop.f32.mrf.mxu3  ;;  %v12868_v16 = vunpack.c.l.b16 %v6447_v4  ;;  %v15884_v4 = vld [vmem:[#allocation147_spill] sm:$0xff] }
 0xa4e   : > { %v6791_v25 = vunpack.c.l.b16 %v6449_v5  ;;  %v6453_v17 = vpack.c.bf16 %v12691_v40, %v12691_v40  ;;  %v12876_v10 = vadd.f32 %v12519_v52, %v15881_v14  ;;  %v12887_v5 = vadd.f32 %v12519_v52, %v15884_v4 }
 0xa4f   : > { %15865 = vst [vmem:[#allocation9_spill] sm:$0xff] %v12820_v33  ;;  %v5867_v50 = vrot.slane %v12820_v33, 6  ;;  %v8217_v26 = vrot.slane %v12820_v33, 9  ;;  %v14520_v40 = vunpack.i.l.s16 %v12859_v58 }
 0xa50   : > { %15880 = vst [vmem:[#allocation90_spill] sm:$0xff] %v12868_v16  ;;  %v12900_v49 = vunpack.i.l.s16 %v6791_v25  ;;  %v6440_v25 = vpack.c.bf16 %v12678_v45, %v12678_v45 }
 0xa51   : > { %v8220_v63 = vrot.slane %v5867_v50, 9  ;;  %v6015_v14 = vmax.f32 %v12820_v33, %v8217_v26  ;;  %v7003_v4 = vrot.slane %v14520_v40, 7 }
 0xa52   : > { %v5564_v8 = vpop.f32.mrf.mxu2  ;;  %15885 = vst [vmem:[#allocation164_spill] sm:$0xff] %v12900_v49 }
 0xa53   : > { %v5565_v28 = vadd.f32 %v5564_v8, %v5476_v56  ;;  %v6441_v56 = vpack.c.bf16 %v12680_v38, %v12680_v38  ;;  %v5848_v38 = vrot.slane %v12704_v32, 4  ;;  %v6018_v31 = vmax.f32 %v5867_v50, %v8220_v63 }
 0xa54   : > { %v12926_v50 = vunpack.i.l.s16 %v6733_v12  ;;  %v15893_v63 = vunpack.i.l.s16 %v12868_v16 }
 0xa55   : > { %v12883_v15 = vmax.f32 %v5565_v28, 0.0  ;;  %v12902_v28 = vunpack.c.l.b16 %v6453_v17  ;;  %v12913_v52 = vunpack.c.l.b16 %v6441_v56  ;;  %v5493_v26 = vpop.f32.mrf.mxu3  ;;  %v8195_v45 = vrot.slane %v5848_v38, 9 }
 0xa56   : > { %v12921_v40 = vadd.f32 %v5493_v26, %v5405_v9  ;;  %v5858_v56 = vrot.slane %v12761_v54, 6  ;;  %15892 = vst [vmem:[#allocation173_spill] sm:$0xff] %v12926_v50  ;;  %v12940_v9 = vunpack.c.l.b16 %v6440_v25 }
 0xa57   : > { %15883 = vst [vmem:[#allocation26_spill] sm:$0xff] %v12883_v15  ;;  %v5870_v8 = vrot.slane %v12883_v15, 6  ;;  %v8221_v21 = vrot.slane %v12883_v15, 9 }
 0xa58   : > { %15886 = vst [vmem:[#allocation27_spill] sm:$0xff] %v12902_v28  ;;  %v8208_v25 = vrot.slane %v5858_v56, 9 }
 0xa59   : > { %v8224_v51 = vrot.slane %v5870_v8, 9  ;;  %v6019_v34 = vmax.f32 %v12883_v15, %v8221_v21  ;;  %15888 = vst [vmem:[#allocation32_spill] sm:$0xff] %v12913_v52  ;;  %v14521_v21 = vunpack.i.l.s16 %v12902_v28 }
 0xa5a   : > { %v5567_v17 = vpop.f32.mrf.mxu2  ;;  %15890 = vst [vmem:[#allocation34_spill] sm:$0xff] %v12921_v40 }
 0xa5b   : > { %v6022_v18 = vmax.f32 %v5870_v8, %v8224_v51  ;;  %v12915_v29 = vmax.f32 %v6015_v14, %v6019_v34  ;;  %v5568_v32 = vadd.f32 %v5567_v17, %v12745_v20  ;;  %v12930_v20 = vrot.slane %v15893_v63, 6  ;;  %15895 = vst [vmem:[#allocation113_spill] sm:$0xff] %v12940_v9 }
 0xa5c   : > { %v12934_v8 = vsel %vm1241_vm3, %v7003_v4, %v12900_v49  ;;  %v8199_v14 = vrot.slane %v5851_v3, 9  ;;  %v6456_v51 = vpack.c.bf16 %v12738_v41, %v12738_v41  ;;  %v8204_v34 = vrot.slane %v5855_v61, 9 }
 0xa5d   : > { %15889 = vst [vmem:[#allocation33_spill] sm:$0xff] %v12915_v29  ;;  %v12924_v60 = vmax.f32 %v6018_v31, %v6022_v18  ;;  %v5623_v12 = vmax.f32 %v5568_v32, 0.0  ;;  %v12948_v4 = vrot.slane %v14521_v21, 6  ;;  %v12952_v17 = vmax.f32 %v5848_v38, %v8195_v45  ;;  %v12964_v45 = vpop.f32.mrf.mxu3 }
 0xa5e   : > { %15894 = vst [vmem:[#allocation51_spill] sm:$0xff] %v12930_v20  ;;  %v6444_v31 = vpack.c.bf16 %v12772_v43, %v12772_v43  ;;  %v6445_v18 = vpack.c.bf16 %v12774_v42, %v12774_v42  ;;  %v12958_v32 = vunpack.c.l.b16 %v6443_v1  ;;  %v5481_v41 = vadd.f32 %v12754_v59, %v12828_v44 }
 0xa5f   : > { %15891 = vst [vmem:[#allocation35_spill] sm:$0xff] %v12924_v60  ;;  %v6446_v63 = vpack.c.bf16 %v12776_v39, %v12776_v39  ;;  %v6047_v23 = vrot.slane %v5623_v12, 2  ;;  %v6048_v62 = vrot.slane %v5623_v12, 4  ;;  %v6049_v38 = vrot.slane %v5623_v12, 6 }
 0xa60   : > { %15896 = vst [vmem:[#allocation54_spill] sm:$0xff] %v12958_v32  ;;  %v12966_v21 = vmax.f32 %v5851_v3, %v8199_v14  ;;  %v12968_v43 = vunpack.c.l.b16 %v6456_v51  ;;  %v12970_v6 = vmax.f32 %v5855_v61, %v8204_v34  ;;  %v12972_v1 = vmax.f32 %v5858_v56, %v8208_v25 }
 0xa61   : > { %v6459_v59 = vpack.c.bf16 %v12778_v47, %v12778_v47  ;;  %v6460_v39 = vpack.c.bf16 %v12780_v57, %v12780_v57  ;;  %v8225_v44 = vrot.slane %v5623_v12, 9  ;;  %v6522_v54 = vunpack.c.l.b16 %v6444_v31 }
 0xa62   : > { %v5569_v26 = vpop.f32.mrf.mxu2  ;;  %15897 = vst [vmem:[#allocation186_spill] sm:$0xff] %v12968_v43  ;;  %v6609_v60 = vunpack.c.l.b16 %v6445_v18  ;;  %v12979_v14 = vunpack.c.l.b16 %v6446_v63  ;;  %v8226_v51 = vrot.slane %v6047_v23, 9  ;;  %v8227_v61 = vrot.slane %v6048_v62, 9 }
 0xa63   : > { %15898 = vst [vmem:[#allocation59_spill] sm:$0xff] %v12970_v6  ;;  %v5570_v42 = vadd.f32 %v5569_v26, %v5481_v41  ;;  %v8228_v34 = vrot.slane %v6049_v38, 9  ;;  %v12981_v16 = vunpack.c.l.b16 %v6459_v59  ;;  %v6526_v47 = vunpack.c.l.b16 %v6460_v39 }
 0xa64   : > { %15899 = vst [vmem:[#allocation124_spill] sm:$0xff] %v12979_v14  ;;  %v6465_v57 = vpack.c.bf16 %v12810_v36, %v12810_v36  ;;  %v6191_v31 = vmax.f32 %v5623_v12, %v8225_v44  ;;  %v6192_v20 = vmax.f32 %v6047_v23, %v8226_v51  ;;  %v6193_v32 = vmax.f32 %v6048_v62, %v8227_v61 }
 0xa65   : > { %v5624_v3 = vmax.f32 %v5570_v42, 0.0  ;;  %15900 = vst [vmem:[#allocation65_spill] sm:$0xff] %v12981_v16  ;;  %v6194_v28 = vmax.f32 %v6049_v38, %v8228_v34  ;;  %v12986_v19 = vpop.f32.mrf.mxu3  ;;  %v14532_v36 = vrot.slane %v12788_v0, 6  ;;  %v8209_v12 = vrot.slane %v12788_v0, 9 }
 0xa66   : > { %v14530_v44 = vrot.slane %v12796_v48, 6  ;;  %v12998_v51 = vunpack.i.l.s16 %v6522_v54  ;;  %v14531_v61 = vrot.slane %v12820_v33, 4  ;;  %v13004_v34 = vunpack.i.l.s16 %v6609_v60 }
 0xa67   : > { %v6050_v41 = vrot.slane %v5624_v3, 2  ;;  %v6051_v56 = vrot.slane %v5624_v3, 4  ;;  %v6052_v25 = vrot.slane %v5624_v3, 6  ;;  %v8229_v26 = vrot.slane %v5624_v3, 9 }
 0xa68   : > { %15903 = vst [vmem:[#allocation142_spill] sm:$0xff] %v12998_v51  ;;  %v5486_v54 = vadd.f32 %v12792_v46, %v12844_v27  ;;  %v13018_v60 = vmax.f32 %v12788_v0, %v8209_v12  ;;  %v13032_v27 = vrot.slane %v14531_v61, 9 }
 0xa69   : > { %v8230_v7 = vrot.slane %v6050_v41, 9  ;;  %v8231_v29 = vrot.slane %v6051_v56, 9  ;;  %v8232_v18 = vrot.slane %v6052_v25, 9  ;;  %v6195_v42 = vmax.f32 %v5624_v3, %v8229_v26 }
 0xa6a   : > { %v5572_v63 = vpop.f32.mrf.mxu2  ;;  %v5865_v3 = vrot.slane %v12820_v33, 2  ;;  %15905 = vst [vmem:[#allocation87_spill] sm:$0xff] %v13032_v27 }
 0xa6b   : > { %v5573_v35 = vadd.f32 %v5572_v63, %v12798_v22  ;;  %v6196_v40 = vmax.f32 %v6050_v41, %v8230_v7  ;;  %v6197_v59 = vmax.f32 %v6051_v56, %v8231_v29  ;;  %v6198_v6 = vmax.f32 %v6052_v25, %v8232_v18 }
 0xa6c   : > { %v12988_v39 = vmax.f32 %v6191_v31, %v6195_v42  ;;  %v8213_v29 = vrot.slane %v12796_v48, 9  ;;  %v13022_v56 = vrot.slane %v14530_v44, 9  ;;  %v14535_v42 = vrot.slane %v12883_v15, 4 }
 0xa6d   : > { %v6224_v23 = vmax.f32 %v6192_v20, %v6196_v40  ;;  %v6225_v62 = vmax.f32 %v6193_v32, %v6197_v59  ;;  %v12994_v38 = vmax.f32 %v6194_v28, %v6198_v6  ;;  %v12996_v22 = vmax.f32 %v5573_v35, 0.0  ;;  %v5500_v31 = vpop.f32.mrf.mxu3 }
 0xa6e   : > { %15901 = vst [vmem:[#allocation73_spill] sm:$0xff] %v12988_v39  ;;  %v6792_v20 = vunpack.c.l.b16 %v6465_v57  ;;  %v13008_v28 = vunpack.i.l.s16 %v6526_v47  ;;  %v8218_v35 = vrot.slane %v5865_v3, 9  ;;  %v5868_v6 = vrot.slane %v12883_v15, 2 }
 0xa6f   : > { %15902 = vst [vmem:[#allocation76_spill] sm:$0xff] %v12994_v38  ;;  %v13015_v32 = vrot.slane %v14532_v36, 9  ;;  %v6055_v25 = vrot.slane %v12996_v22, 6  ;;  %v13026_v47 = vmax.f32 %v12796_v48, %v8213_v29  ;;  %v6473_v63 = vpack.c.bf16 %v6225_v62, %v6225_v62 }
 0xa70   : > { %15904 = vst [vmem:[#allocation88_spill] sm:$0xff] %v13008_v28  ;;  %v13034_v18 = vunpack.i.l.s16 %v6792_v20  ;;  %v6053_v59 = vrot.slane %v12996_v22, 2  ;;  %v13038_v12 = vmax.f32 %v5865_v3, %v8218_v35  ;;  %v8222_v29 = vrot.slane %v5868_v6, 9 }
 0xa71   : > { %v13042_v41 = vadd.f32 %v12866_v37, %v12857_v53  ;;  %v6054_v61 = vrot.slane %v12996_v22, 4  ;;  %v6025_v20 = vmax.f32 %v12952_v17, %v12966_v21  ;;  %v13050_v3 = vrot.slane %v14535_v42, 9 }
 0xa72   : > { %v5574_v26 = vpop.f32.mrf.mxu2  ;;  %15906 = vst [vmem:[#allocation86_spill] sm:$0xff] %v13034_v18  ;;  %v6472_v35 = vpack.c.bf16 %v6224_v23, %v6224_v23  ;;  %v13052_v53 = vunpack.c.l.b16 %v6473_v63  ;;  %v8234_v37 = vrot.slane %v6053_v59, 9  ;;  %v13057_v17 = vmax.f32 %v5868_v6, %v8222_v29  ;;  %v15918_v6 = vld [vmem:[#allocation103_spill] sm:$0xff] }
 0xa73   : > { %v5575_v57 = vadd.f32 %v5574_v26, %v5486_v54  ;;  %15907 = vst [vmem:[#allocation153_spill] sm:$0xff] %v13038_v12  ;;  %v8233_v54 = vrot.slane %v12996_v22, 9  ;;  %v8236_v26 = vrot.slane %v6055_v25, 9  ;;  %v8235_v12 = vrot.slane %v6054_v61, 9 }
 0xa74   : > { %15908 = vst [vmem:[#allocation101_spill] sm:$0xff] %v13050_v3  ;;  %v6457_v15 = vpack.c.bf16 %v6025_v20, %v6025_v20  ;;  %v13061_v14 = vunpack.c.l.b16 %v6472_v35  ;;  %v14540_v48 = vunpack.i.l.s16 %v13052_v53  ;;  %v13068_v42 = vadd.f32 %v12964_v45, %v12876_v10 }
 0xa75   : > { %v5626_v44 = vmax.f32 %v5575_v57, 0.0  ;;  %15909 = vst [vmem:[#allocation106_spill] sm:$0xff] %v13052_v53  ;;  %v8624_v57 = vld [vmem:[%s13834_s5 + $0x28] sm:$0xff]  ;;  %v6199_v23 = vmax.f32 %v12996_v22, %v8233_v54  ;;  %v6202_v63 = vmax.f32 %v6055_v25, %v8236_v26  ;;  %v5503_v18 = vpop.f32.mrf.mxu3  ;;  %v14541_v54 = vunpack.i.l.s16 %v12968_v43 }
 0xa76   : > { %7345 = vmatpush.bf16.msra.mxu3 %v8624_v57  ;;  %15910 = vst [vmem:[#allocation114_spill] sm:$0xff] %v13061_v14  ;;  %v13070_v22 = vunpack.c.l.b16 %v6457_v15  ;;  %v13084_v10 = vrot.slane %v14540_v48, 7  ;;  %v13087_v15 = vadd.f32 %v5500_v31, %v12887_v5  ;;  %v15919_v53 = vunpack.i.l.s16 %v15918_v6 }
 0xa77   : > { %v6056_v36 = vrot.slane %v5626_v44, 2  ;;  %v6057_v62 = vrot.slane %v5626_v44, 4  ;;  %v6058_v40 = vrot.slane %v5626_v44, 6  ;;  %v8237_v46 = vrot.slane %v5626_v44, 9 }
 0xa78   : > { %15911 = vst [vmem:[#allocation117_spill] sm:$0xff] %v13070_v22  ;;  %v14542_v26 = vunpack.i.l.s16 %v13070_v22  ;;  %v6958_v43 = vrot.slane %v15919_v53, 6 }
 0xa79   : > { %v8238_v7 = vrot.slane %v6056_v36, 9  ;;  %v8239_v38 = vrot.slane %v6057_v62, 9  ;;  %v8240_v39 = vrot.slane %v6058_v40, 9  ;;  %v6203_v21 = vmax.f32 %v5626_v44, %v8237_v46 }
 0xa7a   : > { %v5577_v33 = vpop.f32.mrf.mxu2  ;;  %v6200_v46 = vmax.f32 %v6053_v59, %v8234_v37 }
 0xa7b   : > { %v6204_v3 = vmax.f32 %v6056_v36, %v8238_v7  ;;  %v6206_v27 = vmax.f32 %v6058_v40, %v8240_v39  ;;  %v5578_v44 = vadd.f32 %v5577_v33, %v12806_v2  ;;  %v6205_v29 = vmax.f32 %v6057_v62, %v8239_v38 }
 0xa7c   : > { %v6227_v57 = vmax.f32 %v6199_v23, %v6203_v21  ;;  %v15912_v39 = vunpack.i.l.s16 %v12859_v58  ;;  %v6956_v7 = vrot.slane %v12900_v49, 7  ;;  %v6201_v40 = vmax.f32 %v6054_v61, %v8235_v12 }
 0xa7d   : > { %v6230_v20 = vmax.f32 %v6202_v63, %v6206_v27  ;;  %v6228_v2 = vmax.f32 %v6200_v46, %v6204_v3  ;;  %v13079_v33 = vadd.f32 %v12986_v19, %v12880_v55  ;;  %v5627_v38 = vmax.f32 %v5578_v44, 0.0  ;;  %v5505_v37 = vpop.f32.mrf.mxu3 }
 0xa7e   : > { %v13074_v36 = vrot.slane %v15912_v39, 5  ;;  %v15913_v58 = vunpack.i.l.s16 %v12913_v52  ;;  %v6229_v27 = vmax.f32 %v6201_v40, %v6205_v29  ;;  %v6475_v61 = vpack.c.bf16 %v6227_v57, %v6227_v57 }
 0xa7f   : > { %v6478_v59 = vpack.c.bf16 %v6230_v20, %v6230_v20  ;;  %v7006_v19 = vsel %vm1245_vm4, %v12948_v4, %v12934_v8  ;;  %v14543_v12 = vunpack.i.l.s16 %v12940_v9  ;;  %v6957_v5 = vsel %vm1241_vm3, %v6956_v7, %v12926_v50 }
 0xa80   : > { %v6632_v45 = vrot.slane %v15913_v58, 7  ;;  %v6476_v31 = vpack.c.bf16 %v6228_v2, %v6228_v2  ;;  %v6059_v62 = vrot.slane %v5627_v38, 2  ;;  %v6060_v3 = vrot.slane %v5627_v38, 4 }
 0xa81   : > { %v6061_v35 = vrot.slane %v5627_v38, 6  ;;  %v13101_v23 = vadd.f32 %v5503_v18, %v12818_v30  ;;  %v13110_v4 = vsel %vm1249_vm5, %v12950_v24, %v7006_v19  ;;  %v6477_v63 = vpack.c.bf16 %v6229_v27, %v6229_v27  ;;  %v15916_v18 = vld [vmem:[#allocation59_spill] sm:$0xff] }
 0xa82   : > { %v5579_v55 = vpop.f32.mrf.mxu2  ;;  %v13106_v8 = vsel %vm1241_vm3, %v6632_v45, %v14543_v12  ;;  %v13112_v44 = vunpack.c.l.b16 %v6475_v61  ;;  %v13114_v46 = vunpack.c.l.b16 %v6478_v59  ;;  %v8241_v29 = vrot.slane %v5627_v38, 9  ;;  %v15917_v12 = vld [vmem:[#allocation34_spill] sm:$0xff] }
 0xa83   : > { %v5580_v21 = vadd.f32 %v5579_v55, %v13042_v41  ;;  %v13118_v30 = vrot.slane %v14541_v54, 4  ;;  %v13122_v41 = vrot.slane %v14542_v26, 3  ;;  %v13126_v20 = vmax.f32 %v15916_v18, %v12972_v1 }
 0xa84   : > { %15914 = vst [vmem:[#allocation122_spill] sm:$0xff] %v13112_v44  ;;  %v6530_v24 = vunpack.c.l.b16 %v6476_v31  ;;  %v8242_v39 = vrot.slane %v6059_v62, 9  ;;  %v8243_v7 = vrot.slane %v6060_v3, 9  ;;  %v8244_v40 = vrot.slane %v6061_v35, 9 }
 0xa85   : > { %15915 = vst [vmem:[#allocation127_spill] sm:$0xff] %v13114_v46  ;;  %v5628_v57 = vmax.f32 %v5580_v21, 0.0  ;;  %v6613_v59 = vunpack.c.l.b16 %v6477_v63  ;;  %v6207_v55 = vmax.f32 %v5627_v38, %v8241_v29  ;;  %v5508_v63 = vpop.f32.mrf.mxu3 }
 0xa86   : > { %v6208_v18 = vmax.f32 %v6059_v62, %v8242_v39  ;;  %v6209_v31 = vmax.f32 %v6060_v3, %v8243_v7  ;;  %v6210_v22 = vmax.f32 %v6061_v35, %v8244_v40  ;;  %v13133_v44 = vunpack.i.l.s16 %v6530_v24  ;;  %v15922_v7 = vld [vmem:[#allocation13_spill] sm:$0xff]  ;;  %v15923_v35 = vld [vmem:[#allocation27_spill] sm:$0xff] }
 0xa87   : > { %v6062_v2 = vrot.slane %v5628_v57, 2  ;;  %v6063_v58 = vrot.slane %v5628_v57, 4  ;;  %v6064_v45 = vrot.slane %v5628_v57, 6  ;;  %v8245_v27 = vrot.slane %v5628_v57, 9 }
 0xa88   : > { %15920 = vst [vmem:[#allocation84_spill] sm:$0xff] %v13133_v44  ;;  %v13135_v38 = vunpack.i.l.s16 %v6613_v59  ;;  %v13142_v53 = vadd.f32 %v5505_v37, %v15922_v7  ;;  %v15924_v24 = vunpack.i.l.s16 %v15923_v35  ;;  %v15925_v59 = vld [vmem:[#allocation72_spill] sm:$0xff] }
 0xa89   : > { %v8246_v21 = vrot.slane %v6062_v2, 9  ;;  %v8247_v48 = vrot.slane %v6063_v58, 9  ;;  %v8248_v54 = vrot.slane %v6064_v45, 9  ;;  %v6211_v26 = vmax.f32 %v5628_v57, %v8245_v27 }
 0xa8a   : > { %v5582_v1 = vpop.f32.mrf.mxu2  ;;  %v15921_v57 = vunpack.i.l.s16 %v13114_v46  ;;  %v13150_v40 = vrot.slane %v15924_v24, 5 }
 0xa8b   : > { %v5583_v25 = vadd.f32 %v5582_v1, %v15917_v12  ;;  %v6212_v52 = vmax.f32 %v6062_v2, %v8246_v21  ;;  %v6213_v9 = vmax.f32 %v6063_v58, %v8247_v48  ;;  %v6214_v61 = vmax.f32 %v6064_v45, %v8248_v54 }
 0xa8c   : > { %v6231_v29 = vmax.f32 %v6207_v55, %v6211_v26  ;;  %v13139_v62 = vrot.slane %v15921_v57, 7  ;;  %v6634_v48 = vrot.slane %v12998_v51, 6  ;;  %v13146_v54 = vsel %vm1245_vm4, %v6958_v43, %v6957_v5 }
 0xa8d   : > { %v5629_v19 = vmax.f32 %v5583_v25, 0.0  ;;  %v6232_v3 = vmax.f32 %v6208_v18, %v6212_v52  ;;  %v6233_v12 = vmax.f32 %v6209_v31, %v6213_v9  ;;  %v6234_v39 = vmax.f32 %v6210_v22, %v6214_v61 }
 0xa8e   : > { %v6636_v58 = vrot.slane %v13004_v34, 5  ;;  %v6479_v52 = vpack.c.bf16 %v6231_v29, %v6231_v29  ;;  %v13158_v55 = vadd.f32 %v5508_v63, %v15925_v59  ;;  %v15926_v21 = vpack.c.bf16 %v12784_v11, %v12784_v11  ;;  %v5510_v11 = vpop.f32.mrf.mxu3 }
 0xa8f   : > { %v6065_v25 = vrot.slane %v5629_v19, 2  ;;  %v6066_v26 = vrot.slane %v5629_v19, 4  ;;  %v6067_v2 = vrot.slane %v5629_v19, 6  ;;  %v6480_v9 = vpack.c.bf16 %v6232_v3, %v6232_v3  ;;  %v8623_v3 = vld [vmem:[%s13834_s5 + $0x20] sm:$0xff] }
 0xa90   : > { %v8249_v22 = vrot.slane %v5629_v19, 9  ;;  %v6481_v45 = vpack.c.bf16 %v6233_v12, %v6233_v12  ;;  %v6482_v27 = vpack.c.bf16 %v6234_v39, %v6234_v39  ;;  %v6611_v1 = vunpack.c.l.b16 %v15926_v21  ;;  %7346 = vmatpush.bf16.msra.mxu3 %v8623_v3 }
 0xa91   : > { %v6635_v18 = vsel %vm1245_vm4, %v6634_v48, %v13106_v8  ;;  %v8250_v31 = vrot.slane %v6065_v25, 9  ;;  %v8251_v29 = vrot.slane %v6066_v26, 9  ;;  %v8252_v57 = vrot.slane %v6067_v2, 9 }
 0xa92   : > { %v5584_v61 = vpop.f32.mrf.mxu2  ;;  %v13168_v12 = vunpack.c.l.b16 %v6479_v52  ;;  %v6215_v63 = vmax.f32 %v5629_v19, %v8249_v22  ;;  %v6793_v7 = vunpack.c.l.b16 %v6481_v45  ;;  %v13170_v35 = vunpack.c.l.b16 %v6482_v27 }
 0xa93   : > { %v5585_v5 = vadd.f32 %v5584_v61, %v13068_v42  ;;  %v6737_v42 = vunpack.c.l.b16 %v6480_v9  ;;  %v6637_v8 = vsel %vm1249_vm5, %v6636_v58, %v6635_v18  ;;  %v6031_v48 = vmax.f32 %v13018_v60, %v13026_v47 }
 0xa94   : > { %15927 = vst [vmem:[#allocation135_spill] sm:$0xff] %v13168_v12  ;;  %v6216_v52 = vmax.f32 %v6065_v25, %v8250_v31  ;;  %v6217_v43 = vmax.f32 %v6066_v26, %v8251_v29  ;;  %v6218_v9 = vmax.f32 %v6067_v2, %v8252_v57  ;;  %v6639_v19 = vsel %vm6574_vm0, %v13118_v30, %v6637_v8 }
 0xa95   : > { %v5630_v39 = vmax.f32 %v5585_v5, 0.0  ;;  %v14552_v58 = vunpack.i.l.s16 %v13170_v35  ;;  %v13178_v3 = vunpack.i.l.s16 %v6611_v1  ;;  %v6641_v60 = vsel %vm6577_vm12, %v13122_v41, %v6639_v19 }
 0xa96   : > { %v6463_v47 = vpack.c.bf16 %v6031_v48, %v6031_v48  ;;  %v14551_v30 = vunpack.i.l.s16 %v13168_v12  ;;  %v13185_v31 = vunpack.i.l.s16 %v6737_v42  ;;  %v6642_v57 = vrot.slane %v13008_v28, 2 }
 0xa97   : > { %v6068_v24 = vrot.slane %v5630_v39, 2  ;;  %v6069_v61 = vrot.slane %v5630_v39, 4  ;;  %v6070_v59 = vrot.slane %v5630_v39, 6  ;;  %v8253_v21 = vrot.slane %v5630_v39, 9  ;;  %15928 = vst [vmem:[#allocation136_spill] sm:$0xff] %v13178_v3 }
 0xa98   : > { %v7017_v41 = vrot.slane %v14552_v58, 7  ;;  %v13194_v42 = vunpack.c.l.b16 %v6463_v47 }
 0xa99   : > { %v8254_v22 = vrot.slane %v6068_v24, 9  ;;  %v8255_v45 = vrot.slane %v6069_v61, 9  ;;  %v8256_v27 = vrot.slane %v6070_v59, 9  ;;  %v6219_v5 = vmax.f32 %v5630_v39, %v8253_v21 }
 0xa9a   : > { %v5587_v18 = vpop.f32.mrf.mxu2  ;;  %v13189_v39 = vunpack.i.l.s16 %v6793_v7 }
 0xa9b   : > { %v6220_v37 = vmax.f32 %v6068_v24, %v8254_v22  ;;  %v6221_v25 = vmax.f32 %v6069_v61, %v8255_v45  ;;  %v6222_v26 = vmax.f32 %v6070_v59, %v8256_v27  ;;  %v13182_v2 = vmax.f32 %v6215_v63, %v6219_v5 }
 0xa9c   : > { %v5588_v29 = vadd.f32 %v5587_v18, %v13079_v33  ;;  %v6644_v63 = vrot.slane %v13178_v3, 1  ;;  %v15930_v33 = vpack.c.bf16 %v12808_v13, %v12808_v13  ;;  %v15933_v22 = vrot.slane %v12998_v51, 7 }
 0xa9d   : > { %15929 = vst [vmem:[#allocation137_spill] sm:$0xff] %v13182_v2  ;;  %v6236_v1 = vmax.f32 %v6216_v52, %v6220_v37  ;;  %v6237_v8 = vmax.f32 %v6217_v43, %v6221_v25  ;;  %v6238_v21 = vmax.f32 %v6218_v9, %v6222_v26  ;;  %v5513_v37 = vpop.f32.mrf.mxu3  ;;  %v6643_v43 = vsel %vm6580_vm13, %v6642_v57, %v6641_v60  ;;  %v15931_v52 = vld [vmem:[#allocation54_spill] sm:$0xff]  ;;  %v15934_v26 = vld [vmem:[#allocation16_spill] sm:$0xff] }
 0xa9e   : > { %v5631_v48 = vmax.f32 %v5588_v29, 0.0  ;;  %v6735_v59 = vunpack.c.l.b16 %v15930_v33  ;;  %v15932_v9 = vunpack.i.l.s16 %v15931_v52  ;;  %v13209_v13 = vrot.slane %v14551_v30, 6  ;;  %v15936_v33 = vld [vmem:[#allocation51_spill] sm:$0xff] }
 0xa9f   : > { %v6485_v24 = vpack.c.bf16 %v6237_v8, %v6237_v8  ;;  %v6486_v61 = vpack.c.bf16 %v6238_v21, %v6238_v21  ;;  %v6484_v7 = vpack.c.bf16 %v6236_v1, %v6236_v1  ;;  %v13213_v25 = vsel %vm1241_vm3, %v7017_v41, %v13189_v39  ;;  %v15935_v8 = vld [vmem:[#allocation19_spill] sm:$0xff] }
 0xaa0   : > { %v6247_v19 = vrot.slane %v5631_v48, 2  ;;  %v6757_v45 = vsel %vm1241_vm3, %v15933_v22, %v15932_v9  ;;  %v6248_v5 = vrot.slane %v5631_v48, 4  ;;  %v6249_v18 = vrot.slane %v5631_v48, 6 }
 0xaa1   : > { %v13205_v27 = vunpack.c.l.b16 %v6485_v24  ;;  %v8257_v47 = vrot.slane %v5631_v48, 9  ;;  %v6993_v60 = vunpack.c.l.b16 %v6486_v61  ;;  %v13216_v29 = vadd.f32 %v5510_v11, %v15934_v26 }
 0xaa2   : > { %v5589_v57 = vpop.f32.mrf.mxu2  ;;  %v8258_v1 = vrot.slane %v6247_v19, 9  ;;  %v13219_v21 = vadd.f32 %v5513_v37, %v15935_v8  ;;  %v6759_v9 = vsel %vm1245_vm4, %v15936_v33, %v6757_v45  ;;  %v13224_v22 = vunpack.c.l.b16 %v6484_v7 }
 0xaa3   : > { %v5590_v30 = vadd.f32 %v5589_v57, %v13087_v15  ;;  %v13228_v41 = vsel %vm6583_vm14, %v6644_v63, %v6643_v43  ;;  %v13230_v61 = vunpack.i.l.s16 %v6735_v59  ;;  %v8259_v26 = vrot.slane %v6248_v5, 9  ;;  %v15940_v57 = vld [vmem:[#allocation61_spill] sm:$0xff] }
 0xaa4   : > { %v8260_v58 = vrot.slane %v6249_v18, 9  ;;  %v6391_v37 = vmax.f32 %v5631_v48, %v8257_v47  ;;  %v8351_v8 = vunpack.i.l.s16 %v6993_v60  ;;  %v15937_v24 = vrot.slane %v12926_v50, 5 }
 0xaa5   : > { %v5632_v12 = vmax.f32 %v5590_v30, 0.0  ;;  %v15938_v7 = vunpack.i.l.s16 %v12981_v16  ;;  %v6392_v15 = vmax.f32 %v6247_v19, %v8258_v1  ;;  %v6764_v63 = vrot.slane %v13008_v28, 3 }
 0xaa6   : > { %v6761_v45 = vsel %vm1249_vm5, %v15937_v24, %v6759_v9  ;;  %v15939_v59 = vrot.slane %v12788_v0, 6  ;;  %v15941_v11 = vrot.slane %v15940_v57, 6  ;;  %v6393_v46 = vmax.f32 %v6248_v5, %v8259_v26 }
 0xaa7   : > { %v6762_v33 = vrot.slane %v15938_v7, 4  ;;  %v6250_v47 = vrot.slane %v5632_v12, 2  ;;  %v6251_v30 = vrot.slane %v5632_v12, 4  ;;  %v6252_v60 = vrot.slane %v5632_v12, 6 }
 0xaa8   : > { %v6010_v43 = vmax.f32 %v15939_v59, %v13015_v32  ;;  %v6014_v48 = vmax.f32 %v15941_v11, %v13022_v56  ;;  %v8261_v2 = vrot.slane %v5632_v12, 9  ;;  %v15942_v9 = vunpack.i.l.s16 %v13194_v42  ;;  %v15943_v32 = vld [vmem:[#allocation124_spill] sm:$0xff] }
 0xaa9   : > { %v6763_v24 = vsel %vm6574_vm0, %v6762_v33, %v6761_v45  ;;  %v8262_v7 = vrot.slane %v6250_v47, 9  ;;  %v8264_v28 = vrot.slane %v6252_v60, 9  ;;  %v15944_v59 = vunpack.i.l.s16 %v15943_v32 }
 0xaaa   : > { %v6766_v19 = vrot.slane %v15942_v9, 2  ;;  %v6034_v1 = vmax.f32 %v6010_v43, %v6014_v48  ;;  %v6395_v16 = vmax.f32 %v5632_v12, %v8261_v2  ;;  %v5592_v0 = vpop.f32.mrf.mxu2  ;;  %v6394_v57 = vmax.f32 %v6249_v18, %v8260_v58  ;;  %v5515_v48 = vpop.f32.mrf.mxu3 }
 0xaab   : > { %v6848_v6 = vrot.slane %v15944_v59, 7  ;;  %v8263_v56 = vrot.slane %v6251_v30, 9  ;;  %v5593_v11 = vadd.f32 %v5592_v0, %v13101_v23  ;;  %v6396_v51 = vmax.f32 %v6250_v47, %v8262_v7 }
 0xaac   : > { %v6466_v50 = vpack.c.bf16 %v6034_v1, %v6034_v1  ;;  %v6398_v5 = vmax.f32 %v6252_v60, %v8264_v28  ;;  %v13251_v26 = vmax.f32 %v6391_v37, %v6395_v16  ;;  %v6765_v45 = vsel %vm6577_vm12, %v6764_v63, %v6763_v24 }
 0xaad   : > { %v13254_v33 = vmax.f32 %v5593_v11, 0.0  ;;  %v6767_v43 = vsel %vm6580_vm13, %v6766_v19, %v6765_v45  ;;  %v6768_v12 = vrot.slane %v13230_v61, 1  ;;  %v15945_v2 = vpack.c.bf16 %v13126_v20, %v13126_v20  ;;  %v15949_v19 = vld [vmem:[#allocation22_spill] sm:$0xff] }
 0xaae   : > { %v6424_v18 = vmax.f32 %v6392_v15, %v6396_v51  ;;  %v13263_v23 = vmax.f32 %v6394_v57, %v6398_v5  ;;  %v13265_v28 = vunpack.c.l.b16 %v6466_v50  ;;  %v6849_v16 = vsel %vm1241_vm3, %v6848_v6, %v13004_v34 }
 0xaaf   : > { %v13261_v58 = vunpack.c.l.b16 %v15945_v2  ;;  %v6253_v37 = vrot.slane %v13254_v33, 2  ;;  %v6254_v63 = vrot.slane %v13254_v33, 4  ;;  %v14562_v47 = vrot.slane %v13254_v33, 6 }
 0xab0   : > { %15947 = vst [vmem:[#allocation154_spill] sm:$0xff] %v13263_v23  ;;  %v8265_v60 = vrot.slane %v13254_v33, 9  ;;  %v15948_v20 = vunpack.i.l.s16 %v13205_v27  ;;  %v13277_v51 = vrot.slane %v8351_v8, 5  ;;  %v6397_v15 = vmax.f32 %v6251_v30, %v8263_v56 }
 0xab1   : > { %15946 = vst [vmem:[#allocation138_spill] sm:$0xff] %v13261_v58  ;;  %v6488_v50 = vpack.c.bf16 %v6424_v18, %v6424_v18  ;;  %v8266_v9 = vrot.slane %v6253_v37, 9  ;;  %v13280_v1 = vadd.f32 %v5515_v48, %v15949_v19  ;;  %v14563_v6 = vunpack.i.l.s16 %v13261_v58  ;;  %v8622_v48 = vld [vmem:[%s13834_s5 + $0x18] sm:$0xff] }
 0xab2   : > { %v13275_v24 = vrot.slane %v15948_v20, 6  ;;  %v15950_v7 = vrot.slane %v12900_v49, 6  ;;  %v5594_v57 = vpop.f32.mrf.mxu2  ;;  %v13289_v11 = vsel %vm6583_vm14, %v6768_v12, %v6767_v43  ;;  %v8334_v8 = vunpack.i.l.s16 %v13265_v28  ;;  %7347 = vmatpush.bf16.msra.mxu3 %v8622_v48 }
 0xab3   : > { %v13286_v59 = vunpack.c.l.b16 %v6488_v50  ;;  %v6854_v30 = vrot.slane %v13178_v3, 4  ;;  %v8267_v56 = vrot.slane %v6254_v63, 9  ;;  %v8268_v5 = vrot.slane %v14562_v47, 9 }
 0xab4   : > { %v6851_v0 = vsel %vm1245_vm4, %v15950_v7, %v6849_v16  ;;  %v6399_v45 = vmax.f32 %v13254_v33, %v8265_v60  ;;  %v5595_v2 = vadd.f32 %v5594_v57, %v13142_v53  ;;  %v6400_v18 = vmax.f32 %v6253_v37, %v8266_v9 }
 0xab5   : > { %15951 = vst [vmem:[#allocation157_spill] sm:$0xff] %v13286_v59  ;;  %v6425_v16 = vmax.f32 %v6393_v46, %v6397_v15  ;;  %v14568_v43 = vunpack.i.l.s16 %v13286_v59  ;;  %v6853_v12 = vsel %vm1249_vm5, %v13074_v36, %v6851_v0  ;;  %v15952_v20 = vunpack.i.l.s16 %v13061_v14  ;;  %v15953_v15 = vld [vmem:[#allocation86_spill] sm:$0xff] }
 0xab6   : > { %v5634_v28 = vmax.f32 %v5595_v2, 0.0  ;;  %v6648_v60 = vrot.slane %v13133_v44, 6  ;;  %v6855_v53 = vsel %vm6574_vm0, %v6854_v30, %v6853_v12  ;;  %v6650_v9 = vrot.slane %v13135_v38, 5 }
 0xab7   : > { %v6647_v50 = vsel %vm1241_vm3, %v13084_v10, %v15952_v20  ;;  %v6489_v37 = vpack.c.bf16 %v6425_v16, %v6425_v16  ;;  %v6856_v46 = vrot.slane %v14563_v6, 3  ;;  %v6858_v19 = vrot.slane %v15953_v15, 2 }
 0xab8   : > { %v6256_v36 = vrot.slane %v5634_v28, 2  ;;  %v6257_v7 = vrot.slane %v5634_v28, 4  ;;  %v8269_v0 = vrot.slane %v5634_v28, 9  ;;  %v6652_v57 = vrot.slane %v14568_v43, 4 }
 0xab9   : > { %v6258_v10 = vrot.slane %v5634_v28, 6  ;;  %v13315_v2 = vunpack.c.l.b16 %v6489_v37  ;;  %v6649_v30 = vsel %vm1245_vm4, %v6648_v60, %v6647_v50  ;;  %v6857_v48 = vsel %vm6577_vm12, %v6856_v46, %v6855_v53 }
 0xaba   : > { %v8270_v16 = vrot.slane %v6256_v36, 9  ;;  %v8271_v12 = vrot.slane %v6257_v7, 9  ;;  %v6403_v20 = vmax.f32 %v5634_v28, %v8269_v0  ;;  %v6860_v47 = vrot.slane %v8334_v8, 1  ;;  %v5597_v49 = vpop.f32.mrf.mxu2 }
 0xabb   : > { %15954 = vst [vmem:[#allocation145_spill] sm:$0xff] %v13315_v2  ;;  %v6401_v6 = vmax.f32 %v6254_v63, %v8267_v56  ;;  %v14571_v58 = vunpack.i.l.s16 %v13315_v2  ;;  %v6859_v3 = vsel %vm6580_vm13, %v6858_v19, %v6857_v48  ;;  %v7009_v23 = vrot.slane %v15953_v15, 4 }
 0xabc   : > { %v6404_v43 = vmax.f32 %v6256_v36, %v8270_v16  ;;  %v6405_v59 = vmax.f32 %v6257_v7, %v8271_v12  ;;  %v6427_v37 = vmax.f32 %v6399_v45, %v6403_v20  ;;  %v6651_v14 = vsel %vm1249_vm5, %v6650_v9, %v6649_v30  ;;  %v15958_v16 = vld [vmem:[#allocation9_spill] sm:$0xff] }
 0xabd   : > { %v8272_v50 = vrot.slane %v6258_v10, 9  ;;  %v5598_v60 = vadd.f32 %v5597_v49, %v13158_v55  ;;  %v6653_v53 = vsel %vm6574_vm0, %v6652_v57, %v6651_v14  ;;  %v6654_v63 = vrot.slane %v14571_v58, 3 }
 0xabe   : > { %v6428_v56 = vmax.f32 %v6400_v18, %v6404_v43  ;;  %v6429_v28 = vmax.f32 %v6401_v6, %v6405_v59  ;;  %v6491_v46 = vpack.c.bf16 %v6427_v37, %v6427_v37  ;;  %v13328_v19 = vsel %vm6583_vm14, %v6860_v47, %v6859_v3 }
 0xabf   : > { %v5635_v0 = vmax.f32 %v5598_v60, 0.0  ;;  %v6655_v36 = vsel %vm6577_vm12, %v6654_v63, %v6653_v53  ;;  %v7010_v45 = vsel %vm6574_vm0, %v7009_v23, %v13110_v4  ;;  %v7011_v9 = vrot.slane %v8334_v8, 3 }
 0xac0   : > { %v15955_v49 = vrot.slane %v13254_v33, 6  ;;  %v6492_v14 = vpack.c.bf16 %v6428_v56, %v6428_v56  ;;  %v6493_v7 = vpack.c.bf16 %v6429_v28, %v6429_v28  ;;  %v13335_v57 = vunpack.c.l.b16 %v6491_v46  ;;  %v15961_v56 = vld [vmem:[#allocation101_spill] sm:$0xff]  ;;  %v15962_v28 = vld [vmem:[#allocation26_spill] sm:$0xff] }
 0xac1   : > { %v6259_v18 = vrot.slane %v5635_v0, 2  ;;  %v6260_v6 = vrot.slane %v5635_v0, 4  ;;  %v6261_v59 = vrot.slane %v5635_v0, 6  ;;  %v8273_v43 = vrot.slane %v5635_v0, 9 }
 0xac2   : > { %v6402_v55 = vmax.f32 %v15955_v49, %v8268_v5  ;;  %15956 = vst [vmem:[#allocation162_spill] sm:$0xff] %v13335_v57  ;;  %v6406_v3 = vmax.f32 %v6258_v10, %v8272_v50  ;;  %v6534_v47 = vunpack.c.l.b16 %v6492_v14  ;;  %v6615_v30 = vunpack.c.l.b16 %v6493_v7  ;;  %v5599_v33 = vpop.f32.mrf.mxu2  ;;  %v15957_v5 = vld [vmem:[#allocation87_spill] sm:$0xff] }
 0xac3   : > { %v13338_v48 = vsel %vm6577_vm12, %v7011_v9, %v7010_v45  ;;  %v14573_v4 = vunpack.i.l.s16 %v13335_v57  ;;  %v8274_v23 = vrot.slane %v6259_v18, 9  ;;  %v8275_v8 = vrot.slane %v6260_v6, 9  ;;  %v15964_v9 = vld [vmem:[#allocation153_spill] sm:$0xff] }
 0xac4   : > { %v15959_v12 = vrot.slane %v15958_v16, 4  ;;  %v13346_v37 = vunpack.i.l.s16 %v6534_v47  ;;  %v8276_v60 = vrot.slane %v6261_v59, 9  ;;  %v5600_v10 = vadd.f32 %v5599_v33, %v13216_v29  ;;  %v8621_v29 = vld [vmem:[%s13834_s5 + $0x10] sm:$0xff]  ;;  %v15965_v16 = vld [vmem:[#allocation122_spill] sm:$0xff] }
 0xac5   : > { %v13349_v50 = vunpack.i.l.s16 %v6615_v30  ;;  %v6407_v53 = vmax.f32 %v5635_v0, %v8273_v43  ;;  %v6408_v63 = vmax.f32 %v6259_v18, %v8274_v23  ;;  %v15963_v46 = vrot.slane %v15962_v28, 4  ;;  %7348 = vmatpush.bf16.msra.mxu3 %v8621_v29 }
 0xac6   : > { %v13344_v20 = vmax.f32 %v15959_v12, %v15957_v5  ;;  %15960 = vst [vmem:[#allocation144_spill] sm:$0xff] %v13346_v37  ;;  %v13358_v49 = vmax.f32 %v15964_v9, %v13057_v17  ;;  %v6409_v14 = vmax.f32 %v6260_v6, %v8275_v8  ;;  %v5636_v7 = vmax.f32 %v5600_v10, 0.0 }
 0xac7   : > { %v13354_v45 = vmax.f32 %v15963_v46, %v15961_v56  ;;  %v6656_v47 = vrot.slane %v13346_v37, 2  ;;  %v6770_v5 = vrot.slane %v13133_v44, 7  ;;  %v6658_v0 = vrot.slane %v13349_v50, 1 }
 0xac8   : > { %v6774_v18 = vrot.slane %v13185_v31, 5  ;;  %v6776_v43 = vrot.slane %v14573_v4, 4  ;;  %v6778_v17 = vrot.slane %v13346_v37, 3  ;;  %v6262_v30 = vrot.slane %v5636_v7, 2 }
 0xac9   : > { %v6263_v6 = vrot.slane %v5636_v7, 4  ;;  %v6264_v23 = vrot.slane %v5636_v7, 6  ;;  %v8277_v8 = vrot.slane %v5636_v7, 9  ;;  %v6657_v33 = vsel %vm6580_vm13, %v6656_v47, %v6655_v36 }
 0xaca   : > { %v15966_v12 = vunpack.i.l.s16 %v15965_v16  ;;  %v6410_v56 = vmax.f32 %v6261_v59, %v8276_v60  ;;  %v6430_v28 = vmax.f32 %v6402_v55, %v6406_v3  ;;  %v8278_v46 = vrot.slane %v6262_v30, 9  ;;  %v5602_v4 = vpop.f32.mrf.mxu2 }
 0xacb   : > { %v8279_v9 = vrot.slane %v6263_v6, 9  ;;  %v8280_v58 = vrot.slane %v6264_v23, 9  ;;  %v6411_v2 = vmax.f32 %v5636_v7, %v8277_v8  ;;  %v6659_v37 = vsel %vm6583_vm14, %v6658_v0, %v6657_v33 }
 0xacc   : > { %v6771_v10 = vsel %vm1241_vm3, %v6770_v5, %v15966_v12  ;;  %v6494_v44 = vpack.c.bf16 %v6430_v28, %v6430_v28  ;;  %v6863_v36 = vsel %vm1241_vm3, %v13139_v62, %v13135_v38  ;;  %v6412_v47 = vmax.f32 %v6262_v30, %v8278_v46  ;;  %v8634_v30 = vld [vmem:[%s13834_s5 + $0x78] sm:$0xff] }
 0xacd   : > { %v6773_v57 = vsel %vm1245_vm4, %v13209_v13, %v6771_v10  ;;  %v6413_v29 = vmax.f32 %v6263_v6, %v8279_v9  ;;  %v5603_v59 = vadd.f32 %v5602_v4, %v13219_v21  ;;  %v6660_v55 = vpack.c.b16 %v6659_v37, %v13228_v41  ;;  %v8620_v21 = vld [vmem:[%s13834_s5 + $0x8] sm:$0xff] }
 0xace   : > { %v6431_v3 = vmax.f32 %v6407_v53, %v6411_v2  ;;  %v6775_v60 = vsel %vm1249_vm5, %v6774_v18, %v6773_v57  ;;  %v6414_v7 = vmax.f32 %v6264_v23, %v8280_v58  ;;  %v13383_v5 = vunpack.c.l.b16 %v6494_v44  ;;  %7349 = vmatpush.bf16.msra.mxu3 %v8620_v21 }
 0xacf   : > { %v6432_v0 = vmax.f32 %v6408_v63, %v6412_v47  ;;  %v6433_v8 = vmax.f32 %v6409_v14, %v6413_v29  ;;  %v13385_v13 = vmax.f32 %v5603_v59, 0.0  ;;  %6661 = vrot.lane.b32.xlu0 %v6660_v55, %s8795_s29  ;;  %v6777_v62 = vsel %vm6574_vm0, %v6776_v43, %v6775_v60  ;;  %v8619_v63 = vld [vmem:[%s13834_s5] sm:$0xff] }
 0xad0   : > { %v6495_v4 = vpack.c.bf16 %v6431_v3, %v6431_v3  ;;  %v6779_v41 = vsel %vm6577_vm12, %v6778_v17, %v6777_v62  ;;  %v6434_v2 = vmax.f32 %v6410_v56, %v6414_v7  ;;  %v6864_v58 = vrot.slane %v13189_v39, 6 }
 0xad1   : > { %v6496_v44 = vpack.c.bf16 %v6432_v0, %v6432_v0  ;;  %v6497_v57 = vpack.c.bf16 %v6433_v8, %v6433_v8  ;;  %v6265_v37 = vrot.slane %v13385_v13, 2  ;;  %v6266_v53 = vrot.slane %v13385_v13, 4  ;;  %v8633_v8 = vld [vmem:[%s13834_s5 + $0x70] sm:$0xff] }
 0xad2   : > { %v6267_v14 = vrot.slane %v13385_v13, 6  ;;  %v8281_v18 = vrot.slane %v13385_v13, 9  ;;  %v13401_v43 = vunpack.c.l.b16 %v6495_v4  ;;  %v6498_v17 = vpack.c.bf16 %v6434_v2, %v6434_v2  ;;  %v5604_v28 = vpop.f32.mrf.mxu2  ;;  %7350 = vmatpush.bf16.msra.mxu3 %v8619_v63 }
 0xad3   : > { %v6794_v6 = vunpack.c.l.b16 %v6497_v57  ;;  %v8282_v23 = vrot.slane %v6265_v37, 9  ;;  %v6739_v33 = vunpack.c.l.b16 %v6496_v44  ;;  %v8320_v12 = vunpack.i.l.s16 %v13383_v5  ;;  %v8642_v5 = vld [vmem:[%s13834_s5 + $0xb8] sm:$0xff] }
 0xad4   : > { %v8283_v10 = vrot.slane %v6266_v53, 9  ;;  %v8284_v56 = vrot.slane %v6267_v14, 9  ;;  %v8327_v46 = vunpack.i.l.s16 %v13401_v43  ;;  %v6839_v9 = vunpack.c.l.b16 %v6498_v17 }
 0xad5   : > { %v13410_v47 = vunpack.i.l.s16 %v6794_v6  ;;  %v6415_v29 = vmax.f32 %v13385_v13, %v8281_v18  ;;  %v5605_v59 = vadd.f32 %v5604_v28, %v13280_v1  ;;  %v13414_v55 = vunpack.i.l.s16 %v6739_v33 }
 0xad6   : > { %v6416_v3 = vmax.f32 %v6265_v37, %v8282_v23  ;;  %v6418_v60 = vmax.f32 %v6267_v14, %v8284_v56  ;;  %v6780_v7 = vrot.slane %v8327_v46, 2  ;;  %v8336_v0 = vunpack.i.l.s16 %v6839_v9  ;;  %7357 = vmatpush.bf16.msrb.mxu3 %v8634_v30 }
 0xad7   : > { %v5638_v62 = vmax.f32 %v5605_v59, 0.0  ;;  %v6782_v21 = vrot.slane %v13414_v55, 1  ;;  %v6865_v4 = vsel %vm1245_vm4, %v6864_v58, %v6863_v36  ;;  %v15967_v1 = vunpack.i.l.s16 %v13170_v35 }
 0xad8   : > { %v6781_v44 = vsel %vm6580_vm13, %v6780_v7, %v6779_v41  ;;  %v6868_v57 = vrot.slane %v13349_v50, 4  ;;  %v6870_v37 = vrot.slane %v8320_v12, 3  ;;  %v6872_v63 = vrot.slane %v13410_v47, 2  ;;  %v8632_v41 = vld [vmem:[%s13834_s5 + $0x68] sm:$0xff] }
 0xad9   : > { %v6866_v2 = vrot.slane %v15967_v1, 5  ;;  %v6268_v14 = vrot.slane %v5638_v62, 2  ;;  %v6269_v18 = vrot.slane %v5638_v62, 4  ;;  %v6270_v17 = vrot.slane %v5638_v62, 6 }
 0xada   : > { %v8285_v30 = vrot.slane %v5638_v62, 9  ;;  %v6783_v6 = vsel %vm6583_vm14, %v6782_v21, %v6781_v44  ;;  %v6874_v58 = vrot.slane %v8336_v0, 1  ;;  %v7020_v35 = vsel %vm1245_vm4, %v13275_v24, %v13213_v25  ;;  %7358 = vmatpush.bf16.msrb.mxu3 %v8633_v8 }
 0xadb   : > { %v6867_v36 = vsel %vm1249_vm5, %v6866_v2, %v6865_v4  ;;  %v8286_v23 = vrot.slane %v6268_v14, 9  ;;  %v8287_v33 = vrot.slane %v6269_v18, 9  ;;  %v8288_v56 = vrot.slane %v6270_v17, 9 }
 0xadc   : > { %v6419_v28 = vmax.f32 %v5638_v62, %v8285_v30  ;;  %v6784_v9 = vpack.c.b16 %v6783_v6, %v13289_v11  ;;  %v6869_v59 = vsel %vm6574_vm0, %v6868_v57, %v6867_v36  ;;  %v7022_v7 = vsel %vm1249_vm5, %v13277_v51, %v7020_v35  ;;  %v8631_v51 = vld [vmem:[%s13834_s5 + $0x60] sm:$0xff]  ;;  %v15968_v6 = vld [vmem:[#allocation194_spill] sm:$0xff]  ;;  %v15969_v35 = vld [vmem:[#allocation140_spill] sm:$0xff] }
 0xadd   : > { %v7023_v21 = vrot.slane %v13410_v47, 4  ;;  %v6420_v4 = vmax.f32 %v6268_v14, %v8286_v23  ;;  %v6422_v25 = vmax.f32 %v6270_v17, %v8288_v56  ;;  %v6871_v8 = vsel %vm6577_vm12, %v6870_v37, %v6869_v59 }
 0xade   : > { %v13443_v24 = vmax.f32 %v6415_v29, %v6419_v28  ;;  %6785 = vrot.lane.b32.xlu1 %v6784_v9, %s8795_s29  ;;  %v6873_v1 = vsel %vm6580_vm13, %v6872_v63, %v6871_v8  ;;  %v7025_v11 = vrot.slane %v8336_v0, 3  ;;  %v6037_v2 = vmax.f32 %v13344_v20, %v13354_v45  ;;  %7359 = vmatpush.bf16.msrb.mxu3 %v8632_v41 }
 0xadf   : > { %v7024_v62 = vsel %vm6574_vm0, %v7023_v21, %v7022_v7  ;;  %v13454_v44 = vmax.f32 %v6418_v60, %v6422_v25  ;;  %v6875_v29 = vsel %vm6583_vm14, %v6874_v58, %v6873_v1  ;;  %v6417_v57 = vmax.f32 %v6266_v53, %v8283_v10 }
 0xae0   : > { %v6421_v37 = vmax.f32 %v6269_v18, %v8287_v33  ;;  %v6876_v63 = vpack.c.b16 %v6875_v29, %v13328_v19  ;;  %v7026_v0 = vsel %vm6577_vm12, %v7025_v11, %v7024_v62  ;;  %v6436_v14 = vmax.f32 %v6416_v3, %v6420_v4 }
 0xae1   : > { %v6468_v20 = vpack.c.bf16 %v13358_v49, %v13358_v49  ;;  %v8342_v45 = vunpack.i.l.s16 %v13224_v22  ;;  %v6469_v30 = vpack.c.bf16 %v6037_v2, %v6037_v2  ;;  %v6962_v60 = vrot.slane %v13230_v61, 4  ;;  %v8630_v49 = vld [vmem:[%s13834_s5 + $0x58] sm:$0xff] }
 0xae2   : > { %v6437_v17 = vmax.f32 %v6417_v57, %v6421_v37  ;;  %v6442_v36 = vpack.c.bf16 %v15968_v6, %v15968_v6  ;;  %6877 = vrot.lane.b32.xlu2 %v6876_v63, %s8795_s29  ;;  %v6500_v13 = vpack.c.bf16 %v6436_v14, %v6436_v14  ;;  %v6970_v19 = vrot.slane %v13189_v39, 7  ;;  %7360 = vmatpush.bf16.msrb.mxu3 %v8631_v51  ;;  %v15972_v6 = vld [vmem:[#allocation39_spill] sm:$0xff] }
 0xae3   : > { %v13468_v53 = vunpack.c.l.b16 %v6468_v20  ;;  %v6945_v3 = vunpack.c.l.b16 %v6469_v30  ;;  %v6961_v18 = vsel %vm1249_vm5, %v13150_v40, %v13146_v54  ;;  %v6964_v58 = vrot.slane %v15953_v15, 3 }
 0xae4   : > { %v6501_v10 = vpack.c.bf16 %v6437_v17, %v6437_v17  ;;  %v15970_v41 = vpack.c.bf16 %v15969_v35, %v15969_v35  ;;  %v13481_v33 = vunpack.c.l.b16 %v6500_v13  ;;  %v6963_v28 = vsel %vm6574_vm0, %v6962_v60, %v6961_v18 }
 0xae5   : > { %v8340_v56 = vunpack.i.l.s16 %v13468_v53  ;;  %v8346_v59 = vunpack.i.l.s16 %v6945_v3  ;;  %v6971_v7 = vsel %vm1241_vm3, %v6970_v19, %v13185_v31  ;;  %v6972_v54 = vrot.slane %v8342_v45, 6  ;;  %v15973_v19 = vld [vmem:[#allocation113_spill] sm:$0xff] }
 0xae6   : > { %v6519_v23 = vunpack.c.l.b16 %v15970_v41  ;;  %v6947_v9 = vunpack.c.l.b16 %v6501_v10  ;;  %v8344_v40 = vunpack.i.l.s16 %v13481_v33  ;;  %v15971_v4 = vunpack.i.l.s16 %v13205_v27  ;;  %7361 = vmatpush.bf16.msrb.mxu3 %v8630_v49  ;;  %v8639_v33 = vld [vmem:[%s13834_s5 + $0xa0] sm:$0xff] }
 0xae7   : > { %v6966_v21 = vrot.slane %v8340_v56, 2  ;;  %v6976_v8 = vrot.slane %v13414_v55, 4  ;;  %v6965_v62 = vsel %vm6577_vm12, %v6964_v58, %v6963_v28  ;;  %v6968_v11 = vrot.slane %v8346_v59, 1 }
 0xae8   : > { %v6974_v25 = vrot.slane %v15971_v4, 5  ;;  %v8348_v1 = vunpack.i.l.s16 %v6947_v9  ;;  %v6973_v2 = vsel %vm1245_vm4, %v6972_v54, %v6971_v7  ;;  %v6978_v57 = vrot.slane %v13410_v47, 3  ;;  %v15975_v7 = vld [vmem:[#allocation50_spill] sm:$0xff] }
 0xae9   : > { %v6967_v51 = vsel %vm6580_vm13, %v6966_v21, %v6965_v62  ;;  %v6980_v37 = vrot.slane %v8344_v40, 2  ;;  %v7013_v20 = vrot.slane %v8346_v59, 2  ;;  %v6671_v17 = vunpack.c.l.b16 %v6442_v36 }
 0xaea   : > { %v6975_v29 = vsel %vm1249_vm5, %v6974_v25, %v6973_v2  ;;  %v6969_v27 = vsel %vm6583_vm14, %v6968_v11, %v6967_v51  ;;  %v6982_v14 = vrot.slane %v8348_v1, 1  ;;  %v7027_v60 = vrot.slane %v8348_v1, 2 }
 0xaeb   : > { %v6977_v63 = vsel %vm6574_vm0, %v6976_v8, %v6975_v29  ;;  %v6455_v13 = vpack.c.bf16 %v15972_v6, %v15972_v6  ;;  %v15974_v49 = vunpack.i.l.s16 %v15973_v19  ;;  %v13512_v18 = vsel %vm6580_vm13, %v7013_v20, %v13338_v48  ;;  %v15983_v19 = vld [vmem:[#allocation23_spill] sm:$0xff] }
 0xaec   : > { %v6979_v30 = vsel %vm6577_vm12, %v6978_v57, %v6977_v63  ;;  %v13516_v35 = vsel %vm6580_vm13, %v7027_v60, %v7026_v0  ;;  %v8289_v36 = vunpack.i.l.s16 %v6519_v23  ;;  %v8313_v28 = vunpack.i.l.s16 %v6671_v17  ;;  %v15977_v23 = vld [vmem:[#allocation142_spill] sm:$0xff]  ;;  %v15979_v57 = vld [vmem:[#allocation32_spill] sm:$0xff]  ;;  %v15981_v63 = vld [vmem:[#allocation117_spill] sm:$0xff] }
 0xaed   : > { %v6567_v10 = vrot.slane %v15974_v49, 7  ;;  %v6981_v3 = vsel %vm6580_vm13, %v6980_v37, %v6979_v30  ;;  %v6523_v9 = vunpack.c.l.b16 %v6455_v13  ;;  %v6458_v54 = vpack.c.bf16 %v15975_v7, %v15975_v7  ;;  %v15987_v7 = vld [vmem:[#allocation103_spill] sm:$0xff] }
 0xaee   : > { %v6983_v58 = vsel %vm6583_vm14, %v6982_v14, %v6981_v3  ;;  %v6695_v4 = vrot.slane %v8313_v28, 7  ;;  %v15976_v25 = vunpack.i.l.s16 %v15931_v52  ;;  %v6571_v62 = vrot.slane %v15977_v23, 5  ;;  %v15985_v28 = vld [vmem:[#allocation90_spill] sm:$0xff] }
 0xaef   : > { %v6984_v41 = vpack.c.b16 %v6983_v58, %v6969_v27  ;;  %v6568_v59 = vsel %vm1241_vm3, %v6567_v10, %v8289_v36  ;;  %v6673_v21 = vunpack.c.l.b16 %v6458_v54  ;;  %v8293_v48 = vunpack.i.l.s16 %v6523_v9  ;;  %v15984_v58 = vld [vmem:[#allocation173_spill] sm:$0xff] }
 0xaf0   : > { %v6569_v8 = vrot.slane %v15976_v25, 6  ;;  %v6697_v11 = vrot.slane %v13004_v34, 6  ;;  %v15978_v2 = vunpack.i.l.s16 %v15943_v32  ;;  %v15980_v37 = vunpack.i.l.s16 %v15979_v57 }
 0xaf1   : > { %6985 = vrot.lane.b32.xlu0 %v6984_v41, %s8795_s29  ;;  %v8315_v1 = vunpack.i.l.s16 %v6673_v21  ;;  %v6573_v29 = vrot.slane %v8293_v48, 4  ;;  %v15982_v14 = vunpack.i.l.s16 %v15981_v63  ;;  %v6451_v49 = vpack.c.bf16 %v15983_v19, %v15983_v19  ;;  %v15996_v19 = vld [vmem:[#allocation186_spill] sm:$0xff]  ;;  %s325_s29 = scalar_lea.vmem [#allocation2], %s7650_s14 }
 0xaf2   : > { %v6570_v0 = vsel %vm1245_vm4, %v6569_v8, %v6568_v59  ;;  %v6699_v51 = vrot.slane %v15978_v2, 5  ;;  %v6696_v27 = vsel %vm1241_vm3, %v6695_v4, %v15980_v37  ;;  %v6911_v36 = vrot.slane %v15984_v58, 7  ;;  %v15991_v2 = vld [vmem:[#allocation73_spill] sm:$0xff]  ;;  %s7584_s22 = sshll.u32 %s325_s29, 4  ;;  %s7585_s22 = int_to_ptr.vmem [resolvable:$true] %s7584_s22 }
 0xaf3   : > { %v6701_v20 = vrot.slane %v15982_v14, 4  ;;  %v6572_v52 = vsel %vm1249_vm5, %v6571_v62, %v6570_v0  ;;  %v6698_v17 = vsel %vm1245_vm4, %v6697_v11, %v6696_v27  ;;  %v6703_v6 = vrot.slane %v8315_v1, 3  ;;  %v15990_v62 = vld [vmem:[#allocation35_spill] sm:$0xff] }
 0xaf4   : > { %v6575_v30 = vsel %vm6574_vm0, %v6573_v29, %v6572_v52  ;;  %v6700_v60 = vsel %vm1249_vm5, %v6699_v51, %v6698_v17  ;;  %v6887_v10 = vunpack.c.l.b16 %v6451_v49  ;;  %v15986_v9 = vunpack.i.l.s16 %v15985_v28  ;;  %v15992_v29 = vld [vmem:[#allocation33_spill] sm:$0xff] }
 0xaf5   : > { %v6702_v32 = vsel %vm6574_vm0, %v6701_v20, %v6700_v60  ;;  %v15988_v54 = vunpack.i.l.s16 %v15987_v7  ;;  %v15989_v4 = vunpack.i.l.s16 %v13194_v42  ;;  %v6487_v8 = vpack.c.bf16 %v13251_v26, %v13251_v26  ;;  %v15993_v20 = vld [vmem:[#allocation114_spill] sm:$0xff]  ;;  %v8629_v7 = vld [vmem:[%s13834_s5 + $0x50] sm:$0xff] }
 0xaf6   : > { %v13540_v13 = vsel %vm6577_vm12, %v6703_v6, %v6702_v32  ;;  %v8337_v3 = vunpack.i.l.s16 %v6887_v10  ;;  %v6912_v59 = vsel %vm1241_vm3, %v6911_v36, %v15986_v9  ;;  %v6470_v11 = vpack.c.bf16 %v15990_v62, %v15990_v62  ;;  %v16003_v62 = vld [vmem:[#allocation162_spill] sm:$0xff]  ;;  %7362 = vmatpush.bf16.msrb.mxu3 %v8629_v7 }
 0xaf7   : > { %v6915_v21 = vrot.slane %v15988_v54, 5  ;;  %v6917_v48 = vrot.slane %v15989_v4, 4  ;;  %v6471_v51 = vpack.c.bf16 %v15991_v2, %v15991_v2  ;;  %v6467_v57 = vpack.c.bf16 %v15992_v29, %v15992_v29  ;;  %v8628_v29 = vld [vmem:[%s13834_s5 + $0x48] sm:$0xff] }
 0xaf8   : > { %v6913_v41 = vrot.slane %v8337_v3, 6  ;;  %v6531_v42 = vunpack.c.l.b16 %v6487_v8  ;;  %v6992_v37 = vunpack.c.l.b16 %v6470_v11  ;;  %v15994_v26 = vunpack.i.l.s16 %v15993_v20 }
 0xaf9   : > { %v6527_v27 = vunpack.c.l.b16 %v6471_v51  ;;  %v6889_v63 = vunpack.c.l.b16 %v6467_v57  ;;  %v15995_v17 = vunpack.i.l.s16 %v15965_v16  ;;  %v15997_v49 = vunpack.i.l.s16 %v15996_v19  ;;  %v16005_v57 = vld [vmem:[#allocation88_spill] sm:$0xff] }
 0xafa   : > { %v6914_v25 = vsel %vm1245_vm4, %v6913_v41, %v6912_v59  ;;  %v8301_v14 = vunpack.i.l.s16 %v6531_v42  ;;  %v6585_v52 = vrot.slane %v15994_v26, 7  ;;  %v8350_v6 = vunpack.i.l.s16 %v6992_v37  ;;  %v15998_v41 = vld [vmem:[#allocation65_spill] sm:$0xff]  ;;  %7363 = vmatpush.bf16.msrb.mxu3 %v8628_v29 }
 0xafb   : > { %v6916_v1 = vsel %vm1249_vm5, %v6915_v21, %v6914_v25  ;;  %v6587_v60 = vrot.slane %v15995_v17, 6  ;;  %v8297_v32 = vunpack.i.l.s16 %v6527_v27  ;;  %v6576_v10 = vrot.slane %v15997_v49, 3  ;;  %v16000_v21 = vld [vmem:[#allocation84_spill] sm:$0xff] }
 0xafc   : > { %v6918_v0 = vsel %vm6574_vm0, %v6917_v48, %v6916_v1  ;;  %v8339_v3 = vunpack.i.l.s16 %v6889_v63  ;;  %v6591_v36 = vrot.slane %v8301_v14, 4  ;;  %v15999_v28 = vunpack.i.l.s16 %v15998_v41  ;;  %v16001_v48 = vld [vmem:[#allocation157_spill] sm:$0xff]  ;;  %v16006_v27 = vld [vmem:[#allocation76_spill] sm:$0xff] }
 0xafd   : > { %v6919_v59 = vrot.slane %v13230_v61, 3  ;;  %v6578_v54 = vsel %vm6577_vm12, %v6576_v10, %v6575_v30  ;;  %v6586_v16 = vsel %vm1241_vm3, %v6585_v52, %v8297_v32  ;;  %v6589_v4 = vrot.slane %v16000_v21, 5  ;;  %v16007_v17 = vld [vmem:[#allocation144_spill] sm:$0xff] }
 0xafe   : > { %v6579_v9 = vrot.slane %v15999_v28, 2  ;;  %v16002_v25 = vunpack.i.l.s16 %v16001_v48  ;;  %v6588_v1 = vsel %vm1245_vm4, %v6587_v60, %v6586_v16  ;;  %v16004_v11 = vunpack.i.l.s16 %v16003_v62  ;;  %v16011_v48 = vld [vmem:[#allocation127_spill] sm:$0xff] }
 0xaff   : > { %v7015_v51 = vrot.slane %v8350_v6, 1  ;;  %v6582_v30 = vrot.slane %v16005_v57, 1  ;;  %v6590_v42 = vsel %vm1249_vm5, %v6589_v4, %v6588_v1  ;;  %v6921_v37 = vrot.slane %v8339_v3, 2  ;;  %v16013_v1 = vld [vmem:[#allocation106_spill] sm:$0xff] }
 0xb00   : > { %v6593_v8 = vrot.slane %v16002_v25, 3  ;;  %v6595_v2 = vrot.slane %v16004_v11, 2  ;;  %v6474_v63 = vpack.c.bf16 %v16006_v27, %v16006_v27  ;;  %v6581_v14 = vsel %vm6580_vm13, %v6579_v9, %v6578_v54  ;;  %v16008_v9 = vld [vmem:[#allocation145_spill] sm:$0xff]  ;;  %v16010_v54 = vld [vmem:[#allocation154_spill] sm:$0xff] }
 0xb01   : > { %v6592_v20 = vsel %vm6574_vm0, %v6591_v36, %v6590_v42  ;;  %v6920_v26 = vsel %vm6577_vm12, %v6919_v59, %v6918_v0  ;;  %v6597_v60 = vrot.slane %v16007_v17, 1  ;;  %v6923_v32 = vrot.slane %v8340_v56, 1  ;;  %v8627_v0 = vld [vmem:[%s13834_s5 + $0x40] sm:$0xff]  ;;  %v16016_v42 = vld [vmem:[#allocation137_spill] sm:$0xff] }
 0xb02   : > { %v6594_v52 = vsel %vm6577_vm12, %v6593_v8, %v6592_v20  ;;  %v6922_v6 = vsel %vm6580_vm13, %v6921_v37, %v6920_v26  ;;  %v6584_v49 = vsel %vm6583_vm14, %v6582_v30, %v6581_v14  ;;  %v13609_v41 = vsel %vm6583_vm14, %v7015_v51, %v13512_v18  ;;  %7364 = vmatpush.bf16.msrb.mxu3 %v8627_v0  ;;  %v16015_v51 = vld [vmem:[#allocation136_spill] sm:$0xff]  ;;  %v16017_v20 = vld [vmem:[#allocation138_spill] sm:$0xff] }
 0xb03   : > { %v6596_v19 = vsel %vm6580_vm13, %v6595_v2, %v6594_v52  ;;  %v13605_v3 = vsel %vm6583_vm14, %v6923_v32, %v6922_v6  ;;  %v6675_v53 = vunpack.c.l.b16 %v6474_v63  ;;  %v16009_v59 = vunpack.i.l.s16 %v16008_v9 }
 0xb04   : > { %v6598_v10 = vsel %vm6583_vm14, %v6597_v60, %v6596_v19  ;;  %v6490_v16 = vpack.c.bf16 %v16010_v54, %v16010_v54  ;;  %v6711_v4 = vrot.slane %v13135_v38, 6  ;;  %v16012_v25 = vunpack.i.l.s16 %v16011_v48  ;;  %v16019_v48 = vld [vmem:[#allocation135_spill] sm:$0xff] }
 0xb05   : > { %v6599_v36 = vpack.c.b16 %v6598_v10, %v6584_v49  ;;  %v8317_v56 = vunpack.i.l.s16 %v6675_v53  ;;  %v6715_v7 = vrot.slane %v16009_v59, 4  ;;  %v16014_v62 = vunpack.i.l.s16 %v16013_v1 }
 0xb06   : > { %v6713_v8 = vrot.slane %v16012_v25, 5  ;;  %v6677_v11 = vunpack.c.l.b16 %v6490_v16  ;;  %v6705_v29 = vrot.slane %v16015_v51, 2  ;;  %v6483_v37 = vpack.c.bf16 %v16016_v42, %v16016_v42 }
 0xb07   : > { %v6709_v28 = vrot.slane %v8317_v56, 7  ;;  %v6719_v14 = vrot.slane %v13349_v50, 2  ;;  %v16018_v26 = vunpack.i.l.s16 %v16017_v20  ;;  %v6721_v6 = vrot.slane %v8320_v12, 1 }
 0xb08   : > { %v8319_v27 = vunpack.i.l.s16 %v6677_v11  ;;  %v6706_v32 = vsel %vm6580_vm13, %v6705_v29, %v13540_v13  ;;  %v6891_v19 = vunpack.c.l.b16 %v6483_v37  ;;  %v6499_v13 = vpack.c.bf16 %v13443_v24, %v13443_v24  ;;  %v8641_v24 = vld [vmem:[%s13834_s5 + $0xb0] sm:$0xff] }
 0xb09   : > { %v6710_v18 = vsel %vm1241_vm3, %v6709_v28, %v16014_v62  ;;  %v6707_v52 = vrot.slane %v16018_v26, 1  ;;  %v6925_v59 = vrot.slane %v13185_v31, 7  ;;  %v6931_v54 = vrot.slane %v8327_v46, 4 }
 0xb0a   : > { %v6712_v2 = vsel %vm1245_vm4, %v6711_v4, %v6710_v18  ;;  %v6717_v60 = vrot.slane %v8319_v27, 3  ;;  %v8341_v28 = vunpack.i.l.s16 %v6891_v19  ;;  %v6893_v4 = vunpack.c.l.b16 %v6499_v13  ;;  %v8640_v18 = vld [vmem:[%s13834_s5 + $0xa8] sm:$0xff] }
 0xb0b   : > { %v6714_v30 = vsel %vm1249_vm5, %v6713_v8, %v6712_v2  ;;  %v6708_v0 = vsel %vm6583_vm14, %v6707_v52, %v6706_v32  ;;  %v16020_v25 = vunpack.i.l.s16 %v16019_v48  ;;  %v6933_v22 = vrot.slane %v13414_v55, 3 }
 0xb0c   : > { %v6716_v63 = vsel %vm6574_vm0, %v6715_v7, %v6714_v30  ;;  %v6927_v9 = vrot.slane %v8341_v28, 6  ;;  %v6929_v7 = vrot.slane %v8342_v45, 5  ;;  %v8343_v45 = vunpack.i.l.s16 %v6893_v4  ;;  %v8648_v4 = vld [vmem:[%s13834_s5 + $0xe8] sm:$0xff] }
 0xb0d   : > { %v6718_v49 = vsel %vm6577_vm12, %v6717_v60, %v6716_v63  ;;  %v6926_v8 = vsel %vm1241_vm3, %v6925_v59, %v16020_v25  ;;  %v6817_v42 = vrot.slane %v13135_v38, 7  ;;  %v6819_v37 = vrot.slane %v13185_v31, 6  ;;  %v8638_v63 = vld [vmem:[%s13834_s5 + $0x98] sm:$0xff]  ;;  %v8647_v25 = vld [vmem:[%s13834_s5 + $0xe0] sm:$0xff] }
 0xb0e   : > { %v6720_v10 = vsel %vm6580_vm13, %v6719_v14, %v6718_v49  ;;  %v6928_v1 = vsel %vm1245_vm4, %v6927_v9, %v6926_v8  ;;  %v6935_v62 = vrot.slane %v8343_v45, 2  ;;  %v6821_v26 = vrot.slane %v13189_v39, 5  ;;  %v8644_v45 = vld [vmem:[%s13834_s5 + $0xc8] sm:$0xff] }
 0xb0f   : > { %v6722_v53 = vsel %vm6583_vm14, %v6721_v6, %v6720_v10  ;;  %v6930_v43 = vsel %vm1249_vm5, %v6929_v7, %v6928_v1  ;;  %v6818_v20 = vsel %vm1241_vm3, %v6817_v42, %v16000_v21  ;;  %v6805_v38 = vrot.slane %v15984_v58, 6  ;;  %v16021_v21 = vld [vmem:[#allocation164_spill] sm:$0xff]  ;;  %v8646_v1 = vld [vmem:[%s13834_s5 + $0xd8] sm:$0xff] }
 0xb10   : > { %v6723_v56 = vpack.c.b16 %v6722_v53, %v6708_v0  ;;  %v6932_v46 = vsel %vm6574_vm0, %v6931_v54, %v6930_v43  ;;  %v6820_v31 = vsel %vm1245_vm4, %v6819_v37, %v6818_v20  ;;  %v6823_v52 = vrot.slane %v16007_v17, 4  ;;  %v8636_v53 = vld [vmem:[%s13834_s5 + $0x88] sm:$0xff]  ;;  %v8661_v37 = vld [vmem:[%s13836_s7 + $0x30] sm:$0xff] }
 0xb11   : > { %v6934_v11 = vsel %vm6577_vm12, %v6933_v22, %v6932_v46  ;;  %v6809_v6 = vrot.slane %v16005_v57, 4  ;;  %v6807_v39 = vrot.slane %v16021_v21, 5  ;;  %v6822_v32 = vsel %vm1249_vm5, %v6821_v26, %v6820_v31  ;;  %v8645_v22 = vld [vmem:[%s13834_s5 + $0xd0] sm:$0xff]  ;;  %v8659_v26 = vld [vmem:[%s13836_s7 + $0x20] sm:$0xff] }
 0xb12   : > { %v6936_v2 = vsel %vm6580_vm13, %v6935_v62, %v6934_v11  ;;  %v6825_v58 = vrot.slane %v13349_v50, 3  ;;  %v6824_v19 = vsel %vm6574_vm0, %v6823_v52, %v6822_v32  ;;  %v6827_v17 = vrot.slane %v13414_v55, 2  ;;  %v8653_v46 = vld [vmem:[%s13834_s5 + $0x110] sm:$0xff]  ;;  %v8652_v62 = vld [vmem:[%s13834_s5 + $0x108] sm:$0xff] }
 0xb13   : > { %v6811_v10 = vrot.slane %v16015_v51, 3  ;;  %v6813_v0 = vrot.slane %v13230_v61, 2  ;;  %v6829_v50 = vrot.slane %v13410_v47, 1  ;;  %v6502_v55 = vpack.c.bf16 %v13454_v44, %v13454_v44  ;;  %v8650_v47 = vld [vmem:[%s13834_s5 + $0xf8] sm:$0xff] }
 0xb14   : > { %v6815_v9 = vrot.slane %v15953_v15, 1  ;;  %v8649_v15 = vld [vmem:[%s13834_s5 + $0xf0] sm:$0xff] }
 0xb15   : > { %v6994_v44 = vunpack.c.l.b16 %v6502_v55 }
 0xb17   : > { %v8352_v54 = vunpack.i.l.s16 %v6994_v44 }
 0xb19   : > { %v7029_v48 = vrot.slane %v8352_v54, 1 }
 0xb1b   : > { %v7030_v8 = vsel %vm6583_vm14, %v7029_v48, %v13516_v35  ;;  %v8643_v35 = vld [vmem:[%s13834_s5 + $0xc0] sm:$0xff] }
 0xb3c   : > { %v6878_v59 = vpop.permute.xlu2 %6877 }
 0xb41   : > { %v6662_v12 = vpop.permute.xlu0 %6661 }
 0xb42   : > { %v7034_v16 = vsel %vm4966_vm10, %v6599_v36, %v6662_v12  ;;  %v6937_v36 = vrot.slane %v8344_v40, 1  ;;  %v6803_v40 = vrot.slane %v13004_v34, 7 }
 0xb43   : > { %7351 = vmatmul.bf16.vlgmr.msra.gmra.mxu3 %v7034_v16 }
 0xb44   : > { %7371 = vmatpush.bf16.msra.mxu3 %v8642_v5  ;;  %v13667_v29 = vsel %vm6583_vm14, %v6937_v36, %v6936_v2  ;;  %v6804_v14 = vsel %vm1241_vm3, %v6803_v40, %v15977_v23  ;;  %v8637_v23 = vld [vmem:[%s13834_s5 + $0x90] sm:$0xff]  ;;  %v8635_v5 = vld [vmem:[%s13834_s5 + $0x80] sm:$0xff] }
 0xb45   : > { %v6939_v30 = vpack.c.b16 %v13667_v29, %v13605_v3  ;;  %v6806_v60 = vsel %vm1245_vm4, %v6805_v38, %v6804_v14  ;;  %v8662_v29 = vld [vmem:[%s13836_s7 + $0x38] sm:$0xff] }
 0xb46   : > { %v6808_v49 = vsel %vm1249_vm5, %v6807_v39, %v6806_v60  ;;  %7557 = vmatpush.bf16.msra.mxu1 %v8662_v29  ;;  %v8658_v38 = vld [vmem:[%s13836_s7 + $0x18] sm:$0xff]  ;;  %v8657_v60 = vld [vmem:[%s13836_s7 + $0x10] sm:$0xff] }
 0xb47   : > { %v6810_v57 = vsel %vm6574_vm0, %v6809_v6, %v6808_v49 }
 0xb48   : > { %7372 = vmatpush.bf16.msra.mxu3 %v8641_v24  ;;  %v6812_v51 = vsel %vm6577_vm12, %v6811_v10, %v6810_v57  ;;  %v7031_v24 = vpack.c.b16 %v7030_v8, %v13609_v41  ;;  %v8654_v41 = vld [vmem:[%s13834_s5 + $0x118] sm:$0xff] }
 0xb49   : > { %v6814_v61 = vsel %vm6580_vm13, %v6813_v0, %v6812_v51 }
 0xb4a   : > { %v6816_v13 = vsel %vm6583_vm14, %v6815_v9, %v6814_v61  ;;  %7558 = vmatpush.bf16.msra.mxu1 %v8661_v37  ;;  %v8726_v37 = vld [vmem:[%s13837_s8] ss:$0 sm:$0xff] }
 0xb4c   : > { %7373 = vmatpush.bf16.msra.mxu3 %v8640_v18  ;;  %v8651_v18 = vld [vmem:[%s13834_s5 + $0x100] sm:$0xff] }
 0xb50   : > { %7374 = vmatpush.bf16.msra.mxu3 %v8639_v33  ;;  %v6786_v27 = vpop.permute.xlu1 %6785 }
 0xb51   : > { %v7038_v34 = vsel %vm4966_vm10, %v6723_v56, %v6786_v27  ;;  %v6826_v56 = vsel %vm6577_vm12, %v6825_v58, %v6824_v19  ;;  %v8660_v27 = vld [vmem:[%s13836_s7 + $0x28] sm:$0xff] }
 0xb52   : > { %v6828_v28 = vsel %vm6580_vm13, %v6827_v17, %v6826_v56  ;;  %7559 = vmatpush.bf16.msra.mxu1 %v8660_v27  ;;  %v8656_v58 = vld [vmem:[%s13836_s7 + $0x8] sm:$0xff]  ;;  %v8655_v56 = vld [vmem:[%s13836_s7] sm:$0xff] }
 0xb53   : > { %7365 = vmatmul.bf16.vlgmr.msrb.gmra.mxu3 %v7038_v34  ;;  %v6830_v12 = vsel %vm6583_vm14, %v6829_v50, %v6828_v28 }
 0xb54   : > { %7375 = vmatpush.bf16.msra.mxu3 %v8638_v63  ;;  %v6831_v7 = vpack.c.b16 %v6830_v12, %v6816_v13  ;;  %v8725_v63 = vld [vmem:[%s13835_s6] ss:$0 sm:$0xff] }
 0xb56   : > { %v7042_v16 = vsel %vm4966_vm10, %v6831_v7, %v6878_v59  ;;  %7560 = vmatpush.bf16.msra.mxu1 %v8659_v26 }
 0xb58   : > { %7376 = vmatpush.bf16.msra.mxu3 %v8637_v23 }
 0xb5a   : > { %7561 = vmatpush.bf16.msra.mxu1 %v8658_v38 }
 0xb5c   : > { %7377 = vmatpush.bf16.msra.mxu3 %v8636_v53 }
 0xb5e   : > { %7562 = vmatpush.bf16.msra.mxu1 %v8657_v60 }
 0xb60   : > { %7378 = vmatpush.bf16.msra.mxu3 %v8635_v5 }
 0xb62   : > { %7563 = vmatpush.bf16.msra.mxu1 %v8656_v58 }
 0xb63   : > { %7379 = vmatmul.bf16.vlgmr.msra.gmra.mxu3 %v7042_v16  ;;  %v6986_v43 = vpop.permute.xlu0 %6985 }
 0xb64   : > { %7385 = vmatpush.bf16.msrb.mxu3 %v8650_v47  ;;  %v7046_v36 = vsel %vm4966_vm10, %v6939_v30, %v6986_v43 }
 0xb66   : > { %7564 = vmatpush.bf16.msra.mxu1 %v8655_v56 }
 0xb68   : > { %7386 = vmatpush.bf16.msrb.mxu3 %v8649_v15 }
 0xb6c   : > { %7387 = vmatpush.bf16.msrb.mxu3 %v8648_v4 }
 0xb70   : > { %7388 = vmatpush.bf16.msrb.mxu3 %v8647_v25 }
 0xb74   : > { %7389 = vmatpush.bf16.msrb.mxu3 %v8646_v1 }
 0xb78   : > { %7390 = vmatpush.bf16.msrb.mxu3 %v8645_v22 }
 0xb7c   : > { %7391 = vmatpush.bf16.msrb.mxu3 %v8644_v45 }
 0xb80   : > { %7392 = vmatpush.bf16.msrb.mxu3 %v8643_v35 }
 0xb83   : > { %7393 = vmatmul.bf16.vlgmr.msrb.gmra.mxu3 %v7046_v36 }
 0xb84   : > { %7403 = vmatpush.bf16.msra.mxu3 %v8654_v41 }
 0xb88   : > { %7404 = vmatpush.bf16.msra.mxu3 %v8653_v46 }
 0xb8c   : > { %7405 = vmatpush.bf16.msra.mxu3 %v8652_v62 }
 0xb90   : > { %7406 = vmatpush.bf16.msra.mxu3 %v8651_v18 }
 0xb93   : > { %8497 = vmatmul.msk.bf16.vlgmr.msra.gmra.mxu3 %vm4966_vm10, %v7031_v24 }
 0xbc6   : > { %v7352_v11 = vpop.f32.mrf.mxu3 }
 0xbc7   : > { %v7353_v20 = vadd.f32 %v8725_v63, %v7352_v11 }
 0xbce   : > { %v7354_v2 = vpop.f32.mrf.mxu3 }
 0xbcf   : > { %v7355_v23 = vadd.f32 %v8725_v63, %v7354_v2 }
 0xbd6   : > { %v7366_v33 = vpop.f32.mrf.mxu3 }
 0xbd7   : > { %v7367_v34 = vadd.f32 %v7366_v33, %v7353_v20 }
 0xbde   : > { %v7368_v3 = vpop.f32.mrf.mxu3 }
 0xbdf   : > { %v7369_v39 = vadd.f32 %v7368_v3, %v7355_v23 }
 0xbe6   : > { %v7380_v30 = vpop.f32.mrf.mxu3 }
 0xbe7   : > { %v7381_v31 = vadd.f32 %v7380_v30, %v7367_v34 }
 0xbee   : > { %v7382_v40 = vpop.f32.mrf.mxu3 }
 0xbef   : > { %v7383_v19 = vadd.f32 %v7382_v40, %v7369_v39 }
 0xc06   : > { %v7394_v42 = vpop.f32.mrf.mxu3 }
 0xc07   : > { %v7395_v52 = vadd.f32 %v7394_v42, %v7381_v31 }
 0xc0e   : > { %v7396_v14 = vpop.f32.mrf.mxu3 }
 0xc0f   : > { %v7397_v57 = vadd.f32 %v7396_v14, %v7383_v19 }
 0xc16   : > { %v7408_v6 = vpop.f32.mrf.mxu3 }
 0xc17   : > { %v7409_v21 = vadd.f32 %v7408_v6, %v7395_v52 }
 0xc19   : > { %v7413_v32 = vmax.f32 %v7409_v21, 0.0 }
 0xc1b   : > { %v7417_v17 = vrot.slane %v7413_v32, 2  ;;  %v7418_v49 = vrot.slane %v7413_v32, 4  ;;  %v7419_v10 = vrot.slane %v7413_v32, 6  ;;  %v8498_v61 = vrot.slane %v7413_v32, 9 }
 0xc1d   : > { %v8500_v0 = vrot.slane %v7418_v49, 9  ;;  %v8501_v53 = vrot.slane %v7419_v10, 9  ;;  %v8499_v50 = vrot.slane %v7417_v17, 9  ;;  %v7435_v59 = vmax.f32 %v7413_v32, %v8498_v61 }
 0xc1e   : > { %v7410_v55 = vpop.f32.mrf.mxu3 }
 0xc1f   : > { %v7444_v28 = vmax.f32 %v7418_v49, %v8500_v0  ;;  %v7445_v51 = vmax.f32 %v7419_v10, %v8501_v53  ;;  %v7411_v9 = vadd.f32 %v7410_v55, %v7397_v57  ;;  %v7436_v47 = vmax.f32 %v7417_v17, %v8499_v50 }
 0xc21   : > { %v7446_v5 = vmax.f32 %v7444_v28, %v7445_v51  ;;  %v7414_v12 = vmax.f32 %v7411_v9, 0.0  ;;  %v7437_v48 = vmax.f32 %v7435_v59, %v7436_v47 }
 0xc23   : > { %v7420_v44 = vrot.slane %v7414_v12, 2  ;;  %v7421_v13 = vrot.slane %v7414_v12, 4  ;;  %v7470_v7 = vpack.c.bf16 %v7446_v5, %v7446_v5  ;;  %v7422_v15 = vrot.slane %v7414_v12, 6 }
 0xc24   : > { %v8502_v54 = vrot.slane %v7414_v12, 9  ;;  %v7469_v41 = vpack.c.bf16 %v7437_v48, %v7437_v48 }
 0xc25   : > { %v8503_v16 = vrot.slane %v7420_v44, 9  ;;  %v8504_v4 = vrot.slane %v7421_v13, 9  ;;  %v8505_v25 = vrot.slane %v7422_v15, 9  ;;  %v7498_v22 = vunpack.c.l.b16 %v7470_v7 }
 0xc26   : > { %v7453_v8 = vmax.f32 %v7414_v12, %v8502_v54  ;;  %v7497_v11 = vunpack.c.l.b16 %v7469_v41 }
 0xc27   : > { %v7454_v24 = vmax.f32 %v7420_v44, %v8503_v16  ;;  %v7462_v1 = vmax.f32 %v7421_v13, %v8504_v4  ;;  %v7463_v45 = vmax.f32 %v7422_v15, %v8505_v25  ;;  %v7501_v36 = vrot.slane %v7498_v22, 7 }
 0xc29   : > { %v7455_v35 = vmax.f32 %v7453_v8, %v7454_v24  ;;  %v7464_v43 = vmax.f32 %v7462_v1, %v7463_v45  ;;  %v7502_v3 = vsel %vm1241_vm3, %v7501_v36, %v7497_v11 }
 0xc2b   : > { %v7471_v46 = vpack.c.bf16 %v7455_v35, %v7455_v35  ;;  %v7472_v62 = vpack.c.bf16 %v7464_v43, %v7464_v43 }
 0xc2d   : > { %v7499_v18 = vunpack.c.l.b16 %v7471_v46  ;;  %v7500_v2 = vunpack.c.l.b16 %v7472_v62 }
 0xc2f   : > { %v7503_v33 = vrot.slane %v7499_v18, 6  ;;  %v7505_v29 = vrot.slane %v7500_v2, 5 }
 0xc31   : > { %v7504_v30 = vsel %vm1245_vm4, %v7503_v33, %v7502_v3 }
 0xc32   : > { %v7506_v40 = vsel %vm1249_vm5, %v7505_v29, %v7504_v30 }
 0xc33   : > { %v7507_v42 = vpack.c.b16 %v7506_v40, %v7506_v40 }
 0xc35   : > { %7565 = vmatmul.bf16.vlgmr.msra.gmra.mxu1 %v7507_v42 }
 0xcb2   : > { %v7566_v27 = vpop.f32.mrf.mxu1 }
 0xcb3   : > { %v7567_v63 = vadd.f32 %v8726_v37, %v7566_v27 }
 0xcb5   : > { %7570 = vst [vmem:[%s325_s29] sm:$0xf] %v7567_v63 }
 0xcb6   : > { %8756 = shalt.err (!%p8753_p3)
}
 0xcb7   : > { %8680 = dma.vmem_to_hbm [thread:$0]  (%p8885_p5), %s7585_s22, 64, %s7587_s23, %s7572_s24  }
 0xcba   : > { %v7568_v14 = vpop.f32.mrf.mxu1 }
 0xcbb PF: > { %p8686_p4 = scmp.ge.s32.totalorder %s8791_s12, 2  ;;  %s7598_s25 = sand.u32 1, %s8779_s30  }
 0xcbc   : > { %s7599_s28 = scalar_lea.sflag [#allocation3], %s7598_s25 }
 0xcbd   : > { %p8683_p7 = pnand %p8686_p4, %p8889_p6 }
 0xcbf   : > { %p8684_p8 = pneg %p8683_p7 }
 0xcc1   : > { %8774 = dma.done.wait (%p8684_p8), %s7599_s28, 64  }
 0xcc2   : > { %8776 = vsyncadd (%p8684_p8), %s7599_s28, 4294967232  ;;  %p19_p9 = scmp.ge.s32.totalorder %s8872_s15, 4   ;;  %s16022_s30 = smov %s8783_s10 }
 0xcc3   : > { %s16023_s10 = smov %s8787_s11  ;;  %s16024_s11 = smov %s8883_s18 }
 0xcc4   : > { %s16025_s12 = smov %s8872_s15  ;;  %21 = sbr.rel (!%p19_p9) target bundleno = 5 (0x5), region = 154 }
 0xcc9   :  { %7605 = vsyncpa [#allocation3], 1 }
 0xcca   :  { %7607 = vsyncpa [#allocation3 + $0x1], 1 }

</bundles_post_ra>
